<compile_context>
chip_gen: v6e
topology: v6e:2x2x1
jax: 0.10.0
libtpu: 0.0.40
codegen_flags: <defaults>
</compile_context>

<pallas_src>
import functools

import jax
import jax.numpy as jnp
import numpy as np
from jax.experimental import pallas as pl
from jax.experimental.pallas import tpu as pltpu

EPS = 1e-5  # torch.nn.BatchNorm2d default eps

_COMPILER_PARAMS = pltpu.CompilerParams(
    dimension_semantics=("parallel",),   # independent tiles -> shard across v7x's 2 TCs
    vmem_limit_bytes=48 * 1024 * 1024,   # explicit budget with headroom under v7x's 64 MiB
)


# ------------------------------ tiling helpers ------------------------------ #
def _pick_band(rows, w, wp, target=512):
    """Image-rows per grid step: divides `rows`, keeps blocks (8,128)-legal,
    aims for a few hundred matmul rows per tile and >= 2 grid steps."""
    cands = [
        tb for tb in range(1, rows + 1)
        if rows % tb == 0
        and (tb * wp) % 8 == 0
        and (tb * w) % 8 == 0
        and tb * w <= target
    ]
    multi = [tb for tb in cands if rows // tb >= 2]
    if multi:
        return max(multi)
    if cands:
        return max(cands)
    return rows  # block == full extent is always legal


def _pick_rows(m, target=1024):
    cands = [t for t in range(1, m + 1)
             if m % t == 0 and (t % 8 == 0 or t == m) and t <= target]
    return max(cands) if cands else m


# ------------------------------ Pallas kernels ------------------------------ #
def _make_conv_kernel(tb, w, wp, cin, *, stats, relu, add_res):
    """3x3-conv tile kernel: builds the im2col tile in VMEM from the 3 dy-shifted
    row bands, then runs ONE K=9*Cin bf16 matmul on the MXU (f32 accumulate)."""

    def body(xs_ref, w_ref, *rest):
        if stats:
            y_ref, s_ref, ss_ref, a_ref = rest
        elif add_res:
            res_ref, y_ref, a_ref = rest
        else:
            y_ref, a_ref = rest

        # im2col in VMEM (never materialized in HBM):
        #   A[t*W + x, k*Cin + c] = tap k = (dy, dx) of output pixel (t, x)
        for dy in range(3):
            for dx in range(3):
                k = dy * 3 + dx
                for t in range(tb):
                    a_ref[t * w:(t + 1) * w, k * cin:(k + 1) * cin] = (
                        xs_ref[dy, t * wp + dx: t * wp + dx + w, :]
                    )

        # single K-folded MXU matmul (bf16 operands, f32 accumulation)
        acc = jnp.dot(a_ref[...], w_ref[...], preferred_element_type=jnp.float32)

        if stats:
            # pass 1 of two-pass BN: raw conv output + per-tile partial statistics
            y_ref[...] = acc
            s = jnp.sum(acc, axis=0, keepdims=True)
            ss = jnp.sum(acc * acc, axis=0, keepdims=True)
            s_ref[...] = jnp.broadcast_to(s, s_ref.shape)
            ss_ref[...] = jnp.broadcast_to(ss, ss_ref.shape)
        else:
            if add_res:
                acc = acc + res_ref[...]     # f32 elementwise (v5e-safe)
            if relu:
                acc = jnp.maximum(acc, 0.0)
            y_ref[...] = acc

    return body


def _make_affine_kernel(*, relu, add_res):
    """Pass 2 of BN: out = act(y * scale + shift [+ residual]); pure f32 elementwise."""

    def body(y_ref, sc_ref, sh_ref, *rest):
        if add_res:
            res_ref, o_ref = rest
        else:
            (o_ref,) = rest
        v = y_ref[...] * sc_ref[...] + sh_ref[...]
        if add_res:
            v = v + res_ref[...]
        if relu:
            v = jnp.maximum(v, 0.0)
        o_ref[...] = v

    return body


# ------------------------------- call wrappers ------------------------------ #
def _conv_pass(x_nhwc, w_hwio, *, stats, relu, add_res, res_flat=None):
    """Tiled 3x3 conv. Returns (y_flat, s, ss) if stats else y_flat (shape (M, Cout))."""
    assert not (stats and add_res)
    n, h, w, cin = x_nhwc.shape
    cout = w_hwio.shape[-1]
    wp = w + 2
    rows = n * h
    m = rows * w
    tb = _pick_band(rows, w, wp)
    ntiles = rows // tb

    # dy-shifted, W-padded bf16 copies (3x bf16 HBM traffic instead of 9x f32 im2col).
    xp = jnp.pad(x_nhwc.astype(jnp.bfloat16), ((0, 0), (1, 1), (1, 1), (0, 0)))
    xs = jnp.stack(
        [xp[:, dy:dy + h].reshape(rows * wp, cin) for dy in range(3)], axis=0)
    w2 = w_hwio.reshape(9 * cin, cout).astype(jnp.bfloat16)

    in_specs = [
        pl.BlockSpec((3, tb * wp, cin), lambda i: (0, i, 0)),
        pl.BlockSpec((9 * cin, cout), lambda i: (0, 0)),
    ]
    args = [xs, w2]
    if add_res:
        in_specs.append(pl.BlockSpec((tb * w, cout), lambda i: (i, 0)))
        args.append(res_flat)

    if stats:
        out_shape = (
            jax.ShapeDtypeStruct((m, cout), jnp.float32),
            jax.ShapeDtypeStruct((ntiles, 8, cout), jnp.float32),
            jax.ShapeDtypeStruct((ntiles, 8, cout), jnp.float32),
        )
        out_specs = (
            pl.BlockSpec((tb * w, cout), lambda i: (i, 0)),
            pl.BlockSpec((1, 8, cout), lambda i: (i, 0, 0)),
            pl.BlockSpec((1, 8, cout), lambda i: (i, 0, 0)),
        )
    else:
        out_shape = jax.ShapeDtypeStruct((m, cout), jnp.float32)
        out_specs = pl.BlockSpec((tb * w, cout), lambda i: (i, 0))

    return pl.pallas_call(
        _make_conv_kernel(tb, w, wp, cin, stats=stats, relu=relu, add_res=add_res),
        out_shape=out_shape,
        grid=(ntiles,),
        in_specs=in_specs,
        out_specs=out_specs,
        scratch_shapes=[pltpu.VMEM((tb * w, 9 * cin), jnp.bfloat16)],
        compiler_params=_COMPILER_PARAMS,
    )(*args)


def _bn_affine(y_flat, scale, shift, *, relu, res_flat=None):
    """Tiled out = act(y*scale + shift [+ res]); repacked lane-dense when possible."""
    m, cout = y_flat.shape
    add_res = res_flat is not None

    g = 128 // cout if 128 % cout == 0 else 1
    if g > 1 and m % g == 0:     # present a lane-dense (..., 128) output slab
        mp, cp = m // g, cout * g
        y2 = y_flat.reshape(mp, cp)
        res2 = res_flat.reshape(mp, cp) if add_res else None
        sc2 = jnp.tile(scale, (1, g))
        sh2 = jnp.tile(shift, (1, g))
    else:
        mp, cp, y2, res2, sc2, sh2 = m, cout, y_flat, res_flat, scale, shift

    tp = _pick_rows(mp)
    in_specs = [
        pl.BlockSpec((tp, cp), lambda i: (i, 0)),
        pl.BlockSpec((1, cp), lambda i: (0, 0)),
        pl.BlockSpec((1, cp), lambda i: (0, 0)),
    ]
    args = [y2, sc2, sh2]
    if add_res:
        in_specs.append(pl.BlockSpec((tp, cp), lambda i: (i, 0)))
        args.append(res2)

    out = pl.pallas_call(
        _make_affine_kernel(relu=relu, add_res=add_res),
        out_shape=jax.ShapeDtypeStruct((mp, cp), jnp.float32),
        grid=(mp // tp,),
        in_specs=in_specs,
        out_specs=pl.BlockSpec((tp, cp), lambda i: (i, 0)),
        compiler_params=_COMPILER_PARAMS,
    )(*args)
    return out.reshape(m, cout)


def _conv_bn_act(x_nhwc, w_hwio, gamma, beta, *, batch_norm, relu, res_nhwc=None):
    """conv3x3 -> [train-mode BN] -> [+residual] -> [ReLU]   (NHWC in / NHWC out)."""
    n, h, w, cin = x_nhwc.shape
    cout = w_hwio.shape[-1]
    m = n * h * w
    res_flat = (res_nhwc.reshape(m, cout).astype(jnp.float32)
                if res_nhwc is not None else None)

    if batch_norm:
        # pass 1: conv + per-tile partial sums
        y, s, ss = _conv_pass(x_nhwc, w_hwio, stats=True, relu=False, add_res=False)
        tot = jnp.sum(s[:, 0, :], axis=0)
        tot2 = jnp.sum(ss[:, 0, :], axis=0)
        mean = tot / m
        var = jnp.maximum(tot2 / m - mean * mean, 0.0)   # biased batch variance
        scale = gamma.reshape(1, cout) * jax.lax.rsqrt(var + EPS).reshape(1, cout)
        shift = beta.reshape(1, cout) - mean.reshape(1, cout) * scale
        # pass 2: fused affine + residual + ReLU
        out = _bn_affine(y, scale, shift, relu=relu, res_flat=res_flat)
    else:
        out = _conv_pass(x_nhwc, w_hwio, stats=False, relu=relu,
                         add_res=res_flat is not None, res_flat=res_flat)
    return out.reshape(n, h, w, cout)


@functools.partial(jax.jit, static_argnames=("batch_norm", "residual"))
def block_series_forward(x_nchw, params, *, batch_norm, residual):
    """Equivalent of BlockSeries.forward (NCHW in, NCHW out, train-mode BN math)."""
    x = jnp.transpose(x_nchw, (0, 2, 3, 1)).astype(jnp.float32)  # -> NHWC
    for p in params:
        if residual:
            res = x
            y1 = _conv_bn_act(x, p["w1"], p["g1"], p["b1"],
                              batch_norm=batch_norm, relu=False)
            x = _conv_bn_act(y1, p["w2"], p["g2"], p["b2"],
                             batch_norm=batch_norm, relu=True, res_nhwc=res)
        else:
            x = _conv_bn_act(x, p["w1"], p["g1"], p["b1"],
                             batch_norm=batch_norm, relu=True)
    return jnp.transpose(x, (0, 3, 1, 2))  # -> NCHW


def init_params(key, inplanes, n_blocks, residual):
    """Deterministic synthetic init; conv weights stored in HWIO (3,3,Cin,Cout)."""
    params = []
    bound = 1.0 / float(np.sqrt(inplanes * 9))  # ~ torch kaiming-uniform bound
    for _ in range(n_blocks):
        key, k1, k2, k3, k4, k5, k6 = jax.random.split(key, 7)
        p = {
            "w1": jax.random.uniform(
                k1, (3, 3, inplanes, inplanes), jnp.float32, -bound, bound),
            "g1": 1.0 + 0.1 * jax.random.normal(k2, (inplanes,), jnp.float32),
            "b1": 0.1 * jax.random.normal(k3, (inplanes,), jnp.float32),
        }
        if residual:
            p["w2"] = jax.random.uniform(
                k4, (3, 3, inplanes, inplanes), jnp.float32, -bound, bound)
            p["g2"] = 1.0 + 0.1 * jax.random.normal(k5, (inplanes,), jnp.float32)
            p["b2"] = 0.1 * jax.random.normal(k6, (inplanes,), jnp.float32)
        params.append(p)
    return params


# ----------------------------- pure-JAX reference --------------------------- #
def ref_forward(x_nchw, params, *, batch_norm, residual):
    x = jnp.transpose(x_nchw, (0, 2, 3, 1)).astype(jnp.float32)

    def conv(x, w_hwio):
        return jax.lax.conv_general_dilated(
            x, w_hwio, (1, 1), "SAME",
            dimension_numbers=("NHWC", "HWIO", "NHWC"))

    def bn(y, g, b):
        mean = jnp.mean(y, axis=(0, 1, 2), keepdims=True)
        var = jnp.mean((y - mean) ** 2, axis=(0, 1, 2), keepdims=True)
        return (y - mean) * jax.lax.rsqrt(var + EPS) * g.reshape(1, 1, 1, -1) \
            + b.reshape(1, 1, 1, -1)

    for p in params:
        if residual:
            y = conv(x, p["w1"])
            if batch_norm:
                y = bn(y, p["g1"], p["b1"])
            y = conv(y, p["w2"])
            if batch_norm:
                y = bn(y, p["g2"], p["b2"])
            x = jnp.maximum(y + x, 0.0)
        else:
            y = conv(x, p["w1"])
            if batch_norm:
                y = bn(y, p["g1"], p["b1"])
            x = jnp.maximum(y, 0.0)
    return jnp.transpose(x, (0, 3, 1, 2))


# ------------------------------------ main ----------------------------------- #
if __name__ == "__main__":
    key = jax.random.PRNGKey(0)
    kx, kp_a, kp_b, kp_c = jax.random.split(key, 4)

    N, C, H, W = 2, 8, 16, 16  # NCHW, matching the PyTorch module's convention
    n_blocks = 2
    x = jax.random.normal(kx, (N, C, H, W), jnp.float32)

    configs = [
        (kp_a, dict(batch_norm=True, residual=True)),
        (kp_b, dict(batch_norm=True, residual=False)),
        (kp_c, dict(batch_norm=False, residual=True)),
    ]
    for kp, cfg in configs:
        params = init_params(kp, C, n_blocks, residual=cfg["residual"])
        out = jax.block_until_ready(block_series_forward(x, params, **cfg))
        ref = ref_forward(x, params, **cfg)
        np.testing.assert_allclose(
            np.asarray(out), np.asarray(ref), rtol=5e-2, atol=5e-2)

    print("KERNEL_OK")
</pallas_src>

<mosaic_0001>
module attributes {stable_mosaic.version = 11 : i64} {
  func.func @body(%arg0: i32, %arg1: memref<3x288x8xbf16, #tpu.memory_space<vmem>>, %arg2: memref<72x8xbf16, #tpu.memory_space<vmem>>, %arg3: memref<256x8xf32, #tpu.memory_space<vmem>>, %arg4: memref<1x8x8xf32, #tpu.memory_space<vmem>>, %arg5: memref<1x8x8xf32, #tpu.memory_space<vmem>>, %arg6: memref<256x72xbf16, #tpu.memory_space<vmem>>) attributes {dimension_semantics = [#tpu.dimension_semantics<parallel>], iteration_bounds = array<i64: 2>, scalar_prefetch = 0 : i64, scratch_operands = 1 : i64, tpu.core_type = #tpu.core_type<tc>, window_params = [{transform_indices = @transform_0, window_bounds = array<i64: 3, 288, 8>}, {pipeline_mode = #tpu.pipeline_mode<synchronous>, transform_indices = @transform_1, window_bounds = array<i64: 72, 8>}, {transform_indices = @transform_2, window_bounds = array<i64: 256, 8>}, {transform_indices = @transform_3, window_bounds = array<i64: 1, 8, 8>}, {transform_indices = @transform_4, window_bounds = array<i64: 1, 8, 8>}]} {
    %c0 = arith.constant 0 : index
    %c0_0 = arith.constant 0 : index
    %c0_1 = arith.constant 0 : index
    %0 = vector.load %arg1[%c0, %c0_0, %c0_1] : memref<3x288x8xbf16, #tpu.memory_space<vmem>>, vector<1x16x8xbf16>
    %1 = vector.shape_cast %0 : vector<1x16x8xbf16> to vector<16x8xbf16>
    %c0_2 = arith.constant 0 : index
    %c0_3 = arith.constant 0 : index
    %2 = vector.load %arg6[%c0_2, %c0_3] : memref<256x72xbf16, #tpu.memory_space<vmem>>, vector<16x8xbf16>
    tpu.vector_store %arg6[%c0_2, %c0_3], %1 {strides = array<i32>} : memref<256x72xbf16, #tpu.memory_space<vmem>>, vector<16x8xbf16>,
    %c0_4 = arith.constant 0 : index
    %c18 = arith.constant 18 : index
    %c0_5 = arith.constant 0 : index
    %3 = vector.load %arg1[%c0_4, %c18, %c0_5] : memref<3x288x8xbf16, #tpu.memory_space<vmem>>, vector<1x16x8xbf16>
    %4 = vector.shape_cast %3 : vector<1x16x8xbf16> to vector<16x8xbf16>
    %c16 = arith.constant 16 : index
    %c0_6 = arith.constant 0 : index
    %5 = vector.load %arg6[%c16, %c0_6] : memref<256x72xbf16, #tpu.memory_space<vmem>>, vector<16x8xbf16>
    tpu.vector_store %arg6[%c16, %c0_6], %4 {strides = array<i32>} : memref<256x72xbf16, #tpu.memory_space<vmem>>, vector<16x8xbf16>,
    %c0_7 = arith.constant 0 : index
    %c36 = arith.constant 36 : index
    %c0_8 = arith.constant 0 : index
    %6 = vector.load %arg1[%c0_7, %c36, %c0_8] : memref<3x288x8xbf16, #tpu.memory_space<vmem>>, vector<1x16x8xbf16>
    %7 = vector.shape_cast %6 : vector<1x16x8xbf16> to vector<16x8xbf16>
    %c32 = arith.constant 32 : index
    %c0_9 = arith.constant 0 : index
    %8 = vector.load %arg6[%c32, %c0_9] : memref<256x72xbf16, #tpu.memory_space<vmem>>, vector<16x8xbf16>
    tpu.vector_store %arg6[%c32, %c0_9], %7 {strides = array<i32>} : memref<256x72xbf16, #tpu.memory_space<vmem>>, vector<16x8xbf16>,
    %c0_10 = arith.constant 0 : index
    %c54 = arith.constant 54 : index
    %c0_11 = arith.constant 0 : index
    %9 = vector.load %arg1[%c0_10, %c54, %c0_11] : memref<3x288x8xbf16, #tpu.memory_space<vmem>>, vector<1x16x8xbf16>
    %10 = vector.shape_cast %9 : vector<1x16x8xbf16> to vector<16x8xbf16>
    %c48 = arith.constant 48 : index
    %c0_12 = arith.constant 0 : index
    %11 = vector.load %arg6[%c48, %c0_12] : memref<256x72xbf16, #tpu.memory_space<vmem>>, vector<16x8xbf16>
    tpu.vector_store %arg6[%c48, %c0_12], %10 {strides = array<i32>} : memref<256x72xbf16, #tpu.memory_space<vmem>>, vector<16x8xbf16>,
    %c0_13 = arith.constant 0 : index
    %c72 = arith.constant 72 : index
    %c0_14 = arith.constant 0 : index
    %12 = vector.load %arg1[%c0_13, %c72, %c0_14] : memref<3x288x8xbf16, #tpu.memory_space<vmem>>, vector<1x16x8xbf16>
    %13 = vector.shape_cast %12 : vector<1x16x8xbf16> to vector<16x8xbf16>
    %c64 = arith.constant 64 : index
    %c0_15 = arith.constant 0 : index
    %14 = vector.load %arg6[%c64, %c0_15] : memref<256x72xbf16, #tpu.memory_space<vmem>>, vector<16x8xbf16>
    tpu.vector_store %arg6[%c64, %c0_15], %13 {strides = array<i32>} : memref<256x72xbf16, #tpu.memory_space<vmem>>, vector<16x8xbf16>,
    %c0_16 = arith.constant 0 : index
    %c90 = arith.constant 90 : index
    %c0_17 = arith.constant 0 : index
    %15 = vector.load %arg1[%c0_16, %c90, %c0_17] : memref<3x288x8xbf16, #tpu.memory_space<vmem>>, vector<1x16x8xbf16>
    %16 = vector.shape_cast %15 : vector<1x16x8xbf16> to vector<16x8xbf16>
    %c80 = arith.constant 80 : index
    %c0_18 = arith.constant 0 : index
    %17 = vector.load %arg6[%c80, %c0_18] : memref<256x72xbf16, #tpu.memory_space<vmem>>, vector<16x8xbf16>
    tpu.vector_store %arg6[%c80, %c0_18], %16 {strides = array<i32>} : memref<256x72xbf16, #tpu.memory_space<vmem>>, vector<16x8xbf16>,
    %c0_19 = arith.constant 0 : index
    %c108 = arith.constant 108 : index
    %c0_20 = arith.constant 0 : index
    %18 = vector.load %arg1[%c0_19, %c108, %c0_20] : memref<3x288x8xbf16, #tpu.memory_space<vmem>>, vector<1x16x8xbf16>
    %19 = vector.shape_cast %18 : vector<1x16x8xbf16> to vector<16x8xbf16>
    %c96 = arith.constant 96 : index
    %c0_21 = arith.constant 0 : index
    %20 = vector.load %arg6[%c96, %c0_21] : memref<256x72xbf16, #tpu.memory_space<vmem>>, vector<16x8xbf16>
    tpu.vector_store %arg6[%c96, %c0_21], %19 {strides = array<i32>} : memref<256x72xbf16, #tpu.memory_space<vmem>>, vector<16x8xbf16>,
    %c0_22 = arith.constant 0 : index
    %c126 = arith.constant 126 : index
    %c0_23 = arith.constant 0 : index
    %21 = vector.load %arg1[%c0_22, %c126, %c0_23] : memref<3x288x8xbf16, #tpu.memory_space<vmem>>, vector<1x16x8xbf16>
    %22 = vector.shape_cast %21 : vector<1x16x8xbf16> to vector<16x8xbf16>
    %c112 = arith.constant 112 : index
    %c0_24 = arith.constant 0 : index
    %23 = vector.load %arg6[%c112, %c0_24] : memref<256x72xbf16, #tpu.memory_space<vmem>>, vector<16x8xbf16>
    tpu.vector_store %arg6[%c112, %c0_24], %22 {strides = array<i32>} : memref<256x72xbf16, #tpu.memory_space<vmem>>, vector<16x8xbf16>,
    %c0_25 = arith.constant 0 : index
    %c144 = arith.constant 144 : index
    %c0_26 = arith.constant 0 : index
    %24 = vector.load %arg1[%c0_25, %c144, %c0_26] : memref<3x288x8xbf16, #tpu.memory_space<vmem>>, vector<1x16x8xbf16>
    %25 = vector.shape_cast %24 : vector<1x16x8xbf16> to vector<16x8xbf16>
    %c128 = arith.constant 128 : index
    %c0_27 = arith.constant 0 : index
    %26 = vector.load %arg6[%c128, %c0_27] : memref<256x72xbf16, #tpu.memory_space<vmem>>, vector<16x8xbf16>
    tpu.vector_store %arg6[%c128, %c0_27], %25 {strides = array<i32>} : memref<256x72xbf16, #tpu.memory_space<vmem>>, vector<16x8xbf16>,
    %c0_28 = arith.constant 0 : index
    %c162 = arith.constant 162 : index
    %c0_29 = arith.constant 0 : index
    %27 = vector.load %arg1[%c0_28, %c162, %c0_29] : memref<3x288x8xbf16, #tpu.memory_space<vmem>>, vector<1x16x8xbf16>
    %28 = vector.shape_cast %27 : vector<1x16x8xbf16> to vector<16x8xbf16>
    %c144_30 = arith.constant 144 : index
    %c0_31 = arith.constant 0 : index
    %29 = vector.load %arg6[%c144_30, %c0_31] : memref<256x72xbf16, #tpu.memory_space<vmem>>, vector<16x8xbf16>
    tpu.vector_store %arg6[%c144_30, %c0_31], %28 {strides = array<i32>} : memref<256x72xbf16, #tpu.memory_space<vmem>>, vector<16x8xbf16>,
    %c0_32 = arith.constant 0 : index
    %c180 = arith.constant 180 : index
    %c0_33 = arith.constant 0 : index
    %30 = vector.load %arg1[%c0_32, %c180, %c0_33] : memref<3x288x8xbf16, #tpu.memory_space<vmem>>, vector<1x16x8xbf16>
    %31 = vector.shape_cast %30 : vector<1x16x8xbf16> to vector<16x8xbf16>
    %c160 = arith.constant 160 : index
    %c0_34 = arith.constant 0 : index
    %32 = vector.load %arg6[%c160, %c0_34] : memref<256x72xbf16, #tpu.memory_space<vmem>>, vector<16x8xbf16>
    tpu.vector_store %arg6[%c160, %c0_34], %31 {strides = array<i32>} : memref<256x72xbf16, #tpu.memory_space<vmem>>, vector<16x8xbf16>,
    %c0_35 = arith.constant 0 : index
    %c198 = arith.constant 198 : index
    %c0_36 = arith.constant 0 : index
    %33 = vector.load %arg1[%c0_35, %c198, %c0_36] : memref<3x288x8xbf16, #tpu.memory_space<vmem>>, vector<1x16x8xbf16>
    %34 = vector.shape_cast %33 : vector<1x16x8xbf16> to vector<16x8xbf16>
    %c176 = arith.constant 176 : index
    %c0_37 = arith.constant 0 : index
    %35 = vector.load %arg6[%c176, %c0_37] : memref<256x72xbf16, #tpu.memory_space<vmem>>, vector<16x8xbf16>
    tpu.vector_store %arg6[%c176, %c0_37], %34 {strides = array<i32>} : memref<256x72xbf16, #tpu.memory_space<vmem>>, vector<16x8xbf16>,
    %c0_38 = arith.constant 0 : index
    %c216 = arith.constant 216 : index
    %c0_39 = arith.constant 0 : index
    %36 = vector.load %arg1[%c0_38, %c216, %c0_39] : memref<3x288x8xbf16, #tpu.memory_space<vmem>>, vector<1x16x8xbf16>
    %37 = vector.shape_cast %36 : vector<1x16x8xbf16> to vector<16x8xbf16>
    %c192 = arith.constant 192 : index
    %c0_40 = arith.constant 0 : index
    %38 = vector.load %arg6[%c192, %c0_40] : memref<256x72xbf16, #tpu.memory_space<vmem>>, vector<16x8xbf16>
    tpu.vector_store %arg6[%c192, %c0_40], %37 {strides = array<i32>} : memref<256x72xbf16, #tpu.memory_space<vmem>>, vector<16x8xbf16>,
    %c0_41 = arith.constant 0 : index
    %c234 = arith.constant 234 : index
    %c0_42 = arith.constant 0 : index
    %39 = vector.load %arg1[%c0_41, %c234, %c0_42] : memref<3x288x8xbf16, #tpu.memory_space<vmem>>, vector<1x16x8xbf16>
    %40 = vector.shape_cast %39 : vector<1x16x8xbf16> to vector<16x8xbf16>
    %c208 = arith.constant 208 : index
    %c0_43 = arith.constant 0 : index
    %41 = vector.load %arg6[%c208, %c0_43] : memref<256x72xbf16, #tpu.memory_space<vmem>>, vector<16x8xbf16>
    tpu.vector_store %arg6[%c208, %c0_43], %40 {strides = array<i32>} : memref<256x72xbf16, #tpu.memory_space<vmem>>, vector<16x8xbf16>,
    %c0_44 = arith.constant 0 : index
    %c252 = arith.constant 252 : index
    %c0_45 = arith.constant 0 : index
    %42 = vector.load %arg1[%c0_44, %c252, %c0_45] : memref<3x288x8xbf16, #tpu.memory_space<vmem>>, vector<1x16x8xbf16>
    %43 = vector.shape_cast %42 : vector<1x16x8xbf16> to vector<16x8xbf16>
    %c224 = arith.constant 224 : index
    %c0_46 = arith.constant 0 : index
    %44 = vector.load %arg6[%c224, %c0_46] : memref<256x72xbf16, #tpu.memory_space<vmem>>, vector<16x8xbf16>
    tpu.vector_store %arg6[%c224, %c0_46], %43 {strides = array<i32>} : memref<256x72xbf16, #tpu.memory_space<vmem>>, vector<16x8xbf16>,
    %c0_47 = arith.constant 0 : index
    %c270 = arith.constant 270 : index
    %c0_48 = arith.constant 0 : index
    %45 = vector.load %arg1[%c0_47, %c270, %c0_48] : memref<3x288x8xbf16, #tpu.memory_space<vmem>>, vector<1x16x8xbf16>
    %46 = vector.shape_cast %45 : vector<1x16x8xbf16> to vector<16x8xbf16>
    %c240 = arith.constant 240 : index
    %c0_49 = arith.constant 0 : index
    %47 = vector.load %arg6[%c240, %c0_49] : memref<256x72xbf16, #tpu.memory_space<vmem>>, vector<16x8xbf16>
    tpu.vector_store %arg6[%c240, %c0_49], %46 {strides = array<i32>} : memref<256x72xbf16, #tpu.memory_space<vmem>>, vector<16x8xbf16>,
    %c0_50 = arith.constant 0 : index
    %c1 = arith.constant 1 : index
    %c0_51 = arith.constant 0 : index
    %48 = vector.load %arg1[%c0_50, %c1, %c0_51] : memref<3x288x8xbf16, #tpu.memory_space<vmem>>, vector<1x16x8xbf16>
    %49 = vector.shape_cast %48 : vector<1x16x8xbf16> to vector<16x8xbf16>
    %c0_52 = arith.constant 0 : index
    %c8 = arith.constant 8 : index
    %50 = vector.load %arg6[%c0_52, %c8] : memref<256x72xbf16, #tpu.memory_space<vmem>>, vector<16x8xbf16>
    tpu.vector_store %arg6[%c0_52, %c8], %49 {strides = array<i32>} : memref<256x72xbf16, #tpu.memory_space<vmem>>, vector<16x8xbf16>,
    %c0_53 = arith.constant 0 : index
    %c19 = arith.constant 19 : index
    %c0_54 = arith.constant 0 : index
    %51 = vector.load %arg1[%c0_53, %c19, %c0_54] : memref<3x288x8xbf16, #tpu.memory_space<vmem>>, vector<1x16x8xbf16>
    %52 = vector.shape_cast %51 : vector<1x16x8xbf16> to vector<16x8xbf16>
    %c16_55 = arith.constant 16 : index
    %c8_56 = arith.constant 8 : index
    %53 = vector.load %arg6[%c16_55, %c8_56] : memref<256x72xbf16, #tpu.memory_space<vmem>>, vector<16x8xbf16>
    tpu.vector_store %arg6[%c16_55, %c8_56], %52 {strides = array<i32>} : memref<256x72xbf16, #tpu.memory_space<vmem>>, vector<16x8xbf16>,
    %c0_57 = arith.constant 0 : index
    %c37 = arith.constant 37 : index
    %c0_58 = arith.constant 0 : index
    %54 = vector.load %arg1[%c0_57, %c37, %c0_58] : memref<3x288x8xbf16, #tpu.memory_space<vmem>>, vector<1x16x8xbf16>
    %55 = vector.shape_cast %54 : vector<1x16x8xbf16> to vector<16x8xbf16>
    %c32_59 = arith.constant 32 : index
    %c8_60 = arith.constant 8 : index
    %56 = vector.load %arg6[%c32_59, %c8_60] : memref<256x72xbf16, #tpu.memory_space<vmem>>, vector<16x8xbf16>
    tpu.vector_store %arg6[%c32_59, %c8_60], %55 {strides = array<i32>} : memref<256x72xbf16, #tpu.memory_space<vmem>>, vector<16x8xbf16>,
    %c0_61 = arith.constant 0 : index
    %c55 = arith.constant 55 : index
    %c0_62 = arith.constant 0 : index
    %57 = vector.load %arg1[%c0_61, %c55, %c0_62] : memref<3x288x8xbf16, #tpu.memory_space<vmem>>, vector<1x16x8xbf16>
    %58 = vector.shape_cast %57 : vector<1x16x8xbf16> to vector<16x8xbf16>
    %c48_63 = arith.constant 48 : index
    %c8_64 = arith.constant 8 : index
    %59 = vector.load %arg6[%c48_63, %c8_64] : memref<256x72xbf16, #tpu.memory_space<vmem>>, vector<16x8xbf16>
    tpu.vector_store %arg6[%c48_63, %c8_64], %58 {strides = array<i32>} : memref<256x72xbf16, #tpu.memory_space<vmem>>, vector<16x8xbf16>,
    %c0_65 = arith.constant 0 : index
    %c73 = arith.constant 73 : index
    %c0_66 = arith.constant 0 : index
    %60 = vector.load %arg1[%c0_65, %c73, %c0_66] : memref<3x288x8xbf16, #tpu.memory_space<vmem>>, vector<1x16x8xbf16>
    %61 = vector.shape_cast %60 : vector<1x16x8xbf16> to vector<16x8xbf16>
    %c64_67 = arith.constant 64 : index
    %c8_68 = arith.constant 8 : index
    %62 = vector.load %arg6[%c64_67, %c8_68] : memref<256x72xbf16, #tpu.memory_space<vmem>>, vector<16x8xbf16>
    tpu.vector_store %arg6[%c64_67, %c8_68], %61 {strides = array<i32>} : memref<256x72xbf16, #tpu.memory_space<vmem>>, vector<16x8xbf16>,
    %c0_69 = arith.constant 0 : index
    %c91 = arith.constant 91 : index
    %c0_70 = arith.constant 0 : index
    %63 = vector.load %arg1[%c0_69, %c91, %c0_70] : memref<3x288x8xbf16, #tpu.memory_space<vmem>>, vector<1x16x8xbf16>
    %64 = vector.shape_cast %63 : vector<1x16x8xbf16> to vector<16x8xbf16>
    %c80_71 = arith.constant 80 : index
    %c8_72 = arith.constant 8 : index
    %65 = vector.load %arg6[%c80_71, %c8_72] : memref<256x72xbf16, #tpu.memory_space<vmem>>, vector<16x8xbf16>
    tpu.vector_store %arg6[%c80_71, %c8_72], %64 {strides = array<i32>} : memref<256x72xbf16, #tpu.memory_space<vmem>>, vector<16x8xbf16>,
    %c0_73 = arith.constant 0 : index
    %c109 = arith.constant 109 : index
    %c0_74 = arith.constant 0 : index
    %66 = vector.load %arg1[%c0_73, %c109, %c0_74] : memref<3x288x8xbf16, #tpu.memory_space<vmem>>, vector<1x16x8xbf16>
    %67 = vector.shape_cast %66 : vector<1x16x8xbf16> to vector<16x8xbf16>
    %c96_75 = arith.constant 96 : index
    %c8_76 = arith.constant 8 : index
    %68 = vector.load %arg6[%c96_75, %c8_76] : memref<256x72xbf16, #tpu.memory_space<vmem>>, vector<16x8xbf16>
    tpu.vector_store %arg6[%c96_75, %c8_76], %67 {strides = array<i32>} : memref<256x72xbf16, #tpu.memory_space<vmem>>, vector<16x8xbf16>,
    %c0_77 = arith.constant 0 : index
    %c127 = arith.constant 127 : index
    %c0_78 = arith.constant 0 : index
    %69 = vector.load %arg1[%c0_77, %c127, %c0_78] : memref<3x288x8xbf16, #tpu.memory_space<vmem>>, vector<1x16x8xbf16>
    %70 = vector.shape_cast %69 : vector<1x16x8xbf16> to vector<16x8xbf16>
    %c112_79 = arith.constant 112 : index
    %c8_80 = arith.constant 8 : index
    %71 = vector.load %arg6[%c112_79, %c8_80] : memref<256x72xbf16, #tpu.memory_space<vmem>>, vector<16x8xbf16>
    tpu.vector_store %arg6[%c112_79, %c8_80], %70 {strides = array<i32>} : memref<256x72xbf16, #tpu.memory_space<vmem>>, vector<16x8xbf16>,
    %c0_81 = arith.constant 0 : index
    %c145 = arith.constant 145 : index
    %c0_82 = arith.constant 0 : index
    %72 = vector.load %arg1[%c0_81, %c145, %c0_82] : memref<3x288x8xbf16, #tpu.memory_space<vmem>>, vector<1x16x8xbf16>
    %73 = vector.shape_cast %72 : vector<1x16x8xbf16> to vector<16x8xbf16>
    %c128_83 = arith.constant 128 : index
    %c8_84 = arith.constant 8 : index
    %74 = vector.load %arg6[%c128_83, %c8_84] : memref<256x72xbf16, #tpu.memory_space<vmem>>, vector<16x8xbf16>
    tpu.vector_store %arg6[%c128_83, %c8_84], %73 {strides = array<i32>} : memref<256x72xbf16, #tpu.memory_space<vmem>>, vector<16x8xbf16>,
    %c0_85 = arith.constant 0 : index
    %c163 = arith.constant 163 : index
    %c0_86 = arith.constant 0 : index
    %75 = vector.load %arg1[%c0_85, %c163, %c0_86] : memref<3x288x8xbf16, #tpu.memory_space<vmem>>, vector<1x16x8xbf16>
    %76 = vector.shape_cast %75 : vector<1x16x8xbf16> to vector<16x8xbf16>
    %c144_87 = arith.constant 144 : index
    %c8_88 = arith.constant 8 : index
    %77 = vector.load %arg6[%c144_87, %c8_88] : memref<256x72xbf16, #tpu.memory_space<vmem>>, vector<16x8xbf16>
    tpu.vector_store %arg6[%c144_87, %c8_88], %76 {strides = array<i32>} : memref<256x72xbf16, #tpu.memory_space<vmem>>, vector<16x8xbf16>,
    %c0_89 = arith.constant 0 : index
    %c181 = arith.constant 181 : index
    %c0_90 = arith.constant 0 : index
    %78 = vector.load %arg1[%c0_89, %c181, %c0_90] : memref<3x288x8xbf16, #tpu.memory_space<vmem>>, vector<1x16x8xbf16>
    %79 = vector.shape_cast %78 : vector<1x16x8xbf16> to vector<16x8xbf16>
    %c160_91 = arith.constant 160 : index
    %c8_92 = arith.constant 8 : index
    %80 = vector.load %arg6[%c160_91, %c8_92] : memref<256x72xbf16, #tpu.memory_space<vmem>>, vector<16x8xbf16>
    tpu.vector_store %arg6[%c160_91, %c8_92], %79 {strides = array<i32>} : memref<256x72xbf16, #tpu.memory_space<vmem>>, vector<16x8xbf16>,
    %c0_93 = arith.constant 0 : index
    %c199 = arith.constant 199 : index
    %c0_94 = arith.constant 0 : index
    %81 = vector.load %arg1[%c0_93, %c199, %c0_94] : memref<3x288x8xbf16, #tpu.memory_space<vmem>>, vector<1x16x8xbf16>
    %82 = vector.shape_cast %81 : vector<1x16x8xbf16> to vector<16x8xbf16>
    %c176_95 = arith.constant 176 : index
    %c8_96 = arith.constant 8 : index
    %83 = vector.load %arg6[%c176_95, %c8_96] : memref<256x72xbf16, #tpu.memory_space<vmem>>, vector<16x8xbf16>
    tpu.vector_store %arg6[%c176_95, %c8_96], %82 {strides = array<i32>} : memref<256x72xbf16, #tpu.memory_space<vmem>>, vector<16x8xbf16>,
    %c0_97 = arith.constant 0 : index
    %c217 = arith.constant 217 : index
    %c0_98 = arith.constant 0 : index
    %84 = vector.load %arg1[%c0_97, %c217, %c0_98] : memref<3x288x8xbf16, #tpu.memory_space<vmem>>, vector<1x16x8xbf16>
    %85 = vector.shape_cast %84 : vector<1x16x8xbf16> to vector<16x8xbf16>
    %c192_99 = arith.constant 192 : index
    %c8_100 = arith.constant 8 : index
    %86 = vector.load %arg6[%c192_99, %c8_100] : memref<256x72xbf16, #tpu.memory_space<vmem>>, vector<16x8xbf16>
    tpu.vector_store %arg6[%c192_99, %c8_100], %85 {strides = array<i32>} : memref<256x72xbf16, #tpu.memory_space<vmem>>, vector<16x8xbf16>,
    %c0_101 = arith.constant 0 : index
    %c235 = arith.constant 235 : index
    %c0_102 = arith.constant 0 : index
    %87 = vector.load %arg1[%c0_101, %c235, %c0_102] : memref<3x288x8xbf16, #tpu.memory_space<vmem>>, vector<1x16x8xbf16>
    %88 = vector.shape_cast %87 : vector<1x16x8xbf16> to vector<16x8xbf16>
    %c208_103 = arith.constant 208 : index
    %c8_104 = arith.constant 8 : index
    %89 = vector.load %arg6[%c208_103, %c8_104] : memref<256x72xbf16, #tpu.memory_space<vmem>>, vector<16x8xbf16>
    tpu.vector_store %arg6[%c208_103, %c8_104], %88 {strides = array<i32>} : memref<256x72xbf16, #tpu.memory_space<vmem>>, vector<16x8xbf16>,
    %c0_105 = arith.constant 0 : index
    %c253 = arith.constant 253 : index
    %c0_106 = arith.constant 0 : index
    %90 = vector.load %arg1[%c0_105, %c253, %c0_106] : memref<3x288x8xbf16, #tpu.memory_space<vmem>>, vector<1x16x8xbf16>
    %91 = vector.shape_cast %90 : vector<1x16x8xbf16> to vector<16x8xbf16>
    %c224_107 = arith.constant 224 : index
    %c8_108 = arith.constant 8 : index
    %92 = vector.load %arg6[%c224_107, %c8_108] : memref<256x72xbf16, #tpu.memory_space<vmem>>, vector<16x8xbf16>
    tpu.vector_store %arg6[%c224_107, %c8_108], %91 {strides = array<i32>} : memref<256x72xbf16, #tpu.memory_space<vmem>>, vector<16x8xbf16>,
    %c0_109 = arith.constant 0 : index
    %c271 = arith.constant 271 : index
    %c0_110 = arith.constant 0 : index
    %93 = vector.load %arg1[%c0_109, %c271, %c0_110] : memref<3x288x8xbf16, #tpu.memory_space<vmem>>, vector<1x16x8xbf16>
    %94 = vector.shape_cast %93 : vector<1x16x8xbf16> to vector<16x8xbf16>
    %c240_111 = arith.constant 240 : index
    %c8_112 = arith.constant 8 : index
    %95 = vector.load %arg6[%c240_111, %c8_112] : memref<256x72xbf16, #tpu.memory_space<vmem>>, vector<16x8xbf16>
    tpu.vector_store %arg6[%c240_111, %c8_112], %94 {strides = array<i32>} : memref<256x72xbf16, #tpu.memory_space<vmem>>, vector<16x8xbf16>,
    %c0_113 = arith.constant 0 : index
    %c2 = arith.constant 2 : index
    %c0_114 = arith.constant 0 : index
    %96 = vector.load %arg1[%c0_113, %c2, %c0_114] : memref<3x288x8xbf16, #tpu.memory_space<vmem>>, vector<1x16x8xbf16>
    %97 = vector.shape_cast %96 : vector<1x16x8xbf16> to vector<16x8xbf16>
    %c0_115 = arith.constant 0 : index
    %c16_116 = arith.constant 16 : index
    %98 = vector.load %arg6[%c0_115, %c16_116] : memref<256x72xbf16, #tpu.memory_space<vmem>>, vector<16x8xbf16>
    tpu.vector_store %arg6[%c0_115, %c16_116], %97 {strides = array<i32>} : memref<256x72xbf16, #tpu.memory_space<vmem>>, vector<16x8xbf16>,
    %c0_117 = arith.constant 0 : index
    %c20 = arith.constant 20 : index
    %c0_118 = arith.constant 0 : index
    %99 = vector.load %arg1[%c0_117, %c20, %c0_118] : memref<3x288x8xbf16, #tpu.memory_space<vmem>>, vector<1x16x8xbf16>
    %100 = vector.shape_cast %99 : vector<1x16x8xbf16> to vector<16x8xbf16>
    %c16_119 = arith.constant 16 : index
    %c16_120 = arith.constant 16 : index
    %101 = vector.load %arg6[%c16_119, %c16_120] : memref<256x72xbf16, #tpu.memory_space<vmem>>, vector<16x8xbf16>
    tpu.vector_store %arg6[%c16_119, %c16_120], %100 {strides = array<i32>} : memref<256x72xbf16, #tpu.memory_space<vmem>>, vector<16x8xbf16>,
    %c0_121 = arith.constant 0 : index
    %c38 = arith.constant 38 : index
    %c0_122 = arith.constant 0 : index
    %102 = vector.load %arg1[%c0_121, %c38, %c0_122] : memref<3x288x8xbf16, #tpu.memory_space<vmem>>, vector<1x16x8xbf16>
    %103 = vector.shape_cast %102 : vector<1x16x8xbf16> to vector<16x8xbf16>
    %c32_123 = arith.constant 32 : index
    %c16_124 = arith.constant 16 : index
    %104 = vector.load %arg6[%c32_123, %c16_124] : memref<256x72xbf16, #tpu.memory_space<vmem>>, vector<16x8xbf16>
    tpu.vector_store %arg6[%c32_123, %c16_124], %103 {strides = array<i32>} : memref<256x72xbf16, #tpu.memory_space<vmem>>, vector<16x8xbf16>,
    %c0_125 = arith.constant 0 : index
    %c56 = arith.constant 56 : index
    %c0_126 = arith.constant 0 : index
    %105 = vector.load %arg1[%c0_125, %c56, %c0_126] : memref<3x288x8xbf16, #tpu.memory_space<vmem>>, vector<1x16x8xbf16>
    %106 = vector.shape_cast %105 : vector<1x16x8xbf16> to vector<16x8xbf16>
    %c48_127 = arith.constant 48 : index
    %c16_128 = arith.constant 16 : index
    %107 = vector.load %arg6[%c48_127, %c16_128] : memref<256x72xbf16, #tpu.memory_space<vmem>>, vector<16x8xbf16>
    tpu.vector_store %arg6[%c48_127, %c16_128], %106 {strides = array<i32>} : memref<256x72xbf16, #tpu.memory_space<vmem>>, vector<16x8xbf16>,
    %c0_129 = arith.constant 0 : index
    %c74 = arith.constant 74 : index
    %c0_130 = arith.constant 0 : index
    %108 = vector.load %arg1[%c0_129, %c74, %c0_130] : memref<3x288x8xbf16, #tpu.memory_space<vmem>>, vector<1x16x8xbf16>
    %109 = vector.shape_cast %108 : vector<1x16x8xbf16> to vector<16x8xbf16>
    %c64_131 = arith.constant 64 : index
    %c16_132 = arith.constant 16 : index
    %110 = vector.load %arg6[%c64_131, %c16_132] : memref<256x72xbf16, #tpu.memory_space<vmem>>, vector<16x8xbf16>
    tpu.vector_store %arg6[%c64_131, %c16_132], %109 {strides = array<i32>} : memref<256x72xbf16, #tpu.memory_space<vmem>>, vector<16x8xbf16>,
    %c0_133 = arith.constant 0 : index
    %c92 = arith.constant 92 : index
    %c0_134 = arith.constant 0 : index
    %111 = vector.load %arg1[%c0_133, %c92, %c0_134] : memref<3x288x8xbf16, #tpu.memory_space<vmem>>, vector<1x16x8xbf16>
    %112 = vector.shape_cast %111 : vector<1x16x8xbf16> to vector<16x8xbf16>
    %c80_135 = arith.constant 80 : index
    %c16_136 = arith.constant 16 : index
    %113 = vector.load %arg6[%c80_135, %c16_136] : memref<256x72xbf16, #tpu.memory_space<vmem>>, vector<16x8xbf16>
    tpu.vector_store %arg6[%c80_135, %c16_136], %112 {strides = array<i32>} : memref<256x72xbf16, #tpu.memory_space<vmem>>, vector<16x8xbf16>,
    %c0_137 = arith.constant 0 : index
    %c110 = arith.constant 110 : index
    %c0_138 = arith.constant 0 : index
    %114 = vector.load %arg1[%c0_137, %c110, %c0_138] : memref<3x288x8xbf16, #tpu.memory_space<vmem>>, vector<1x16x8xbf16>
    %115 = vector.shape_cast %114 : vector<1x16x8xbf16> to vector<16x8xbf16>
    %c96_139 = arith.constant 96 : index
    %c16_140 = arith.constant 16 : index
    %116 = vector.load %arg6[%c96_139, %c16_140] : memref<256x72xbf16, #tpu.memory_space<vmem>>, vector<16x8xbf16>
    tpu.vector_store %arg6[%c96_139, %c16_140], %115 {strides = array<i32>} : memref<256x72xbf16, #tpu.memory_space<vmem>>, vector<16x8xbf16>,
    %c0_141 = arith.constant 0 : index
    %c128_142 = arith.constant 128 : index
    %c0_143 = arith.constant 0 : index
    %117 = vector.load %arg1[%c0_141, %c128_142, %c0_143] : memref<3x288x8xbf16, #tpu.memory_space<vmem>>, vector<1x16x8xbf16>
    %118 = vector.shape_cast %117 : vector<1x16x8xbf16> to vector<16x8xbf16>
    %c112_144 = arith.constant 112 : index
    %c16_145 = arith.constant 16 : index
    %119 = vector.load %arg6[%c112_144, %c16_145] : memref<256x72xbf16, #tpu.memory_space<vmem>>, vector<16x8xbf16>
    tpu.vector_store %arg6[%c112_144, %c16_145], %118 {strides = array<i32>} : memref<256x72xbf16, #tpu.memory_space<vmem>>, vector<16x8xbf16>,
    %c0_146 = arith.constant 0 : index
    %c146 = arith.constant 146 : index
    %c0_147 = arith.constant 0 : index
    %120 = vector.load %arg1[%c0_146, %c146, %c0_147] : memref<3x288x8xbf16, #tpu.memory_space<vmem>>, vector<1x16x8xbf16>
    %121 = vector.shape_cast %120 : vector<1x16x8xbf16> to vector<16x8xbf16>
    %c128_148 = arith.constant 128 : index
    %c16_149 = arith.constant 16 : index
    %122 = vector.load %arg6[%c128_148, %c16_149] : memref<256x72xbf16, #tpu.memory_space<vmem>>, vector<16x8xbf16>
    tpu.vector_store %arg6[%c128_148, %c16_149], %121 {strides = array<i32>} : memref<256x72xbf16, #tpu.memory_space<vmem>>, vector<16x8xbf16>,
    %c0_150 = arith.constant 0 : index
    %c164 = arith.constant 164 : index
    %c0_151 = arith.constant 0 : index
    %123 = vector.load %arg1[%c0_150, %c164, %c0_151] : memref<3x288x8xbf16, #tpu.memory_space<vmem>>, vector<1x16x8xbf16>
    %124 = vector.shape_cast %123 : vector<1x16x8xbf16> to vector<16x8xbf16>
    %c144_152 = arith.constant 144 : index
    %c16_153 = arith.constant 16 : index
    %125 = vector.load %arg6[%c144_152, %c16_153] : memref<256x72xbf16, #tpu.memory_space<vmem>>, vector<16x8xbf16>
    tpu.vector_store %arg6[%c144_152, %c16_153], %124 {strides = array<i32>} : memref<256x72xbf16, #tpu.memory_space<vmem>>, vector<16x8xbf16>,
    %c0_154 = arith.constant 0 : index
    %c182 = arith.constant 182 : index
    %c0_155 = arith.constant 0 : index
    %126 = vector.load %arg1[%c0_154, %c182, %c0_155] : memref<3x288x8xbf16, #tpu.memory_space<vmem>>, vector<1x16x8xbf16>
    %127 = vector.shape_cast %126 : vector<1x16x8xbf16> to vector<16x8xbf16>
    %c160_156 = arith.constant 160 : index
    %c16_157 = arith.constant 16 : index
    %128 = vector.load %arg6[%c160_156, %c16_157] : memref<256x72xbf16, #tpu.memory_space<vmem>>, vector<16x8xbf16>
    tpu.vector_store %arg6[%c160_156, %c16_157], %127 {strides = array<i32>} : memref<256x72xbf16, #tpu.memory_space<vmem>>, vector<16x8xbf16>,
    %c0_158 = arith.constant 0 : index
    %c200 = arith.constant 200 : index
    %c0_159 = arith.constant 0 : index
    %129 = vector.load %arg1[%c0_158, %c200, %c0_159] : memref<3x288x8xbf16, #tpu.memory_space<vmem>>, vector<1x16x8xbf16>
    %130 = vector.shape_cast %129 : vector<1x16x8xbf16> to vector<16x8xbf16>
    %c176_160 = arith.constant 176 : index
    %c16_161 = arith.constant 16 : index
    %131 = vector.load %arg6[%c176_160, %c16_161] : memref<256x72xbf16, #tpu.memory_space<vmem>>, vector<16x8xbf16>
    tpu.vector_store %arg6[%c176_160, %c16_161], %130 {strides = array<i32>} : memref<256x72xbf16, #tpu.memory_space<vmem>>, vector<16x8xbf16>,
    %c0_162 = arith.constant 0 : index
    %c218 = arith.constant 218 : index
    %c0_163 = arith.constant 0 : index
    %132 = vector.load %arg1[%c0_162, %c218, %c0_163] : memref<3x288x8xbf16, #tpu.memory_space<vmem>>, vector<1x16x8xbf16>
    %133 = vector.shape_cast %132 : vector<1x16x8xbf16> to vector<16x8xbf16>
    %c192_164 = arith.constant 192 : index
    %c16_165 = arith.constant 16 : index
    %134 = vector.load %arg6[%c192_164, %c16_165] : memref<256x72xbf16, #tpu.memory_space<vmem>>, vector<16x8xbf16>
    tpu.vector_store %arg6[%c192_164, %c16_165], %133 {strides = array<i32>} : memref<256x72xbf16, #tpu.memory_space<vmem>>, vector<16x8xbf16>,
    %c0_166 = arith.constant 0 : index
    %c236 = arith.constant 236 : index
    %c0_167 = arith.constant 0 : index
    %135 = vector.load %arg1[%c0_166, %c236, %c0_167] : memref<3x288x8xbf16, #tpu.memory_space<vmem>>, vector<1x16x8xbf16>
    %136 = vector.shape_cast %135 : vector<1x16x8xbf16> to vector<16x8xbf16>
    %c208_168 = arith.constant 208 : index
    %c16_169 = arith.constant 16 : index
    %137 = vector.load %arg6[%c208_168, %c16_169] : memref<256x72xbf16, #tpu.memory_space<vmem>>, vector<16x8xbf16>
    tpu.vector_store %arg6[%c208_168, %c16_169], %136 {strides = array<i32>} : memref<256x72xbf16, #tpu.memory_space<vmem>>, vector<16x8xbf16>,
    %c0_170 = arith.constant 0 : index
    %c254 = arith.constant 254 : index
    %c0_171 = arith.constant 0 : index
    %138 = vector.load %arg1[%c0_170, %c254, %c0_171] : memref<3x288x8xbf16, #tpu.memory_space<vmem>>, vector<1x16x8xbf16>
    %139 = vector.shape_cast %138 : vector<1x16x8xbf16> to vector<16x8xbf16>
    %c224_172 = arith.constant 224 : index
    %c16_173 = arith.constant 16 : index
    %140 = vector.load %arg6[%c224_172, %c16_173] : memref<256x72xbf16, #tpu.memory_space<vmem>>, vector<16x8xbf16>
    tpu.vector_store %arg6[%c224_172, %c16_173], %139 {strides = array<i32>} : memref<256x72xbf16, #tpu.memory_space<vmem>>, vector<16x8xbf16>,
    %c0_174 = arith.constant 0 : index
    %c272 = arith.constant 272 : index
    %c0_175 = arith.constant 0 : index
    %141 = vector.load %arg1[%c0_174, %c272, %c0_175] : memref<3x288x8xbf16, #tpu.memory_space<vmem>>, vector<1x16x8xbf16>
    %142 = vector.shape_cast %141 : vector<1x16x8xbf16> to vector<16x8xbf16>
    %c240_176 = arith.constant 240 : index
    %c16_177 = arith.constant 16 : index
    %143 = vector.load %arg6[%c240_176, %c16_177] : memref<256x72xbf16, #tpu.memory_space<vmem>>, vector<16x8xbf16>
    tpu.vector_store %arg6[%c240_176, %c16_177], %142 {strides = array<i32>} : memref<256x72xbf16, #tpu.memory_space<vmem>>, vector<16x8xbf16>,
    %c1_178 = arith.constant 1 : index
    %c0_179 = arith.constant 0 : index
    %c0_180 = arith.constant 0 : index
    %144 = vector.load %arg1[%c1_178, %c0_179, %c0_180] : memref<3x288x8xbf16, #tpu.memory_space<vmem>>, vector<1x16x8xbf16>
    %145 = vector.shape_cast %144 : vector<1x16x8xbf16> to vector<16x8xbf16>
    %c0_181 = arith.constant 0 : index
    %c24 = arith.constant 24 : index
    %146 = vector.load %arg6[%c0_181, %c24] : memref<256x72xbf16, #tpu.memory_space<vmem>>, vector<16x8xbf16>
    tpu.vector_store %arg6[%c0_181, %c24], %145 {strides = array<i32>} : memref<256x72xbf16, #tpu.memory_space<vmem>>, vector<16x8xbf16>,
    %c1_182 = arith.constant 1 : index
    %c18_183 = arith.constant 18 : index
    %c0_184 = arith.constant 0 : index
    %147 = vector.load %arg1[%c1_182, %c18_183, %c0_184] : memref<3x288x8xbf16, #tpu.memory_space<vmem>>, vector<1x16x8xbf16>
    %148 = vector.shape_cast %147 : vector<1x16x8xbf16> to vector<16x8xbf16>
    %c16_185 = arith.constant 16 : index
    %c24_186 = arith.constant 24 : index
    %149 = vector.load %arg6[%c16_185, %c24_186] : memref<256x72xbf16, #tpu.memory_space<vmem>>, vector<16x8xbf16>
    tpu.vector_store %arg6[%c16_185, %c24_186], %148 {strides = array<i32>} : memref<256x72xbf16, #tpu.memory_space<vmem>>, vector<16x8xbf16>,
    %c1_187 = arith.constant 1 : index
    %c36_188 = arith.constant 36 : index
    %c0_189 = arith.constant 0 : index
    %150 = vector.load %arg1[%c1_187, %c36_188, %c0_189] : memref<3x288x8xbf16, #tpu.memory_space<vmem>>, vector<1x16x8xbf16>
    %151 = vector.shape_cast %150 : vector<1x16x8xbf16> to vector<16x8xbf16>
    %c32_190 = arith.constant 32 : index
    %c24_191 = arith.constant 24 : index
    %152 = vector.load %arg6[%c32_190, %c24_191] : memref<256x72xbf16, #tpu.memory_space<vmem>>, vector<16x8xbf16>
    tpu.vector_store %arg6[%c32_190, %c24_191], %151 {strides = array<i32>} : memref<256x72xbf16, #tpu.memory_space<vmem>>, vector<16x8xbf16>,
    %c1_192 = arith.constant 1 : index
    %c54_193 = arith.constant 54 : index
    %c0_194 = arith.constant 0 : index
    %153 = vector.load %arg1[%c1_192, %c54_193, %c0_194] : memref<3x288x8xbf16, #tpu.memory_space<vmem>>, vector<1x16x8xbf16>
    %154 = vector.shape_cast %153 : vector<1x16x8xbf16> to vector<16x8xbf16>
    %c48_195 = arith.constant 48 : index
    %c24_196 = arith.constant 24 : index
    %155 = vector.load %arg6[%c48_195, %c24_196] : memref<256x72xbf16, #tpu.memory_space<vmem>>, vector<16x8xbf16>
    tpu.vector_store %arg6[%c48_195, %c24_196], %154 {strides = array<i32>} : memref<256x72xbf16, #tpu.memory_space<vmem>>, vector<16x8xbf16>,
    %c1_197 = arith.constant 1 : index
    %c72_198 = arith.constant 72 : index
    %c0_199 = arith.constant 0 : index
    %156 = vector.load %arg1[%c1_197, %c72_198, %c0_199] : memref<3x288x8xbf16, #tpu.memory_space<vmem>>, vector<1x16x8xbf16>
    %157 = vector.shape_cast %156 : vector<1x16x8xbf16> to vector<16x8xbf16>
    %c64_200 = arith.constant 64 : index
    %c24_201 = arith.constant 24 : index
    %158 = vector.load %arg6[%c64_200, %c24_201] : memref<256x72xbf16, #tpu.memory_space<vmem>>, vector<16x8xbf16>
    tpu.vector_store %arg6[%c64_200, %c24_201], %157 {strides = array<i32>} : memref<256x72xbf16, #tpu.memory_space<vmem>>, vector<16x8xbf16>,
    %c1_202 = arith.constant 1 : index
    %c90_203 = arith.constant 90 : index
    %c0_204 = arith.constant 0 : index
    %159 = vector.load %arg1[%c1_202, %c90_203, %c0_204] : memref<3x288x8xbf16, #tpu.memory_space<vmem>>, vector<1x16x8xbf16>
    %160 = vector.shape_cast %159 : vector<1x16x8xbf16> to vector<16x8xbf16>
    %c80_205 = arith.constant 80 : index
    %c24_206 = arith.constant 24 : index
    %161 = vector.load %arg6[%c80_205, %c24_206] : memref<256x72xbf16, #tpu.memory_space<vmem>>, vector<16x8xbf16>
    tpu.vector_store %arg6[%c80_205, %c24_206], %160 {strides = array<i32>} : memref<256x72xbf16, #tpu.memory_space<vmem>>, vector<16x8xbf16>,
    %c1_207 = arith.constant 1 : index
    %c108_208 = arith.constant 108 : index
    %c0_209 = arith.constant 0 : index
    %162 = vector.load %arg1[%c1_207, %c108_208, %c0_209] : memref<3x288x8xbf16, #tpu.memory_space<vmem>>, vector<1x16x8xbf16>
    %163 = vector.shape_cast %162 : vector<1x16x8xbf16> to vector<16x8xbf16>
    %c96_210 = arith.constant 96 : index
    %c24_211 = arith.constant 24 : index
    %164 = vector.load %arg6[%c96_210, %c24_211] : memref<256x72xbf16, #tpu.memory_space<vmem>>, vector<16x8xbf16>
    tpu.vector_store %arg6[%c96_210, %c24_211], %163 {strides = array<i32>} : memref<256x72xbf16, #tpu.memory_space<vmem>>, vector<16x8xbf16>,
    %c1_212 = arith.constant 1 : index
    %c126_213 = arith.constant 126 : index
    %c0_214 = arith.constant 0 : index
    %165 = vector.load %arg1[%c1_212, %c126_213, %c0_214] : memref<3x288x8xbf16, #tpu.memory_space<vmem>>, vector<1x16x8xbf16>
    %166 = vector.shape_cast %165 : vector<1x16x8xbf16> to vector<16x8xbf16>
    %c112_215 = arith.constant 112 : index
    %c24_216 = arith.constant 24 : index
    %167 = vector.load %arg6[%c112_215, %c24_216] : memref<256x72xbf16, #tpu.memory_space<vmem>>, vector<16x8xbf16>
    tpu.vector_store %arg6[%c112_215, %c24_216], %166 {strides = array<i32>} : memref<256x72xbf16, #tpu.memory_space<vmem>>, vector<16x8xbf16>,
    %c1_217 = arith.constant 1 : index
    %c144_218 = arith.constant 144 : index
    %c0_219 = arith.constant 0 : index
    %168 = vector.load %arg1[%c1_217, %c144_218, %c0_219] : memref<3x288x8xbf16, #tpu.memory_space<vmem>>, vector<1x16x8xbf16>
    %169 = vector.shape_cast %168 : vector<1x16x8xbf16> to vector<16x8xbf16>
    %c128_220 = arith.constant 128 : index
    %c24_221 = arith.constant 24 : index
    %170 = vector.load %arg6[%c128_220, %c24_221] : memref<256x72xbf16, #tpu.memory_space<vmem>>, vector<16x8xbf16>
    tpu.vector_store %arg6[%c128_220, %c24_221], %169 {strides = array<i32>} : memref<256x72xbf16, #tpu.memory_space<vmem>>, vector<16x8xbf16>,
    %c1_222 = arith.constant 1 : index
    %c162_223 = arith.constant 162 : index
    %c0_224 = arith.constant 0 : index
    %171 = vector.load %arg1[%c1_222, %c162_223, %c0_224] : memref<3x288x8xbf16, #tpu.memory_space<vmem>>, vector<1x16x8xbf16>
    %172 = vector.shape_cast %171 : vector<1x16x8xbf16> to vector<16x8xbf16>
    %c144_225 = arith.constant 144 : index
    %c24_226 = arith.constant 24 : index
    %173 = vector.load %arg6[%c144_225, %c24_226] : memref<256x72xbf16, #tpu.memory_space<vmem>>, vector<16x8xbf16>
    tpu.vector_store %arg6[%c144_225, %c24_226], %172 {strides = array<i32>} : memref<256x72xbf16, #tpu.memory_space<vmem>>, vector<16x8xbf16>,
    %c1_227 = arith.constant 1 : index
    %c180_228 = arith.constant 180 : index
    %c0_229 = arith.constant 0 : index
    %174 = vector.load %arg1[%c1_227, %c180_228, %c0_229] : memref<3x288x8xbf16, #tpu.memory_space<vmem>>, vector<1x16x8xbf16>
    %175 = vector.shape_cast %174 : vector<1x16x8xbf16> to vector<16x8xbf16>
    %c160_230 = arith.constant 160 : index
    %c24_231 = arith.constant 24 : index
    %176 = vector.load %arg6[%c160_230, %c24_231] : memref<256x72xbf16, #tpu.memory_space<vmem>>, vector<16x8xbf16>
    tpu.vector_store %arg6[%c160_230, %c24_231], %175 {strides = array<i32>} : memref<256x72xbf16, #tpu.memory_space<vmem>>, vector<16x8xbf16>,
    %c1_232 = arith.constant 1 : index
    %c198_233 = arith.constant 198 : index
    %c0_234 = arith.constant 0 : index
    %177 = vector.load %arg1[%c1_232, %c198_233, %c0_234] : memref<3x288x8xbf16, #tpu.memory_space<vmem>>, vector<1x16x8xbf16>
    %178 = vector.shape_cast %177 : vector<1x16x8xbf16> to vector<16x8xbf16>
    %c176_235 = arith.constant 176 : index
    %c24_236 = arith.constant 24 : index
    %179 = vector.load %arg6[%c176_235, %c24_236] : memref<256x72xbf16, #tpu.memory_space<vmem>>, vector<16x8xbf16>
    tpu.vector_store %arg6[%c176_235, %c24_236], %178 {strides = array<i32>} : memref<256x72xbf16, #tpu.memory_space<vmem>>, vector<16x8xbf16>,
    %c1_237 = arith.constant 1 : index
    %c216_238 = arith.constant 216 : index
    %c0_239 = arith.constant 0 : index
    %180 = vector.load %arg1[%c1_237, %c216_238, %c0_239] : memref<3x288x8xbf16, #tpu.memory_space<vmem>>, vector<1x16x8xbf16>
    %181 = vector.shape_cast %180 : vector<1x16x8xbf16> to vector<16x8xbf16>
    %c192_240 = arith.constant 192 : index
    %c24_241 = arith.constant 24 : index
    %182 = vector.load %arg6[%c192_240, %c24_241] : memref<256x72xbf16, #tpu.memory_space<vmem>>, vector<16x8xbf16>
    tpu.vector_store %arg6[%c192_240, %c24_241], %181 {strides = array<i32>} : memref<256x72xbf16, #tpu.memory_space<vmem>>, vector<16x8xbf16>,
    %c1_242 = arith.constant 1 : index
    %c234_243 = arith.constant 234 : index
    %c0_244 = arith.constant 0 : index
    %183 = vector.load %arg1[%c1_242, %c234_243, %c0_244] : memref<3x288x8xbf16, #tpu.memory_space<vmem>>, vector<1x16x8xbf16>
    %184 = vector.shape_cast %183 : vector<1x16x8xbf16> to vector<16x8xbf16>
    %c208_245 = arith.constant 208 : index
    %c24_246 = arith.constant 24 : index
    %185 = vector.load %arg6[%c208_245, %c24_246] : memref<256x72xbf16, #tpu.memory_space<vmem>>, vector<16x8xbf16>
    tpu.vector_store %arg6[%c208_245, %c24_246], %184 {strides = array<i32>} : memref<256x72xbf16, #tpu.memory_space<vmem>>, vector<16x8xbf16>,
    %c1_247 = arith.constant 1 : index
    %c252_248 = arith.constant 252 : index
    %c0_249 = arith.constant 0 : index
    %186 = vector.load %arg1[%c1_247, %c252_248, %c0_249] : memref<3x288x8xbf16, #tpu.memory_space<vmem>>, vector<1x16x8xbf16>
    %187 = vector.shape_cast %186 : vector<1x16x8xbf16> to vector<16x8xbf16>
    %c224_250 = arith.constant 224 : index
    %c24_251 = arith.constant 24 : index
    %188 = vector.load %arg6[%c224_250, %c24_251] : memref<256x72xbf16, #tpu.memory_space<vmem>>, vector<16x8xbf16>
    tpu.vector_store %arg6[%c224_250, %c24_251], %187 {strides = array<i32>} : memref<256x72xbf16, #tpu.memory_space<vmem>>, vector<16x8xbf16>,
    %c1_252 = arith.constant 1 : index
    %c270_253 = arith.constant 270 : index
    %c0_254 = arith.constant 0 : index
    %189 = vector.load %arg1[%c1_252, %c270_253, %c0_254] : memref<3x288x8xbf16, #tpu.memory_space<vmem>>, vector<1x16x8xbf16>
    %190 = vector.shape_cast %189 : vector<1x16x8xbf16> to vector<16x8xbf16>
    %c240_255 = arith.constant 240 : index
    %c24_256 = arith.constant 24 : index
    %191 = vector.load %arg6[%c240_255, %c24_256] : memref<256x72xbf16, #tpu.memory_space<vmem>>, vector<16x8xbf16>
    tpu.vector_store %arg6[%c240_255, %c24_256], %190 {strides = array<i32>} : memref<256x72xbf16, #tpu.memory_space<vmem>>, vector<16x8xbf16>,
    %c1_257 = arith.constant 1 : index
    %c1_258 = arith.constant 1 : index
    %c0_259 = arith.constant 0 : index
    %192 = vector.load %arg1[%c1_257, %c1_258, %c0_259] : memref<3x288x8xbf16, #tpu.memory_space<vmem>>, vector<1x16x8xbf16>
    %193 = vector.shape_cast %192 : vector<1x16x8xbf16> to vector<16x8xbf16>
    %c0_260 = arith.constant 0 : index
    %c32_261 = arith.constant 32 : index
    %194 = vector.load %arg6[%c0_260, %c32_261] : memref<256x72xbf16, #tpu.memory_space<vmem>>, vector<16x8xbf16>
    tpu.vector_store %arg6[%c0_260, %c32_261], %193 {strides = array<i32>} : memref<256x72xbf16, #tpu.memory_space<vmem>>, vector<16x8xbf16>,
    %c1_262 = arith.constant 1 : index
    %c19_263 = arith.constant 19 : index
    %c0_264 = arith.constant 0 : index
    %195 = vector.load %arg1[%c1_262, %c19_263, %c0_264] : memref<3x288x8xbf16, #tpu.memory_space<vmem>>, vector<1x16x8xbf16>
    %196 = vector.shape_cast %195 : vector<1x16x8xbf16> to vector<16x8xbf16>
    %c16_265 = arith.constant 16 : index
    %c32_266 = arith.constant 32 : index
    %197 = vector.load %arg6[%c16_265, %c32_266] : memref<256x72xbf16, #tpu.memory_space<vmem>>, vector<16x8xbf16>
    tpu.vector_store %arg6[%c16_265, %c32_266], %196 {strides = array<i32>} : memref<256x72xbf16, #tpu.memory_space<vmem>>, vector<16x8xbf16>,
    %c1_267 = arith.constant 1 : index
    %c37_268 = arith.constant 37 : index
    %c0_269 = arith.constant 0 : index
    %198 = vector.load %arg1[%c1_267, %c37_268, %c0_269] : memref<3x288x8xbf16, #tpu.memory_space<vmem>>, vector<1x16x8xbf16>
    %199 = vector.shape_cast %198 : vector<1x16x8xbf16> to vector<16x8xbf16>
    %c32_270 = arith.constant 32 : index
    %c32_271 = arith.constant 32 : index
    %200 = vector.load %arg6[%c32_270, %c32_271] : memref<256x72xbf16, #tpu.memory_space<vmem>>, vector<16x8xbf16>
    tpu.vector_store %arg6[%c32_270, %c32_271], %199 {strides = array<i32>} : memref<256x72xbf16, #tpu.memory_space<vmem>>, vector<16x8xbf16>,
    %c1_272 = arith.constant 1 : index
    %c55_273 = arith.constant 55 : index
    %c0_274 = arith.constant 0 : index
    %201 = vector.load %arg1[%c1_272, %c55_273, %c0_274] : memref<3x288x8xbf16, #tpu.memory_space<vmem>>, vector<1x16x8xbf16>
    %202 = vector.shape_cast %201 : vector<1x16x8xbf16> to vector<16x8xbf16>
    %c48_275 = arith.constant 48 : index
    %c32_276 = arith.constant 32 : index
    %203 = vector.load %arg6[%c48_275, %c32_276] : memref<256x72xbf16, #tpu.memory_space<vmem>>, vector<16x8xbf16>
    tpu.vector_store %arg6[%c48_275, %c32_276], %202 {strides = array<i32>} : memref<256x72xbf16, #tpu.memory_space<vmem>>, vector<16x8xbf16>,
    %c1_277 = arith.constant 1 : index
    %c73_278 = arith.constant 73 : index
    %c0_279 = arith.constant 0 : index
    %204 = vector.load %arg1[%c1_277, %c73_278, %c0_279] : memref<3x288x8xbf16, #tpu.memory_space<vmem>>, vector<1x16x8xbf16>
    %205 = vector.shape_cast %204 : vector<1x16x8xbf16> to vector<16x8xbf16>
    %c64_280 = arith.constant 64 : index
    %c32_281 = arith.constant 32 : index
    %206 = vector.load %arg6[%c64_280, %c32_281] : memref<256x72xbf16, #tpu.memory_space<vmem>>, vector<16x8xbf16>
    tpu.vector_store %arg6[%c64_280, %c32_281], %205 {strides = array<i32>} : memref<256x72xbf16, #tpu.memory_space<vmem>>, vector<16x8xbf16>,
    %c1_282 = arith.constant 1 : index
    %c91_283 = arith.constant 91 : index
    %c0_284 = arith.constant 0 : index
    %207 = vector.load %arg1[%c1_282, %c91_283, %c0_284] : memref<3x288x8xbf16, #tpu.memory_space<vmem>>, vector<1x16x8xbf16>
    %208 = vector.shape_cast %207 : vector<1x16x8xbf16> to vector<16x8xbf16>
    %c80_285 = arith.constant 80 : index
    %c32_286 = arith.constant 32 : index
    %209 = vector.load %arg6[%c80_285, %c32_286] : memref<256x72xbf16, #tpu.memory_space<vmem>>, vector<16x8xbf16>
    tpu.vector_store %arg6[%c80_285, %c32_286], %208 {strides = array<i32>} : memref<256x72xbf16, #tpu.memory_space<vmem>>, vector<16x8xbf16>,
    %c1_287 = arith.constant 1 : index
    %c109_288 = arith.constant 109 : index
    %c0_289 = arith.constant 0 : index
    %210 = vector.load %arg1[%c1_287, %c109_288, %c0_289] : memref<3x288x8xbf16, #tpu.memory_space<vmem>>, vector<1x16x8xbf16>
    %211 = vector.shape_cast %210 : vector<1x16x8xbf16> to vector<16x8xbf16>
    %c96_290 = arith.constant 96 : index
    %c32_291 = arith.constant 32 : index
    %212 = vector.load %arg6[%c96_290, %c32_291] : memref<256x72xbf16, #tpu.memory_space<vmem>>, vector<16x8xbf16>
    tpu.vector_store %arg6[%c96_290, %c32_291], %211 {strides = array<i32>} : memref<256x72xbf16, #tpu.memory_space<vmem>>, vector<16x8xbf16>,
    %c1_292 = arith.constant 1 : index
    %c127_293 = arith.constant 127 : index
    %c0_294 = arith.constant 0 : index
    %213 = vector.load %arg1[%c1_292, %c127_293, %c0_294] : memref<3x288x8xbf16, #tpu.memory_space<vmem>>, vector<1x16x8xbf16>
    %214 = vector.shape_cast %213 : vector<1x16x8xbf16> to vector<16x8xbf16>
    %c112_295 = arith.constant 112 : index
    %c32_296 = arith.constant 32 : index
    %215 = vector.load %arg6[%c112_295, %c32_296] : memref<256x72xbf16, #tpu.memory_space<vmem>>, vector<16x8xbf16>
    tpu.vector_store %arg6[%c112_295, %c32_296], %214 {strides = array<i32>} : memref<256x72xbf16, #tpu.memory_space<vmem>>, vector<16x8xbf16>,
    %c1_297 = arith.constant 1 : index
    %c145_298 = arith.constant 145 : index
    %c0_299 = arith.constant 0 : index
    %216 = vector.load %arg1[%c1_297, %c145_298, %c0_299] : memref<3x288x8xbf16, #tpu.memory_space<vmem>>, vector<1x16x8xbf16>
    %217 = vector.shape_cast %216 : vector<1x16x8xbf16> to vector<16x8xbf16>
    %c128_300 = arith.constant 128 : index
    %c32_301 = arith.constant 32 : index
    %218 = vector.load %arg6[%c128_300, %c32_301] : memref<256x72xbf16, #tpu.memory_space<vmem>>, vector<16x8xbf16>
    tpu.vector_store %arg6[%c128_300, %c32_301], %217 {strides = array<i32>} : memref<256x72xbf16, #tpu.memory_space<vmem>>, vector<16x8xbf16>,
    %c1_302 = arith.constant 1 : index
    %c163_303 = arith.constant 163 : index
    %c0_304 = arith.constant 0 : index
    %219 = vector.load %arg1[%c1_302, %c163_303, %c0_304] : memref<3x288x8xbf16, #tpu.memory_space<vmem>>, vector<1x16x8xbf16>
    %220 = vector.shape_cast %219 : vector<1x16x8xbf16> to vector<16x8xbf16>
    %c144_305 = arith.constant 144 : index
    %c32_306 = arith.constant 32 : index
    %221 = vector.load %arg6[%c144_305, %c32_306] : memref<256x72xbf16, #tpu.memory_space<vmem>>, vector<16x8xbf16>
    tpu.vector_store %arg6[%c144_305, %c32_306], %220 {strides = array<i32>} : memref<256x72xbf16, #tpu.memory_space<vmem>>, vector<16x8xbf16>,
    %c1_307 = arith.constant 1 : index
    %c181_308 = arith.constant 181 : index
    %c0_309 = arith.constant 0 : index
    %222 = vector.load %arg1[%c1_307, %c181_308, %c0_309] : memref<3x288x8xbf16, #tpu.memory_space<vmem>>, vector<1x16x8xbf16>
    %223 = vector.shape_cast %222 : vector<1x16x8xbf16> to vector<16x8xbf16>
    %c160_310 = arith.constant 160 : index
    %c32_311 = arith.constant 32 : index
    %224 = vector.load %arg6[%c160_310, %c32_311] : memref<256x72xbf16, #tpu.memory_space<vmem>>, vector<16x8xbf16>
    tpu.vector_store %arg6[%c160_310, %c32_311], %223 {strides = array<i32>} : memref<256x72xbf16, #tpu.memory_space<vmem>>, vector<16x8xbf16>,
    %c1_312 = arith.constant 1 : index
    %c199_313 = arith.constant 199 : index
    %c0_314 = arith.constant 0 : index
    %225 = vector.load %arg1[%c1_312, %c199_313, %c0_314] : memref<3x288x8xbf16, #tpu.memory_space<vmem>>, vector<1x16x8xbf16>
    %226 = vector.shape_cast %225 : vector<1x16x8xbf16> to vector<16x8xbf16>
    %c176_315 = arith.constant 176 : index
    %c32_316 = arith.constant 32 : index
    %227 = vector.load %arg6[%c176_315, %c32_316] : memref<256x72xbf16, #tpu.memory_space<vmem>>, vector<16x8xbf16>
    tpu.vector_store %arg6[%c176_315, %c32_316], %226 {strides = array<i32>} : memref<256x72xbf16, #tpu.memory_space<vmem>>, vector<16x8xbf16>,
    %c1_317 = arith.constant 1 : index
    %c217_318 = arith.constant 217 : index
    %c0_319 = arith.constant 0 : index
    %228 = vector.load %arg1[%c1_317, %c217_318, %c0_319] : memref<3x288x8xbf16, #tpu.memory_space<vmem>>, vector<1x16x8xbf16>
    %229 = vector.shape_cast %228 : vector<1x16x8xbf16> to vector<16x8xbf16>
    %c192_320 = arith.constant 192 : index
    %c32_321 = arith.constant 32 : index
    %230 = vector.load %arg6[%c192_320, %c32_321] : memref<256x72xbf16, #tpu.memory_space<vmem>>, vector<16x8xbf16>
    tpu.vector_store %arg6[%c192_320, %c32_321], %229 {strides = array<i32>} : memref<256x72xbf16, #tpu.memory_space<vmem>>, vector<16x8xbf16>,
    %c1_322 = arith.constant 1 : index
    %c235_323 = arith.constant 235 : index
    %c0_324 = arith.constant 0 : index
    %231 = vector.load %arg1[%c1_322, %c235_323, %c0_324] : memref<3x288x8xbf16, #tpu.memory_space<vmem>>, vector<1x16x8xbf16>
    %232 = vector.shape_cast %231 : vector<1x16x8xbf16> to vector<16x8xbf16>
    %c208_325 = arith.constant 208 : index
    %c32_326 = arith.constant 32 : index
    %233 = vector.load %arg6[%c208_325, %c32_326] : memref<256x72xbf16, #tpu.memory_space<vmem>>, vector<16x8xbf16>
    tpu.vector_store %arg6[%c208_325, %c32_326], %232 {strides = array<i32>} : memref<256x72xbf16, #tpu.memory_space<vmem>>, vector<16x8xbf16>,
    %c1_327 = arith.constant 1 : index
    %c253_328 = arith.constant 253 : index
    %c0_329 = arith.constant 0 : index
    %234 = vector.load %arg1[%c1_327, %c253_328, %c0_329] : memref<3x288x8xbf16, #tpu.memory_space<vmem>>, vector<1x16x8xbf16>
    %235 = vector.shape_cast %234 : vector<1x16x8xbf16> to vector<16x8xbf16>
    %c224_330 = arith.constant 224 : index
    %c32_331 = arith.constant 32 : index
    %236 = vector.load %arg6[%c224_330, %c32_331] : memref<256x72xbf16, #tpu.memory_space<vmem>>, vector<16x8xbf16>
    tpu.vector_store %arg6[%c224_330, %c32_331], %235 {strides = array<i32>} : memref<256x72xbf16, #tpu.memory_space<vmem>>, vector<16x8xbf16>,
    %c1_332 = arith.constant 1 : index
    %c271_333 = arith.constant 271 : index
    %c0_334 = arith.constant 0 : index
    %237 = vector.load %arg1[%c1_332, %c271_333, %c0_334] : memref<3x288x8xbf16, #tpu.memory_space<vmem>>, vector<1x16x8xbf16>
    %238 = vector.shape_cast %237 : vector<1x16x8xbf16> to vector<16x8xbf16>
    %c240_335 = arith.constant 240 : index
    %c32_336 = arith.constant 32 : index
    %239 = vector.load %arg6[%c240_335, %c32_336] : memref<256x72xbf16, #tpu.memory_space<vmem>>, vector<16x8xbf16>
    tpu.vector_store %arg6[%c240_335, %c32_336], %238 {strides = array<i32>} : memref<256x72xbf16, #tpu.memory_space<vmem>>, vector<16x8xbf16>,
    %c1_337 = arith.constant 1 : index
    %c2_338 = arith.constant 2 : index
    %c0_339 = arith.constant 0 : index
    %240 = vector.load %arg1[%c1_337, %c2_338, %c0_339] : memref<3x288x8xbf16, #tpu.memory_space<vmem>>, vector<1x16x8xbf16>
    %241 = vector.shape_cast %240 : vector<1x16x8xbf16> to vector<16x8xbf16>
    %c0_340 = arith.constant 0 : index
    %c40 = arith.constant 40 : index
    %242 = vector.load %arg6[%c0_340, %c40] : memref<256x72xbf16, #tpu.memory_space<vmem>>, vector<16x8xbf16>
    tpu.vector_store %arg6[%c0_340, %c40], %241 {strides = array<i32>} : memref<256x72xbf16, #tpu.memory_space<vmem>>, vector<16x8xbf16>,
    %c1_341 = arith.constant 1 : index
    %c20_342 = arith.constant 20 : index
    %c0_343 = arith.constant 0 : index
    %243 = vector.load %arg1[%c1_341, %c20_342, %c0_343] : memref<3x288x8xbf16, #tpu.memory_space<vmem>>, vector<1x16x8xbf16>
    %244 = vector.shape_cast %243 : vector<1x16x8xbf16> to vector<16x8xbf16>
    %c16_344 = arith.constant 16 : index
    %c40_345 = arith.constant 40 : index
    %245 = vector.load %arg6[%c16_344, %c40_345] : memref<256x72xbf16, #tpu.memory_space<vmem>>, vector<16x8xbf16>
    tpu.vector_store %arg6[%c16_344, %c40_345], %244 {strides = array<i32>} : memref<256x72xbf16, #tpu.memory_space<vmem>>, vector<16x8xbf16>,
    %c1_346 = arith.constant 1 : index
    %c38_347 = arith.constant 38 : index
    %c0_348 = arith.constant 0 : index
    %246 = vector.load %arg1[%c1_346, %c38_347, %c0_348] : memref<3x288x8xbf16, #tpu.memory_space<vmem>>, vector<1x16x8xbf16>
    %247 = vector.shape_cast %246 : vector<1x16x8xbf16> to vector<16x8xbf16>
    %c32_349 = arith.constant 32 : index
    %c40_350 = arith.constant 40 : index
    %248 = vector.load %arg6[%c32_349, %c40_350] : memref<256x72xbf16, #tpu.memory_space<vmem>>, vector<16x8xbf16>
    tpu.vector_store %arg6[%c32_349, %c40_350], %247 {strides = array<i32>} : memref<256x72xbf16, #tpu.memory_space<vmem>>, vector<16x8xbf16>,
    %c1_351 = arith.constant 1 : index
    %c56_352 = arith.constant 56 : index
    %c0_353 = arith.constant 0 : index
    %249 = vector.load %arg1[%c1_351, %c56_352, %c0_353] : memref<3x288x8xbf16, #tpu.memory_space<vmem>>, vector<1x16x8xbf16>
    %250 = vector.shape_cast %249 : vector<1x16x8xbf16> to vector<16x8xbf16>
    %c48_354 = arith.constant 48 : index
    %c40_355 = arith.constant 40 : index
    %251 = vector.load %arg6[%c48_354, %c40_355] : memref<256x72xbf16, #tpu.memory_space<vmem>>, vector<16x8xbf16>
    tpu.vector_store %arg6[%c48_354, %c40_355], %250 {strides = array<i32>} : memref<256x72xbf16, #tpu.memory_space<vmem>>, vector<16x8xbf16>,
    %c1_356 = arith.constant 1 : index
    %c74_357 = arith.constant 74 : index
    %c0_358 = arith.constant 0 : index
    %252 = vector.load %arg1[%c1_356, %c74_357, %c0_358] : memref<3x288x8xbf16, #tpu.memory_space<vmem>>, vector<1x16x8xbf16>
    %253 = vector.shape_cast %252 : vector<1x16x8xbf16> to vector<16x8xbf16>
    %c64_359 = arith.constant 64 : index
    %c40_360 = arith.constant 40 : index
    %254 = vector.load %arg6[%c64_359, %c40_360] : memref<256x72xbf16, #tpu.memory_space<vmem>>, vector<16x8xbf16>
    tpu.vector_store %arg6[%c64_359, %c40_360], %253 {strides = array<i32>} : memref<256x72xbf16, #tpu.memory_space<vmem>>, vector<16x8xbf16>,
    %c1_361 = arith.constant 1 : index
    %c92_362 = arith.constant 92 : index
    %c0_363 = arith.constant 0 : index
    %255 = vector.load %arg1[%c1_361, %c92_362, %c0_363] : memref<3x288x8xbf16, #tpu.memory_space<vmem>>, vector<1x16x8xbf16>
    %256 = vector.shape_cast %255 : vector<1x16x8xbf16> to vector<16x8xbf16>
    %c80_364 = arith.constant 80 : index
    %c40_365 = arith.constant 40 : index
    %257 = vector.load %arg6[%c80_364, %c40_365] : memref<256x72xbf16, #tpu.memory_space<vmem>>, vector<16x8xbf16>
    tpu.vector_store %arg6[%c80_364, %c40_365], %256 {strides = array<i32>} : memref<256x72xbf16, #tpu.memory_space<vmem>>, vector<16x8xbf16>,
    %c1_366 = arith.constant 1 : index
    %c110_367 = arith.constant 110 : index
    %c0_368 = arith.constant 0 : index
    %258 = vector.load %arg1[%c1_366, %c110_367, %c0_368] : memref<3x288x8xbf16, #tpu.memory_space<vmem>>, vector<1x16x8xbf16>
    %259 = vector.shape_cast %258 : vector<1x16x8xbf16> to vector<16x8xbf16>
    %c96_369 = arith.constant 96 : index
    %c40_370 = arith.constant 40 : index
    %260 = vector.load %arg6[%c96_369, %c40_370] : memref<256x72xbf16, #tpu.memory_space<vmem>>, vector<16x8xbf16>
    tpu.vector_store %arg6[%c96_369, %c40_370], %259 {strides = array<i32>} : memref<256x72xbf16, #tpu.memory_space<vmem>>, vector<16x8xbf16>,
    %c1_371 = arith.constant 1 : index
    %c128_372 = arith.constant 128 : index
    %c0_373 = arith.constant 0 : index
    %261 = vector.load %arg1[%c1_371, %c128_372, %c0_373] : memref<3x288x8xbf16, #tpu.memory_space<vmem>>, vector<1x16x8xbf16>
    %262 = vector.shape_cast %261 : vector<1x16x8xbf16> to vector<16x8xbf16>
    %c112_374 = arith.constant 112 : index
    %c40_375 = arith.constant 40 : index
    %263 = vector.load %arg6[%c112_374, %c40_375] : memref<256x72xbf16, #tpu.memory_space<vmem>>, vector<16x8xbf16>
    tpu.vector_store %arg6[%c112_374, %c40_375], %262 {strides = array<i32>} : memref<256x72xbf16, #tpu.memory_space<vmem>>, vector<16x8xbf16>,
    %c1_376 = arith.constant 1 : index
    %c146_377 = arith.constant 146 : index
    %c0_378 = arith.constant 0 : index
    %264 = vector.load %arg1[%c1_376, %c146_377, %c0_378] : memref<3x288x8xbf16, #tpu.memory_space<vmem>>, vector<1x16x8xbf16>
    %265 = vector.shape_cast %264 : vector<1x16x8xbf16> to vector<16x8xbf16>
    %c128_379 = arith.constant 128 : index
    %c40_380 = arith.constant 40 : index
    %266 = vector.load %arg6[%c128_379, %c40_380] : memref<256x72xbf16, #tpu.memory_space<vmem>>, vector<16x8xbf16>
    tpu.vector_store %arg6[%c128_379, %c40_380], %265 {strides = array<i32>} : memref<256x72xbf16, #tpu.memory_space<vmem>>, vector<16x8xbf16>,
    %c1_381 = arith.constant 1 : index
    %c164_382 = arith.constant 164 : index
    %c0_383 = arith.constant 0 : index
    %267 = vector.load %arg1[%c1_381, %c164_382, %c0_383] : memref<3x288x8xbf16, #tpu.memory_space<vmem>>, vector<1x16x8xbf16>
    %268 = vector.shape_cast %267 : vector<1x16x8xbf16> to vector<16x8xbf16>
    %c144_384 = arith.constant 144 : index
    %c40_385 = arith.constant 40 : index
    %269 = vector.load %arg6[%c144_384, %c40_385] : memref<256x72xbf16, #tpu.memory_space<vmem>>, vector<16x8xbf16>
    tpu.vector_store %arg6[%c144_384, %c40_385], %268 {strides = array<i32>} : memref<256x72xbf16, #tpu.memory_space<vmem>>, vector<16x8xbf16>,
    %c1_386 = arith.constant 1 : index
    %c182_387 = arith.constant 182 : index
    %c0_388 = arith.constant 0 : index
    %270 = vector.load %arg1[%c1_386, %c182_387, %c0_388] : memref<3x288x8xbf16, #tpu.memory_space<vmem>>, vector<1x16x8xbf16>
    %271 = vector.shape_cast %270 : vector<1x16x8xbf16> to vector<16x8xbf16>
    %c160_389 = arith.constant 160 : index
    %c40_390 = arith.constant 40 : index
    %272 = vector.load %arg6[%c160_389, %c40_390] : memref<256x72xbf16, #tpu.memory_space<vmem>>, vector<16x8xbf16>
    tpu.vector_store %arg6[%c160_389, %c40_390], %271 {strides = array<i32>} : memref<256x72xbf16, #tpu.memory_space<vmem>>, vector<16x8xbf16>,
    %c1_391 = arith.constant 1 : index
    %c200_392 = arith.constant 200 : index
    %c0_393 = arith.constant 0 : index
    %273 = vector.load %arg1[%c1_391, %c200_392, %c0_393] : memref<3x288x8xbf16, #tpu.memory_space<vmem>>, vector<1x16x8xbf16>
    %274 = vector.shape_cast %273 : vector<1x16x8xbf16> to vector<16x8xbf16>
    %c176_394 = arith.constant 176 : index
    %c40_395 = arith.constant 40 : index
    %275 = vector.load %arg6[%c176_394, %c40_395] : memref<256x72xbf16, #tpu.memory_space<vmem>>, vector<16x8xbf16>
    tpu.vector_store %arg6[%c176_394, %c40_395], %274 {strides = array<i32>} : memref<256x72xbf16, #tpu.memory_space<vmem>>, vector<16x8xbf16>,
    %c1_396 = arith.constant 1 : index
    %c218_397 = arith.constant 218 : index
    %c0_398 = arith.constant 0 : index
    %276 = vector.load %arg1[%c1_396, %c218_397, %c0_398] : memref<3x288x8xbf16, #tpu.memory_space<vmem>>, vector<1x16x8xbf16>
    %277 = vector.shape_cast %276 : vector<1x16x8xbf16> to vector<16x8xbf16>
    %c192_399 = arith.constant 192 : index
    %c40_400 = arith.constant 40 : index
    %278 = vector.load %arg6[%c192_399, %c40_400] : memref<256x72xbf16, #tpu.memory_space<vmem>>, vector<16x8xbf16>
    tpu.vector_store %arg6[%c192_399, %c40_400], %277 {strides = array<i32>} : memref<256x72xbf16, #tpu.memory_space<vmem>>, vector<16x8xbf16>,
    %c1_401 = arith.constant 1 : index
    %c236_402 = arith.constant 236 : index
    %c0_403 = arith.constant 0 : index
    %279 = vector.load %arg1[%c1_401, %c236_402, %c0_403] : memref<3x288x8xbf16, #tpu.memory_space<vmem>>, vector<1x16x8xbf16>
    %280 = vector.shape_cast %279 : vector<1x16x8xbf16> to vector<16x8xbf16>
    %c208_404 = arith.constant 208 : index
    %c40_405 = arith.constant 40 : index
    %281 = vector.load %arg6[%c208_404, %c40_405] : memref<256x72xbf16, #tpu.memory_space<vmem>>, vector<16x8xbf16>
    tpu.vector_store %arg6[%c208_404, %c40_405], %280 {strides = array<i32>} : memref<256x72xbf16, #tpu.memory_space<vmem>>, vector<16x8xbf16>,
    %c1_406 = arith.constant 1 : index
    %c254_407 = arith.constant 254 : index
    %c0_408 = arith.constant 0 : index
    %282 = vector.load %arg1[%c1_406, %c254_407, %c0_408] : memref<3x288x8xbf16, #tpu.memory_space<vmem>>, vector<1x16x8xbf16>
    %283 = vector.shape_cast %282 : vector<1x16x8xbf16> to vector<16x8xbf16>
    %c224_409 = arith.constant 224 : index
    %c40_410 = arith.constant 40 : index
    %284 = vector.load %arg6[%c224_409, %c40_410] : memref<256x72xbf16, #tpu.memory_space<vmem>>, vector<16x8xbf16>
    tpu.vector_store %arg6[%c224_409, %c40_410], %283 {strides = array<i32>} : memref<256x72xbf16, #tpu.memory_space<vmem>>, vector<16x8xbf16>,
    %c1_411 = arith.constant 1 : index
    %c272_412 = arith.constant 272 : index
    %c0_413 = arith.constant 0 : index
    %285 = vector.load %arg1[%c1_411, %c272_412, %c0_413] : memref<3x288x8xbf16, #tpu.memory_space<vmem>>, vector<1x16x8xbf16>
    %286 = vector.shape_cast %285 : vector<1x16x8xbf16> to vector<16x8xbf16>
    %c240_414 = arith.constant 240 : index
    %c40_415 = arith.constant 40 : index
    %287 = vector.load %arg6[%c240_414, %c40_415] : memref<256x72xbf16, #tpu.memory_space<vmem>>, vector<16x8xbf16>
    tpu.vector_store %arg6[%c240_414, %c40_415], %286 {strides = array<i32>} : memref<256x72xbf16, #tpu.memory_space<vmem>>, vector<16x8xbf16>,
    %c2_416 = arith.constant 2 : index
    %c0_417 = arith.constant 0 : index
    %c0_418 = arith.constant 0 : index
    %288 = vector.load %arg1[%c2_416, %c0_417, %c0_418] : memref<3x288x8xbf16, #tpu.memory_space<vmem>>, vector<1x16x8xbf16>
    %289 = vector.shape_cast %288 : vector<1x16x8xbf16> to vector<16x8xbf16>
    %c0_419 = arith.constant 0 : index
    %c48_420 = arith.constant 48 : index
    %290 = vector.load %arg6[%c0_419, %c48_420] : memref<256x72xbf16, #tpu.memory_space<vmem>>, vector<16x8xbf16>
    tpu.vector_store %arg6[%c0_419, %c48_420], %289 {strides = array<i32>} : memref<256x72xbf16, #tpu.memory_space<vmem>>, vector<16x8xbf16>,
    %c2_421 = arith.constant 2 : index
    %c18_422 = arith.constant 18 : index
    %c0_423 = arith.constant 0 : index
    %291 = vector.load %arg1[%c2_421, %c18_422, %c0_423] : memref<3x288x8xbf16, #tpu.memory_space<vmem>>, vector<1x16x8xbf16>
    %292 = vector.shape_cast %291 : vector<1x16x8xbf16> to vector<16x8xbf16>
    %c16_424 = arith.constant 16 : index
    %c48_425 = arith.constant 48 : index
    %293 = vector.load %arg6[%c16_424, %c48_425] : memref<256x72xbf16, #tpu.memory_space<vmem>>, vector<16x8xbf16>
    tpu.vector_store %arg6[%c16_424, %c48_425], %292 {strides = array<i32>} : memref<256x72xbf16, #tpu.memory_space<vmem>>, vector<16x8xbf16>,
    %c2_426 = arith.constant 2 : index
    %c36_427 = arith.constant 36 : index
    %c0_428 = arith.constant 0 : index
    %294 = vector.load %arg1[%c2_426, %c36_427, %c0_428] : memref<3x288x8xbf16, #tpu.memory_space<vmem>>, vector<1x16x8xbf16>
    %295 = vector.shape_cast %294 : vector<1x16x8xbf16> to vector<16x8xbf16>
    %c32_429 = arith.constant 32 : index
    %c48_430 = arith.constant 48 : index
    %296 = vector.load %arg6[%c32_429, %c48_430] : memref<256x72xbf16, #tpu.memory_space<vmem>>, vector<16x8xbf16>
    tpu.vector_store %arg6[%c32_429, %c48_430], %295 {strides = array<i32>} : memref<256x72xbf16, #tpu.memory_space<vmem>>, vector<16x8xbf16>,
    %c2_431 = arith.constant 2 : index
    %c54_432 = arith.constant 54 : index
    %c0_433 = arith.constant 0 : index
    %297 = vector.load %arg1[%c2_431, %c54_432, %c0_433] : memref<3x288x8xbf16, #tpu.memory_space<vmem>>, vector<1x16x8xbf16>
    %298 = vector.shape_cast %297 : vector<1x16x8xbf16> to vector<16x8xbf16>
    %c48_434 = arith.constant 48 : index
    %c48_435 = arith.constant 48 : index
    %299 = vector.load %arg6[%c48_434, %c48_435] : memref<256x72xbf16, #tpu.memory_space<vmem>>, vector<16x8xbf16>
    tpu.vector_store %arg6[%c48_434, %c48_435], %298 {strides = array<i32>} : memref<256x72xbf16, #tpu.memory_space<vmem>>, vector<16x8xbf16>,
    %c2_436 = arith.constant 2 : index
    %c72_437 = arith.constant 72 : index
    %c0_438 = arith.constant 0 : index
    %300 = vector.load %arg1[%c2_436, %c72_437, %c0_438] : memref<3x288x8xbf16, #tpu.memory_space<vmem>>, vector<1x16x8xbf16>
    %301 = vector.shape_cast %300 : vector<1x16x8xbf16> to vector<16x8xbf16>
    %c64_439 = arith.constant 64 : index
    %c48_440 = arith.constant 48 : index
    %302 = vector.load %arg6[%c64_439, %c48_440] : memref<256x72xbf16, #tpu.memory_space<vmem>>, vector<16x8xbf16>
    tpu.vector_store %arg6[%c64_439, %c48_440], %301 {strides = array<i32>} : memref<256x72xbf16, #tpu.memory_space<vmem>>, vector<16x8xbf16>,
    %c2_441 = arith.constant 2 : index
    %c90_442 = arith.constant 90 : index
    %c0_443 = arith.constant 0 : index
    %303 = vector.load %arg1[%c2_441, %c90_442, %c0_443] : memref<3x288x8xbf16, #tpu.memory_space<vmem>>, vector<1x16x8xbf16>
    %304 = vector.shape_cast %303 : vector<1x16x8xbf16> to vector<16x8xbf16>
    %c80_444 = arith.constant 80 : index
    %c48_445 = arith.constant 48 : index
    %305 = vector.load %arg6[%c80_444, %c48_445] : memref<256x72xbf16, #tpu.memory_space<vmem>>, vector<16x8xbf16>
    tpu.vector_store %arg6[%c80_444, %c48_445], %304 {strides = array<i32>} : memref<256x72xbf16, #tpu.memory_space<vmem>>, vector<16x8xbf16>,
    %c2_446 = arith.constant 2 : index
    %c108_447 = arith.constant 108 : index
    %c0_448 = arith.constant 0 : index
    %306 = vector.load %arg1[%c2_446, %c108_447, %c0_448] : memref<3x288x8xbf16, #tpu.memory_space<vmem>>, vector<1x16x8xbf16>
    %307 = vector.shape_cast %306 : vector<1x16x8xbf16> to vector<16x8xbf16>
    %c96_449 = arith.constant 96 : index
    %c48_450 = arith.constant 48 : index
    %308 = vector.load %arg6[%c96_449, %c48_450] : memref<256x72xbf16, #tpu.memory_space<vmem>>, vector<16x8xbf16>
    tpu.vector_store %arg6[%c96_449, %c48_450], %307 {strides = array<i32>} : memref<256x72xbf16, #tpu.memory_space<vmem>>, vector<16x8xbf16>,
    %c2_451 = arith.constant 2 : index
    %c126_452 = arith.constant 126 : index
    %c0_453 = arith.constant 0 : index
    %309 = vector.load %arg1[%c2_451, %c126_452, %c0_453] : memref<3x288x8xbf16, #tpu.memory_space<vmem>>, vector<1x16x8xbf16>
    %310 = vector.shape_cast %309 : vector<1x16x8xbf16> to vector<16x8xbf16>
    %c112_454 = arith.constant 112 : index
    %c48_455 = arith.constant 48 : index
    %311 = vector.load %arg6[%c112_454, %c48_455] : memref<256x72xbf16, #tpu.memory_space<vmem>>, vector<16x8xbf16>
    tpu.vector_store %arg6[%c112_454, %c48_455], %310 {strides = array<i32>} : memref<256x72xbf16, #tpu.memory_space<vmem>>, vector<16x8xbf16>,
    %c2_456 = arith.constant 2 : index
    %c144_457 = arith.constant 144 : index
    %c0_458 = arith.constant 0 : index
    %312 = vector.load %arg1[%c2_456, %c144_457, %c0_458] : memref<3x288x8xbf16, #tpu.memory_space<vmem>>, vector<1x16x8xbf16>
    %313 = vector.shape_cast %312 : vector<1x16x8xbf16> to vector<16x8xbf16>
    %c128_459 = arith.constant 128 : index
    %c48_460 = arith.constant 48 : index
    %314 = vector.load %arg6[%c128_459, %c48_460] : memref<256x72xbf16, #tpu.memory_space<vmem>>, vector<16x8xbf16>
    tpu.vector_store %arg6[%c128_459, %c48_460], %313 {strides = array<i32>} : memref<256x72xbf16, #tpu.memory_space<vmem>>, vector<16x8xbf16>,
    %c2_461 = arith.constant 2 : index
    %c162_462 = arith.constant 162 : index
    %c0_463 = arith.constant 0 : index
    %315 = vector.load %arg1[%c2_461, %c162_462, %c0_463] : memref<3x288x8xbf16, #tpu.memory_space<vmem>>, vector<1x16x8xbf16>
    %316 = vector.shape_cast %315 : vector<1x16x8xbf16> to vector<16x8xbf16>
    %c144_464 = arith.constant 144 : index
    %c48_465 = arith.constant 48 : index
    %317 = vector.load %arg6[%c144_464, %c48_465] : memref<256x72xbf16, #tpu.memory_space<vmem>>, vector<16x8xbf16>
    tpu.vector_store %arg6[%c144_464, %c48_465], %316 {strides = array<i32>} : memref<256x72xbf16, #tpu.memory_space<vmem>>, vector<16x8xbf16>,
    %c2_466 = arith.constant 2 : index
    %c180_467 = arith.constant 180 : index
    %c0_468 = arith.constant 0 : index
    %318 = vector.load %arg1[%c2_466, %c180_467, %c0_468] : memref<3x288x8xbf16, #tpu.memory_space<vmem>>, vector<1x16x8xbf16>
    %319 = vector.shape_cast %318 : vector<1x16x8xbf16> to vector<16x8xbf16>
    %c160_469 = arith.constant 160 : index
    %c48_470 = arith.constant 48 : index
    %320 = vector.load %arg6[%c160_469, %c48_470] : memref<256x72xbf16, #tpu.memory_space<vmem>>, vector<16x8xbf16>
    tpu.vector_store %arg6[%c160_469, %c48_470], %319 {strides = array<i32>} : memref<256x72xbf16, #tpu.memory_space<vmem>>, vector<16x8xbf16>,
    %c2_471 = arith.constant 2 : index
    %c198_472 = arith.constant 198 : index
    %c0_473 = arith.constant 0 : index
    %321 = vector.load %arg1[%c2_471, %c198_472, %c0_473] : memref<3x288x8xbf16, #tpu.memory_space<vmem>>, vector<1x16x8xbf16>
    %322 = vector.shape_cast %321 : vector<1x16x8xbf16> to vector<16x8xbf16>
    %c176_474 = arith.constant 176 : index
    %c48_475 = arith.constant 48 : index
    %323 = vector.load %arg6[%c176_474, %c48_475] : memref<256x72xbf16, #tpu.memory_space<vmem>>, vector<16x8xbf16>
    tpu.vector_store %arg6[%c176_474, %c48_475], %322 {strides = array<i32>} : memref<256x72xbf16, #tpu.memory_space<vmem>>, vector<16x8xbf16>,
    %c2_476 = arith.constant 2 : index
    %c216_477 = arith.constant 216 : index
    %c0_478 = arith.constant 0 : index
    %324 = vector.load %arg1[%c2_476, %c216_477, %c0_478] : memref<3x288x8xbf16, #tpu.memory_space<vmem>>, vector<1x16x8xbf16>
    %325 = vector.shape_cast %324 : vector<1x16x8xbf16> to vector<16x8xbf16>
    %c192_479 = arith.constant 192 : index
    %c48_480 = arith.constant 48 : index
    %326 = vector.load %arg6[%c192_479, %c48_480] : memref<256x72xbf16, #tpu.memory_space<vmem>>, vector<16x8xbf16>
    tpu.vector_store %arg6[%c192_479, %c48_480], %325 {strides = array<i32>} : memref<256x72xbf16, #tpu.memory_space<vmem>>, vector<16x8xbf16>,
    %c2_481 = arith.constant 2 : index
    %c234_482 = arith.constant 234 : index
    %c0_483 = arith.constant 0 : index
    %327 = vector.load %arg1[%c2_481, %c234_482, %c0_483] : memref<3x288x8xbf16, #tpu.memory_space<vmem>>, vector<1x16x8xbf16>
    %328 = vector.shape_cast %327 : vector<1x16x8xbf16> to vector<16x8xbf16>
    %c208_484 = arith.constant 208 : index
    %c48_485 = arith.constant 48 : index
    %329 = vector.load %arg6[%c208_484, %c48_485] : memref<256x72xbf16, #tpu.memory_space<vmem>>, vector<16x8xbf16>
    tpu.vector_store %arg6[%c208_484, %c48_485], %328 {strides = array<i32>} : memref<256x72xbf16, #tpu.memory_space<vmem>>, vector<16x8xbf16>,
    %c2_486 = arith.constant 2 : index
    %c252_487 = arith.constant 252 : index
    %c0_488 = arith.constant 0 : index
    %330 = vector.load %arg1[%c2_486, %c252_487, %c0_488] : memref<3x288x8xbf16, #tpu.memory_space<vmem>>, vector<1x16x8xbf16>
    %331 = vector.shape_cast %330 : vector<1x16x8xbf16> to vector<16x8xbf16>
    %c224_489 = arith.constant 224 : index
    %c48_490 = arith.constant 48 : index
    %332 = vector.load %arg6[%c224_489, %c48_490] : memref<256x72xbf16, #tpu.memory_space<vmem>>, vector<16x8xbf16>
    tpu.vector_store %arg6[%c224_489, %c48_490], %331 {strides = array<i32>} : memref<256x72xbf16, #tpu.memory_space<vmem>>, vector<16x8xbf16>,
    %c2_491 = arith.constant 2 : index
    %c270_492 = arith.constant 270 : index
    %c0_493 = arith.constant 0 : index
    %333 = vector.load %arg1[%c2_491, %c270_492, %c0_493] : memref<3x288x8xbf16, #tpu.memory_space<vmem>>, vector<1x16x8xbf16>
    %334 = vector.shape_cast %333 : vector<1x16x8xbf16> to vector<16x8xbf16>
    %c240_494 = arith.constant 240 : index
    %c48_495 = arith.constant 48 : index
    %335 = vector.load %arg6[%c240_494, %c48_495] : memref<256x72xbf16, #tpu.memory_space<vmem>>, vector<16x8xbf16>
    tpu.vector_store %arg6[%c240_494, %c48_495], %334 {strides = array<i32>} : memref<256x72xbf16, #tpu.memory_space<vmem>>, vector<16x8xbf16>,
    %c2_496 = arith.constant 2 : index
    %c1_497 = arith.constant 1 : index
    %c0_498 = arith.constant 0 : index
    %336 = vector.load %arg1[%c2_496, %c1_497, %c0_498] : memref<3x288x8xbf16, #tpu.memory_space<vmem>>, vector<1x16x8xbf16>
    %337 = vector.shape_cast %336 : vector<1x16x8xbf16> to vector<16x8xbf16>
    %c0_499 = arith.constant 0 : index
    %c56_500 = arith.constant 56 : index
    %338 = vector.load %arg6[%c0_499, %c56_500] : memref<256x72xbf16, #tpu.memory_space<vmem>>, vector<16x8xbf16>
    tpu.vector_store %arg6[%c0_499, %c56_500], %337 {strides = array<i32>} : memref<256x72xbf16, #tpu.memory_space<vmem>>, vector<16x8xbf16>,
    %c2_501 = arith.constant 2 : index
    %c19_502 = arith.constant 19 : index
    %c0_503 = arith.constant 0 : index
    %339 = vector.load %arg1[%c2_501, %c19_502, %c0_503] : memref<3x288x8xbf16, #tpu.memory_space<vmem>>, vector<1x16x8xbf16>
    %340 = vector.shape_cast %339 : vector<1x16x8xbf16> to vector<16x8xbf16>
    %c16_504 = arith.constant 16 : index
    %c56_505 = arith.constant 56 : index
    %341 = vector.load %arg6[%c16_504, %c56_505] : memref<256x72xbf16, #tpu.memory_space<vmem>>, vector<16x8xbf16>
    tpu.vector_store %arg6[%c16_504, %c56_505], %340 {strides = array<i32>} : memref<256x72xbf16, #tpu.memory_space<vmem>>, vector<16x8xbf16>,
    %c2_506 = arith.constant 2 : index
    %c37_507 = arith.constant 37 : index
    %c0_508 = arith.constant 0 : index
    %342 = vector.load %arg1[%c2_506, %c37_507, %c0_508] : memref<3x288x8xbf16, #tpu.memory_space<vmem>>, vector<1x16x8xbf16>
    %343 = vector.shape_cast %342 : vector<1x16x8xbf16> to vector<16x8xbf16>
    %c32_509 = arith.constant 32 : index
    %c56_510 = arith.constant 56 : index
    %344 = vector.load %arg6[%c32_509, %c56_510] : memref<256x72xbf16, #tpu.memory_space<vmem>>, vector<16x8xbf16>
    tpu.vector_store %arg6[%c32_509, %c56_510], %343 {strides = array<i32>} : memref<256x72xbf16, #tpu.memory_space<vmem>>, vector<16x8xbf16>,
    %c2_511 = arith.constant 2 : index
    %c55_512 = arith.constant 55 : index
    %c0_513 = arith.constant 0 : index
    %345 = vector.load %arg1[%c2_511, %c55_512, %c0_513] : memref<3x288x8xbf16, #tpu.memory_space<vmem>>, vector<1x16x8xbf16>
    %346 = vector.shape_cast %345 : vector<1x16x8xbf16> to vector<16x8xbf16>
    %c48_514 = arith.constant 48 : index
    %c56_515 = arith.constant 56 : index
    %347 = vector.load %arg6[%c48_514, %c56_515] : memref<256x72xbf16, #tpu.memory_space<vmem>>, vector<16x8xbf16>
    tpu.vector_store %arg6[%c48_514, %c56_515], %346 {strides = array<i32>} : memref<256x72xbf16, #tpu.memory_space<vmem>>, vector<16x8xbf16>,
    %c2_516 = arith.constant 2 : index
    %c73_517 = arith.constant 73 : index
    %c0_518 = arith.constant 0 : index
    %348 = vector.load %arg1[%c2_516, %c73_517, %c0_518] : memref<3x288x8xbf16, #tpu.memory_space<vmem>>, vector<1x16x8xbf16>
    %349 = vector.shape_cast %348 : vector<1x16x8xbf16> to vector<16x8xbf16>
    %c64_519 = arith.constant 64 : index
    %c56_520 = arith.constant 56 : index
    %350 = vector.load %arg6[%c64_519, %c56_520] : memref<256x72xbf16, #tpu.memory_space<vmem>>, vector<16x8xbf16>
    tpu.vector_store %arg6[%c64_519, %c56_520], %349 {strides = array<i32>} : memref<256x72xbf16, #tpu.memory_space<vmem>>, vector<16x8xbf16>,
    %c2_521 = arith.constant 2 : index
    %c91_522 = arith.constant 91 : index
    %c0_523 = arith.constant 0 : index
    %351 = vector.load %arg1[%c2_521, %c91_522, %c0_523] : memref<3x288x8xbf16, #tpu.memory_space<vmem>>, vector<1x16x8xbf16>
    %352 = vector.shape_cast %351 : vector<1x16x8xbf16> to vector<16x8xbf16>
    %c80_524 = arith.constant 80 : index
    %c56_525 = arith.constant 56 : index
    %353 = vector.load %arg6[%c80_524, %c56_525] : memref<256x72xbf16, #tpu.memory_space<vmem>>, vector<16x8xbf16>
    tpu.vector_store %arg6[%c80_524, %c56_525], %352 {strides = array<i32>} : memref<256x72xbf16, #tpu.memory_space<vmem>>, vector<16x8xbf16>,
    %c2_526 = arith.constant 2 : index
    %c109_527 = arith.constant 109 : index
    %c0_528 = arith.constant 0 : index
    %354 = vector.load %arg1[%c2_526, %c109_527, %c0_528] : memref<3x288x8xbf16, #tpu.memory_space<vmem>>, vector<1x16x8xbf16>
    %355 = vector.shape_cast %354 : vector<1x16x8xbf16> to vector<16x8xbf16>
    %c96_529 = arith.constant 96 : index
    %c56_530 = arith.constant 56 : index
    %356 = vector.load %arg6[%c96_529, %c56_530] : memref<256x72xbf16, #tpu.memory_space<vmem>>, vector<16x8xbf16>
    tpu.vector_store %arg6[%c96_529, %c56_530], %355 {strides = array<i32>} : memref<256x72xbf16, #tpu.memory_space<vmem>>, vector<16x8xbf16>,
    %c2_531 = arith.constant 2 : index
    %c127_532 = arith.constant 127 : index
    %c0_533 = arith.constant 0 : index
    %357 = vector.load %arg1[%c2_531, %c127_532, %c0_533] : memref<3x288x8xbf16, #tpu.memory_space<vmem>>, vector<1x16x8xbf16>
    %358 = vector.shape_cast %357 : vector<1x16x8xbf16> to vector<16x8xbf16>
    %c112_534 = arith.constant 112 : index
    %c56_535 = arith.constant 56 : index
    %359 = vector.load %arg6[%c112_534, %c56_535] : memref<256x72xbf16, #tpu.memory_space<vmem>>, vector<16x8xbf16>
    tpu.vector_store %arg6[%c112_534, %c56_535], %358 {strides = array<i32>} : memref<256x72xbf16, #tpu.memory_space<vmem>>, vector<16x8xbf16>,
    %c2_536 = arith.constant 2 : index
    %c145_537 = arith.constant 145 : index
    %c0_538 = arith.constant 0 : index
    %360 = vector.load %arg1[%c2_536, %c145_537, %c0_538] : memref<3x288x8xbf16, #tpu.memory_space<vmem>>, vector<1x16x8xbf16>
    %361 = vector.shape_cast %360 : vector<1x16x8xbf16> to vector<16x8xbf16>
    %c128_539 = arith.constant 128 : index
    %c56_540 = arith.constant 56 : index
    %362 = vector.load %arg6[%c128_539, %c56_540] : memref<256x72xbf16, #tpu.memory_space<vmem>>, vector<16x8xbf16>
    tpu.vector_store %arg6[%c128_539, %c56_540], %361 {strides = array<i32>} : memref<256x72xbf16, #tpu.memory_space<vmem>>, vector<16x8xbf16>,
    %c2_541 = arith.constant 2 : index
    %c163_542 = arith.constant 163 : index
    %c0_543 = arith.constant 0 : index
    %363 = vector.load %arg1[%c2_541, %c163_542, %c0_543] : memref<3x288x8xbf16, #tpu.memory_space<vmem>>, vector<1x16x8xbf16>
    %364 = vector.shape_cast %363 : vector<1x16x8xbf16> to vector<16x8xbf16>
    %c144_544 = arith.constant 144 : index
    %c56_545 = arith.constant 56 : index
    %365 = vector.load %arg6[%c144_544, %c56_545] : memref<256x72xbf16, #tpu.memory_space<vmem>>, vector<16x8xbf16>
    tpu.vector_store %arg6[%c144_544, %c56_545], %364 {strides = array<i32>} : memref<256x72xbf16, #tpu.memory_space<vmem>>, vector<16x8xbf16>,
    %c2_546 = arith.constant 2 : index
    %c181_547 = arith.constant 181 : index
    %c0_548 = arith.constant 0 : index
    %366 = vector.load %arg1[%c2_546, %c181_547, %c0_548] : memref<3x288x8xbf16, #tpu.memory_space<vmem>>, vector<1x16x8xbf16>
    %367 = vector.shape_cast %366 : vector<1x16x8xbf16> to vector<16x8xbf16>
    %c160_549 = arith.constant 160 : index
    %c56_550 = arith.constant 56 : index
    %368 = vector.load %arg6[%c160_549, %c56_550] : memref<256x72xbf16, #tpu.memory_space<vmem>>, vector<16x8xbf16>
    tpu.vector_store %arg6[%c160_549, %c56_550], %367 {strides = array<i32>} : memref<256x72xbf16, #tpu.memory_space<vmem>>, vector<16x8xbf16>,
    %c2_551 = arith.constant 2 : index
    %c199_552 = arith.constant 199 : index
    %c0_553 = arith.constant 0 : index
    %369 = vector.load %arg1[%c2_551, %c199_552, %c0_553] : memref<3x288x8xbf16, #tpu.memory_space<vmem>>, vector<1x16x8xbf16>
    %370 = vector.shape_cast %369 : vector<1x16x8xbf16> to vector<16x8xbf16>
    %c176_554 = arith.constant 176 : index
    %c56_555 = arith.constant 56 : index
    %371 = vector.load %arg6[%c176_554, %c56_555] : memref<256x72xbf16, #tpu.memory_space<vmem>>, vector<16x8xbf16>
    tpu.vector_store %arg6[%c176_554, %c56_555], %370 {strides = array<i32>} : memref<256x72xbf16, #tpu.memory_space<vmem>>, vector<16x8xbf16>,
    %c2_556 = arith.constant 2 : index
    %c217_557 = arith.constant 217 : index
    %c0_558 = arith.constant 0 : index
    %372 = vector.load %arg1[%c2_556, %c217_557, %c0_558] : memref<3x288x8xbf16, #tpu.memory_space<vmem>>, vector<1x16x8xbf16>
    %373 = vector.shape_cast %372 : vector<1x16x8xbf16> to vector<16x8xbf16>
    %c192_559 = arith.constant 192 : index
    %c56_560 = arith.constant 56 : index
    %374 = vector.load %arg6[%c192_559, %c56_560] : memref<256x72xbf16, #tpu.memory_space<vmem>>, vector<16x8xbf16>
    tpu.vector_store %arg6[%c192_559, %c56_560], %373 {strides = array<i32>} : memref<256x72xbf16, #tpu.memory_space<vmem>>, vector<16x8xbf16>,
    %c2_561 = arith.constant 2 : index
    %c235_562 = arith.constant 235 : index
    %c0_563 = arith.constant 0 : index
    %375 = vector.load %arg1[%c2_561, %c235_562, %c0_563] : memref<3x288x8xbf16, #tpu.memory_space<vmem>>, vector<1x16x8xbf16>
    %376 = vector.shape_cast %375 : vector<1x16x8xbf16> to vector<16x8xbf16>
    %c208_564 = arith.constant 208 : index
    %c56_565 = arith.constant 56 : index
    %377 = vector.load %arg6[%c208_564, %c56_565] : memref<256x72xbf16, #tpu.memory_space<vmem>>, vector<16x8xbf16>
    tpu.vector_store %arg6[%c208_564, %c56_565], %376 {strides = array<i32>} : memref<256x72xbf16, #tpu.memory_space<vmem>>, vector<16x8xbf16>,
    %c2_566 = arith.constant 2 : index
    %c253_567 = arith.constant 253 : index
    %c0_568 = arith.constant 0 : index
    %378 = vector.load %arg1[%c2_566, %c253_567, %c0_568] : memref<3x288x8xbf16, #tpu.memory_space<vmem>>, vector<1x16x8xbf16>
    %379 = vector.shape_cast %378 : vector<1x16x8xbf16> to vector<16x8xbf16>
    %c224_569 = arith.constant 224 : index
    %c56_570 = arith.constant 56 : index
    %380 = vector.load %arg6[%c224_569, %c56_570] : memref<256x72xbf16, #tpu.memory_space<vmem>>, vector<16x8xbf16>
    tpu.vector_store %arg6[%c224_569, %c56_570], %379 {strides = array<i32>} : memref<256x72xbf16, #tpu.memory_space<vmem>>, vector<16x8xbf16>,
    %c2_571 = arith.constant 2 : index
    %c271_572 = arith.constant 271 : index
    %c0_573 = arith.constant 0 : index
    %381 = vector.load %arg1[%c2_571, %c271_572, %c0_573] : memref<3x288x8xbf16, #tpu.memory_space<vmem>>, vector<1x16x8xbf16>
    %382 = vector.shape_cast %381 : vector<1x16x8xbf16> to vector<16x8xbf16>
    %c240_574 = arith.constant 240 : index
    %c56_575 = arith.constant 56 : index
    %383 = vector.load %arg6[%c240_574, %c56_575] : memref<256x72xbf16, #tpu.memory_space<vmem>>, vector<16x8xbf16>
    tpu.vector_store %arg6[%c240_574, %c56_575], %382 {strides = array<i32>} : memref<256x72xbf16, #tpu.memory_space<vmem>>, vector<16x8xbf16>,
    %c2_576 = arith.constant 2 : index
    %c2_577 = arith.constant 2 : index
    %c0_578 = arith.constant 0 : index
    %384 = vector.load %arg1[%c2_576, %c2_577, %c0_578] : memref<3x288x8xbf16, #tpu.memory_space<vmem>>, vector<1x16x8xbf16>
    %385 = vector.shape_cast %384 : vector<1x16x8xbf16> to vector<16x8xbf16>
    %c0_579 = arith.constant 0 : index
    %c64_580 = arith.constant 64 : index
    %386 = vector.load %arg6[%c0_579, %c64_580] : memref<256x72xbf16, #tpu.memory_space<vmem>>, vector<16x8xbf16>
    tpu.vector_store %arg6[%c0_579, %c64_580], %385 {strides = array<i32>} : memref<256x72xbf16, #tpu.memory_space<vmem>>, vector<16x8xbf16>,
    %c2_581 = arith.constant 2 : index
    %c20_582 = arith.constant 20 : index
    %c0_583 = arith.constant 0 : index
    %387 = vector.load %arg1[%c2_581, %c20_582, %c0_583] : memref<3x288x8xbf16, #tpu.memory_space<vmem>>, vector<1x16x8xbf16>
    %388 = vector.shape_cast %387 : vector<1x16x8xbf16> to vector<16x8xbf16>
    %c16_584 = arith.constant 16 : index
    %c64_585 = arith.constant 64 : index
    %389 = vector.load %arg6[%c16_584, %c64_585] : memref<256x72xbf16, #tpu.memory_space<vmem>>, vector<16x8xbf16>
    tpu.vector_store %arg6[%c16_584, %c64_585], %388 {strides = array<i32>} : memref<256x72xbf16, #tpu.memory_space<vmem>>, vector<16x8xbf16>,
    %c2_586 = arith.constant 2 : index
    %c38_587 = arith.constant 38 : index
    %c0_588 = arith.constant 0 : index
    %390 = vector.load %arg1[%c2_586, %c38_587, %c0_588] : memref<3x288x8xbf16, #tpu.memory_space<vmem>>, vector<1x16x8xbf16>
    %391 = vector.shape_cast %390 : vector<1x16x8xbf16> to vector<16x8xbf16>
    %c32_589 = arith.constant 32 : index
    %c64_590 = arith.constant 64 : index
    %392 = vector.load %arg6[%c32_589, %c64_590] : memref<256x72xbf16, #tpu.memory_space<vmem>>, vector<16x8xbf16>
    tpu.vector_store %arg6[%c32_589, %c64_590], %391 {strides = array<i32>} : memref<256x72xbf16, #tpu.memory_space<vmem>>, vector<16x8xbf16>,
    %c2_591 = arith.constant 2 : index
    %c56_592 = arith.constant 56 : index
    %c0_593 = arith.constant 0 : index
    %393 = vector.load %arg1[%c2_591, %c56_592, %c0_593] : memref<3x288x8xbf16, #tpu.memory_space<vmem>>, vector<1x16x8xbf16>
    %394 = vector.shape_cast %393 : vector<1x16x8xbf16> to vector<16x8xbf16>
    %c48_594 = arith.constant 48 : index
    %c64_595 = arith.constant 64 : index
    %395 = vector.load %arg6[%c48_594, %c64_595] : memref<256x72xbf16, #tpu.memory_space<vmem>>, vector<16x8xbf16>
    tpu.vector_store %arg6[%c48_594, %c64_595], %394 {strides = array<i32>} : memref<256x72xbf16, #tpu.memory_space<vmem>>, vector<16x8xbf16>,
    %c2_596 = arith.constant 2 : index
    %c74_597 = arith.constant 74 : index
    %c0_598 = arith.constant 0 : index
    %396 = vector.load %arg1[%c2_596, %c74_597, %c0_598] : memref<3x288x8xbf16, #tpu.memory_space<vmem>>, vector<1x16x8xbf16>
    %397 = vector.shape_cast %396 : vector<1x16x8xbf16> to vector<16x8xbf16>
    %c64_599 = arith.constant 64 : index
    %c64_600 = arith.constant 64 : index
    %398 = vector.load %arg6[%c64_599, %c64_600] : memref<256x72xbf16, #tpu.memory_space<vmem>>, vector<16x8xbf16>
    tpu.vector_store %arg6[%c64_599, %c64_600], %397 {strides = array<i32>} : memref<256x72xbf16, #tpu.memory_space<vmem>>, vector<16x8xbf16>,
    %c2_601 = arith.constant 2 : index
    %c92_602 = arith.constant 92 : index
    %c0_603 = arith.constant 0 : index
    %399 = vector.load %arg1[%c2_601, %c92_602, %c0_603] : memref<3x288x8xbf16, #tpu.memory_space<vmem>>, vector<1x16x8xbf16>
    %400 = vector.shape_cast %399 : vector<1x16x8xbf16> to vector<16x8xbf16>
    %c80_604 = arith.constant 80 : index
    %c64_605 = arith.constant 64 : index
    %401 = vector.load %arg6[%c80_604, %c64_605] : memref<256x72xbf16, #tpu.memory_space<vmem>>, vector<16x8xbf16>
    tpu.vector_store %arg6[%c80_604, %c64_605], %400 {strides = array<i32>} : memref<256x72xbf16, #tpu.memory_space<vmem>>, vector<16x8xbf16>,
    %c2_606 = arith.constant 2 : index
    %c110_607 = arith.constant 110 : index
    %c0_608 = arith.constant 0 : index
    %402 = vector.load %arg1[%c2_606, %c110_607, %c0_608] : memref<3x288x8xbf16, #tpu.memory_space<vmem>>, vector<1x16x8xbf16>
    %403 = vector.shape_cast %402 : vector<1x16x8xbf16> to vector<16x8xbf16>
    %c96_609 = arith.constant 96 : index
    %c64_610 = arith.constant 64 : index
    %404 = vector.load %arg6[%c96_609, %c64_610] : memref<256x72xbf16, #tpu.memory_space<vmem>>, vector<16x8xbf16>
    tpu.vector_store %arg6[%c96_609, %c64_610], %403 {strides = array<i32>} : memref<256x72xbf16, #tpu.memory_space<vmem>>, vector<16x8xbf16>,
    %c2_611 = arith.constant 2 : index
    %c128_612 = arith.constant 128 : index
    %c0_613 = arith.constant 0 : index
    %405 = vector.load %arg1[%c2_611, %c128_612, %c0_613] : memref<3x288x8xbf16, #tpu.memory_space<vmem>>, vector<1x16x8xbf16>
    %406 = vector.shape_cast %405 : vector<1x16x8xbf16> to vector<16x8xbf16>
    %c112_614 = arith.constant 112 : index
    %c64_615 = arith.constant 64 : index
    %407 = vector.load %arg6[%c112_614, %c64_615] : memref<256x72xbf16, #tpu.memory_space<vmem>>, vector<16x8xbf16>
    tpu.vector_store %arg6[%c112_614, %c64_615], %406 {strides = array<i32>} : memref<256x72xbf16, #tpu.memory_space<vmem>>, vector<16x8xbf16>,
    %c2_616 = arith.constant 2 : index
    %c146_617 = arith.constant 146 : index
    %c0_618 = arith.constant 0 : index
    %408 = vector.load %arg1[%c2_616, %c146_617, %c0_618] : memref<3x288x8xbf16, #tpu.memory_space<vmem>>, vector<1x16x8xbf16>
    %409 = vector.shape_cast %408 : vector<1x16x8xbf16> to vector<16x8xbf16>
    %c128_619 = arith.constant 128 : index
    %c64_620 = arith.constant 64 : index
    %410 = vector.load %arg6[%c128_619, %c64_620] : memref<256x72xbf16, #tpu.memory_space<vmem>>, vector<16x8xbf16>
    tpu.vector_store %arg6[%c128_619, %c64_620], %409 {strides = array<i32>} : memref<256x72xbf16, #tpu.memory_space<vmem>>, vector<16x8xbf16>,
    %c2_621 = arith.constant 2 : index
    %c164_622 = arith.constant 164 : index
    %c0_623 = arith.constant 0 : index
    %411 = vector.load %arg1[%c2_621, %c164_622, %c0_623] : memref<3x288x8xbf16, #tpu.memory_space<vmem>>, vector<1x16x8xbf16>
    %412 = vector.shape_cast %411 : vector<1x16x8xbf16> to vector<16x8xbf16>
    %c144_624 = arith.constant 144 : index
    %c64_625 = arith.constant 64 : index
    %413 = vector.load %arg6[%c144_624, %c64_625] : memref<256x72xbf16, #tpu.memory_space<vmem>>, vector<16x8xbf16>
    tpu.vector_store %arg6[%c144_624, %c64_625], %412 {strides = array<i32>} : memref<256x72xbf16, #tpu.memory_space<vmem>>, vector<16x8xbf16>,
    %c2_626 = arith.constant 2 : index
    %c182_627 = arith.constant 182 : index
    %c0_628 = arith.constant 0 : index
    %414 = vector.load %arg1[%c2_626, %c182_627, %c0_628] : memref<3x288x8xbf16, #tpu.memory_space<vmem>>, vector<1x16x8xbf16>
    %415 = vector.shape_cast %414 : vector<1x16x8xbf16> to vector<16x8xbf16>
    %c160_629 = arith.constant 160 : index
    %c64_630 = arith.constant 64 : index
    %416 = vector.load %arg6[%c160_629, %c64_630] : memref<256x72xbf16, #tpu.memory_space<vmem>>, vector<16x8xbf16>
    tpu.vector_store %arg6[%c160_629, %c64_630], %415 {strides = array<i32>} : memref<256x72xbf16, #tpu.memory_space<vmem>>, vector<16x8xbf16>,
    %c2_631 = arith.constant 2 : index
    %c200_632 = arith.constant 200 : index
    %c0_633 = arith.constant 0 : index
    %417 = vector.load %arg1[%c2_631, %c200_632, %c0_633] : memref<3x288x8xbf16, #tpu.memory_space<vmem>>, vector<1x16x8xbf16>
    %418 = vector.shape_cast %417 : vector<1x16x8xbf16> to vector<16x8xbf16>
    %c176_634 = arith.constant 176 : index
    %c64_635 = arith.constant 64 : index
    %419 = vector.load %arg6[%c176_634, %c64_635] : memref<256x72xbf16, #tpu.memory_space<vmem>>, vector<16x8xbf16>
    tpu.vector_store %arg6[%c176_634, %c64_635], %418 {strides = array<i32>} : memref<256x72xbf16, #tpu.memory_space<vmem>>, vector<16x8xbf16>,
    %c2_636 = arith.constant 2 : index
    %c218_637 = arith.constant 218 : index
    %c0_638 = arith.constant 0 : index
    %420 = vector.load %arg1[%c2_636, %c218_637, %c0_638] : memref<3x288x8xbf16, #tpu.memory_space<vmem>>, vector<1x16x8xbf16>
    %421 = vector.shape_cast %420 : vector<1x16x8xbf16> to vector<16x8xbf16>
    %c192_639 = arith.constant 192 : index
    %c64_640 = arith.constant 64 : index
    %422 = vector.load %arg6[%c192_639, %c64_640] : memref<256x72xbf16, #tpu.memory_space<vmem>>, vector<16x8xbf16>
    tpu.vector_store %arg6[%c192_639, %c64_640], %421 {strides = array<i32>} : memref<256x72xbf16, #tpu.memory_space<vmem>>, vector<16x8xbf16>,
    %c2_641 = arith.constant 2 : index
    %c236_642 = arith.constant 236 : index
    %c0_643 = arith.constant 0 : index
    %423 = vector.load %arg1[%c2_641, %c236_642, %c0_643] : memref<3x288x8xbf16, #tpu.memory_space<vmem>>, vector<1x16x8xbf16>
    %424 = vector.shape_cast %423 : vector<1x16x8xbf16> to vector<16x8xbf16>
    %c208_644 = arith.constant 208 : index
    %c64_645 = arith.constant 64 : index
    %425 = vector.load %arg6[%c208_644, %c64_645] : memref<256x72xbf16, #tpu.memory_space<vmem>>, vector<16x8xbf16>
    tpu.vector_store %arg6[%c208_644, %c64_645], %424 {strides = array<i32>} : memref<256x72xbf16, #tpu.memory_space<vmem>>, vector<16x8xbf16>,
    %c2_646 = arith.constant 2 : index
    %c254_647 = arith.constant 254 : index
    %c0_648 = arith.constant 0 : index
    %426 = vector.load %arg1[%c2_646, %c254_647, %c0_648] : memref<3x288x8xbf16, #tpu.memory_space<vmem>>, vector<1x16x8xbf16>
    %427 = vector.shape_cast %426 : vector<1x16x8xbf16> to vector<16x8xbf16>
    %c224_649 = arith.constant 224 : index
    %c64_650 = arith.constant 64 : index
    %428 = vector.load %arg6[%c224_649, %c64_650] : memref<256x72xbf16, #tpu.memory_space<vmem>>, vector<16x8xbf16>
    tpu.vector_store %arg6[%c224_649, %c64_650], %427 {strides = array<i32>} : memref<256x72xbf16, #tpu.memory_space<vmem>>, vector<16x8xbf16>,
    %c2_651 = arith.constant 2 : index
    %c272_652 = arith.constant 272 : index
    %c0_653 = arith.constant 0 : index
    %429 = vector.load %arg1[%c2_651, %c272_652, %c0_653] : memref<3x288x8xbf16, #tpu.memory_space<vmem>>, vector<1x16x8xbf16>
    %430 = vector.shape_cast %429 : vector<1x16x8xbf16> to vector<16x8xbf16>
    %c240_654 = arith.constant 240 : index
    %c64_655 = arith.constant 64 : index
    %431 = vector.load %arg6[%c240_654, %c64_655] : memref<256x72xbf16, #tpu.memory_space<vmem>>, vector<16x8xbf16>
    tpu.vector_store %arg6[%c240_654, %c64_655], %430 {strides = array<i32>} : memref<256x72xbf16, #tpu.memory_space<vmem>>, vector<16x8xbf16>,
    %c0_656 = arith.constant 0 : index
    %c0_657 = arith.constant 0 : index
    %432 = vector.load %arg6[%c0_656, %c0_657] : memref<256x72xbf16, #tpu.memory_space<vmem>>, vector<256x72xbf16>
    %c0_658 = arith.constant 0 : index
    %c0_659 = arith.constant 0 : index
    %433 = vector.load %arg2[%c0_658, %c0_659] : memref<72x8xbf16, #tpu.memory_space<vmem>>, vector<72x8xbf16>
    %cst = arith.constant dense<0.000000e+00> : vector<256x8xf32>
    %434 = tpu.matmul %432, %433, %cst {dimension_numbers = #tpu.dot_dimension_numbers<[1], [0], [0], [1], [0, 0, 1, 1], [], []>} : vector<256x72xbf16>, vector<72x8xbf16>, vector<256x8xf32> -> vector<256x8xf32>
    %c0_660 = arith.constant 0 : index
    %c0_661 = arith.constant 0 : index
    %435 = vector.load %arg3[%c0_660, %c0_661] : memref<256x8xf32, #tpu.memory_space<vmem>>, vector<256x8xf32>
    tpu.vector_store %arg3[%c0_660, %c0_661], %434 {strides = array<i32>} : memref<256x8xf32, #tpu.memory_space<vmem>>, vector<256x8xf32>,
    %cst_662 = arith.constant dense<0.000000e+00> : vector<8xf32>
    %436 = vector.multi_reduction <add>, %434, %cst_662 [0] : vector<256x8xf32> to vector<8xf32>
    %437 = vector.shape_cast %436 : vector<8xf32> to vector<1x8xf32>
    %438 = arith.mulf %434, %434 : vector<256x8xf32>
    %cst_663 = arith.constant dense<0.000000e+00> : vector<8xf32>
    %439 = vector.multi_reduction <add>, %438, %cst_663 [0] : vector<256x8xf32> to vector<8xf32>
    %440 = vector.shape_cast %439 : vector<8xf32> to vector<1x8xf32>
    %441 = vector.shape_cast %437 : vector<1x8xf32> to vector<1x1x8xf32>
    %442 = vector.broadcast %441 : vector<1x1x8xf32> to vector<1x8x8xf32>
    %c0_664 = arith.constant 0 : index
    %c0_665 = arith.constant 0 : index
    %c0_666 = arith.constant 0 : index
    %443 = vector.load %arg4[%c0_664, %c0_665, %c0_666] : memref<1x8x8xf32, #tpu.memory_space<vmem>>, vector<1x8x8xf32>
    tpu.vector_store %arg4[%c0_664, %c0_665, %c0_666], %442 {strides = array<i32>} : memref<1x8x8xf32, #tpu.memory_space<vmem>>, vector<1x8x8xf32>,
    %444 = vector.shape_cast %440 : vector<1x8xf32> to vector<1x1x8xf32>
    %445 = vector.broadcast %444 : vector<1x1x8xf32> to vector<1x8x8xf32>
    %c0_667 = arith.constant 0 : index
    %c0_668 = arith.constant 0 : index
    %c0_669 = arith.constant 0 : index
    %446 = vector.load %arg5[%c0_667, %c0_668, %c0_669] : memref<1x8x8xf32, #tpu.memory_space<vmem>>, vector<1x8x8xf32>
    tpu.vector_store %arg5[%c0_667, %c0_668, %c0_669], %445 {strides = array<i32>} : memref<1x8x8xf32, #tpu.memory_space<vmem>>, vector<1x8x8xf32>,
    return
  }
  func.func @transform_0(%arg0: i32) -> (i32, i32, i32) {
    %c0_i32 = arith.constant 0 : i32
    %c0_i32_0 = arith.constant 0 : i32
    %c0_i32_1 = arith.constant 0 : i32
    return %c0_i32, %arg0, %c0_i32_0 : i32, i32, i32
  }
  func.func @transform_1(%arg0: i32) -> (i32, i32) {
    %c0_i32 = arith.constant 0 : i32
    %c0_i32_0 = arith.constant 0 : i32
    %c0_i32_1 = arith.constant 0 : i32
    return %c0_i32, %c0_i32_0 : i32, i32
  }
  func.func @transform_2(%arg0: i32) -> (i32, i32) {
    %c0_i32 = arith.constant 0 : i32
    %c0_i32_0 = arith.constant 0 : i32
    return %arg0, %c0_i32 : i32, i32
  }
  func.func @transform_3(%arg0: i32) -> (i32, i32, i32) {
    %c0_i32 = arith.constant 0 : i32
    %c0_i32_0 = arith.constant 0 : i32
    %c0_i32_1 = arith.constant 0 : i32
    return %arg0, %c0_i32, %c0_i32_0 : i32, i32, i32
  }
  func.func @transform_4(%arg0: i32) -> (i32, i32, i32) {
    %c0_i32 = arith.constant 0 : i32
    %c0_i32_0 = arith.constant 0 : i32
    %c0_i32_1 = arith.constant 0 : i32
    return %arg0, %c0_i32, %c0_i32_0 : i32, i32, i32
  }
}

module attributes {stable_mosaic.version = 11 : i64} {
  func.func @body(%arg0: i32, %arg1: memref<32x128xf32, #tpu.memory_space<vmem>>, %arg2: memref<1x128xf32, #tpu.memory_space<vmem>>, %arg3: memref<1x128xf32, #tpu.memory_space<vmem>>, %arg4: memref<32x128xf32, #tpu.memory_space<vmem>>) attributes {dimension_semantics = [#tpu.dimension_semantics<parallel>], iteration_bounds = array<i64: 1>, scalar_prefetch = 0 : i64, scratch_operands = 0 : i64, tpu.core_type = #tpu.core_type<tc>, window_params = [{transform_indices = @transform_0, window_bounds = array<i64: 32, 128>}, {pipeline_mode = #tpu.pipeline_mode<synchronous>, transform_indices = @transform_1, window_bounds = array<i64: 1, 128>}, {pipeline_mode = #tpu.pipeline_mode<synchronous>, transform_indices = @transform_2, window_bounds = array<i64: 1, 128>}, {transform_indices = @transform_3, window_bounds = array<i64: 32, 128>}]} {
    %c0 = arith.constant 0 : index
    %c0_0 = arith.constant 0 : index
    %0 = vector.load %arg1[%c0, %c0_0] : memref<32x128xf32, #tpu.memory_space<vmem>>, vector<32x128xf32>
    %c0_1 = arith.constant 0 : index
    %c0_2 = arith.constant 0 : index
    %1 = vector.load %arg2[%c0_1, %c0_2] : memref<1x128xf32, #tpu.memory_space<vmem>>, vector<1x128xf32>
    %2 = vector.broadcast %1 : vector<1x128xf32> to vector<32x128xf32>
    %3 = arith.mulf %0, %2 : vector<32x128xf32>
    %c0_3 = arith.constant 0 : index
    %c0_4 = arith.constant 0 : index
    %4 = vector.load %arg3[%c0_3, %c0_4] : memref<1x128xf32, #tpu.memory_space<vmem>>, vector<1x128xf32>
    %5 = vector.broadcast %4 : vector<1x128xf32> to vector<32x128xf32>
    %6 = arith.addf %3, %5 : vector<32x128xf32>
    %c0_5 = arith.constant 0 : index
    %c0_6 = arith.constant 0 : index
    %7 = vector.load %arg4[%c0_5, %c0_6] : memref<32x128xf32, #tpu.memory_space<vmem>>, vector<32x128xf32>
    tpu.vector_store %arg4[%c0_5, %c0_6], %6 {strides = array<i32>} : memref<32x128xf32, #tpu.memory_space<vmem>>, vector<32x128xf32>,
    return
  }
  func.func @transform_0(%arg0: i32) -> (i32, i32) {
    %c0_i32 = arith.constant 0 : i32
    %c0_i32_0 = arith.constant 0 : i32
    return %arg0, %c0_i32 : i32, i32
  }
  func.func @transform_1(%arg0: i32) -> (i32, i32) {
    %c0_i32 = arith.constant 0 : i32
    %c0_i32_0 = arith.constant 0 : i32
    %c0_i32_1 = arith.constant 0 : i32
    return %c0_i32, %c0_i32_0 : i32, i32
  }
  func.func @transform_2(%arg0: i32) -> (i32, i32) {
    %c0_i32 = arith.constant 0 : i32
    %c0_i32_0 = arith.constant 0 : i32
    %c0_i32_1 = arith.constant 0 : i32
    return %c0_i32, %c0_i32_0 : i32, i32
  }
  func.func @transform_3(%arg0: i32) -> (i32, i32) {
    %c0_i32 = arith.constant 0 : i32
    %c0_i32_0 = arith.constant 0 : i32
    return %arg0, %c0_i32 : i32, i32
  }
}

module attributes {stable_mosaic.version = 11 : i64} {
  func.func @body(%arg0: i32, %arg1: memref<32x128xf32, #tpu.memory_space<vmem>>, %arg2: memref<1x128xf32, #tpu.memory_space<vmem>>, %arg3: memref<1x128xf32, #tpu.memory_space<vmem>>, %arg4: memref<32x128xf32, #tpu.memory_space<vmem>>, %arg5: memref<32x128xf32, #tpu.memory_space<vmem>>) attributes {dimension_semantics = [#tpu.dimension_semantics<parallel>], iteration_bounds = array<i64: 1>, scalar_prefetch = 0 : i64, scratch_operands = 0 : i64, tpu.core_type = #tpu.core_type<tc>, window_params = [{transform_indices = @transform_0, window_bounds = array<i64: 32, 128>}, {pipeline_mode = #tpu.pipeline_mode<synchronous>, transform_indices = @transform_1, window_bounds = array<i64: 1, 128>}, {pipeline_mode = #tpu.pipeline_mode<synchronous>, transform_indices = @transform_2, window_bounds = array<i64: 1, 128>}, {transform_indices = @transform_3, window_bounds = array<i64: 32, 128>}, {transform_indices = @transform_4, window_bounds = array<i64: 32, 128>}]} {
    %c0 = arith.constant 0 : index
    %c0_0 = arith.constant 0 : index
    %0 = vector.load %arg1[%c0, %c0_0] : memref<32x128xf32, #tpu.memory_space<vmem>>, vector<32x128xf32>
    %c0_1 = arith.constant 0 : index
    %c0_2 = arith.constant 0 : index
    %1 = vector.load %arg2[%c0_1, %c0_2] : memref<1x128xf32, #tpu.memory_space<vmem>>, vector<1x128xf32>
    %2 = vector.broadcast %1 : vector<1x128xf32> to vector<32x128xf32>
    %3 = arith.mulf %0, %2 : vector<32x128xf32>
    %c0_3 = arith.constant 0 : index
    %c0_4 = arith.constant 0 : index
    %4 = vector.load %arg3[%c0_3, %c0_4] : memref<1x128xf32, #tpu.memory_space<vmem>>, vector<1x128xf32>
    %5 = vector.broadcast %4 : vector<1x128xf32> to vector<32x128xf32>
    %6 = arith.addf %3, %5 : vector<32x128xf32>
    %c0_5 = arith.constant 0 : index
    %c0_6 = arith.constant 0 : index
    %7 = vector.load %arg4[%c0_5, %c0_6] : memref<32x128xf32, #tpu.memory_space<vmem>>, vector<32x128xf32>
    %8 = arith.addf %6, %7 : vector<32x128xf32>
    %cst = arith.constant 0.000000e+00 : f32
    %9 = vector.broadcast %cst : f32 to vector<32x128xf32>
    %10 = arith.maximumf %8, %9 : vector<32x128xf32>
    %c0_7 = arith.constant 0 : index
    %c0_8 = arith.constant 0 : index
    %11 = vector.load %arg5[%c0_7, %c0_8] : memref<32x128xf32, #tpu.memory_space<vmem>>, vector<32x128xf32>
    tpu.vector_store %arg5[%c0_7, %c0_8], %10 {strides = array<i32>} : memref<32x128xf32, #tpu.memory_space<vmem>>, vector<32x128xf32>,
    return
  }
  func.func @transform_0(%arg0: i32) -> (i32, i32) {
    %c0_i32 = arith.constant 0 : i32
    %c0_i32_0 = arith.constant 0 : i32
    return %arg0, %c0_i32 : i32, i32
  }
  func.func @transform_1(%arg0: i32) -> (i32, i32) {
    %c0_i32 = arith.constant 0 : i32
    %c0_i32_0 = arith.constant 0 : i32
    %c0_i32_1 = arith.constant 0 : i32
    return %c0_i32, %c0_i32_0 : i32, i32
  }
  func.func @transform_2(%arg0: i32) -> (i32, i32) {
    %c0_i32 = arith.constant 0 : i32
    %c0_i32_0 = arith.constant 0 : i32
    %c0_i32_1 = arith.constant 0 : i32
    return %c0_i32, %c0_i32_0 : i32, i32
  }
  func.func @transform_3(%arg0: i32) -> (i32, i32) {
    %c0_i32 = arith.constant 0 : i32
    %c0_i32_0 = arith.constant 0 : i32
    return %arg0, %c0_i32 : i32, i32
  }
  func.func @transform_4(%arg0: i32) -> (i32, i32) {
    %c0_i32 = arith.constant 0 : i32
    %c0_i32_0 = arith.constant 0 : i32
    return %arg0, %c0_i32 : i32, i32
  }
}

</mosaic_0001>

<bundles_post_ra>
// kernel: block_series_forward.9
= control target key start
LH: loop header
LB: loop body
LE: loop exit
PB: predicated region body
PF: predicated region fallthrough
CT: control target
= control target key end

     0   :  { %s100_s0 = inlined_call_operand.vmem [shape: f32[32,128], index: 0, kind: input, shape index: {}]   ;;  %s101_s1 = inlined_call_operand.vmem [shape: f32[1,128], index: 1, kind: input, shape index: {}]   ;;  %s102_s2 = inlined_call_operand.vmem [shape: f32[1,128], index: 2, kind: input, shape index: {}]   ;;  %s103_s3 = inlined_call_operand.vmem [shape: f32[32,128], index: 3, kind: output, shape index: {}]  }
   0x1   :  { %v14_v0 = vld [vmem:[%s100_s0] sm:$0xff]  ;;  %v15_v4 = vld [vmem:[%s100_s0 + $0x8] sm:$0xff]  ;;  %v16_v5 = vld [vmem:[%s100_s0 + $0x10] sm:$0xff] }
   0x2   :  { %v48_v1 = vld [vmem:[%s101_s1] ss:$0 sm:$0xff]  ;;  %v17_v6 = vld [vmem:[%s100_s0 + $0x18] sm:$0xff] }
   0x3   :  { %v49_v2 = vld [vmem:[%s102_s2] ss:$0 sm:$0xff]  ;;  %v25_v3 = vmul.f32 %v48_v1, %v14_v0  ;;  %v26_v7 = vmul.f32 %v48_v1, %v15_v4  ;;  %v27_v8 = vmul.f32 %v48_v1, %v16_v5  ;;  %v28_v9 = vmul.f32 %v48_v1, %v17_v6 }
   0x5   :  { %v36_v10 = vadd.f32 %v49_v2, %v25_v3  ;;  %v37_v11 = vadd.f32 %v49_v2, %v26_v7  ;;  %v38_v12 = vadd.f32 %v49_v2, %v27_v8  ;;  %v39_v13 = vadd.f32 %v49_v2, %v28_v9 }
   0x7   :  { %40 = vst [vmem:[%s103_s3] sm:$0xff] %v36_v10  ;;  %41 = vst [vmem:[%s103_s3 + $0x8] sm:$0xff] %v37_v11 }
   0x8   :  { %42 = vst [vmem:[%s103_s3 + $0x10] sm:$0xff] %v38_v12  ;;  %43 = vst [vmem:[%s103_s3 + $0x18] sm:$0xff] %v39_v13 }

// kernel: block_series_forward.11
= control target key start
LH: loop header
LB: loop body
LE: loop exit
PB: predicated region body
PF: predicated region fallthrough
CT: control target
= control target key end

     0   :  { %s132_s0 = inlined_call_operand.vmem [shape: f32[32,128], index: 0, kind: input, shape index: {}]   ;;  %s133_s1 = inlined_call_operand.vmem [shape: f32[1,128], index: 1, kind: input, shape index: {}]   ;;  %s134_s2 = inlined_call_operand.vmem [shape: f32[1,128], index: 2, kind: input, shape index: {}]   ;;  %s135_s3 = inlined_call_operand.vmem [shape: f32[32,128], index: 3, kind: input, shape index: {}]   ;;  %s136_s4 = inlined_call_operand.vmem [shape: f32[32,128], index: 4, kind: output, shape index: {}]  }
   0x1   :  { %v17_v0 = vld [vmem:[%s132_s0] sm:$0xff]  ;;  %v18_v4 = vld [vmem:[%s132_s0 + $0x8] sm:$0xff]  ;;  %v19_v7 = vld [vmem:[%s132_s0 + $0x10] sm:$0xff] }
   0x2   :  { %v63_v1 = vld [vmem:[%s133_s1] ss:$0 sm:$0xff]  ;;  %v20_v8 = vld [vmem:[%s132_s0 + $0x18] sm:$0xff]  ;;  %v44_v10 = vld [vmem:[%s135_s3 + $0x8] sm:$0xff] }
   0x3   :  { %v64_v2 = vld [vmem:[%s134_s2] ss:$0 sm:$0xff]  ;;  %v28_v3 = vmul.f32 %v63_v1, %v17_v0  ;;  %v29_v6 = vmul.f32 %v63_v1, %v18_v4  ;;  %v30_v11 = vmul.f32 %v63_v1, %v19_v7  ;;  %v31_v12 = vmul.f32 %v63_v1, %v20_v8  ;;  %v45_v14 = vld [vmem:[%s135_s3 + $0x10] sm:$0xff]  ;;  %v46_v15 = vld [vmem:[%s135_s3 + $0x18] sm:$0xff] }
   0x4   :  { %v43_v5 = vld [vmem:[%s135_s3] sm:$0xff] }
   0x5   :  { %v39_v9 = vadd.f32 %v64_v2, %v28_v3  ;;  %v40_v13 = vadd.f32 %v64_v2, %v29_v6  ;;  %v41_v17 = vadd.f32 %v64_v2, %v30_v11  ;;  %v42_v18 = vadd.f32 %v64_v2, %v31_v12 }
   0x7   :  { %v47_v16 = vadd.f32 %v43_v5, %v39_v9  ;;  %v48_v19 = vadd.f32 %v44_v10, %v40_v13  ;;  %v49_v21 = vadd.f32 %v45_v14, %v41_v17  ;;  %v50_v22 = vadd.f32 %v46_v15, %v42_v18 }
   0x9   :  { %v51_v20 = vmax.f32 %v47_v16, 0.0  ;;  %v52_v23 = vmax.f32 %v48_v19, 0.0  ;;  %v53_v24 = vmax.f32 %v49_v21, 0.0  ;;  %v54_v25 = vmax.f32 %v50_v22, 0.0 }
   0xb   :  { %55 = vst [vmem:[%s136_s4] sm:$0xff] %v51_v20  ;;  %56 = vst [vmem:[%s136_s4 + $0x8] sm:$0xff] %v52_v23 }
   0xc   :  { %57 = vst [vmem:[%s136_s4 + $0x10] sm:$0xff] %v53_v24  ;;  %58 = vst [vmem:[%s136_s4 + $0x18] sm:$0xff] %v54_v25 }

// kernel: block_series_forward.8
= control target key start
LH: loop header
LB: loop body
LE: loop exit
PB: predicated region body
PF: predicated region fallthrough
CT: control target
= control target key end

     0   :  { %s5482_s15 = smov 0   ;;  %s5484_s16 = smov 0   ;;  %s7505_s0 = inlined_call_operand.vmem [shape: bf16[3,576,8], index: 0, kind: input, shape index: {}]   ;;  %s7506_s1 = inlined_call_operand.vmem [shape: bf16[72,8], index: 1, kind: input, shape index: {}]   ;;  %s7507_s2 = inlined_call_operand.vmem [shape: f32[512,8], index: 2, kind: output, shape index: {0}]   ;;  %s7508_s3 = inlined_call_operand.vmem [shape: f32[2,8,8], index: 3, kind: output, shape index: {1}]   ;;  %s7509_s4 = inlined_call_operand.vmem [shape: f32[2,8,8], index: 4, kind: output, shape index: {2}]  }
   0x1   :  { %s5486_s17 = smov 0  }
   0x2 LB: > { %s5498_s18 = sadd.s32 4294967295, %s5447_s17   ;;  %s5501_s19 = sadd.s32 1, %s5447_s17   ;;  %s5447_s17 = sphi %s5486_s17, %s7526_s17   ;;  %s5443_s16 = sphi %s5484_s16, %s7525_s16   ;;  %s5439_s15 = sphi %s5482_s15, %s7524_s15  }
   0x3   : > { %s19_s20 = ssub.s32 %s5447_s17, %s5501_s19  ;;  %s22_s21 = sadd.s32 1, %s5443_s16 }
   0x4   : > { %p20_p0 = scmp.eq.s32.totalorder %s19_s20, 0  ;;  %p29_p1 = scmp.ne.s32.totalorder %s5443_s16, %s5439_s15 }
   0x5   : > { %p30_p2 = scmp.eq.s32.totalorder %s5447_s17, 0  ;;  %p4892_p4 = scmp.ge.s32.totalorder %s5447_s17, 2 }
   0x6   : > { %s5510_s22 = scalar_select %p20_p0, %s5443_s16, %s22_s21  }
   0x7   : > { %p31_p3 = por %p30_p2, %p29_p1  ;;  %157 = sbr.rel (%p4892_p4) target bundleno = 44 (0x2c), region = 20 }
   0xc   : > { %160 = sbr.rel (!%p31_p3) target bundleno = 44 (0x2c), region = 24  ;;  %s162_s23 = sand.u32 (%p31_p3), 1, %s5443_s16  }
   0xd   : > { %s5294_s24 = smul.u32 (%p31_p3), 144, %s5447_s17 }
   0xe   : > { %s5370_s25 = smul.u32 (%p31_p3), 432, %s162_s23 }
   0xf   : > { %s5518_s28 = scalar_lea.vmem (%p31_p3), %s7505_s0, %s5294_s24 }
  0x10   : > { %v184_v0 = vld [vmem:[%s5518_s28] sm:$0xff] (%p31_p3)   ;;  %v188_v1 = vld [vmem:[%s5518_s28 + $0x8] sm:$0xff] (%p31_p3)   ;;  %v192_v2 = vld [vmem:[%s5518_s28 + $0x10] sm:$0xff] (%p31_p3)   ;;  %s5523_s29 = scalar_lea.vmem (%p31_p3), [#allocation3], %s5370_s25 }
  0x11   : > { %185 = vst [vmem:[%s5523_s29] sm:$0xff] %v184_v0   ;;  %189 = vst [vmem:[%s5523_s29 + $0x8] sm:$0xff] %v188_v1   ;;  %v196_v3 = vld [vmem:[%s5518_s28 + $0x18] sm:$0xff]   ;;  %v200_v4 = vld [vmem:[%s5518_s28 + $0x20] sm:$0xff]  }
  0x12   : > { %193 = vst [vmem:[%s5523_s29 + $0x10] sm:$0xff] %v192_v2   ;;  %v204_v5 = vld [vmem:[%s5518_s28 + $0x28] sm:$0xff]   ;;  %197 = vst [vmem:[%s5523_s29 + $0x18] sm:$0xff] %v196_v3   ;;  %v208_v6 = vld [vmem:[%s5518_s28 + $0x30] sm:$0xff]  }
  0x13   : > { %201 = vst [vmem:[%s5523_s29 + $0x20] sm:$0xff] %v200_v4   ;;  %205 = vst [vmem:[%s5523_s29 + $0x28] sm:$0xff] %v204_v5   ;;  %v212_v7 = vld [vmem:[%s5518_s28 + $0x38] sm:$0xff]   ;;  %v216_v8 = vld [vmem:[%s5518_s28 + $0x40] sm:$0xff]  }
  0x14   : > { %209 = vst [vmem:[%s5523_s29 + $0x30] sm:$0xff] %v208_v6   ;;  %213 = vst [vmem:[%s5523_s29 + $0x38] sm:$0xff] %v212_v7   ;;  %v220_v9 = vld [vmem:[%s5518_s28 + $0x48] sm:$0xff]   ;;  %v224_v10 = vld [vmem:[%s5518_s28 + $0x50] sm:$0xff]  }
  0x15   : > { %217 = vst [vmem:[%s5523_s29 + $0x40] sm:$0xff] %v216_v8   ;;  %v228_v11 = vld [vmem:[%s5518_s28 + $0x58] sm:$0xff]   ;;  %221 = vst [vmem:[%s5523_s29 + $0x48] sm:$0xff] %v220_v9   ;;  %v232_v12 = vld [vmem:[%s5518_s28 + $0x60] sm:$0xff]  }
  0x16   : > { %225 = vst [vmem:[%s5523_s29 + $0x50] sm:$0xff] %v224_v10   ;;  %229 = vst [vmem:[%s5523_s29 + $0x58] sm:$0xff] %v228_v11   ;;  %v236_v13 = vld [vmem:[%s5518_s28 + $0x68] sm:$0xff]   ;;  %v240_v14 = vld [vmem:[%s5518_s28 + $0x70] sm:$0xff]  }
  0x17   : > { %233 = vst [vmem:[%s5523_s29 + $0x60] sm:$0xff] %v232_v12   ;;  %237 = vst [vmem:[%s5523_s29 + $0x68] sm:$0xff] %v236_v13   ;;  %v244_v15 = vld [vmem:[%s5518_s28 + $0x78] sm:$0xff]   ;;  %v248_v16 = vld [vmem:[%s5518_s28 + $0x80] sm:$0xff]  }
  0x18   : > { %241 = vst [vmem:[%s5523_s29 + $0x70] sm:$0xff] %v240_v14   ;;  %v252_v17 = vld [vmem:[%s5518_s28 + $0x88] sm:$0xff]   ;;  %245 = vst [vmem:[%s5523_s29 + $0x78] sm:$0xff] %v244_v15   ;;  %v256_v18 = vld [vmem:[%s5518_s28 + $0x120] sm:$0xff]  }
  0x19   : > { %249 = vst [vmem:[%s5523_s29 + $0x80] sm:$0xff] %v248_v16   ;;  %253 = vst [vmem:[%s5523_s29 + $0x88] sm:$0xff] %v252_v17   ;;  %v260_v19 = vld [vmem:[%s5518_s28 + $0x128] sm:$0xff]   ;;  %v264_v20 = vld [vmem:[%s5518_s28 + $0x130] sm:$0xff]  }
  0x1a   : > { %257 = vst [vmem:[%s5523_s29 + $0x90] sm:$0xff] %v256_v18   ;;  %261 = vst [vmem:[%s5523_s29 + $0x98] sm:$0xff] %v260_v19   ;;  %v268_v21 = vld [vmem:[%s5518_s28 + $0x138] sm:$0xff]   ;;  %v272_v22 = vld [vmem:[%s5518_s28 + $0x140] sm:$0xff]  }
  0x1b   : > { %265 = vst [vmem:[%s5523_s29 + $0xa0] sm:$0xff] %v264_v20   ;;  %v276_v23 = vld [vmem:[%s5518_s28 + $0x148] sm:$0xff]   ;;  %269 = vst [vmem:[%s5523_s29 + $0xa8] sm:$0xff] %v268_v21   ;;  %v280_v24 = vld [vmem:[%s5518_s28 + $0x150] sm:$0xff]  }
  0x1c   : > { %273 = vst [vmem:[%s5523_s29 + $0xb0] sm:$0xff] %v272_v22   ;;  %277 = vst [vmem:[%s5523_s29 + $0xb8] sm:$0xff] %v276_v23   ;;  %v284_v25 = vld [vmem:[%s5518_s28 + $0x158] sm:$0xff]   ;;  %v288_v26 = vld [vmem:[%s5518_s28 + $0x160] sm:$0xff]  }
  0x1d   : > { %281 = vst [vmem:[%s5523_s29 + $0xc0] sm:$0xff] %v280_v24   ;;  %285 = vst [vmem:[%s5523_s29 + $0xc8] sm:$0xff] %v284_v25   ;;  %v292_v27 = vld [vmem:[%s5518_s28 + $0x168] sm:$0xff]   ;;  %v296_v28 = vld [vmem:[%s5518_s28 + $0x170] sm:$0xff]  }
  0x1e   : > { %289 = vst [vmem:[%s5523_s29 + $0xd0] sm:$0xff] %v288_v26   ;;  %v300_v29 = vld [vmem:[%s5518_s28 + $0x178] sm:$0xff]   ;;  %293 = vst [vmem:[%s5523_s29 + $0xd8] sm:$0xff] %v292_v27   ;;  %v304_v30 = vld [vmem:[%s5518_s28 + $0x180] sm:$0xff]  }
  0x1f   : > { %297 = vst [vmem:[%s5523_s29 + $0xe0] sm:$0xff] %v296_v28   ;;  %301 = vst [vmem:[%s5523_s29 + $0xe8] sm:$0xff] %v300_v29   ;;  %v308_v31 = vld [vmem:[%s5518_s28 + $0x188] sm:$0xff]   ;;  %v312_v32 = vld [vmem:[%s5518_s28 + $0x190] sm:$0xff]  }
  0x20   : > { %305 = vst [vmem:[%s5523_s29 + $0xf0] sm:$0xff] %v304_v30   ;;  %309 = vst [vmem:[%s5523_s29 + $0xf8] sm:$0xff] %v308_v31   ;;  %v316_v33 = vld [vmem:[%s5518_s28 + $0x198] sm:$0xff]   ;;  %v320_v34 = vld [vmem:[%s5518_s28 + $0x1a0] sm:$0xff]  }
  0x21   : > { %313 = vst [vmem:[%s5523_s29 + $0x100] sm:$0xff] %v312_v32   ;;  %v324_v35 = vld [vmem:[%s5518_s28 + $0x1a8] sm:$0xff]   ;;  %317 = vst [vmem:[%s5523_s29 + $0x108] sm:$0xff] %v316_v33   ;;  %v328_v36 = vld [vmem:[%s5518_s28 + $0x240] sm:$0xff]  }
  0x22   : > { %321 = vst [vmem:[%s5523_s29 + $0x110] sm:$0xff] %v320_v34   ;;  %325 = vst [vmem:[%s5523_s29 + $0x118] sm:$0xff] %v324_v35   ;;  %v332_v37 = vld [vmem:[%s5518_s28 + $0x248] sm:$0xff]   ;;  %v336_v38 = vld [vmem:[%s5518_s28 + $0x250] sm:$0xff]  }
  0x23   : > { %329 = vst [vmem:[%s5523_s29 + $0x120] sm:$0xff] %v328_v36   ;;  %333 = vst [vmem:[%s5523_s29 + $0x128] sm:$0xff] %v332_v37   ;;  %v340_v39 = vld [vmem:[%s5518_s28 + $0x258] sm:$0xff]   ;;  %v344_v40 = vld [vmem:[%s5518_s28 + $0x260] sm:$0xff]  }
  0x24   : > { %337 = vst [vmem:[%s5523_s29 + $0x130] sm:$0xff] %v336_v38   ;;  %v348_v41 = vld [vmem:[%s5518_s28 + $0x268] sm:$0xff]   ;;  %341 = vst [vmem:[%s5523_s29 + $0x138] sm:$0xff] %v340_v39   ;;  %v352_v42 = vld [vmem:[%s5518_s28 + $0x270] sm:$0xff]  }
  0x25   : > { %345 = vst [vmem:[%s5523_s29 + $0x140] sm:$0xff] %v344_v40   ;;  %349 = vst [vmem:[%s5523_s29 + $0x148] sm:$0xff] %v348_v41   ;;  %v356_v43 = vld [vmem:[%s5518_s28 + $0x278] sm:$0xff]   ;;  %v360_v44 = vld [vmem:[%s5518_s28 + $0x280] sm:$0xff]  }
  0x26   : > { %353 = vst [vmem:[%s5523_s29 + $0x150] sm:$0xff] %v352_v42   ;;  %357 = vst [vmem:[%s5523_s29 + $0x158] sm:$0xff] %v356_v43   ;;  %v364_v45 = vld [vmem:[%s5518_s28 + $0x288] sm:$0xff]   ;;  %v368_v46 = vld [vmem:[%s5518_s28 + $0x290] sm:$0xff]  }
  0x27   : > { %361 = vst [vmem:[%s5523_s29 + $0x160] sm:$0xff] %v360_v44   ;;  %v372_v47 = vld [vmem:[%s5518_s28 + $0x298] sm:$0xff]   ;;  %365 = vst [vmem:[%s5523_s29 + $0x168] sm:$0xff] %v364_v45   ;;  %v376_v48 = vld [vmem:[%s5518_s28 + $0x2a0] sm:$0xff]  }
  0x28   : > { %369 = vst [vmem:[%s5523_s29 + $0x170] sm:$0xff] %v368_v46   ;;  %373 = vst [vmem:[%s5523_s29 + $0x178] sm:$0xff] %v372_v47   ;;  %v380_v49 = vld [vmem:[%s5518_s28 + $0x2a8] sm:$0xff]   ;;  %v384_v50 = vld [vmem:[%s5518_s28 + $0x2b0] sm:$0xff]  }
  0x29   : > { %377 = vst [vmem:[%s5523_s29 + $0x180] sm:$0xff] %v376_v48   ;;  %381 = vst [vmem:[%s5523_s29 + $0x188] sm:$0xff] %v380_v49   ;;  %v388_v51 = vld [vmem:[%s5518_s28 + $0x2b8] sm:$0xff]   ;;  %v392_v52 = vld [vmem:[%s5518_s28 + $0x2c0] sm:$0xff]  }
  0x2a   : > { %385 = vst [vmem:[%s5523_s29 + $0x190] sm:$0xff] %v384_v50   ;;  %v396_v53 = vld [vmem:[%s5518_s28 + $0x2c8] sm:$0xff]   ;;  %389 = vst [vmem:[%s5523_s29 + $0x198] sm:$0xff] %v388_v51  }
  0x2b   : > { %393 = vst [vmem:[%s5523_s29 + $0x1a0] sm:$0xff] %v392_v52   ;;  %397 = vst [vmem:[%s5523_s29 + $0x1a8] sm:$0xff] %v396_v53  }
  0x2c PF: > { %p4894_p5 = scmp.ge.s32.totalorder %s5447_s17, 1  ;;  %p638_p6 = scmp.lt.s32.totalorder %s5447_s17, 3 }
  0x2e   : > { %p639_p7 = pnand %p4894_p5, %p638_p6 }
  0x2f   : > { %s645_s30 = sand.u32 (!%p639_p7), 1, %s5439_s15   ;;  %s5449_s7 = smov (!%p639_p7), 8  }
  0x30   : > { %642 = sbr.rel (%p639_p7) target bundleno = 921 (0x399), region = 65  ;;  %s5450_s8 = smov (!%p639_p7), 16  }
  0x31   : > { %s5371_s5 = smul.u32 (!%p639_p7), 432, %s645_s30  ;;  %s5451_s9 = smov (!%p639_p7), 24  }
  0x32   : > { %s5452_s10 = smov (!%p639_p7), 32   ;;  %s5453_s11 = smov (!%p639_p7), 40  }
  0x33   : > { %s5633_s6 = scalar_lea.vmem (!%p639_p7), [#allocation3], %s5371_s5  ;;  %s5454_s12 = smov (!%p639_p7), 48  }
  0x34   : > { %s5455_s13 = smov (!%p639_p7), 56   ;;  %s5456_s24 = smov (!%p639_p7), 64  }
  0x35   : > { %vm1050_vm0 = vsmask.f32 256  ;;  %vm1051_vm1 = vsmask.f32 4368  ;;  %vm966_vm2 = vsmask.f32 2304 }
  0x36   : > { %vm967_vm3 = vsmask.f32 6416  ;;  %v1048_v54 = vld [vmem:[%s5633_s6 + $0x1c] sm:$0xf]  ;;  %v1049_v55 = vld [vmem:[%s5633_s6 + $0x20] sm:$0xf]  ;;  %vm5643_vm6 = vmor %vm1050_vm0, %vm1051_vm1 }
  0x37   : > { %v1047_v56 = vld [vmem:[%s5633_s6 + $0x18] sm:$0x8]  ;;  %vm927_vm4 = vsmask.f32 3328  ;;  %vm928_vm5 = vsmask.f32 7440  ;;  %vm5656_vm9 = vmor %vm966_vm2, %vm967_vm3 }
  0x38   : > { %v1059_v57 = vshrl.u32 %v1048_v54, 16  ;;  %v1068_v58 = vshrl.u32 %v1049_v55, 16  ;;  %v1071_v59 = vshll.u32 %v1049_v55, 16  ;;  %v1054_v60 = vshrl.u32 %v1047_v56, 16  ;;  %v963_v61 = vld [vmem:[%s5633_s6 + $0x8] sm:$0xe]  ;;  %vm5669_vm10 = vmor %vm927_vm4, %vm928_vm5 }
  0x39   : > { %v1062_v62 = vshll.u32 %v1048_v54, 16  ;;  %v964_v63 = vld [vmem:[%s5633_s6 + $0xc] sm:$0xf]  ;;  %v970_v0 = vshrl.u32 %v963_v61, 16  ;;  %v973_v1 = vshll.u32 %v963_v61, 16  ;;  %vm705_vm12 = vcmask 1042432  }
  0x3a   : > { %v1061_v2 = vrot.slane %v1059_v57, 7  ;;  %v1070_v3 = vrot.slane %v1068_v58, 7  ;;  %v4911_v4 = vrot.slane %v1054_v60, 11  ;;  %v979_v5 = vshrl.u32 %v964_v63, 16  ;;  %v924_v6 = vld [vmem:[%s5633_s6] sm:$0xf] }
  0x3b   : > { %v972_v8 = vrot.slane %v970_v0, 5  ;;  %v975_v9 = vrot.slane %v973_v1, 6  ;;  %v982_v10 = vshll.u32 %v964_v63, 16  ;;  %v925_v11 = vld [vmem:[%s5633_s6 + $0x4] sm:$0xf]  ;;  %v931_v12 = vshrl.u32 %v924_v6, 16 }
  0x3c   : > { %v1066_v13 = vrot.slane %v1061_v2, 4  ;;  %v1073_v14 = vor.u32 %v1071_v59, %v1070_v3  ;;  %v1064_v15 = vor.u32 %v1062_v62, %v1061_v2  ;;  %v981_v16 = vrot.slane %v979_v5, 5  ;;  %v965_v17 = vld [vmem:[%s5633_s6 + $0x10] sm:$0x3]  ;;  %v926_v22 = vld [vmem:[%s5633_s6 + $0x8] sm:$0x1] }
  0x3d   : > { %v976_v18 = vor.u32 %v975_v9, %v972_v8  ;;  %v984_v19 = vrot.slane %v982_v10, 6  ;;  %v933_v20 = vrot.slane %v931_v12, 4  ;;  %v934_v21 = vshll.u32 %v924_v6, 16  ;;  %v1006_v32 = vld [vmem:[%s5633_s6 + $0x14] sm:$0xf]  ;;  %s4895_s29 = sshll.u32 %s5498_s18, 5 }
  0x3e   : > { %vm1008_vm7 = vsmask.f32 1280  ;;  %vm1009_vm8 = vsmask.f32 5392  ;;  %v1074_v23 = vsel %vm5643_vm6, %v1066_v13, %v1073_v14  ;;  %v1065_v24 = vsel %vm5643_vm6, %v4911_v4, %v1064_v15  ;;  %v1007_v37 = vld [vmem:[%s5633_s6 + $0x18] sm:$0x7] }
  0x3f   : > { %v940_v26 = vshll.u32 %v925_v11, 16  ;;  %v944_v27 = vshrl.u32 %v925_v11, 16  ;;  %1077 = vrot.lane.b32.xlu1 %v1074_v23, %s5449_s7  ;;  %1075 = vrot.lane.b32.xlu0 %v1065_v24, %s5449_s7  ;;  %v977_v28 = vrot.slane %v976_v18, 4  ;;  %v985_v29 = vor.u32 %v984_v19, %v981_v16  ;;  %v1005_v42 = vld [vmem:[%s5633_s6 + $0x10] sm:$0xc]  ;;  %vm5688_vm11 = vmor %vm1008_vm7, %vm1009_vm8  ;;  %p680_p8 = scmp.lt.s32.totalorder %s4895_s29, 63 }
  0x40   : > { %v936_v30 = vrot.slane %v934_v21, 5  ;;  %v989_v31 = vshrl.u32 %v965_v17, 16  ;;  %v992_v34 = vshll.u32 %v965_v17, 16  ;;  %v950_v36 = vshll.u32 %v926_v22, 16  ;;  %v1084_v52 = vld [vmem:[%s5633_s6 + $0x28] sm:$0xf] }
  0x41   : > { %v942_v33 = vrot.slane %v940_v26, 5  ;;  %v946_v35 = vrot.slane %v944_v27, 4  ;;  %v986_v38 = vsel %vm5656_vm9, %v977_v28, %v985_v29  ;;  %v987_v40 = vrot.slane %v985_v29, 4  ;;  %v1085_v57 = vld [vmem:[%s5633_s6 + $0x2c] sm:$0x1]  ;;  %s7528_s29 = smov (!%p680_p8, %s4895_s29), 63 }
  0x42   : > { %v937_v39 = vor.u32 %v936_v30, %v933_v20  ;;  %v991_v41 = vrot.slane %v989_v31, 5  ;;  %v994_v44 = vrot.slane %v992_v34, 6  ;;  %v952_v46 = vrot.slane %v950_v36, 5  ;;  %v1083_v62 = vld [vmem:[%s5633_s6 + $0x24] sm:$0xf]  ;;  %s4896_s30 = sshll.u32 %s7528_s29, 3 }
  0x43   : > { %v947_v45 = vor.u32 %v946_v35, %v942_v33  ;;  %v1021_v47 = vshrl.u32 %v1006_v32, 16  ;;  %997 = vrot.lane.b32.xlu1 %v986_v38, %s5449_s7  ;;  %v1024_v49 = vshll.u32 %v1006_v32, 16  ;;  %v1031_v50 = vshrl.u32 %v1007_v37, 16  ;;  %v1119_v3 = vld [vmem:[%s5633_s6 + $0x30] sm:$0xf]  ;;  %p685_p9 = scmp.lt.s32.totalorder %s5498_s18, 1 }
  0x44   : > { %v938_v48 = vrot.slane %v937_v39, 4  ;;  %v1034_v51 = vshll.u32 %v1007_v37, 16  ;;  %v995_v53 = vor.u32 %v994_v44, %v991_v41  ;;  %v1012_v56 = vshrl.u32 %v1005_v42, 16  ;;  %v1120_v17 = vld [vmem:[%s5633_s6 + $0x34] sm:$0x3] }
  0x45   : > { %v948_v54 = vrot.slane %v947_v45, 4  ;;  %v1023_v55 = vrot.slane %v1021_v47, 6  ;;  %v1026_v59 = vrot.slane %v1024_v49, 7  ;;  %v1033_v60 = vrot.slane %v1031_v50, 6  ;;  %v1118_v23 = vld [vmem:[%s5633_s6 + $0x2c] sm:$0xe] }
  0x46   : > { %v943_v58 = vsel %vm5669_vm10, %v938_v48, %v942_v33  ;;  %v1036_v61 = vrot.slane %v1034_v51, 7  ;;  %v996_v63 = vsel %vm5656_vm9, %v987_v40, %v995_v53  ;;  %v1014_v1 = vrot.slane %v1012_v56, 6  ;;  %v1158_v37 = vld [vmem:[%s5633_s6 + $0x38] sm:$0xf]  ;;  %v1157_v48 = vld [vmem:[%s5633_s6 + $0x34] sm:$0xc] }
  0x47   : > { %954 = vrot.lane.b32.xlu0 %v943_v58, %s5449_s7  ;;  %v953_v0 = vsel %vm5669_vm10, %v948_v54, %v952_v46  ;;  %v1015_v2 = vshll.u32 %v1005_v42, 16  ;;  %999 = vrot.lane.b32.xlu1 %v996_v63, %s5449_s7  ;;  %v1027_v4 = vor.u32 %v1026_v59, %v1023_v55  ;;  %v1096_v6 = vshll.u32 %v1084_v52, 16  ;;  %v1159_v42 = vld [vmem:[%s5633_s6 + $0x3c] sm:$0x7]  ;;  %v4977_v25 = vld [vmem:[%s5633_s6 + $0x114] sm:$0x3] }
  0x48   : > { %v1037_v5 = vor.u32 %v1036_v61, %v1033_v60  ;;  %v1100_v8 = vshrl.u32 %v1084_v52, 16  ;;  %v1106_v11 = vshll.u32 %v1085_v57, 16  ;;  %v1087_v12 = vshrl.u32 %v1083_v62, 16  ;;  %v1197_v57 = vld [vmem:[%s5633_s6 + $0x40] sm:$0xf]  ;;  %s7530_s18 = smov (!%p685_p9, %s5498_s18), 1 }
  0x49   : > { %v1017_v10 = vrot.slane %v1015_v2, 7  ;;  %v1090_v13 = vshll.u32 %v1083_v62, 16  ;;  %v1029_v14 = vrot.slane %v1027_v4, 4  ;;  %v1098_v15 = vrot.slane %v1096_v6, 5  ;;  %v1198_v62 = vld [vmem:[%s5633_s6 + $0x44] sm:$0xf] }
  0x4a   : > { %v1102_v16 = vrot.slane %v1100_v8, 4  ;;  %v1131_v18 = vshrl.u32 %v1119_v3, 16  ;;  %v1108_v20 = vrot.slane %v1106_v11, 5  ;;  %v1089_v21 = vrot.slane %v1087_v12, 4 }
  0x4b   : > { %956 = vrot.lane.b32.xlu0 %v953_v0, %s5449_s7  ;;  %v1018_v19 = vor.u32 %v1017_v10, %v1014_v1  ;;  %v1092_v22 = vrot.slane %v1090_v13, 5  ;;  %v1038_v24 = vsel %vm5688_vm11, %v1029_v14, %v1037_v5  ;;  %v1134_v28 = vshll.u32 %v1119_v3, 16  ;;  %v1196_v3 = vld [vmem:[%s5633_s6 + $0x3c] sm:$0x8]  ;;  %v1230_v10 = vld [vmem:[%s5633_s6 + $0x4c] sm:$0xf] }
  0x4c   : > { %v1103_v26 = vor.u32 %v1102_v16, %v1098_v15  ;;  %v1133_v27 = vrot.slane %v1131_v18, 5  ;;  %1041 = vrot.lane.b32.xlu1 %v1038_v24, %s5449_s7  ;;  %v1141_v31 = vshrl.u32 %v1120_v17, 16  ;;  %v1144_v32 = vshll.u32 %v1120_v17, 16  ;;  %v1229_v24 = vld [vmem:[%s5633_s6 + $0x48] sm:$0xf] }
  0x4d   : > { %v1019_v29 = vrot.slane %v1018_v19, 4  ;;  %v1093_v30 = vor.u32 %v1092_v22, %v1089_v21  ;;  %v1136_v34 = vrot.slane %v1134_v28, 6  ;;  %v1122_v35 = vshrl.u32 %v1118_v23, 16  ;;  %v1231_v19 = vld [vmem:[%s5633_s6 + $0x50] sm:$0x1] }
  0x4e   : > { %v1104_v33 = vrot.slane %v1103_v26, 4  ;;  %v1125_v36 = vshll.u32 %v1118_v23, 16  ;;  %v1143_v40 = vrot.slane %v1141_v31, 5  ;;  %v1146_v41 = vrot.slane %v1144_v32, 6 }
  0x4f   : > { %v1028_v38 = vsel %vm5688_vm11, %v1019_v29, %v1027_v4  ;;  %v1094_v39 = vrot.slane %v1093_v30, 4  ;;  %v1137_v45 = vor.u32 %v1136_v34, %v1133_v27  ;;  %v1124_v46 = vrot.slane %v1122_v35, 5  ;;  %v1265_v30 = vld [vmem:[%s5633_s6 + $0x54] sm:$0xf] }
  0x50   : > { %1039 = vrot.lane.b32.xlu0 %v1028_v38, %s5449_s7  ;;  %v1109_v44 = vsel %vm5669_vm10, %v1104_v33, %v1108_v20  ;;  %v1127_v47 = vrot.slane %v1125_v36, 6  ;;  %v1147_v50 = vor.u32 %v1146_v41, %v1143_v40  ;;  %v1170_v51 = vshrl.u32 %v1158_v37, 16 }
  0x51   : > { %1112 = vrot.lane.b32.xlu1 %v1109_v44, %s5449_s7  ;;  %v1099_v49 = vsel %vm5669_vm10, %v1094_v39, %v1098_v15  ;;  %v1173_v52 = vshll.u32 %v1158_v37, 16  ;;  %v1139_v53 = vrot.slane %v1137_v45, 4  ;;  %v1180_v55 = vshrl.u32 %v1159_v42, 16  ;;  %v1266_v39 = vld [vmem:[%s5633_s6 + $0x58] sm:$0x3] }
  0x52   : > { %v1128_v54 = vor.u32 %v1127_v47, %v1124_v46  ;;  %v1183_v56 = vshll.u32 %v1159_v42, 16  ;;  %v1172_v58 = vrot.slane %v1170_v51, 6  ;;  %v1161_v60 = vshrl.u32 %v1157_v48, 16 }
  0x53   : > { %v1175_v59 = vrot.slane %v1173_v52, 7  ;;  %v1164_v61 = vshll.u32 %v1157_v48, 16  ;;  %v1148_v63 = vsel %vm5656_vm9, %v1139_v53, %v1147_v50  ;;  %v1182_v1 = vrot.slane %v1180_v55, 6  ;;  %v1304_v50 = vld [vmem:[%s5633_s6 + $0x5c] sm:$0xf] }
  0x54   : > { %1110 = vrot.lane.b32.xlu0 %v1099_v49, %s5449_s7  ;;  %v1129_v0 = vrot.slane %v1128_v54, 4  ;;  %v1185_v2 = vrot.slane %v1183_v56, 7  ;;  %v1163_v5 = vrot.slane %v1161_v60, 6  ;;  %v1205_v8 = vshrl.u32 %v1197_v57, 16 }
  0x55   : > { %1151 = vrot.lane.b32.xlu1 %v1148_v63, %s5449_s7  ;;  %v1176_v4 = vor.u32 %v1175_v59, %v1172_v58  ;;  %v1166_v6 = vrot.slane %v1164_v61, 7  ;;  %v1214_v13 = vshrl.u32 %v1198_v62, 16  ;;  %v1217_v14 = vshll.u32 %v1198_v62, 16  ;;  %v1305_v59 = vld [vmem:[%s5633_s6 + $0x60] sm:$0x7] }
  0x56   : > { %v1138_v11 = vsel %vm5656_vm9, %v1129_v0, %v1137_v45  ;;  %v1186_v12 = vor.u32 %v1185_v2, %v1182_v1  ;;  %v1207_v17 = vrot.slane %v1205_v8, 7  ;;  %v1200_v18 = vshrl.u32 %v1196_v3, 16  ;;  %v1264_v45 = vld [vmem:[%s5633_s6 + $0x50] sm:$0xe] }
  0x57   : > { %v1178_v15 = vrot.slane %v1176_v4, 4  ;;  %v1167_v16 = vor.u32 %v1166_v6, %v1163_v5  ;;  %v1216_v20 = vrot.slane %v1214_v13, 7  ;;  %v1208_v21 = vshll.u32 %v1197_v57, 16 }
  0x58   : > { %1149 = vrot.lane.b32.xlu0 %v1138_v11, %s5449_s7  ;;  %v1242_v22 = vshll.u32 %v1230_v10, 16  ;;  %v1246_v23 = vshrl.u32 %v1230_v10, 16  ;;  %v1212_v28 = vrot.slane %v1207_v17, 4  ;;  %v4912_v29 = vrot.slane %v1200_v18, 11  ;;  %v1343_v11 = vld [vmem:[%s5633_s6 + $0x64] sm:$0xf] }
  0x59   : > { %v1187_v26 = vsel %vm5688_vm11, %v1178_v15, %v1186_v12  ;;  %v1168_v27 = vrot.slane %v1167_v16, 4  ;;  %v1219_v31 = vor.u32 %v1217_v14, %v1216_v20  ;;  %v1210_v32 = vor.u32 %v1208_v21, %v1207_v17  ;;  %v1344_v16 = vld [vmem:[%s5633_s6 + $0x68] sm:$0xf] }
  0x5a   : > { %1190 = vrot.lane.b32.xlu1 %v1187_v26, %s5449_s7  ;;  %v1244_v33 = vrot.slane %v1242_v22, 5  ;;  %v1248_v34 = vrot.slane %v1246_v23, 4  ;;  %v1252_v36 = vshll.u32 %v1231_v19, 16  ;;  %v1233_v37 = vshrl.u32 %v1229_v24, 16  ;;  %v1342_v26 = vld [vmem:[%s5633_s6 + $0x60] sm:$0x8] }
  0x5b   : > { %v1177_v35 = vsel %vm5688_vm11, %v1168_v27, %v1176_v4  ;;  %v1236_v38 = vshll.u32 %v1229_v24, 16  ;;  %v1220_v40 = vsel %vm5643_vm6, %v1212_v28, %v1219_v31  ;;  %v1211_v41 = vsel %vm5643_vm6, %v4912_v29, %v1210_v32  ;;  %v1303_v4 = vld [vmem:[%s5633_s6 + $0x58] sm:$0xc]  ;;  %v1376_v31 = vld [vmem:[%s5633_s6 + $0x70] sm:$0xf] }
  0x5c   : > { %1188 = vrot.lane.b32.xlu0 %v1177_v35, %s5449_s7  ;;  %v1249_v42 = vor.u32 %v1248_v34, %v1244_v33  ;;  %v1277_v44 = vshrl.u32 %v1265_v30, 16  ;;  %v1254_v46 = vrot.slane %v1252_v36, 5  ;;  %v1235_v47 = vrot.slane %v1233_v37, 4 }
  0x5d   : > { %v1238_v48 = vrot.slane %v1236_v38, 5  ;;  %v1280_v49 = vshll.u32 %v1265_v30, 16  ;;  %v1287_v53 = vshrl.u32 %v1266_v39, 16  ;;  %v1290_v54 = vshll.u32 %v1266_v39, 16 }
  0x5e   : > { %1223 = vrot.lane.b32.xlu1 %v1220_v40, %s5449_s7  ;;  %v1250_v51 = vrot.slane %v1249_v42, 4  ;;  %v1279_v52 = vrot.slane %v1277_v44, 5  ;;  %v1268_v57 = vshrl.u32 %v1264_v45, 16  ;;  %v1271_v58 = vshll.u32 %v1264_v45, 16  ;;  %v1377_v40 = vld [vmem:[%s5633_s6 + $0x74] sm:$0x1] }
  0x5f   : > { %v1239_v55 = vor.u32 %v1238_v48, %v1235_v47  ;;  %v1282_v56 = vrot.slane %v1280_v49, 6  ;;  %v1289_v61 = vrot.slane %v1287_v53, 5  ;;  %v1292_v62 = vrot.slane %v1290_v54, 6 }
  0x60   : > { %1221 = vrot.lane.b32.xlu0 %v1211_v41, %s5449_s7  ;;  %v1255_v60 = vsel %vm5669_vm10, %v1250_v51, %v1254_v46  ;;  %v1316_v63 = vshrl.u32 %v1304_v50, 16  ;;  %v1270_v2 = vrot.slane %v1268_v57, 5  ;;  %v1273_v3 = vrot.slane %v1271_v58, 6  ;;  %v1375_v46 = vld [vmem:[%s5633_s6 + $0x6c] sm:$0xf] }
  0x61   : > { %v1240_v0 = vrot.slane %v1239_v55, 4  ;;  %v1283_v1 = vor.u32 %v1282_v56, %v1279_v52  ;;  %v1293_v5 = vor.u32 %v1292_v62, %v1289_v61  ;;  %v1319_v8 = vshll.u32 %v1304_v50, 16  ;;  %v1411_v51 = vld [vmem:[%s5633_s6 + $0x78] sm:$0xf]  ;;  %v1412_v56 = vld [vmem:[%s5633_s6 + $0x7c] sm:$0x3] }
  0x62   : > { %1258 = vrot.lane.b32.xlu1 %v1255_v60, %s5449_s7  ;;  %v1318_v6 = vrot.slane %v1316_v63, 6  ;;  %v1326_v10 = vshrl.u32 %v1305_v59, 16  ;;  %v1274_v14 = vor.u32 %v1273_v3, %v1270_v2  ;;  %v1329_v15 = vshll.u32 %v1305_v59, 16  ;;  %v1410_v61 = vld [vmem:[%s5633_s6 + $0x74] sm:$0xe] }
  0x63   : > { %v1245_v12 = vsel %vm5669_vm10, %v1240_v0, %v1244_v33  ;;  %v1285_v13 = vrot.slane %v1283_v1, 4  ;;  %v1321_v17 = vrot.slane %v1319_v8, 7  ;;  %v1307_v19 = vshrl.u32 %v1303_v4, 16 }
  0x64   : > { %1256 = vrot.lane.b32.xlu0 %v1245_v12, %s5449_s7  ;;  %v1328_v18 = vrot.slane %v1326_v10, 6  ;;  %v1310_v20 = vshll.u32 %v1303_v4, 16  ;;  %v1275_v22 = vrot.slane %v1274_v14, 4  ;;  %v1331_v23 = vrot.slane %v1329_v15, 7 }
  0x65   : > { %v1294_v21 = vsel %vm5656_vm9, %v1285_v13, %v1293_v5  ;;  %v1351_v24 = vshrl.u32 %v1343_v11, 16  ;;  %v1322_v27 = vor.u32 %v1321_v17, %v1318_v6  ;;  %v1309_v28 = vrot.slane %v1307_v19, 6  ;;  %v1450_v6 = vld [vmem:[%s5633_s6 + $0x80] sm:$0xf]  ;;  %v1451_v17 = vld [vmem:[%s5633_s6 + $0x84] sm:$0x7] }
  0x66   : > { %1297 = vrot.lane.b32.xlu1 %v1294_v21, %s5449_s7  ;;  %v1312_v29 = vrot.slane %v1310_v20, 7  ;;  %v1360_v30 = vshrl.u32 %v1344_v16, 16  ;;  %v1284_v32 = vsel %vm5656_vm9, %v1275_v22, %v1283_v1  ;;  %v1332_v33 = vor.u32 %v1331_v23, %v1328_v18 }
  0x67   : > { %v1353_v34 = vrot.slane %v1351_v24, 7  ;;  %v1363_v35 = vshll.u32 %v1344_v16, 16  ;;  %v1324_v36 = vrot.slane %v1322_v27, 4  ;;  %v1346_v39 = vshrl.u32 %v1342_v26, 16 }
  0x68   : > { %1295 = vrot.lane.b32.xlu0 %v1284_v32, %s5449_s7  ;;  %v1313_v37 = vor.u32 %v1312_v29, %v1309_v28  ;;  %v1362_v38 = vrot.slane %v1360_v30, 7  ;;  %v1354_v42 = vshll.u32 %v1343_v11, 16  ;;  %v1388_v44 = vshll.u32 %v1376_v31, 16  ;;  %v1489_v32 = vld [vmem:[%s5633_s6 + $0x88] sm:$0xf] }
  0x69   : > { %v1358_v41 = vrot.slane %v1353_v34, 4  ;;  %v1392_v45 = vshrl.u32 %v1376_v31, 16  ;;  %v1333_v47 = vsel %vm5688_vm11, %v1324_v36, %v1332_v33  ;;  %v4913_v50 = vrot.slane %v1346_v39, 11 }
  0x6a   : > { %v1314_v48 = vrot.slane %v1313_v37, 4  ;;  %v1365_v49 = vor.u32 %v1363_v35, %v1362_v38  ;;  %1336 = vrot.lane.b32.xlu1 %v1333_v47, %s5449_s7  ;;  %v1356_v52 = vor.u32 %v1354_v42, %v1353_v34  ;;  %v1390_v53 = vrot.slane %v1388_v44, 5  ;;  %v1490_v37 = vld [vmem:[%s5633_s6 + $0x8c] sm:$0xf]  ;;  %v1488_v47 = vld [vmem:[%s5633_s6 + $0x84] sm:$0x8] }
  0x6b   : > { %v1394_v54 = vrot.slane %v1392_v45, 4  ;;  %v1398_v55 = vshll.u32 %v1377_v40, 16  ;;  %v1379_v59 = vshrl.u32 %v1375_v46, 16  ;;  %v1382_v60 = vshll.u32 %v1375_v46, 16 }
  0x6c   : > { %v1323_v57 = vsel %vm5688_vm11, %v1314_v48, %v1322_v27  ;;  %v1366_v58 = vsel %vm5643_vm6, %v1358_v41, %v1365_v49  ;;  %v1357_v62 = vsel %vm5643_vm6, %v4913_v50, %v1356_v52  ;;  %v1423_v1 = vshrl.u32 %v1411_v51, 16  ;;  %v1449_v27 = vld [vmem:[%s5633_s6 + $0x7c] sm:$0xc]  ;;  %v1522_v52 = vld [vmem:[%s5633_s6 + $0x4] sm:$0xf] }
  0x6d   : > { %1334 = vrot.lane.b32.xlu0 %v1323_v57, %s5449_s7  ;;  %v1395_v63 = vor.u32 %v1394_v54, %v1390_v53  ;;  %v1400_v0 = vrot.slane %v1398_v55, 5  ;;  %v1381_v2 = vrot.slane %v1379_v59, 4  ;;  %v1384_v3 = vrot.slane %v1382_v60, 5  ;;  %v1523_v57 = vld [vmem:[%s5633_s6 + $0x8] sm:$0x1] }
  0x6e   : > { %v1426_v4 = vshll.u32 %v1411_v51, 16  ;;  %v1433_v5 = vshrl.u32 %v1412_v56, 16  ;;  %1369 = vrot.lane.b32.xlu1 %v1366_v58, %s5449_s7  ;;  %v1425_v10 = vrot.slane %v1423_v1, 5  ;;  %v1436_v11 = vshll.u32 %v1412_v56, 16 }
  0x6f   : > { %v1396_v8 = vrot.slane %v1395_v63, 4  ;;  %v1414_v12 = vshrl.u32 %v1410_v61, 16  ;;  %v1385_v13 = vor.u32 %v1384_v3, %v1381_v2  ;;  %v1417_v16 = vshll.u32 %v1410_v61, 16 }
  0x70   : > { %v1428_v14 = vrot.slane %v1426_v4, 6  ;;  %v1435_v15 = vrot.slane %v1433_v5, 5  ;;  %v1438_v19 = vrot.slane %v1436_v11, 6  ;;  %v1462_v21 = vshrl.u32 %v1450_v6, 16 }
  0x71   : > { %1367 = vrot.lane.b32.xlu0 %v1357_v62, %s5449_s7  ;;  %v1401_v18 = vsel %vm5669_vm10, %v1396_v8, %v1400_v0  ;;  %v1416_v20 = vrot.slane %v1414_v12, 5  ;;  %v1386_v22 = vrot.slane %v1385_v13, 4  ;;  %v1419_v24 = vrot.slane %v1417_v16, 6  ;;  %v1544_v62 = vld [vmem:[%s5633_s6 + $0xc] sm:$0xf] }
  0x72   : > { %v1429_v23 = vor.u32 %v1428_v14, %v1425_v10  ;;  %v1465_v26 = vshll.u32 %v1450_v6, 16  ;;  %1404 = vrot.lane.b32.xlu1 %v1401_v18, %s5449_s7  ;;  %v1439_v28 = vor.u32 %v1438_v19, %v1435_v15  ;;  %v1464_v29 = vrot.slane %v1462_v21, 6  ;;  %v1521_v10 = vld [vmem:[%s5633_s6] sm:$0xe]  ;;  %v1545_v15 = vld [vmem:[%s5633_s6 + $0x10] sm:$0x3] }
  0x73   : > { %v1472_v30 = vshrl.u32 %v1451_v17, 16  ;;  %v1475_v31 = vshll.u32 %v1451_v17, 16  ;;  %v1391_v33 = vsel %vm5669_vm10, %v1386_v22, %v1390_v53  ;;  %v1420_v35 = vor.u32 %v1419_v24, %v1416_v20  ;;  %v1565_v16 = vld [vmem:[%s5633_s6 + $0x14] sm:$0xf]  ;;  %v1543_v22 = vld [vmem:[%s5633_s6 + $0x8] sm:$0xc] }
  0x74   : > { %v1431_v34 = vrot.slane %v1429_v23, 4  ;;  %v1467_v36 = vrot.slane %v1465_v26, 7  ;;  %v1453_v40 = vshrl.u32 %v1449_v27, 16  ;;  %v1456_v41 = vshll.u32 %v1449_v27, 16  ;;  %v1566_v26 = vld [vmem:[%s5633_s6 + $0x18] sm:$0x7] }
  0x75   : > { %1402 = vrot.lane.b32.xlu0 %v1391_v33, %s5449_s7  ;;  %v1474_v38 = vrot.slane %v1472_v30, 6  ;;  %v1477_v39 = vrot.slane %v1475_v31, 7  ;;  %v1421_v44 = vrot.slane %v1420_v35, 4  ;;  %v1497_v46 = vshrl.u32 %v1489_v32, 16  ;;  %v1599_v35 = vld [vmem:[%s5633_s6 + $0x2c] sm:$0x1] }
  0x76   : > { %v1440_v42 = vsel %vm5656_vm9, %v1431_v34, %v1439_v28  ;;  %v1468_v45 = vor.u32 %v1467_v36, %v1464_v29  ;;  %v1455_v49 = vrot.slane %v1453_v40, 6  ;;  %v1458_v50 = vrot.slane %v1456_v41, 7  ;;  %v5833_v34 = vld [vmem:[%s5633_s6 + $0x28] sm:$0xf]  ;;  %v741_v40 = vld [vmem:[%s5633_s6 + $0x20] sm:$0x7] }
  0x77   : > { %1443 = vrot.lane.b32.xlu1 %v1440_v42, %s5449_s7  ;;  %v1478_v48 = vor.u32 %v1477_v39, %v1474_v38  ;;  %v1506_v51 = vshrl.u32 %v1490_v37, 16  ;;  %v1430_v53 = vsel %vm5656_vm9, %v1421_v44, %v1429_v23  ;;  %v1499_v55 = vrot.slane %v1497_v46, 7  ;;  %v5841_v38 = vld [vmem:[%s5633_s6 + $0x30] sm:$0xf]  ;;  %v740_v39 = vld [vmem:[%s5633_s6 + $0x1c] sm:$0xf] }
  0x78   : > { %v1470_v54 = vrot.slane %v1468_v45, 4  ;;  %v1509_v56 = vshll.u32 %v1490_v37, 16  ;;  %v1459_v58 = vor.u32 %v1458_v50, %v1455_v49  ;;  %v1492_v60 = vshrl.u32 %v1488_v47, 16  ;;  %v739_v44 = vld [vmem:[%s5633_s6 + $0x18] sm:$0x8] }
  0x79   : > { %1441 = vrot.lane.b32.xlu0 %v1430_v53, %s5449_s7  ;;  %v1508_v59 = vrot.slane %v1506_v51, 7  ;;  %v1500_v61 = vshll.u32 %v1489_v32, 16  ;;  %v1504_v0 = vrot.slane %v1499_v55, 4  ;;  %vm706_vm13 = vcmask 1046532   ;;  %v1564_v32 = vld [vmem:[%s5633_s6 + $0x10] sm:$0x8] }
  0x7a   : > { %v1479_v63 = vsel %vm5688_vm11, %v1470_v54, %v1478_v48  ;;  %v1529_v1 = vrot.slane %v1522_v52, 5  ;;  %v1460_v2 = vrot.slane %v1459_v58, 4  ;;  %v4914_v4 = vrot.slane %v1492_v60, 11  ;;  %vm5803_vm14 = vmor %vm705_vm12, %vm706_vm13  ;;  %v695_v46 = vld [vmem:[%s5633_s6 + $0x4] sm:$0xf] }
  0x7b   : > { %1482 = vrot.lane.b32.xlu1 %v1479_v63, %s5449_s7  ;;  %v1511_v3 = vor.u32 %v1509_v56, %v1508_v59  ;;  %v1502_v5 = vor.u32 %v1500_v61, %v1499_v55  ;;  %v1532_v8 = vrot.slane %v1523_v57, 5  ;;  %v1551_v11 = vrot.slane %v1544_v62, 6  ;;  %v760_v47 = vld [vmem:[%s5633_s6 + $0x28] sm:$0xf]  ;;  %v759_v48 = vld [vmem:[%s5633_s6 + $0x24] sm:$0xf] }
  0x7c   : > { %v1531_v6 = vrot.slane %v1529_v1, 4  ;;  %v1469_v12 = vsel %vm5688_vm11, %v1460_v2, %v1468_v45  ;;  %vm725_vm15 = vcmask 1041408   ;;  %vm726_vm0 = vcmask 1045508   ;;  %v694_v45 = vld [vmem:[%s5633_s6] sm:$0xf] }
  0x7d   : > { %v1512_v13 = vsel %vm5643_vm6, %v1504_v0, %v1511_v3  ;;  %1480 = vrot.lane.b32.xlu0 %v1469_v12, %s5449_s7  ;;  %v1503_v17 = vsel %vm5643_vm6, %v4914_v4, %v1502_v5  ;;  %v4915_v18 = vrot.slane %v1521_v10, 9  ;;  %v1553_v20 = vrot.slane %v1551_v11, 4  ;;  %vm5816_vm1 = vmor %vm725_vm15, %vm726_vm0  ;;  %v1586_v49 = vld [vmem:[%s5633_s6 + $0x20] sm:$0xf]  ;;  %v1597_v50 = vld [vmem:[%s5633_s6 + $0x24] sm:$0xe] }
  0x7e   : > { %v1533_v19 = vsel %vm5803_vm14, %v1531_v6, %v1532_v8  ;;  %v1554_v21 = vrot.slane %v1545_v15, 6  ;;  %v1572_v23 = vrot.slane %v1565_v16, 7  ;;  %vm745_vm2 = vcmask 1040384   ;;  %v1620_v51 = vld [vmem:[%s5633_s6 + $0x34] sm:$0x3] }
  0x7f   : > { %1515 = vrot.lane.b32.xlu1 %v1512_v13, %s5449_s7  ;;  %vm746_vm3 = vcmask 1044484   ;;  %v1530_v27 = vsel %vm5803_vm14, %v4915_v18, %v1529_v1  ;;  %v4916_v28 = vrot.slane %v1543_v22, 10  ;;  %v1575_v31 = vrot.slane %v1566_v26, 7  ;;  %v699_v52 = vld [vmem:[%s5633_s6 + $0x8] sm:$0xe] }
  0x80   : > { %v1555_v29 = vsel %vm5816_vm1, %v1553_v20, %v1554_v21  ;;  %v1574_v30 = vrot.slane %v1572_v23, 4  ;;  %vm5828_vm4 = vmor %vm745_vm2, %vm746_vm3  ;;  %v4917_v37 = vrot.slane %v1564_v32, 11  ;;  %v1605_v42 = vrot.slane %v5833_v34, 5  ;;  %v700_v56 = vld [vmem:[%s5633_s6 + $0xc] sm:$0xf] }
  0x81   : > { %1513 = vrot.lane.b32.xlu0 %v1503_v17, %s5449_s7  ;;  %v1552_v36 = vsel %vm5816_vm1, %v4916_v28, %v1551_v11  ;;  %v1608_v54 = vrot.slane %v1599_v35, 5  ;;  %vm696_vm5 = vcmask 60416   ;;  %v750_v55 = vrot.slane %v740_v39, 7  ;;  %v5864_v59 = vld [vmem:[%s5633_s6 + $0x38] sm:$0xf] }
  0x82   : > { %v1576_v41 = vsel %vm5828_vm4, %v1574_v30, %v1575_v31  ;;  %v1573_v53 = vsel %vm5828_vm4, %v4917_v37, %v1572_v23  ;;  %v1607_v57 = vrot.slane %v1605_v42, 4  ;;  %v1626_v58 = vrot.slane %v5841_v38, 6  ;;  %697 = vst.msk [vmem:[#allocation2] sm:$0xf] %vm696_vm5, %v694_v45  ;;  %698 = vst.msk [vmem:[#allocation2 + $0x4] sm:$0xf] %vm696_vm5, %v695_v46 }
  0x83   : > { %1536 = vrot.lane.b32.xlu1 %v1533_v19, %s5450_s8  ;;  %v753_v60 = vrot.slane %v741_v40, 7  ;;  %v4901_v61 = vrot.slane %v739_v44, 11  ;;  %762 = vst.msk [vmem:[#allocation2 + $0x24] sm:$0xf] %vm696_vm5, %v760_v47  ;;  %761 = vst.msk [vmem:[#allocation2 + $0x20] sm:$0xf] %vm696_vm5, %v759_v48 }
  0x84   : > { %v1585_v62 = vld [vmem:[%s5633_s6 + $0x1c] sm:$0xf]  ;;  %v4918_v63 = vrot.slane %v1597_v50, 9  ;;  %v752_v0 = vrot.slane %v750_v55, 4  ;;  %v701_v1 = vld [vmem:[%s5633_s6 + $0x10] sm:$0x1]  ;;  %v1609_v15 = vsel %vm5803_vm14, %v1607_v57, %v1608_v54 }
  0x85   : > { %1534 = vrot.lane.b32.xlu0 %v1530_v27, %s5450_s8  ;;  %v751_v2 = vsel %vm5828_vm4, %v4901_v61, %v750_v55  ;;  %v4899_v3 = vrot.slane %v699_v52, 9  ;;  %v710_v4 = vrot.slane %v700_v56, 5  ;;  %v720_v5 = vld [vmem:[%s5633_s6 + $0x14] sm:$0xf]  ;;  %v721_v6 = vld [vmem:[%s5633_s6 + $0x18] sm:$0x3] }
  0x86   : > { %v1629_v8 = vrot.slane %v1620_v51, 6  ;;  %v1618_v10 = vld [vmem:[%s5633_s6 + $0x2c] sm:$0xc]  ;;  %v1647_v11 = vrot.slane %v5864_v59, 7  ;;  %v754_v12 = vsel %vm5828_vm4, %v752_v0, %v753_v60  ;;  %757 = vst.msk [vmem:[#allocation2 + $0x18] sm:$0xf] %vm696_vm5, %v751_v2  ;;  %v1606_v27 = vsel %vm5803_vm14, %v4918_v63, %v1605_v42 }
  0x87   : > { %1558 = vrot.lane.b32.xlu1 %v1555_v29, %s5450_s8  ;;  %v719_v13 = vld [vmem:[%s5633_s6 + $0x10] sm:$0xc]  ;;  %v1628_v16 = vrot.slane %v1626_v58, 4  ;;  %v1641_v17 = vld [vmem:[%s5633_s6 + $0x3c] sm:$0x7]  ;;  %v711_v18 = vsel %vm5803_vm14, %v4899_v3, %v710_v4  ;;  %v712_v19 = vrot.slane %v710_v4, 4 }
  0x88   : > { %758 = vst.msk [vmem:[#allocation2 + $0x1c] sm:$0xf] %vm696_vm5, %v754_v12  ;;  %v764_v20 = vld [vmem:[%s5633_s6 + $0x30] sm:$0xf]  ;;  %717 = vst.msk [vmem:[#allocation2 + $0x8] sm:$0xf] %vm696_vm5, %v711_v18 }
  0x89   : > { %1556 = vrot.lane.b32.xlu0 %v1552_v36, %s5450_s8  ;;  %v713_v21 = vrot.slane %v701_v1, 5  ;;  %v730_v22 = vrot.slane %v720_v5, 6  ;;  %v733_v23 = vrot.slane %v721_v6, 6  ;;  %v765_v26 = vld [vmem:[%s5633_s6 + $0x34] sm:$0x1]  ;;  %v4919_v28 = vrot.slane %v1618_v10, 10 }
  0x8a   : > { %v4900_v29 = vrot.slane %v719_v13, 10  ;;  %v763_v30 = vld [vmem:[%s5633_s6 + $0x2c] sm:$0xe]  ;;  %v1649_v31 = vrot.slane %v1647_v11, 4  ;;  %v1650_v32 = vrot.slane %v1641_v17, 7  ;;  %v1630_v37 = vsel %vm5816_vm1, %v1628_v16, %v1629_v8 }
  0x8b   : > { %1579 = vrot.lane.b32.xlu1 %v1576_v41, %s5450_s8  ;;  %v1639_v34 = vld [vmem:[%s5633_s6 + $0x34] sm:$0x8]  ;;  %v714_v35 = vsel %vm5803_vm14, %v712_v19, %v713_v21  ;;  %v732_v36 = vrot.slane %v730_v22, 4  ;;  %v771_v40 = vrot.slane %v764_v20, 5  ;;  %v774_v41 = vrot.slane %v765_v26, 5 }
  0x8c   : > { %718 = vst.msk [vmem:[#allocation2 + $0xc] sm:$0xf] %vm696_vm5, %v714_v35  ;;  %v731_v39 = vsel %vm5816_vm1, %v4900_v29, %v730_v22  ;;  %v781_v42 = vld [vmem:[%s5633_s6 + $0x38] sm:$0xf]  ;;  %v782_v44 = vld [vmem:[%s5633_s6 + $0x3c] sm:$0x3]  ;;  %v1627_v52 = vsel %vm5816_vm1, %v4919_v28, %v1626_v58  ;;  %v1651_v60 = vsel %vm5828_vm4, %v1649_v31, %v1650_v32 }
  0x8d   : > { %1577 = vrot.lane.b32.xlu0 %v1573_v53, %s5450_s8  ;;  %v5913_v45 = vld [vmem:[%s5633_s6 + $0x4c] sm:$0xf]  ;;  %v734_v46 = vsel %vm5816_vm1, %v732_v36, %v733_v23  ;;  %737 = vst.msk [vmem:[#allocation2 + $0x10] sm:$0xf] %vm696_vm5, %v731_v39  ;;  %v4902_v47 = vrot.slane %v763_v30, 9  ;;  %v773_v50 = vrot.slane %v771_v40, 4 }
  0x8e   : > { %v780_v48 = vld [vmem:[%s5633_s6 + $0x34] sm:$0xc]  ;;  %738 = vst.msk [vmem:[#allocation2 + $0x14] sm:$0xf] %vm696_vm5, %v734_v46  ;;  %v798_v51 = vld [vmem:[%s5633_s6 + $0x40] sm:$0xf] }
  0x8f   : > { %1591 = vrot.lane.b32.xlu1 %v1586_v49, %s5450_s8  ;;  %v4920_v49 = vrot.slane %v1639_v34, 11  ;;  %v772_v53 = vsel %vm5803_vm14, %v4902_v47, %v771_v40  ;;  %v788_v54 = vrot.slane %v781_v42, 6  ;;  %v791_v55 = vrot.slane %v782_v44, 6  ;;  %v799_v56 = vld [vmem:[%s5633_s6 + $0x44] sm:$0x7] }
  0x90   : > { %v815_v57 = vld [vmem:[%s5633_s6 + $0x4c] sm:$0xf]  ;;  %v1680_v61 = vrot.slane %v5913_v45, 5  ;;  %v775_v38 = vsel %vm5803_vm14, %v773_v50, %v774_v41  ;;  %778 = vst.msk [vmem:[#allocation2 + $0x28] sm:$0xf] %vm696_vm5, %v772_v53  ;;  %v4903_v58 = vrot.slane %v780_v48, 10 }
  0x91   : > { %1589 = vrot.lane.b32.xlu0 %v1585_v62, %s5450_s8  ;;  %v797_v62 = vld [vmem:[%s5633_s6 + $0x3c] sm:$0x8]  ;;  %817 = vst.msk [vmem:[#allocation2 + $0x44] sm:$0xf] %vm696_vm5, %v815_v57  ;;  %v814_v63 = vld [vmem:[%s5633_s6 + $0x48] sm:$0xf]  ;;  %v1648_v13 = vsel %vm5828_vm4, %v4920_v49, %v1647_v11 }
  0x92   : > { %v1674_v0 = vld [vmem:[%s5633_s6 + $0x50] sm:$0x1]  ;;  %v5942_v1 = vld [vmem:[%s5633_s6 + $0x54] sm:$0xf]  ;;  %779 = vst.msk [vmem:[#allocation2 + $0x2c] sm:$0xf] %vm696_vm5, %v775_v38  ;;  %v789_v8 = vsel %vm5816_vm1, %v4903_v58, %v788_v54 }
  0x93   : > { %1612 = vrot.lane.b32.xlu1 %v1609_v15, %s5450_s8  ;;  %v790_v2 = vrot.slane %v788_v54, 4  ;;  %816 = vst.msk [vmem:[#allocation2 + $0x40] sm:$0xf] %vm696_vm5, %v814_v63  ;;  %v1661_v3 = vld [vmem:[%s5633_s6 + $0x44] sm:$0xf]  ;;  %v805_v10 = vrot.slane %v798_v51, 7 }
  0x94   : > { %v1672_v4 = vld [vmem:[%s5633_s6 + $0x48] sm:$0xe]  ;;  %v1695_v5 = vld [vmem:[%s5633_s6 + $0x58] sm:$0x3]  ;;  %v5951_v6 = vld [vmem:[%s5633_s6 + $0x5c] sm:$0xf] }
  0x95   : > { %1610 = vrot.lane.b32.xlu0 %v1606_v27, %s5450_s8  ;;  %v808_v12 = vrot.slane %v799_v56, 7  ;;  %v792_v15 = vsel %vm5816_vm1, %v790_v2, %v791_v55  ;;  %795 = vst.msk [vmem:[#allocation2 + $0x30] sm:$0xf] %vm696_vm5, %v789_v8  ;;  %v4904_v16 = vrot.slane %v797_v62, 11  ;;  %v819_v17 = vld [vmem:[%s5633_s6 + $0x54] sm:$0xf] }
  0x96   : > { %v820_v18 = vld [vmem:[%s5633_s6 + $0x58] sm:$0x1]  ;;  %v1682_v19 = vrot.slane %v1680_v61, 4  ;;  %v1683_v20 = vrot.slane %v1674_v0, 5  ;;  %v1701_v21 = vrot.slane %v5942_v1, 6  ;;  %v807_v59 = vrot.slane %v805_v10, 4 }
  0x97   : > { %1633 = vrot.lane.b32.xlu1 %v1630_v37, %s5450_s8  ;;  %796 = vst.msk [vmem:[#allocation2 + $0x34] sm:$0xf] %vm696_vm5, %v792_v15  ;;  %v818_v11 = vld [vmem:[%s5633_s6 + $0x50] sm:$0xe]  ;;  %v1660_v22 = vld [vmem:[%s5633_s6 + $0x40] sm:$0xf]  ;;  %v806_v23 = vsel %vm5828_vm4, %v4904_v16, %v805_v10 }
  0x98   : > { %v826_v26 = vrot.slane %v819_v17, 5  ;;  %v829_v27 = vrot.slane %v820_v18, 5  ;;  %v1693_v28 = vld [vmem:[%s5633_s6 + $0x50] sm:$0xc]  ;;  %v1716_v29 = vld [vmem:[%s5633_s6 + $0x60] sm:$0x7]  ;;  %v809_v30 = vsel %vm5828_vm4, %v807_v59, %v808_v12  ;;  %v1684_v39 = vsel %vm5803_vm14, %v1682_v19, %v1683_v20 }
  0x99   : > { %1631 = vrot.lane.b32.xlu0 %v1627_v52, %s5450_s8  ;;  %812 = vst.msk [vmem:[#allocation2 + $0x38] sm:$0xf] %vm696_vm5, %v806_v23  ;;  %v4905_v31 = vrot.slane %v818_v11, 9  ;;  %v4921_v32 = vrot.slane %v1672_v4, 9  ;;  %v1704_v34 = vrot.slane %v1695_v5, 6  ;;  %v1722_v35 = vrot.slane %v5951_v6, 7 }
  0x9a   : > { %813 = vst.msk [vmem:[#allocation2 + $0x3c] sm:$0xf] %vm696_vm5, %v809_v30  ;;  %v828_v36 = vrot.slane %v826_v26, 4  ;;  %v836_v37 = vld [vmem:[%s5633_s6 + $0x5c] sm:$0xf]  ;;  %v1703_v40 = vrot.slane %v1701_v21, 4 }
  0x9b   : > { %1654 = vrot.lane.b32.xlu1 %v1651_v60, %s5450_s8  ;;  %v827_v41 = vsel %vm5803_vm14, %v4905_v31, %v826_v26  ;;  %v837_v42 = vld [vmem:[%s5633_s6 + $0x60] sm:$0x3]  ;;  %v843_v44 = vrot.slane %v836_v37, 6  ;;  %v835_v46 = vld [vmem:[%s5633_s6 + $0x58] sm:$0xc]  ;;  %v4922_v50 = vrot.slane %v1693_v28, 10  ;;  %v1681_v52 = vsel %vm5803_vm14, %v4921_v32, %v1680_v61 }
  0x9c   : > { %v830_v47 = vsel %vm5803_vm14, %v828_v36, %v829_v27  ;;  %833 = vst.msk [vmem:[#allocation2 + $0x48] sm:$0xf] %vm696_vm5, %v827_v41  ;;  %v846_v48 = vrot.slane %v837_v42, 6  ;;  %v4906_v49 = vrot.slane %v835_v46, 10  ;;  %v1724_v53 = vrot.slane %v1722_v35, 4 }
  0x9d   : > { %1652 = vrot.lane.b32.xlu0 %v1648_v13, %s5450_s8  ;;  %834 = vst.msk [vmem:[#allocation2 + $0x4c] sm:$0xf] %vm696_vm5, %v830_v47  ;;  %v845_v51 = vrot.slane %v843_v44, 4  ;;  %v1725_v54 = vrot.slane %v1716_v29, 7  ;;  %v853_v56 = vld [vmem:[%s5633_s6 + $0x64] sm:$0xf]  ;;  %v1705_v60 = vsel %vm5816_vm1, %v1703_v40, %v1704_v34  ;;  %v1702_v4 = vsel %vm5816_vm1, %v4922_v50, %v1701_v21 }
  0x9e   : > { %v844_v55 = vsel %vm5816_vm1, %v4906_v49, %v843_v44  ;;  %v854_v57 = vld [vmem:[%s5633_s6 + $0x68] sm:$0x7]  ;;  %v1714_v38 = vld [vmem:[%s5633_s6 + $0x58] sm:$0x8]  ;;  %v860_v45 = vrot.slane %v853_v56, 7  ;;  %vm960_vm7 = vcmask 126016  }
  0x9f   : > { %1666 = vrot.lane.b32.xlu1 %v1661_v3, %s5450_s8  ;;  %v847_v58 = vsel %vm5816_vm1, %v845_v51, %v846_v48  ;;  %850 = vst.msk [vmem:[#allocation2 + $0x50] sm:$0xf] %vm696_vm5, %v844_v55  ;;  %v863_v61 = vrot.slane %v854_v57, 7  ;;  %v852_v62 = vld [vmem:[%s5633_s6 + $0x60] sm:$0x8]  ;;  %v4923_v5 = vrot.slane %v1714_v38, 11  ;;  %v1726_v8 = vsel %vm5828_vm4, %v1724_v53, %v1725_v54 }
  0xa0   : > { %v6011_v63 = vld [vmem:[%s5633_s6 + $0x70] sm:$0xf]  ;;  %851 = vst.msk [vmem:[#allocation2 + $0x54] sm:$0xf] %vm696_vm5, %v847_v58  ;;  %v4907_v0 = vrot.slane %v852_v62, 11  ;;  %v862_v1 = vrot.slane %v860_v45, 4 }
  0xa1   : > { %1664 = vrot.lane.b32.xlu0 %v1660_v22, %s5450_s8  ;;  %v870_v2 = vld [vmem:[%s5633_s6 + $0x70] sm:$0xf]  ;;  %v869_v3 = vld [vmem:[%s5633_s6 + $0x6c] sm:$0xf]  ;;  %v1749_v10 = vld [vmem:[%s5633_s6 + $0x74] sm:$0x1]  ;;  %v1723_v21 = vsel %vm5828_vm4, %v4923_v5, %v1722_v35 }
  0xa2   : > { %v861_v6 = vsel %vm5828_vm4, %v4907_v0, %v860_v45  ;;  %872 = vst.msk [vmem:[#allocation2 + $0x64] sm:$0xf] %vm696_vm5, %v870_v2  ;;  %871 = vst.msk [vmem:[#allocation2 + $0x60] sm:$0xf] %vm696_vm5, %v869_v3  ;;  %v1755_v12 = vrot.slane %v6011_v63, 5  ;;  %v864_v13 = vsel %vm5828_vm4, %v862_v1, %v863_v61  ;;  %v1758_v27 = vrot.slane %v1749_v10, 5 }
  0xa3   : > { %1687 = vrot.lane.b32.xlu1 %v1684_v39, %s5450_s8  ;;  %867 = vst.msk [vmem:[#allocation2 + $0x58] sm:$0xf] %vm696_vm5, %v861_v6  ;;  %v874_v15 = vld [vmem:[%s5633_s6 + $0x78] sm:$0xf]  ;;  %868 = vst.msk [vmem:[#allocation2 + $0x5c] sm:$0xf] %vm696_vm5, %v864_v13 }
  0xa4   : > { %v6033_v16 = vld [vmem:[%s5633_s6 + $0x78] sm:$0xf]  ;;  %v875_v17 = vld [vmem:[%s5633_s6 + $0x7c] sm:$0x1]  ;;  %v881_v18 = vrot.slane %v874_v15, 5  ;;  %v1757_v26 = vrot.slane %v1755_v12, 4 }
  0xa5   : > { %1685 = vrot.lane.b32.xlu0 %v1681_v52, %s5450_s8  ;;  %v884_v19 = vrot.slane %v875_v17, 5  ;;  %v873_v20 = vld [vmem:[%s5633_s6 + $0x74] sm:$0xe]  ;;  %v1736_v59 = vld [vmem:[%s5633_s6 + $0x68] sm:$0xf]  ;;  %v1776_v28 = vrot.slane %v6033_v16, 6 }
  0xa6   : > { %v1747_v11 = vld [vmem:[%s5633_s6 + $0x6c] sm:$0xe]  ;;  %v883_v22 = vrot.slane %v881_v18, 4  ;;  %v4908_v23 = vrot.slane %v873_v20, 9  ;;  %v6046_v29 = vld [vmem:[%s5633_s6 + $0x80] sm:$0xf]  ;;  %v1759_v42 = vsel %vm5803_vm14, %v1757_v26, %v1758_v27 }
  0xa7   : > { %1708 = vrot.lane.b32.xlu1 %v1705_v60, %s5450_s8  ;;  %v1770_v30 = vld [vmem:[%s5633_s6 + $0x7c] sm:$0x3]  ;;  %v891_v34 = vld [vmem:[%s5633_s6 + $0x80] sm:$0xf]  ;;  %v1735_v35 = vld [vmem:[%s5633_s6 + $0x64] sm:$0xf] }
  0xa8   : > { %v885_v31 = vsel %vm5803_vm14, %v883_v22, %v884_v19  ;;  %v882_v32 = vsel %vm5803_vm14, %v4908_v23, %v881_v18  ;;  %v1768_v36 = vld [vmem:[%s5633_s6 + $0x74] sm:$0xc]  ;;  %v892_v37 = vld [vmem:[%s5633_s6 + $0x84] sm:$0x3]  ;;  %v4924_v39 = vrot.slane %v1747_v11, 9  ;;  %v1797_v40 = vrot.slane %v6046_v29, 7 }
  0xa9   : > { %1706 = vrot.lane.b32.xlu0 %v1702_v4, %s5450_s8  ;;  %889 = vst.msk [vmem:[#allocation2 + $0x6c] sm:$0xf] %vm696_vm5, %v885_v31  ;;  %888 = vst.msk [vmem:[#allocation2 + $0x68] sm:$0xf] %vm696_vm5, %v882_v32  ;;  %v890_v41 = vld [vmem:[%s5633_s6 + $0x7c] sm:$0xc] }
  0xaa   : > { %v1778_v44 = vrot.slane %v1776_v28, 4  ;;  %v1779_v46 = vrot.slane %v1770_v30, 6  ;;  %v1791_v47 = vld [vmem:[%s5633_s6 + $0x84] sm:$0x7]  ;;  %v898_v48 = vrot.slane %v891_v34, 6  ;;  %v901_v49 = vrot.slane %v892_v37, 6 }
  0xab   : > { %1729 = vrot.lane.b32.xlu1 %v1726_v8, %s5450_s8  ;;  %v908_v50 = vld [vmem:[%s5633_s6 + $0x88] sm:$0xf]  ;;  %v4909_v54 = vrot.slane %v890_v41, 10  ;;  %v909_v55 = vld [vmem:[%s5633_s6 + $0x8c] sm:$0x7]  ;;  %v1756_v56 = vsel %vm5803_vm14, %v4924_v39, %v1755_v12  ;;  %v4925_v57 = vrot.slane %v1768_v36, 10 }
  0xac   : > { %v900_v53 = vrot.slane %v898_v48, 4  ;;  %v1799_v60 = vrot.slane %v1797_v40, 4  ;;  %v1800_v38 = vrot.slane %v1791_v47, 7  ;;  %v907_v58 = vld [vmem:[%s5633_s6 + $0x84] sm:$0x8]  ;;  %v1780_v45 = vsel %vm5816_vm1, %v1778_v44, %v1779_v46 }
  0xad   : > { %1727 = vrot.lane.b32.xlu0 %v1723_v21, %s5450_s8  ;;  %v1789_v61 = vld [vmem:[%s5633_s6 + $0x7c] sm:$0x8]  ;;  %v899_v63 = vsel %vm5816_vm1, %v4909_v54, %v898_v48  ;;  %v915_v0 = vrot.slane %v908_v50, 7  ;;  %v918_v1 = vrot.slane %v909_v55, 7  ;;  %v4910_v4 = vrot.slane %v907_v58, 11 }
  0xae   : > { %v902_v62 = vsel %vm5816_vm1, %v900_v53, %v901_v49  ;;  %905 = vst.msk [vmem:[#allocation2 + $0x70] sm:$0xf] %vm696_vm5, %v899_v63  ;;  %v1777_v5 = vsel %vm5816_vm1, %v4925_v57, %v1776_v28  ;;  %v4926_v6 = vrot.slane %v1789_v61, 11  ;;  %v1801_v8 = vsel %vm5828_vm4, %v1799_v60, %v1800_v38  ;;  %v4930_v15 = vld [vmem:[%s5633_s6 + $0x9c] sm:$0xf] }
  0xaf   : > { %1741 = vrot.lane.b32.xlu1 %v1736_v59, %s5450_s8  ;;  %906 = vst.msk [vmem:[#allocation2 + $0x74] sm:$0xf] %vm696_vm5, %v902_v62  ;;  %v917_v3 = vrot.slane %v915_v0, 4  ;;  %v916_v12 = vsel %vm5828_vm4, %v4910_v4, %v915_v0  ;;  %v1811_v18 = vld [vmem:[%s5633_s6 + $0x8c] sm:$0xf]  ;;  %v1844_v19 = vrot.slane %v4930_v15, 5 }
  0xb0   : > { %922 = vst.msk [vmem:[#allocation2 + $0x78] sm:$0xf] %vm696_vm5, %v916_v12  ;;  %v1798_v17 = vsel %vm5828_vm4, %v4926_v6, %v1797_v40  ;;  %v4931_v21 = vld [vmem:[%s5633_s6 + $0xa0] sm:$0x1]  ;;  %v4934_v59 = vld [vmem:[%s5633_s6 + $0xa4] sm:$0xf] }
  0xb1   : > { %1739 = vrot.lane.b32.xlu0 %v1735_v35, %s5450_s8  ;;  %v1078_v51 = vpop.permute.xlu1 %1077  ;;  %v1076_v52 = vpop.permute.xlu0 %1075  ;;  %v919_v10 = vsel %vm5828_vm4, %v917_v3, %v918_v1  ;;  %v1810_v11 = vld [vmem:[%s5633_s6 + $0x88] sm:$0xf]  ;;  %v4928_v23 = vld [vmem:[%s5633_s6 + $0x94] sm:$0xf]  ;;  %v1846_v26 = vrot.slane %v1844_v19, 4  ;;  %v1847_v27 = vrot.slane %v4931_v21, 5 }
  0xb2   : > { %1082 = vst.msk [vmem:[#allocation2 + $0x1c] sm:$0xf] %vm960_vm7, %v1078_v51  ;;  %1081 = vst.msk [vmem:[#allocation2 + $0x18] sm:$0xf] %vm960_vm7, %v1076_v52  ;;  %v4929_v28 = vld [vmem:[%s5633_s6 + $0x98] sm:$0xe] }
  0xb3   : > { %1762 = vrot.lane.b32.xlu1 %v1759_v42, %s5450_s8  ;;  %923 = vst.msk [vmem:[#allocation2 + $0x7c] sm:$0xf] %vm696_vm5, %v919_v10  ;;  %v1865_v29 = vrot.slane %v4934_v59, 6  ;;  %v4935_v30 = vld [vmem:[%s5633_s6 + $0xa8] sm:$0x3]  ;;  %v4932_v36 = vrot.slane %v4929_v28, 9  ;;  %v1848_v37 = vsel %vm5803_vm14, %v1846_v26, %v1847_v27 }
  0xb4   : > { %v4938_v31 = vld [vmem:[%s5633_s6 + $0xac] sm:$0xf]  ;;  %v4927_v34 = vld [vmem:[%s5633_s6 + $0x90] sm:$0xf]  ;;  %v1868_v40 = vrot.slane %v4935_v30, 6  ;;  %vm1540_vm8 = vcmask 191616  }
  0xb5   : > { %1760 = vrot.lane.b32.xlu0 %v1756_v56, %s5450_s8  ;;  %v998_v2 = vpop.permute.xlu1 %997  ;;  %v1867_v39 = vrot.slane %v1865_v29, 4  ;;  %v4933_v41 = vld [vmem:[%s5633_s6 + $0xa0] sm:$0xc]  ;;  %v1886_v42 = vrot.slane %v4938_v31, 7  ;;  %v4939_v44 = vld [vmem:[%s5633_s6 + $0xb0] sm:$0x7]  ;;  %v1845_v47 = vsel %vm5803_vm14, %v4932_v36, %v1844_v19 }
  0xb6   : > { %1003 = vst.msk [vmem:[#allocation2 + $0x8] sm:$0xf] %vm960_vm7, %v998_v2  ;;  %v4936_v49 = vrot.slane %v4933_v41, 10  ;;  %v1889_v52 = vrot.slane %v4939_v44, 7  ;;  %v4937_v53 = vld [vmem:[%s5633_s6 + $0xa8] sm:$0x8] }
  0xb7   : > { %1783 = vrot.lane.b32.xlu1 %v1780_v45, %s5450_s8  ;;  %v1869_v50 = vsel %vm5816_vm1, %v1867_v39, %v1868_v40  ;;  %v1888_v51 = vrot.slane %v1886_v42, 4  ;;  %v4944_v54 = vld [vmem:[%s5633_s6 + $0xc0] sm:$0xf]  ;;  %v4940_v57 = vrot.slane %v4937_v53, 11  ;;  %v4945_v45 = vld [vmem:[%s5633_s6 + $0xc4] sm:$0x1] }
  0xb8   : > { %v1866_v56 = vsel %vm5816_vm1, %v4936_v49, %v1865_v29  ;;  %v1919_v58 = vrot.slane %v4944_v54, 5  ;;  %v4948_v61 = vld [vmem:[%s5633_s6 + $0xc8] sm:$0xf]  ;;  %v4942_v0 = vld [vmem:[%s5633_s6 + $0xb8] sm:$0xf]  ;;  %vm4395_vm12 = vcmask 1043456  }
  0xb9   : > { %v955_v13 = vpop.permute.xlu0 %954  ;;  %1781 = vrot.lane.b32.xlu0 %v1777_v5, %s5450_s8  ;;  %v1000_v16 = vpop.permute.xlu1 %999  ;;  %v1890_v38 = vsel %vm5828_vm4, %v1888_v51, %v1889_v52  ;;  %v1887_v63 = vsel %vm5828_vm4, %v4940_v57, %v1886_v42  ;;  %v4943_v1 = vld [vmem:[%s5633_s6 + $0xbc] sm:$0xe]  ;;  %v6153_v2 = vld [vmem:[%s5633_s6 + $0xd0] sm:$0xf]  ;;  %v1922_v5 = vrot.slane %v4945_v45, 5  ;;  %v1940_v6 = vrot.slane %v4948_v61, 6 }
  0xba   : > { %961 = vst.msk [vmem:[#allocation2] sm:$0xf] %vm960_vm7, %v955_v13  ;;  %1004 = vst.msk [vmem:[#allocation2 + $0xc] sm:$0xf] %vm960_vm7, %v1000_v16  ;;  %v1921_v4 = vrot.slane %v1919_v58, 4  ;;  %v4946_v15 = vrot.slane %v4943_v1, 9 }
  0xbb   : > { %1804 = vrot.lane.b32.xlu1 %v1801_v8, %s5450_s8  ;;  %v4984_v8 = vld [vmem:[%s5633_s6 + $0x94] sm:$0xf]  ;;  %v4949_v10 = vld [vmem:[%s5633_s6 + $0xcc] sm:$0x3]  ;;  %v4947_v16 = vld [vmem:[%s5633_s6 + $0xc4] sm:$0xc] }
  0xbc   : > { %v4941_v13 = vld [vmem:[%s5633_s6 + $0xb4] sm:$0xf]  ;;  %v2137_v19 = vshll.u32 %v4984_v8, 16  ;;  %v4983_v21 = vld [vmem:[%s5633_s6 + $0x90] sm:$0xf]  ;;  %v4950_v26 = vrot.slane %v4947_v16, 10 }
  0xbd   : > { %v957_v20 = vpop.permute.xlu0 %956  ;;  %1802 = vrot.lane.b32.xlu0 %v1798_v17, %s5450_s8  ;;  %v1961_v17 = vrot.slane %v6153_v2, 7  ;;  %v4987_v27 = vld [vmem:[%s5633_s6 + $0x9c] sm:$0xf]  ;;  %v4951_v31 = vld [vmem:[%s5633_s6 + $0xcc] sm:$0x8]  ;;  %v2131_v39 = vshll.u32 %v4983_v21, 16 }
  0xbe   : > { %962 = vst.msk [vmem:[#allocation2 + $0x4] sm:$0xf] %vm960_vm7, %v957_v20  ;;  %v1042_v22 = vpop.permute.xlu1 %1041  ;;  %v2141_v20 = vshrl.u32 %v4984_v8, 16  ;;  %v6177_v36 = vrot.slane %v2137_v19, 5  ;;  %v2173_v42 = vshrl.u32 %v4987_v27, 16  ;;  %v2176_v44 = vshll.u32 %v4987_v27, 16 }
  0xbf   : > { %1816 = vrot.lane.b32.xlu1 %v1811_v18, %s5450_s8  ;;  %1046 = vst.msk [vmem:[#allocation2 + $0x14] sm:$0xf] %vm960_vm7, %v1042_v22  ;;  %v4953_v18 = vld [vmem:[%s5633_s6 + $0xd4] sm:$0x7]  ;;  %v1942_v22 = vrot.slane %v1940_v6, 4  ;;  %v1963_v29 = vrot.slane %v1961_v17, 4 }
  0xc0   : > { %v1964_v30 = vrot.slane %v4953_v18, 7  ;;  %v4954_v51 = vrot.slane %v4951_v31, 11  ;;  %v4955_v16 = vld [vmem:[%s5633_s6 + $0xd8] sm:$0xf]  ;;  %vm1833_vm13 = vcmask 257216   ;;  %vm2157_vm15 = vcmask 322816  }
  0xc1   : > { %1814 = vrot.lane.b32.xlu0 %v1810_v11, %s5450_s8  ;;  %v1923_v11 = vsel %vm5803_vm14, %v1921_v4, %v1922_v5  ;;  %v4956_v4 = vld [vmem:[%s5633_s6 + $0xdc] sm:$0xf]  ;;  %vm2728_vm0 = vcmask 388416   ;;  %vm3021_vm2 = vcmask 454016   ;;  %vm3345_vm3 = vcmask 519616   ;;  %s4897_s8 = sshll.u32 %s7530_s18, 3 }
  0xc2   : > { %v1040_v32 = vpop.permute.xlu0 %1039  ;;  %vm3916_vm5 = vcmask 585216   ;;  %v2093_v14 = vrot.slane %v4977_v25, 6  ;;  %s692_s14 = scalar_lea.vmem %s7509_s4, %s4897_s8 }
  0xc3   : > { %1045 = vst.msk [vmem:[#allocation2 + $0x10] sm:$0xf] %vm960_vm7, %v1040_v32  ;;  %1829 = vrot.lane.b32.xlu1 %v4928_v23, %s5451_s9  ;;  %v1113_v35 = vpop.permute.xlu1 %1112  ;;  %v1943_v23 = vrot.slane %v4949_v10, 6  ;;  %v2128_v32 = vshrl.u32 %v4983_v21, 16 }
  0xc4   : > { %1117 = vst.msk [vmem:[#allocation2 + $0x24] sm:$0xf] %vm960_vm7, %v1113_v35  ;;  %v4985_v35 = vld [vmem:[%s5633_s6 + $0x98] sm:$0x1] }
  0xc5   : > { %1827 = vrot.lane.b32.xlu0 %v4927_v34, %s5451_s9  ;;  %v1920_v34 = vsel %vm5803_vm14, %v4946_v15, %v1919_v58  ;;  %v1944_v41 = vsel %vm5816_vm1, %v1942_v22, %v1943_v23  ;;  %v2147_v52 = vshll.u32 %v4985_v35, 16  ;;  %v2130_v53 = vrot.slane %v2128_v32, 4  ;;  %v5037_v22 = vld [vmem:[%s5633_s6 + $0x98] sm:$0x1]  ;;  %v5040_v23 = vld [vmem:[%s5633_s6 + $0x9c] sm:$0xf] }
  0xc6   : > { %v1111_v46 = vpop.permute.xlu0 %1110  ;;  %v2720_v32 = vrot.slane %v5037_v22, 5  ;;  %v5148_v35 = vld [vmem:[%s5633_s6 + $0x124] sm:$0xf] }
  0xc7   : > { %1116 = vst.msk [vmem:[#allocation2 + $0x20] sm:$0xf] %vm960_vm7, %v1111_v46  ;;  %1851 = vrot.lane.b32.xlu1 %v1848_v37, %s5451_s9  ;;  %v1152_v48 = vpop.permute.xlu1 %1151  ;;  %v2143_v37 = vrot.slane %v2141_v20, 4  ;;  %v4986_v46 = vld [vmem:[%s5633_s6 + $0x98] sm:$0xe] }
  0xc8   : > { %1156 = vst.msk [vmem:[#allocation2 + $0x2c] sm:$0xf] %vm960_vm7, %v1152_v48  ;;  %v4988_v48 = vld [vmem:[%s5633_s6 + $0xa0] sm:$0x3]  ;;  %v2167_v57 = vshll.u32 %v4986_v46, 16 }
  0xc9   : > { %1849 = vrot.lane.b32.xlu0 %v1845_v47, %s5451_s9  ;;  %v1941_v47 = vsel %vm5816_vm1, %v4950_v26, %v1940_v6  ;;  %v2144_v54 = vor.u32 %v2143_v37, %v6177_v36  ;;  %v2183_v58 = vshrl.u32 %v4988_v48, 16  ;;  %v2186_v45 = vshll.u32 %v4988_v48, 16 }
  0xca   : > { %v1150_v55 = vpop.permute.xlu0 %1149 }
  0xcb   : > { %1155 = vst.msk [vmem:[#allocation2 + $0x28] sm:$0xf] %vm960_vm7, %v1150_v55  ;;  %1872 = vrot.lane.b32.xlu1 %v1869_v50, %s5451_s9  ;;  %v1965_v50 = vsel %vm5828_vm4, %v1963_v29, %v1964_v30  ;;  %v2133_v55 = vrot.slane %v2131_v39, 5  ;;  %v2145_v5 = vrot.slane %v2144_v54, 4  ;;  %v2185_v8 = vrot.slane %v2183_v58, 5 }
  0xcc   : > { %v1191_v60 = vpop.permute.xlu1 %1190  ;;  %v2188_v10 = vrot.slane %v2186_v45, 6  ;;  %v5035_v29 = vld [vmem:[%s5633_s6 + $0x90] sm:$0xe]  ;;  %v5041_v39 = vld [vmem:[%s5633_s6 + $0xa0] sm:$0x3] }
  0xcd   : > { %1195 = vst.msk [vmem:[#allocation2 + $0x34] sm:$0xf] %vm960_vm7, %v1191_v60  ;;  %1870 = vrot.lane.b32.xlu0 %v1866_v56, %s5451_s9  ;;  %v2164_v56 = vshrl.u32 %v4986_v46, 16  ;;  %v2175_v60 = vrot.slane %v2173_v42, 5  ;;  %v2134_v1 = vor.u32 %v2133_v55, %v2130_v53  ;;  %v5038_v42 = vrot.slane %v5035_v29, 9 }
  0xce   : > { %v1189_v62 = vpop.permute.xlu0 %1188  ;;  %v2189_v21 = vor.u32 %v2188_v10, %v2185_v8  ;;  %v3329_v46 = vshrl.u32 %v5148_v35, 16  ;;  %v5151_v54 = vld [vmem:[%s5633_s6 + $0x12c] sm:$0xf]  ;;  %v5150_v45 = vld [vmem:[%s5633_s6 + $0x128] sm:$0xe] }
  0xcf   : > { %1194 = vst.msk [vmem:[#allocation2 + $0x30] sm:$0xf] %vm960_vm7, %v1189_v62  ;;  %1893 = vrot.lane.b32.xlu1 %v1890_v38, %s5451_s9  ;;  %v2178_v38 = vrot.slane %v2176_v44, 6  ;;  %v1962_v62 = vsel %vm5828_vm4, %v4954_v51, %v1961_v17  ;;  %v2166_v2 = vrot.slane %v2164_v56, 5  ;;  %v2135_v17 = vrot.slane %v2134_v1, 4 }
  0xd0   : > { %v1224_v3 = vpop.permute.xlu1 %1223  ;;  %v3325_v44 = vshll.u32 %v5148_v35, 16  ;;  %v6232_v51 = vld [vmem:[%s5633_s6 + $0x12c] sm:$0xf]  ;;  %v3331_v58 = vrot.slane %v3329_v46, 4  ;;  %v3361_v1 = vshrl.u32 %v5151_v54, 16  ;;  %v3352_v10 = vshrl.u32 %v5150_v45, 16 }
  0xd1   : > { %1228 = vst.msk [vmem:[#allocation2 + $0x3c] sm:$0xf] %vm960_vm7, %v1224_v3  ;;  %1891 = vrot.lane.b32.xlu0 %v1887_v63, %s5451_s9  ;;  %v2169_v3 = vrot.slane %v2167_v57, 6  ;;  %v2179_v6 = vor.u32 %v2178_v38, %v2175_v60  ;;  %v2140_v27 = vsel %vm5669_vm10, %v2135_v17, %v6177_v36  ;;  %v5039_v36 = vld [vmem:[%s5633_s6 + $0x98] sm:$0xc]  ;;  %v3032_v60 = vrot.slane %v6232_v51, 5 }
  0xd2   : > { %v1222_v12 = vpop.permute.xlu0 %1221  ;;  %v5042_v53 = vrot.slane %v5039_v36, 10  ;;  %v6241_v38 = vrot.slane %v3325_v44, 5  ;;  %v6264_v29 = vld [vmem:[%s5633_s6 + $0x124] sm:$0xf] }
  0xd3   : > { %1227 = vst.msk [vmem:[#allocation2 + $0x38] sm:$0xf] %vm960_vm7, %v1222_v12  ;;  %1905 = vrot.lane.b32.xlu1 %v4942_v0, %s5451_s9  ;;  %v2149_v0 = vrot.slane %v2147_v52, 5  ;;  %v2170_v18 = vor.u32 %v2169_v3, %v2166_v2  ;;  %v2181_v20 = vrot.slane %v2179_v6, 4  ;;  %v3364_v2 = vshll.u32 %v5151_v54, 16 }
  0xd4   : > { %v1259_v59 = vpop.permute.xlu1 %1258  ;;  %v3332_v17 = vor.u32 %v3331_v58, %v6241_v38  ;;  %v4990_v44 = vld [vmem:[%s5633_s6 + $0xa4] sm:$0xf]  ;;  %v4989_v54 = vld [vmem:[%s5633_s6 + $0xa0] sm:$0xc] }
  0xd5   : > { %1263 = vst.msk [vmem:[#allocation2 + $0x44] sm:$0xf] %vm960_vm7, %v1259_v59  ;;  %1903 = vrot.lane.b32.xlu0 %v4941_v13, %s5451_s9  ;;  %v5036_v13 = vld [vmem:[%s5633_s6 + $0x94] sm:$0xf]  ;;  %v2150_v19 = vsel %vm5669_vm10, %v2145_v5, %v2149_v0  ;;  %v2190_v30 = vsel %vm5656_vm9, %v2181_v20, %v2189_v21  ;;  %v5149_v0 = vld [vmem:[%s5633_s6 + $0x128] sm:$0x1] }
  0xd6   : > { %v1257_v28 = vpop.permute.xlu0 %1256  ;;  %v2717_v59 = vrot.slane %v5036_v13, 5  ;;  %v5152_v5 = vld [vmem:[%s5633_s6 + $0x130] sm:$0x3]  ;;  %v5092_v13 = vld [vmem:[%s5633_s6 + $0x124] sm:$0xf]  ;;  %v3363_v21 = vrot.slane %v3361_v1, 5 }
  0xd7   : > { %1262 = vst.msk [vmem:[#allocation2 + $0x40] sm:$0xf] %vm960_vm7, %v1257_v28  ;;  %1926 = vrot.lane.b32.xlu1 %v1923_v11, %s5451_s9  ;;  %v2171_v28 = vrot.slane %v2170_v18, 4  ;;  %v3335_v18 = vshll.u32 %v5149_v0, 16  ;;  %v5093_v20 = vld [vmem:[%s5633_s6 + $0x128] sm:$0xe] }
  0xd8   : > { %v1298_v40 = vpop.permute.xlu1 %1297  ;;  %v2719_v31 = vrot.slane %v2717_v59, 4  ;;  %v2718_v57 = vsel %vm5803_vm14, %v5038_v42, %v2717_v59  ;;  %v3366_v59 = vrot.slane %v3364_v2, 6  ;;  %v3374_v22 = vshll.u32 %v5152_v5, 16  ;;  %v5205_v1 = vld [vmem:[%s5633_s6 + $0x130] sm:$0x3] }
  0xd9   : > { %1302 = vst.msk [vmem:[#allocation2 + $0x4c] sm:$0xf] %vm960_vm7, %v1298_v40  ;;  %1924 = vrot.lane.b32.xlu0 %v1920_v34, %s5451_s9  ;;  %v2739_v34 = vrot.slane %v5040_v23, 6  ;;  %v3905_v42 = vrot.slane %v6264_v29, 5  ;;  %v2212_v58 = vshrl.u32 %v4990_v44, 16 }
  0xda   : > { %v1296_v49 = vpop.permute.xlu0 %1295  ;;  %v2721_v48 = vsel %vm5803_vm14, %v2719_v31, %v2720_v32  ;;  %v5096_v31 = vrot.slane %v5093_v20, 9  ;;  %v3333_v32 = vrot.slane %v3332_v17, 4  ;;  %v4994_v20 = vld [vmem:[%s5633_s6 + $0xb0] sm:$0xf]  ;;  %v6347_v29 = vld [vmem:[%s5633_s6 + $0xa4] sm:$0xf] }
  0xdb   : > { %1301 = vst.msk [vmem:[#allocation2 + $0x48] sm:$0xf] %vm960_vm7, %v1296_v49  ;;  %1947 = vrot.lane.b32.xlu1 %v1944_v41, %s5451_s9  ;;  %v2180_v41 = vsel %vm5656_vm9, %v2171_v28, %v2179_v6  ;;  %v2741_v49 = vrot.slane %v2739_v34, 4  ;;  %v3907_v51 = vrot.slane %v3905_v42, 4 }
  0xdc   : > { %v1337_v61 = vpop.permute.xlu1 %1336 }
  0xdd   : > { %1945 = vrot.lane.b32.xlu0 %v1941_v47, %s5451_s9  ;;  %1341 = vst.msk [vmem:[#allocation2 + $0x54] sm:$0xf] %vm960_vm7, %v1337_v61  ;;  %v5147_v47 = vld [vmem:[%s5633_s6 + $0x120] sm:$0xf] }
  0xde   : > { %v3316_v55 = vshrl.u32 %v5147_v47, 16  ;;  %v3319_v56 = vshll.u32 %v5147_v47, 16 }
  0xdf   : > { %v1335_v63 = vpop.permute.xlu0 %1334  ;;  %1968 = vrot.lane.b32.xlu1 %v1965_v50, %s5451_s9  ;;  %v2742_v50 = vrot.slane %v5041_v39, 6  ;;  %v6270_v39 = vor.u32 %v3366_v59, %v3363_v21  ;;  %v5405_v21 = vld [vmem:[%s7506_s1 + $0x18] sm:$0xff]  }
  0xe0   : > { %1340 = vst.msk [vmem:[#allocation2 + $0x50] sm:$0xf] %vm960_vm7, %v1335_v63  ;;  %v1370_v12 = vpop.permute.xlu1 %1369  ;;  %v5095_v63 = vld [vmem:[%s5633_s6 + $0x130] sm:$0x1]  ;;  %v3318_v6 = vrot.slane %v3316_v55, 4  ;;  %v3321_v8 = vrot.slane %v3319_v56, 5 }
  0xe1   : > { %1966 = vrot.lane.b32.xlu0 %v1962_v62, %s5451_s9  ;;  %1374 = vst.msk [vmem:[#allocation2 + $0x5c] sm:$0xf] %vm960_vm7, %v1370_v12  ;;  %v2743_v62 = vsel %vm5816_vm1, %v2741_v49, %v2742_v50  ;;  %v3355_v12 = vshll.u32 %v5150_v45, 16  ;;  %v6279_v49 = vld [vmem:[%s5633_s6 + $0x12c] sm:$0xf]  ;;  %v3033_v50 = vsel %vm5803_vm14, %v5096_v31, %v3032_v60  ;;  %v3369_v56 = vrot.slane %v6270_v39, 4 }
  0xe2   : > { %v2215_v45 = vshll.u32 %v4990_v44, 16 }
  0xe3   : > { %v1368_v15 = vpop.permute.xlu0 %1367  ;;  %1980 = vrot.lane.b32.xlu1 %v4956_v4, %s5451_s9  ;;  %v2740_v4 = vsel %vm5816_vm1, %v5042_v53, %v2739_v34  ;;  %v3357_v28 = vrot.slane %v3355_v12, 6  ;;  %v3337_v34 = vrot.slane %v3335_v18, 5  ;;  %v4991_v53 = vld [vmem:[%s5633_s6 + $0xa8] sm:$0x7]  ;;  %v2214_v12 = vrot.slane %v2212_v58, 6 }
  0xe4   : > { %1373 = vst.msk [vmem:[#allocation2 + $0x58] sm:$0xf] %vm960_vm7, %v1368_v15  ;;  %v1405_v11 = vpop.permute.xlu1 %1404  ;;  %v3034_v15 = vrot.slane %v3032_v60, 4  ;;  %v5199_v60 = vld [vmem:[%s5633_s6 + $0x120] sm:$0xe]  ;;  %v2222_v2 = vshrl.u32 %v4991_v53, 16 }
  0xe5   : > { %1978 = vrot.lane.b32.xlu0 %v4955_v16, %s5451_s9  ;;  %1409 = vst.msk [vmem:[#allocation2 + $0x64] sm:$0xf] %vm960_vm7, %v1405_v11  ;;  %v3035_v16 = vrot.slane %v5095_v63, 5  ;;  %v3371_v11 = vshrl.u32 %v5152_v5, 16  ;;  %v3927_v63 = vrot.slane %v6279_v49, 6  ;;  %v5202_v18 = vrot.slane %v5199_v60, 9 }
  0xe7   : > { %v1403_v26 = vpop.permute.xlu0 %1402  ;;  %2153 = vrot.lane.b32.xlu1 %v2150_v19, %s5452_s10  ;;  %v3373_v36 = vrot.slane %v3371_v11, 5  ;;  %v3929_v11 = vrot.slane %v3927_v63, 4 }
  0xe8   : > { %1408 = vst.msk [vmem:[#allocation2 + $0x60] sm:$0xf] %vm960_vm7, %v1403_v26  ;;  %v3322_v26 = vor.u32 %v3321_v8, %v3318_v6  ;;  %v5404_v6 = vld [vmem:[%s7506_s1 + $0x20] ss:$0 sps:$4 sm:$0xff]  }
  0xe9   : > { %v1444_v37 = vpop.permute.xlu1 %1443  ;;  %2151 = vrot.lane.b32.xlu0 %v2140_v27, %s5452_s10  ;;  %v3354_v27 = vrot.slane %v3352_v10, 5  ;;  %5368 = vmatprep.subr.msk.bf16.mxu0 %vm4395_vm12, %v5404_v6 }
  0xea   : > { %1448 = vst.msk [vmem:[#allocation2 + $0x6c] sm:$0xf] %vm960_vm7, %v1444_v37  ;;  %v3036_v37 = vsel %vm5803_vm14, %v3034_v15, %v3035_v16  ;;  %v3323_v46 = vrot.slane %v3322_v26, 4  ;;  %v2225_v15 = vshll.u32 %v4991_v53, 16  ;;  %5369 = vmatprep.subr.msk.bf16.mxu1 %vm4395_vm12, %v5404_v6 }
  0xeb   : > { %v1442_v40 = vpop.permute.xlu0 %1441  ;;  %2193 = vrot.lane.b32.xlu1 %v2190_v30, %s5452_s10  ;;  %v5091_v30 = vld [vmem:[%s5633_s6 + $0x120] sm:$0xf]  ;;  %v3358_v47 = vor.u32 %v3357_v28, %v3354_v27  ;;  %v4397_v28 = vsel %vm4395_vm12, %v5404_v6, 0  ;;  %v6376_v6 = vld [vmem:[%s5633_s6 + $0x134] sm:$0xf] }
  0xec   : > { %1447 = vst.msk [vmem:[#allocation2 + $0x68] sm:$0xf] %vm960_vm7, %v1442_v40  ;;  %v3376_v40 = vrot.slane %v3374_v22, 6  ;;  %v3328_v5 = vsel %vm5669_vm10, %v3323_v46, %v6241_v38  ;;  %v6313_v38 = vld [vmem:[%s5633_s6 + $0xac] sm:$0xf]  ;;  %v3930_v22 = vrot.slane %v5205_v1, 6  ;;  %5317 = vmatpush3.bf16.msra.mxu0 %v4397_v28  ;;  %5363 = vmatpush3.bf16.msra.mxu1 %v4397_v28 }
  0xed   : > { %v1483_v52 = vpop.permute.xlu1 %1482  ;;  %2191 = vrot.lane.b32.xlu0 %v2180_v41, %s5452_s10  ;;  %v3359_v0 = vrot.slane %v3358_v47, 4  ;;  %5318 = vmatprep.subr.bf16.mxu0 %v5405_v21  ;;  %v2259_v46 = vshll.u32 %v4994_v20, 16  ;;  %v5045_v1 = vld [vmem:[%s5633_s6 + $0xa8] sm:$0x7] }
  0xee   : > { %1487 = vst.msk [vmem:[#allocation2 + $0x74] sm:$0xf] %vm960_vm7, %v1483_v52  ;;  %v3338_v52 = vsel %vm5669_vm10, %v3333_v32, %v3337_v34  ;;  %v2227_v32 = vrot.slane %v2225_v15, 7  ;;  %v2247_v34 = vshrl.u32 %v6313_v38, 16  ;;  %5359 = vmatprep.subr.bf16.mxu1 %v5405_v21 }
  0xef   : > { %2724 = vrot.lane.b32.xlu1 %v2721_v48, %s5453_s11  ;;  %v1481_v61 = vpop.permute.xlu0 %1480  ;;  %v5201_v48 = vld [vmem:[%s5633_s6 + $0x128] sm:$0x1]  ;;  %v3368_v59 = vsel %vm5656_vm9, %v3359_v0, %v6270_v39  ;;  %v5406_v39 = vld [vmem:[%s7506_s1 + $0x10] sm:$0xff]   ;;  %v2760_v0 = vrot.slane %v6347_v29, 7 }
  0xf0   : > { %1486 = vst.msk [vmem:[#allocation2 + $0x70] sm:$0xf] %vm960_vm7, %v1481_v61  ;;  %5319 = vmatpush3.bf16.msra.mxu0 %v5405_v21  ;;  %5364 = vmatpush3.bf16.msra.mxu1 %v5405_v21 }
  0xf1   : > { %v1516_v3 = vpop.permute.xlu1 %1515  ;;  %2722 = vrot.lane.b32.xlu0 %v2718_v57, %s5453_s11  ;;  %v3377_v57 = vor.u32 %v3376_v40, %v3373_v36  ;;  %v3906_v40 = vsel %vm5803_vm14, %v5202_v18, %v3905_v42  ;;  %5320 = vmatprep.subr.bf16.mxu0 %v5406_v39  ;;  %v5407_v42 = vld [vmem:[%s7506_s1 + $0x8] sm:$0xff]   ;;  %v3053_v18 = vrot.slane %v6376_v6, 6 }
  0xf2   : > { %1520 = vst.msk [vmem:[#allocation2 + $0x7c] sm:$0xf] %vm960_vm7, %v1516_v3  ;;  %v2203_v3 = vshrl.u32 %v4989_v54, 16  ;;  %5360 = vmatprep.subr.bf16.mxu1 %v5406_v39 }
  0xf3   : > { %2746 = vrot.lane.b32.xlu1 %v2743_v62, %s5453_s11  ;;  %v1514_v19 = vpop.permute.xlu0 %1513  ;;  %v3908_v62 = vrot.slane %v5201_v48, 5  ;;  %v3378_v10 = vsel %vm5656_vm9, %v3369_v56, %v3377_v57 }
  0xf4   : > { %1519 = vst.msk [vmem:[#allocation2 + $0x78] sm:$0xf] %vm960_vm7, %v1514_v19  ;;  %v5203_v19 = vld [vmem:[%s5633_s6 + $0x128] sm:$0xc]  ;;  %v2205_v26 = vrot.slane %v2203_v3, 6  ;;  %5321 = vmatpush3.bf16.msra.mxu0 %v5406_v39  ;;  %5365 = vmatpush3.bf16.msra.mxu1 %v5406_v39  ;;  %vm4346_vm7 = vcmask 588800  }
  0xf5   : > { %v1537_v23 = vpop.permute.xlu1 %1536  ;;  %2744 = vrot.lane.b32.xlu0 %v2740_v4, %s5453_s11  ;;  %v2206_v4 = vshll.u32 %v4989_v54, 16  ;;  %v3909_v17 = vsel %vm5803_vm14, %v3907_v51, %v3908_v62  ;;  %v5206_v36 = vrot.slane %v5203_v19, 10  ;;  %v4992_v54 = vld [vmem:[%s5633_s6 + $0xa8] sm:$0x8]  ;;  %5322 = vmatprep.subr.bf16.mxu0 %v5407_v42 }
  0xf6   : > { %1542 = vst.msk [vmem:[#allocation2 + $0x4] sm:$0xf] %vm1540_vm8, %v1537_v23  ;;  %v2224_v23 = vrot.slane %v2222_v2, 6  ;;  %v2242_v58 = vshrl.u32 %v4992_v54, 16  ;;  %5361 = vmatprep.subr.bf16.mxu1 %v5407_v42 }
  0xf7   : > { %3017 = vrot.lane.b32.xlu1 %v5092_v13, %s5454_s12  ;;  %v1535_v35 = vpop.permute.xlu0 %1534  ;;  %v2217_v13 = vrot.slane %v2215_v45, 7  ;;  %v2208_v27 = vrot.slane %v2206_v4, 7  ;;  %v3928_v56 = vsel %vm5816_vm1, %v5206_v36, %v3927_v63  ;;  %v2250_v45 = vshll.u32 %v6313_v38, 16  ;;  %v5408_v63 = vld [vmem:[%s7506_s1] sm:$0xff]   ;;  %v5099_v38 = vld [vmem:[%s5633_s6 + $0x138] sm:$0x3] }
  0xf8   : > { %1541 = vst.msk [vmem:[#allocation2] sm:$0xf] %vm1540_vm8, %v1535_v35  ;;  %v2256_v35 = vshrl.u32 %v4994_v20, 16  ;;  %v4995_v3 = vrot.slane %v2242_v58, 11  ;;  %5323 = vmatpush3.bf16.msra.mxu0 %v5407_v42  ;;  %5366 = vmatpush3.bf16.msra.mxu1 %v5407_v42  ;;  %v6390_v20 = vld [vmem:[%s5633_s6 + $0x13c] sm:$0xf] }
  0xf9   : > { %v1559_v41 = vpop.permute.xlu1 %1558  ;;  %3015 = vrot.lane.b32.xlu0 %v5091_v30, %s5454_s12  ;;  %v6327_v31 = vor.u32 %v2217_v13, %v2214_v12  ;;  %v2209_v44 = vor.u32 %v2208_v27, %v2205_v26  ;;  %v2762_v12 = vrot.slane %v2760_v0, 4  ;;  %v2763_v13 = vrot.slane %v5045_v1, 7  ;;  %5324 = vmatprep.subr.bf16.mxu0 %v5408_v63  ;;  %v5153_v26 = vld [vmem:[%s5633_s6 + $0x130] sm:$0xc] }
  0xfa   : > { %1563 = vst.msk [vmem:[#allocation2 + $0xc] sm:$0xf] %vm1540_vm8, %v1559_v41  ;;  %v3931_v41 = vsel %vm5816_vm1, %v3929_v11, %v3930_v22  ;;  %v2258_v53 = vrot.slane %v2256_v35, 7  ;;  %5362 = vmatprep.subr.bf16.mxu1 %v5408_v63  ;;  %v5155_v11 = vld [vmem:[%s5633_s6 + $0x138] sm:$0x7]  ;;  %v3074_v35 = vrot.slane %v6390_v20, 7 }
  0xfb   : > { %3039 = vrot.lane.b32.xlu1 %v3036_v37, %s5454_s12  ;;  %v1557_v55 = vpop.permute.xlu0 %1556  ;;  %v2220_v48 = vrot.slane %v6327_v31, 4  ;;  %v2210_v57 = vrot.slane %v2209_v44, 4  ;;  %v3391_v39 = vshrl.u32 %v5153_v26, 16  ;;  %v3394_v36 = vshll.u32 %v5153_v26, 16 }
  0xfc   : > { %1562 = vst.msk [vmem:[#allocation2 + $0x8] sm:$0xf] %vm1540_vm8, %v1557_v55  ;;  %v2261_v60 = vor.u32 %v2259_v46, %v2258_v53  ;;  %5325 = vmatpush3.bf16.msra.mxu0 %v5408_v63  ;;  %5367 = vmatpush3.bf16.msra.mxu1 %v5408_v63  ;;  %v5047_v53 = vld [vmem:[%s5633_s6 + $0xac] sm:$0xf]  ;;  %v3076_v42 = vrot.slane %v3074_v35, 4 }
  0xfd   : > { %v1580_v61 = vpop.permute.xlu1 %1579  ;;  %3037 = vrot.lane.b32.xlu0 %v3033_v50, %s5454_s12  ;;  %v2228_v50 = vor.u32 %v2227_v32, %v2224_v23  ;;  %v2219_v2 = vsel %vm5688_vm11, %v2210_v57, %v6327_v31  ;;  %v3056_v31 = vrot.slane %v5099_v38, 6  ;;  %v5097_v32 = vld [vmem:[%s5633_s6 + $0x130] sm:$0xc]  ;;  %v3393_v58 = vrot.slane %v3391_v39, 6  ;;  %v5156_v63 = vld [vmem:[%s5633_s6 + $0x138] sm:$0x8] }
  0xfe   : > { %1584 = vst.msk [vmem:[#allocation2 + $0x14] sm:$0xf] %vm1540_vm8, %v1580_v61  ;;  %v5209_v38 = vld [vmem:[%s5633_s6 + $0x138] sm:$0x7] }
  0xff   : > { %3341 = vrot.lane.b32.xlu1 %v3338_v52, %s5455_s13  ;;  %v1578_v8 = vpop.permute.xlu0 %1577  ;;  %v2249_v52 = vrot.slane %v2247_v34, 7  ;;  %v2229_v51 = vsel %vm5688_vm11, %v2220_v48, %v2228_v50  ;;  %v5103_v34 = vld [vmem:[%s5633_s6 + $0x140] sm:$0x7]  ;;  %v6410_v50 = vld [vmem:[%s5633_s6 + $0x13c] sm:$0xf] }
 0x100   : > { %1583 = vst.msk [vmem:[#allocation2 + $0x10] sm:$0xf] %vm1540_vm8, %v1578_v8  ;;  %v3077_v29 = vrot.slane %v5103_v34, 7  ;;  %v3951_v34 = vrot.slane %v5209_v38, 7 }
 0x101   : > { %v1592_v16 = vpop.permute.xlu1 %1591  ;;  %3339 = vrot.lane.b32.xlu0 %v3328_v5, %s5455_s13  ;;  %v2254_v62 = vrot.slane %v2249_v52, 4  ;;  %v2252_v4 = vor.u32 %v2250_v45, %v2249_v52  ;;  %v5043_v5 = vld [vmem:[%s5633_s6 + $0xa0] sm:$0x8]  ;;  %v3396_v45 = vrot.slane %v3394_v36, 7  ;;  %v5207_v36 = vld [vmem:[%s5633_s6 + $0x130] sm:$0x8] }
 0x102   : > { %1596 = vst.msk [vmem:[#allocation2 + $0x1c] sm:$0xf] %vm1540_vm8, %v1592_v16  ;;  %v5154_v16 = vld [vmem:[%s5633_s6 + $0x134] sm:$0xf]  ;;  %v5158_v52 = vld [vmem:[%s5633_s6 + $0x140] sm:$0xf] }
 0x103   : > { %3381 = vrot.lane.b32.xlu1 %v3378_v10, %s5455_s13  ;;  %v1590_v30 = vpop.permute.xlu0 %1589  ;;  %v2262_v10 = vsel %vm5643_vm6, %v2254_v62, %v2261_v60  ;;  %v2253_v19 = vsel %vm5643_vm6, %v4995_v3, %v2252_v4  ;;  %v3400_v22 = vshrl.u32 %v5154_v16, 16  ;;  %v3403_v23 = vshll.u32 %v5154_v16, 16 }
 0x104   : > { %1595 = vst.msk [vmem:[#allocation2 + $0x18] sm:$0xf] %vm1540_vm8, %v1590_v30  ;;  %v3055_v30 = vrot.slane %v3053_v18, 4  ;;  %v3435_v60 = vshrl.u32 %v6410_v50, 16  ;;  %v3078_v3 = vsel %vm5828_vm4, %v3076_v42, %v3077_v29  ;;  %v3397_v4 = vor.u32 %v3396_v45, %v3393_v58 }
 0x105   : > { %v1613_v37 = vpop.permute.xlu1 %1612  ;;  %3379 = vrot.lane.b32.xlu0 %v3368_v59, %s5455_s13  ;;  %v2764_v59 = vsel %vm5828_vm4, %v2762_v12, %v2763_v13  ;;  %v3402_v44 = vrot.slane %v3400_v22, 6  ;;  %v3405_v46 = vrot.slane %v3403_v23, 7  ;;  %v5210_v42 = vrot.slane %v5207_v36, 11 }
 0x106   : > { %1617 = vst.msk [vmem:[#allocation2 + $0x24] sm:$0xf] %vm1540_vm8, %v1613_v37  ;;  %v3410_v37 = vshrl.u32 %v5155_v11, 16  ;;  %v3057_v54 = vsel %vm5816_vm1, %v3055_v30, %v3056_v31  ;;  %v3437_v16 = vrot.slane %v3435_v60, 7  ;;  %v3398_v22 = vrot.slane %v3397_v4, 4 }
 0x107   : > { %3912 = vrot.lane.b32.xlu1 %v3909_v17, %s5456_s24  ;;  %v1611_v47 = vpop.permute.xlu0 %1610  ;;  %v5046_v17 = vrot.slane %v5043_v5, 11  ;;  %v3447_v5 = vshll.u32 %v5158_v52, 16  ;;  %v4996_v30 = vld [vmem:[%s5633_s6 + $0xb4] sm:$0xf] }
 0x108   : > { %1616 = vst.msk [vmem:[#allocation2 + $0x20] sm:$0xf] %vm1540_vm8, %v1611_v47  ;;  %v3413_v47 = vshll.u32 %v5155_v11, 16  ;;  %v3412_v57 = vrot.slane %v3410_v37, 6  ;;  %v5000_v37 = vld [vmem:[%s5633_s6 + $0xc0] sm:$0xf] }
 0x109   : > { %v1634_v55 = vpop.permute.xlu1 %1633  ;;  %3910 = vrot.lane.b32.xlu0 %v3906_v40, %s5456_s24  ;;  %v2761_v28 = vsel %vm5828_vm4, %v5046_v17, %v2760_v0  ;;  %v3444_v0 = vshrl.u32 %v5158_v52, 16 }
 0x10a   : > { %1638 = vst.msk [vmem:[#allocation2 + $0x2c] sm:$0xf] %vm1540_vm8, %v1634_v55  ;;  %v5100_v55 = vrot.slane %v5097_v32, 10  ;;  %v3415_v62 = vrot.slane %v3413_v47, 7  ;;  %v2275_v47 = vshrl.u32 %v4996_v30, 16 }
 0x10b   : > { %3934 = vrot.lane.b32.xlu1 %v3931_v41, %s5456_s24  ;;  %v1632_v61 = vpop.permute.xlu0 %1631  ;;  %v5048_v41 = vld [vmem:[%s5633_s6 + $0xb0] sm:$0xf]  ;;  %v3446_v17 = vrot.slane %v3444_v0, 7 }
 0x10c   : > { %1637 = vst.msk [vmem:[#allocation2 + $0x28] sm:$0xf] %vm1540_vm8, %v1632_v61 }
 0x10d   : > { %v1655_v49 = vpop.permute.xlu1 %1654  ;;  %3932 = vrot.lane.b32.xlu0 %v3928_v56, %s5456_s24  ;;  %v5101_v56 = vld [vmem:[%s5633_s6 + $0x138] sm:$0x8] }
 0x10e   : > { %1659 = vst.msk [vmem:[#allocation2 + $0x34] sm:$0xf] %vm1540_vm8, %v1655_v49  ;;  %v5104_v1 = vrot.slane %v5101_v56, 11  ;;  %v5001_v56 = vld [vmem:[%s5633_s6 + $0xc4] sm:$0x3] }
 0x10f   : > { %2232 = vrot.lane.b32.xlu1 %v2229_v51, %s5452_s10  ;;  %v1653_v8 = vpop.permute.xlu0 %1652  ;;  %v6420_v51 = vor.u32 %v3405_v46, %v3402_v44  ;;  %v4998_v46 = vld [vmem:[%s5633_s6 + $0xbc] sm:$0x1] }
 0x110   : > { %1658 = vst.msk [vmem:[#allocation2 + $0x30] sm:$0xf] %vm1540_vm8, %v1653_v8  ;;  %v6435_v8 = vld [vmem:[%s5633_s6 + $0x134] sm:$0xf]  ;;  %v3075_v11 = vsel %vm5828_vm4, %v5104_v1, %v3074_v35 }
 0x111   : > { %v1667_v15 = vpop.permute.xlu1 %1666  ;;  %2230 = vrot.lane.b32.xlu0 %v2219_v2, %s5452_s10  ;;  %v3054_v2 = vsel %vm5816_vm1, %v5100_v55, %v3053_v18  ;;  %v3408_v13 = vrot.slane %v6420_v51, 4  ;;  %v3430_v18 = vshrl.u32 %v5156_v63, 16  ;;  %v3948_v20 = vrot.slane %v6435_v8, 7  ;;  %v4999_v55 = vld [vmem:[%s5633_s6 + $0xbc] sm:$0xe] }
 0x112   : > { %1671 = vst.msk [vmem:[#allocation2 + $0x3c] sm:$0xf] %vm1540_vm8, %v1667_v15  ;;  %v3416_v15 = vor.u32 %v3415_v62, %v3412_v57  ;;  %v3407_v44 = vsel %vm5688_vm11, %v3398_v22, %v6420_v51  ;;  %v2277_v51 = vrot.slane %v2275_v47, 4  ;;  %v2310_v60 = vshrl.u32 %v4999_v55, 16  ;;  %v5161_v47 = vld [vmem:[%s5633_s6 + $0x148] sm:$0xf] }
 0x113   : > { %2265 = vrot.lane.b32.xlu1 %v2262_v10, %s5452_s10  ;;  %v1665_v21 = vpop.permute.xlu0 %1664  ;;  %v4997_v10 = vld [vmem:[%s5633_s6 + $0xb8] sm:$0xf]  ;;  %v5159_v32 = vrot.slane %v3430_v18, 11  ;;  %v3950_v39 = vrot.slane %v3948_v20, 4  ;;  %v2313_v0 = vshll.u32 %v4999_v55, 16  ;;  %v3472_v55 = vshll.u32 %v5161_v47, 16 }
 0x114   : > { %1670 = vst.msk [vmem:[#allocation2 + $0x38] sm:$0xf] %vm1540_vm8, %v1665_v21  ;;  %v2284_v21 = vshll.u32 %v4997_v10, 16  ;;  %v3417_v26 = vsel %vm5688_vm11, %v3408_v13, %v3416_v15 }
 0x115   : > { %v1688_v27 = vpop.permute.xlu1 %1687  ;;  %2263 = vrot.lane.b32.xlu0 %v2253_v19, %s5452_s10  ;;  %v3438_v19 = vshll.u32 %v6410_v50, 16  ;;  %v3952_v58 = vsel %vm5828_vm4, %v3950_v39, %v3951_v34  ;;  %v2315_v13 = vrot.slane %v2313_v0, 6 }
 0x116   : > { %1692 = vst.msk [vmem:[#allocation2 + $0x44] sm:$0xf] %vm1540_vm8, %v1688_v27  ;;  %v3442_v27 = vrot.slane %v3437_v16, 4 }
 0x117   : > { %2767 = vrot.lane.b32.xlu1 %v2764_v59, %s5453_s11  ;;  %v1686_v40 = vpop.permute.xlu0 %1685  ;;  %v2288_v59 = vshrl.u32 %v4997_v10, 16  ;;  %v3440_v35 = vor.u32 %v3438_v19, %v3437_v16  ;;  %v5212_v16 = vld [vmem:[%s5633_s6 + $0x140] sm:$0xf] }
 0x118   : > { %1691 = vst.msk [vmem:[#allocation2 + $0x40] sm:$0xf] %vm1540_vm8, %v1686_v40  ;;  %v6456_v40 = vrot.slane %v2284_v21, 5  ;;  %v5050_v21 = vld [vmem:[%s5633_s6 + $0xb8] sm:$0xf] }
 0x119   : > { %v1709_v48 = vpop.permute.xlu1 %1708  ;;  %2765 = vrot.lane.b32.xlu0 %v2761_v28, %s5453_s11  ;;  %v3449_v28 = vor.u32 %v3447_v5, %v3446_v17  ;;  %v3441_v57 = vsel %vm5643_vm6, %v5159_v32, %v3440_v35  ;;  %v3949_v5 = vsel %vm5828_vm4, %v5210_v42, %v3948_v20  ;;  %v5211_v20 = vld [vmem:[%s5633_s6 + $0x13c] sm:$0xf]  ;;  %v5054_v32 = vld [vmem:[%s5633_s6 + $0xc0] sm:$0xf]  ;;  %v5049_v35 = vld [vmem:[%s5633_s6 + $0xb4] sm:$0xe] }
 0x11a   : > { %1713 = vst.msk [vmem:[#allocation2 + $0x4c] sm:$0xf] %vm1540_vm8, %v1709_v48  ;;  %v2278_v48 = vshll.u32 %v4996_v30, 16  ;;  %v5160_v42 = vld [vmem:[%s5633_s6 + $0x144] sm:$0xf] }
 0x11b   : > { %2779 = vrot.lane.b32.xlu1 %v5048_v41, %s5453_s11  ;;  %v1707_v61 = vpop.permute.xlu0 %1706  ;;  %v2290_v41 = vrot.slane %v2288_v59, 4  ;;  %v3450_v52 = vsel %vm5643_vm6, %v3442_v27, %v3449_v28  ;;  %v2793_v28 = vrot.slane %v5050_v21, 5  ;;  %v3463_v0 = vshrl.u32 %v5160_v42, 16  ;;  %v5107_v21 = vld [vmem:[%s5633_s6 + $0x14c] sm:$0xe] }
 0x11c   : > { %1712 = vst.msk [vmem:[#allocation2 + $0x48] sm:$0xf] %vm1540_vm8, %v1707_v61  ;;  %v2294_v61 = vshll.u32 %v4998_v46, 16  ;;  %v2280_v62 = vrot.slane %v2278_v48, 5  ;;  %v2814_v46 = vrot.slane %v5054_v32, 6 }
 0x11d   : > { %v1730_v49 = vpop.permute.xlu1 %1729  ;;  %2777 = vrot.lane.b32.xlu0 %v5047_v53, %s5453_s11  ;;  %v2319_v53 = vshrl.u32 %v5000_v37, 16  ;;  %v2291_v45 = vor.u32 %v2290_v41, %v6456_v40  ;;  %v2795_v41 = vrot.slane %v2793_v28, 4 }
 0x11e   : > { %1734 = vst.msk [vmem:[#allocation2 + $0x54] sm:$0xf] %vm1540_vm8, %v1730_v49  ;;  %v2296_v8 = vrot.slane %v2294_v61, 5  ;;  %v2281_v10 = vor.u32 %v2280_v62, %v2277_v51  ;;  %v5164_v62 = vld [vmem:[%s5633_s6 + $0x150] sm:$0xf] }
 0x11f   : > { %3060 = vrot.lane.b32.xlu1 %v3057_v54, %s5454_s12  ;;  %v1728_v12 = vpop.permute.xlu0 %1727  ;;  %v2322_v54 = vshll.u32 %v5000_v37, 16  ;;  %v2321_v1 = vrot.slane %v2319_v53, 5  ;;  %v2292_v17 = vrot.slane %v2291_v45, 4 }
 0x120   : > { %1733 = vst.msk [vmem:[#allocation2 + $0x50] sm:$0xf] %vm1540_vm8, %v1728_v12  ;;  %v2312_v12 = vrot.slane %v2310_v60, 5  ;;  %v2282_v59 = vrot.slane %v2281_v10, 4  ;;  %v3507_v10 = vshrl.u32 %v5164_v62, 16 }
 0x121   : > { %v1742_v6 = vpop.permute.xlu1 %1741  ;;  %3058 = vrot.lane.b32.xlu0 %v3054_v2, %s5454_s12  ;;  %v2324_v63 = vrot.slane %v2322_v54, 6  ;;  %v2329_v2 = vshrl.u32 %v5001_v56, 16  ;;  %v5052_v54 = vrot.slane %v5049_v35, 9 }
 0x122   : > { %1746 = vst.msk [vmem:[#allocation2 + $0x5c] sm:$0xf] %vm1540_vm8, %v1742_v6  ;;  %v2287_v34 = vsel %vm5669_vm10, %v2282_v59, %v6456_v40  ;;  %v5053_v40 = vld [vmem:[%s5633_s6 + $0xbc] sm:$0xc] }
 0x123   : > { %3081 = vrot.lane.b32.xlu1 %v3078_v3, %s5454_s12  ;;  %v1740_v23 = vpop.permute.xlu0 %1739  ;;  %v2332_v3 = vshll.u32 %v5001_v56, 16  ;;  %v2325_v6 = vor.u32 %v2324_v63, %v2321_v1  ;;  %v2331_v18 = vrot.slane %v2329_v2, 5  ;;  %v5056_v51 = vrot.slane %v5053_v40, 10  ;;  %v5109_v63 = vld [vmem:[%s5633_s6 + $0x154] sm:$0x1] }
 0x124   : > { %1745 = vst.msk [vmem:[#allocation2 + $0x58] sm:$0xf] %vm1540_vm8, %v1740_v23  ;;  %v2297_v23 = vsel %vm5669_vm10, %v2292_v17, %v2296_v8  ;;  %v2794_v1 = vsel %vm5803_vm14, %v5052_v54, %v2793_v28  ;;  %v6527_v2 = vrot.slane %v3472_v55, 5  ;;  %v5162_v8 = vld [vmem:[%s5633_s6 + $0x14c] sm:$0x1] }
 0x125   : > { %v1763_v31 = vpop.permute.xlu1 %1762  ;;  %3079 = vrot.lane.b32.xlu0 %v3075_v11, %s5454_s12  ;;  %v2334_v19 = vrot.slane %v2332_v3, 6  ;;  %v2316_v11 = vor.u32 %v2315_v13, %v2312_v12  ;;  %v3510_v12 = vshll.u32 %v5164_v62, 16  ;;  %v5163_v13 = vld [vmem:[%s5633_s6 + $0x14c] sm:$0xe]  ;;  %v5165_v17 = vld [vmem:[%s5633_s6 + $0x154] sm:$0x3] }
 0x126   : > { %1767 = vst.msk [vmem:[#allocation2 + $0x64] sm:$0xf] %vm1540_vm8, %v1763_v31  ;;  %v5051_v31 = vld [vmem:[%s5633_s6 + $0xbc] sm:$0x1]  ;;  %v3482_v59 = vshll.u32 %v5162_v8, 16 }
 0x127   : > { %3420 = vrot.lane.b32.xlu1 %v3417_v26, %s5455_s13  ;;  %v1761_v50 = vpop.permute.xlu0 %1760  ;;  %v2327_v26 = vrot.slane %v2325_v6, 4  ;;  %v2335_v27 = vor.u32 %v2334_v19, %v2331_v18  ;;  %v2317_v37 = vrot.slane %v2316_v11, 4  ;;  %v3110_v18 = vrot.slane %v5109_v63, 5  ;;  %v5003_v55 = vld [vmem:[%s5633_s6 + $0xc8] sm:$0xf] }
 0x128   : > { %1766 = vst.msk [vmem:[#allocation2 + $0x60] sm:$0xf] %vm1540_vm8, %v1761_v50  ;;  %v5055_v50 = vld [vmem:[%s5633_s6 + $0xc4] sm:$0x3]  ;;  %v3465_v19 = vrot.slane %v3463_v0, 4  ;;  %v3498_v11 = vshrl.u32 %v5163_v13, 16 }
 0x129   : > { %v1784_v29 = vpop.permute.xlu1 %1783  ;;  %3418 = vrot.lane.b32.xlu0 %v3407_v44, %s5455_s13  ;;  %v2336_v36 = vsel %vm5656_vm9, %v2327_v26, %v2335_v27  ;;  %v2796_v44 = vrot.slane %v5051_v31, 5  ;;  %v2326_v53 = vsel %vm5656_vm9, %v2317_v37, %v2325_v6  ;;  %v2817_v45 = vrot.slane %v5055_v50, 6  ;;  %v5106_v26 = vld [vmem:[%s5633_s6 + $0x148] sm:$0xf]  ;;  %v5213_v8 = vld [vmem:[%s5633_s6 + $0x144] sm:$0xe] }
 0x12a   : > { %1788 = vst.msk [vmem:[#allocation2 + $0x6c] sm:$0xf] %vm1540_vm8, %v1784_v29  ;;  %v3476_v29 = vshrl.u32 %v5161_v47, 16  ;;  %v3509_v27 = vrot.slane %v3507_v10, 5  ;;  %v3512_v28 = vrot.slane %v3510_v12, 6  ;;  %v3520_v31 = vshll.u32 %v5165_v17, 16 }
 0x12b   : > { %3453 = vrot.lane.b32.xlu1 %v3450_v52, %s5455_s13  ;;  %v1782_v49 = vpop.permute.xlu0 %1781  ;;  %v6510_v52 = vld [vmem:[%s5633_s6 + $0x150] sm:$0xf]  ;;  %v5110_v37 = vrot.slane %v5107_v21, 9  ;;  %v2361_v63 = vshll.u32 %v5003_v55, 16 }
 0x12c   : > { %1787 = vst.msk [vmem:[#allocation2 + $0x68] sm:$0xf] %vm1540_vm8, %v1782_v49  ;;  %v3107_v60 = vrot.slane %v6510_v52, 5  ;;  %v3466_v49 = vshll.u32 %v5160_v42, 16  ;;  %v3478_v3 = vrot.slane %v3476_v29, 4  ;;  %v6555_v50 = vor.u32 %v3512_v28, %v3509_v27 }
 0x12d   : > { %v1805_v4 = vpop.permute.xlu1 %1804  ;;  %3451 = vrot.lane.b32.xlu0 %v3441_v57, %s5455_s13  ;;  %v2797_v57 = vsel %vm5803_vm14, %v2795_v41, %v2796_v44  ;;  %v3500_v41 = vrot.slane %v3498_v11, 5  ;;  %v5002_v52 = vld [vmem:[%s5633_s6 + $0xc4] sm:$0xc] }
 0x12e   : > { %1809 = vst.msk [vmem:[#allocation2 + $0x74] sm:$0xf] %vm1540_vm8, %v1805_v4  ;;  %v3109_v6 = vrot.slane %v3107_v60, 4  ;;  %v3515_v0 = vrot.slane %v6555_v50, 4 }
 0x12f   : > { %3955 = vrot.lane.b32.xlu1 %v3952_v58, %s5456_s24  ;;  %v1803_v15 = vpop.permute.xlu0 %1802  ;;  %v2816_v58 = vrot.slane %v2814_v46, 4 }
 0x130   : > { %1808 = vst.msk [vmem:[#allocation2 + $0x70] sm:$0xf] %vm1540_vm8, %v1803_v15 }
 0x131   : > { %v1817_v38 = vpop.permute.xlu1 %1816  ;;  %3953 = vrot.lane.b32.xlu0 %v3949_v5, %s5456_s24  ;;  %v2818_v5 = vsel %vm5816_vm1, %v2816_v58, %v2817_v45  ;;  %v5215_v45 = vld [vmem:[%s5633_s6 + $0x14c] sm:$0x1] }
 0x132   : > { %1821 = vst.msk [vmem:[#allocation2 + $0x7c] sm:$0xf] %vm1540_vm8, %v1817_v38  ;;  %v3468_v38 = vrot.slane %v3466_v49, 5 }
 0x133   : > { %3967 = vrot.lane.b32.xlu1 %v5212_v16, %s5456_s24  ;;  %v1815_v22 = vpop.permute.xlu0 %1814  ;;  %v2815_v16 = vsel %vm5816_vm1, %v5056_v51, %v2814_v46  ;;  %v6551_v46 = vld [vmem:[%s5633_s6 + $0x148] sm:$0xf]  ;;  %v5004_v51 = vld [vmem:[%s5633_s6 + $0xcc] sm:$0x7] }
 0x134   : > { %1820 = vst.msk [vmem:[#allocation2 + $0x78] sm:$0xf] %vm1540_vm8, %v1815_v22  ;;  %v3501_v22 = vshll.u32 %v5163_v13, 16  ;;  %v3469_v35 = vor.u32 %v3468_v38, %v3465_v19  ;;  %v3981_v42 = vrot.slane %v6551_v46, 5  ;;  %v5219_v13 = vld [vmem:[%s5633_s6 + $0x154] sm:$0x3] }
 0x135   : > { %v1830_v30 = vpop.permute.xlu1 %1829  ;;  %3965 = vrot.lane.b32.xlu0 %v5211_v20, %s5456_s24  ;;  %v3479_v20 = vor.u32 %v3478_v3, %v6527_v2  ;;  %v2371_v38 = vshll.u32 %v5004_v51, 16 }
 0x136   : > { %1835 = vst.msk [vmem:[#allocation2 + $0x4] sm:$0xf] %vm1833_vm13, %v1830_v30  ;;  %v3517_v30 = vshrl.u32 %v5165_v17, 16  ;;  %v3503_v44 = vrot.slane %v3501_v22, 6  ;;  %v3470_v29 = vrot.slane %v3469_v35, 4  ;;  %v2352_v17 = vshll.u32 %v5002_v52, 16 }
 0x137   : > { %2300 = vrot.lane.b32.xlu1 %v2297_v23, %s5452_s10  ;;  %v1828_v39 = vpop.permute.xlu0 %1827  ;;  %v5216_v22 = vrot.slane %v5213_v8, 9  ;;  %v2373_v35 = vrot.slane %v2371_v38, 7  ;;  %v5113_v38 = vld [vmem:[%s5633_s6 + $0x15c] sm:$0x3] }
 0x138   : > { %1834 = vst.msk [vmem:[#allocation2] sm:$0xf] %vm1833_vm13, %v1828_v39  ;;  %v3480_v39 = vrot.slane %v3479_v20, 4  ;;  %v3519_v40 = vrot.slane %v3517_v30, 5  ;;  %v3504_v58 = vor.u32 %v3503_v44, %v3500_v41  ;;  %v3475_v3 = vsel %vm5669_vm10, %v3470_v29, %v6527_v2  ;;  %v5006_v20 = vld [vmem:[%s5633_s6 + $0xd0] sm:$0xf] }
 0x139   : > { %v1852_v48 = vpop.permute.xlu1 %1851  ;;  %2298 = vrot.lane.b32.xlu0 %v2287_v34, %s5452_s10  ;;  %v5105_v34 = vld [vmem:[%s5633_s6 + $0x144] sm:$0xf]  ;;  %v2363_v2 = vrot.slane %v2361_v63, 7  ;;  %v3982_v44 = vsel %vm5803_vm14, %v5216_v22, %v3981_v42 }
 0x13a   : > { %1856 = vst.msk [vmem:[#allocation2 + $0xc] sm:$0xf] %vm1833_vm13, %v1852_v48  ;;  %v3111_v48 = vsel %vm5803_vm14, %v3109_v6, %v3110_v18  ;;  %v3505_v12 = vrot.slane %v3504_v58, 4 }
 0x13b   : > { %2339 = vrot.lane.b32.xlu1 %v2336_v36, %s5452_s10  ;;  %v1850_v56 = vpop.permute.xlu0 %1849  ;;  %v3484_v36 = vrot.slane %v3482_v59, 5  ;;  %v5007_v59 = vld [vmem:[%s5633_s6 + $0xd4] sm:$0xf] }
 0x13c   : > { %1855 = vst.msk [vmem:[#allocation2 + $0x8] sm:$0xf] %vm1833_vm13, %v1850_v56  ;;  %v3108_v56 = vsel %vm5803_vm14, %v5110_v37, %v3107_v60  ;;  %v3514_v27 = vsel %vm5656_vm9, %v3505_v12, %v6555_v50  ;;  %v2405_v50 = vshll.u32 %v5007_v59, 16 }
 0x13d   : > { %v1873_v61 = vpop.permute.xlu1 %1872  ;;  %2337 = vrot.lane.b32.xlu0 %v2326_v53, %s5452_s10  ;;  %v3522_v53 = vrot.slane %v3520_v31, 6  ;;  %v2354_v31 = vrot.slane %v2352_v17, 7  ;;  %v5167_v17 = vld [vmem:[%s5633_s6 + $0x158] sm:$0xf] }
 0x13e   : > { %1877 = vst.msk [vmem:[#allocation2 + $0x14] sm:$0xf] %vm1833_vm13, %v1873_v61  ;;  %v6571_v61 = vld [vmem:[%s5633_s6 + $0x150] sm:$0xf] }
 0x13f   : > { %2800 = vrot.lane.b32.xlu1 %v2797_v57, %s5453_s11  ;;  %v1871_v4 = vpop.permute.xlu0 %1870  ;;  %v3485_v57 = vsel %vm5669_vm10, %v3480_v39, %v3484_v36  ;;  %v3523_v49 = vor.u32 %v3522_v53, %v3519_v40  ;;  %v4002_v10 = vrot.slane %v6571_v61, 6  ;;  %v2393_v39 = vshrl.u32 %v5006_v20, 16 }
 0x140   : > { %1876 = vst.msk [vmem:[#allocation2 + $0x10] sm:$0xf] %vm1833_vm13, %v1871_v4  ;;  %v3983_v4 = vrot.slane %v3981_v42, 4  ;;  %v2402_v36 = vshrl.u32 %v5007_v59, 16  ;;  %v5058_v42 = vld [vmem:[%s5633_s6 + $0xc8] sm:$0xf] }
 0x141   : > { %v1894_v15 = vpop.permute.xlu1 %1893  ;;  %2798 = vrot.lane.b32.xlu0 %v2794_v1, %s5453_s11  ;;  %v2358_v1 = vshrl.u32 %v5003_v55, 16  ;;  %v3524_v18 = vsel %vm5656_vm9, %v3515_v0, %v3523_v49  ;;  %v2395_v55 = vrot.slane %v2393_v39, 7  ;;  %v2835_v63 = vrot.slane %v5058_v42, 7  ;;  %v5115_v42 = vld [vmem:[%s5633_s6 + $0x15c] sm:$0x8] }
 0x142   : > { %1898 = vst.msk [vmem:[#allocation2 + $0x1c] sm:$0xf] %vm1833_vm13, %v1894_v15  ;;  %v2368_v15 = vshrl.u32 %v5004_v51, 16  ;;  %v2404_v29 = vrot.slane %v2402_v36, 7  ;;  %v2396_v51 = vshll.u32 %v5006_v20, 16  ;;  %v3546_v20 = vshrl.u32 %v5167_v17, 16 }
 0x143   : > { %2821 = vrot.lane.b32.xlu1 %v2818_v5, %s5453_s11  ;;  %v1892_v23 = vpop.permute.xlu0 %1891  ;;  %v3984_v5 = vrot.slane %v5215_v45, 5  ;;  %v2360_v19 = vrot.slane %v2358_v1, 6  ;;  %v2400_v49 = vrot.slane %v2395_v55, 4  ;;  %v3549_v59 = vshll.u32 %v5167_v17, 16 }
 0x144   : > { %1897 = vst.msk [vmem:[#allocation2 + $0x18] sm:$0xf] %vm1833_vm13, %v1892_v23  ;;  %v4004_v23 = vrot.slane %v4002_v10, 4  ;;  %v2370_v28 = vrot.slane %v2368_v15, 6  ;;  %v2407_v1 = vor.u32 %v2405_v50, %v2404_v29  ;;  %v2398_v8 = vor.u32 %v2396_v51, %v2395_v55 }
 0x145   : > { %v1906_v32 = vpop.permute.xlu1 %1905  ;;  %2819 = vrot.lane.b32.xlu0 %v2815_v16, %s5453_s11  ;;  %v2349_v16 = vshrl.u32 %v5002_v52, 16  ;;  %v3985_v11 = vsel %vm5803_vm14, %v3983_v4, %v3984_v5  ;;  %v2364_v37 = vor.u32 %v2363_v2, %v2360_v19  ;;  %v2837_v15 = vrot.slane %v2835_v63, 4 }
 0x146   : > { %1910 = vst.msk [vmem:[#allocation2 + $0x24] sm:$0xf] %vm1833_vm13, %v1906_v32  ;;  %v3551_v39 = vrot.slane %v3549_v59, 7 }
 0x147   : > { %3093 = vrot.lane.b32.xlu1 %v5106_v26, %s5454_s12  ;;  %v1904_v47 = vpop.permute.xlu0 %1903  ;;  %v4005_v26 = vrot.slane %v5219_v13, 6  ;;  %v2351_v30 = vrot.slane %v2349_v16, 6  ;;  %v2366_v53 = vrot.slane %v2364_v37, 4  ;;  %v2408_v13 = vsel %vm5643_vm6, %v2400_v49, %v2407_v1 }
 0x148   : > { %1909 = vst.msk [vmem:[#allocation2 + $0x20] sm:$0xf] %vm1833_vm13, %v1904_v47 }
 0x149   : > { %v1927_v54 = vpop.permute.xlu1 %1926  ;;  %3091 = vrot.lane.b32.xlu0 %v5105_v34, %s5454_s12  ;;  %v5217_v34 = vld [vmem:[%s5633_s6 + $0x14c] sm:$0xc]  ;;  %v4006_v46 = vsel %vm5816_vm1, %v4004_v23, %v4005_v26  ;;  %v5166_v23 = vld [vmem:[%s5633_s6 + $0x154] sm:$0xc] }
 0x14a   : > { %1931 = vst.msk [vmem:[#allocation2 + $0x2c] sm:$0xf] %vm1833_vm13, %v1927_v54  ;;  %v5220_v47 = vrot.slane %v5217_v34, 10  ;;  %v2374_v54 = vor.u32 %v2373_v35, %v2370_v28  ;;  %v5168_v28 = vld [vmem:[%s5633_s6 + $0x15c] sm:$0x7]  ;;  %v3548_v35 = vrot.slane %v3546_v20, 6 }
 0x14b   : > { %3114 = vrot.lane.b32.xlu1 %v3111_v48, %s5454_s12  ;;  %v1925_v62 = vpop.permute.xlu0 %1924  ;;  %v2355_v48 = vor.u32 %v2354_v31, %v2351_v30  ;;  %v3131_v31 = vrot.slane %v5113_v38, 6  ;;  %v3537_v36 = vshrl.u32 %v5166_v23, 16 }
 0x14c   : > { %1930 = vst.msk [vmem:[#allocation2 + $0x28] sm:$0xf] %vm1833_vm13, %v1925_v62  ;;  %v4003_v58 = vsel %vm5816_vm1, %v5220_v47, %v4002_v10  ;;  %v2375_v0 = vsel %vm5688_vm11, %v2366_v53, %v2374_v54  ;;  %v6627_v10 = vld [vmem:[%s5633_s6 + $0x158] sm:$0xf]  ;;  %v3556_v47 = vshrl.u32 %v5168_v28, 16 }
 0x14d   : > { %v1948_v60 = vpop.permute.xlu1 %1947  ;;  %3112 = vrot.lane.b32.xlu0 %v3108_v56, %s5454_s12  ;;  %v5005_v56 = vld [vmem:[%s5633_s6 + $0xcc] sm:$0x8]  ;;  %v2356_v45 = vrot.slane %v2355_v48, 4  ;;  %v3128_v19 = vrot.slane %v6627_v10, 6  ;;  %v3559_v48 = vshll.u32 %v5168_v28, 16 }
 0x14e   : > { %1952 = vst.msk [vmem:[#allocation2 + $0x34] sm:$0xf] %vm1833_vm13, %v1948_v60  ;;  %v2388_v61 = vshrl.u32 %v5005_v56, 16  ;;  %v5059_v60 = vld [vmem:[%s5633_s6 + $0xcc] sm:$0x7] }
 0x14f   : > { %3488 = vrot.lane.b32.xlu1 %v3485_v57, %s5455_s13  ;;  %v1946_v6 = vpop.permute.xlu0 %1945  ;;  %v2365_v4 = vsel %vm5688_vm11, %v2356_v45, %v2364_v37  ;;  %v2838_v16 = vrot.slane %v5059_v60, 7  ;;  %v3130_v30 = vrot.slane %v3128_v19, 4  ;;  %v5117_v37 = vld [vmem:[%s5633_s6 + $0x164] sm:$0x7]  ;;  %v5061_v54 = vld [vmem:[%s5633_s6 + $0xd0] sm:$0xf] }
 0x150   : > { %1951 = vst.msk [vmem:[#allocation2 + $0x30] sm:$0xf] %vm1833_vm13, %v1946_v6  ;;  %v5008_v5 = vrot.slane %v2388_v61, 11  ;;  %v5171_v53 = vld [vmem:[%s5633_s6 + $0x164] sm:$0xf]  ;;  %v3152_v56 = vrot.slane %v5117_v37, 7 }
 0x151   : > { %v1969_v21 = vpop.permute.xlu1 %1968  ;;  %3486 = vrot.lane.b32.xlu0 %v3475_v3, %s5455_s13  ;;  %v5057_v3 = vld [vmem:[%s5633_s6 + $0xc4] sm:$0x8]  ;;  %v2839_v22 = vsel %vm5828_vm4, %v2837_v15, %v2838_v16  ;;  %v3132_v55 = vsel %vm5816_vm1, %v3130_v30, %v3131_v31  ;;  %v3539_v45 = vrot.slane %v3537_v36, 6  ;;  %v3590_v1 = vshrl.u32 %v5171_v53, 16  ;;  %v5169_v16 = vld [vmem:[%s5633_s6 + $0x15c] sm:$0x8] }
 0x152   : > { %1973 = vst.msk [vmem:[#allocation2 + $0x3c] sm:$0xf] %vm1833_vm13, %v1969_v21  ;;  %v2399_v2 = vsel %vm5643_vm6, %v5008_v5, %v2398_v8  ;;  %v6641_v21 = vld [vmem:[%s5633_s6 + $0x160] sm:$0xf]  ;;  %v3593_v5 = vshll.u32 %v5171_v53, 16 }
 0x153   : > { %3527 = vrot.lane.b32.xlu1 %v3524_v18, %s5455_s13  ;;  %v1967_v32 = vpop.permute.xlu0 %1966  ;;  %v5060_v18 = vrot.slane %v5057_v3, 11  ;;  %v3149_v34 = vrot.slane %v6641_v21, 7  ;;  %v3592_v15 = vrot.slane %v3590_v1, 7  ;;  %v5221_v28 = vld [vmem:[%s5633_s6 + $0x154] sm:$0x8] }
 0x154   : > { %1972 = vst.msk [vmem:[#allocation2 + $0x38] sm:$0xf] %vm1833_vm13, %v1967_v32  ;;  %v5111_v32 = vld [vmem:[%s5633_s6 + $0x154] sm:$0xc]  ;;  %v6703_v37 = vld [vmem:[%s5633_s6 + $0xe4] sm:$0xf] }
 0x155   : > { %v1981_v41 = vpop.permute.xlu1 %1980  ;;  %3525 = vrot.lane.b32.xlu0 %v3514_v27, %s5455_s13  ;;  %v2836_v27 = vsel %vm5828_vm4, %v5060_v18, %v2835_v63  ;;  %v5114_v29 = vrot.slane %v5111_v32, 10  ;;  %v5014_v1 = vld [vmem:[%s5633_s6 + $0xe8] sm:$0x3] }
 0x156   : > { %1985 = vst.msk [vmem:[#allocation2 + $0x44] sm:$0xf] %vm1833_vm13, %v1981_v41  ;;  %v3540_v41 = vshll.u32 %v5166_v23, 16 }
 0x157   : > { %3988 = vrot.lane.b32.xlu1 %v3985_v11, %s5456_s24  ;;  %v1979_v40 = vpop.permute.xlu0 %1978  ;;  %v3129_v60 = vsel %vm5816_vm1, %v5114_v29, %v3128_v19  ;;  %v5011_v29 = vld [vmem:[%s5633_s6 + $0xe0] sm:$0x1] }
 0x158   : > { %1984 = vst.msk [vmem:[#allocation2 + $0x40] sm:$0xf] %vm1833_vm13, %v1979_v40  ;;  %v6659_v40 = vld [vmem:[%s5633_s6 + $0x160] sm:$0xf]  ;;  %v3542_v61 = vrot.slane %v3540_v41, 7 }
 0x159   : > { %v2154_v57 = vpop.permute.xlu1 %2153  ;;  %3986 = vrot.lane.b32.xlu0 %v3982_v44, %s5456_s24  ;;  %v3581_v49 = vshrl.u32 %v6659_v40, 16  ;;  %v3584_v38 = vshll.u32 %v6659_v40, 16  ;;  %v1994_v40 = vrot.slane %v6703_v37, 5  ;;  %v5068_v37 = vld [vmem:[%s5633_s6 + $0xe4] sm:$0xf] }
 0x15a   : > { %2159 = vst.msk [vmem:[#allocation2 + $0x4] sm:$0xf] %vm2157_vm15, %v2154_v57  ;;  %v3151_v57 = vrot.slane %v3149_v34, 4 }
 0x15b   : > { %4009 = vrot.lane.b32.xlu1 %v4006_v46, %s5456_s24  ;;  %v2152_v62 = vpop.permute.xlu0 %2151  ;;  %v5062_v46 = vld [vmem:[%s5633_s6 + $0xd4] sm:$0xf] }
 0x15c   : > { %2158 = vst.msk [vmem:[#allocation2] sm:$0xf] %vm2157_vm15, %v2152_v62  ;;  %v3558_v62 = vrot.slane %v3556_v47, 6  ;;  %v3153_v3 = vsel %vm5828_vm4, %v3151_v57, %v3152_v56  ;;  %v5013_v47 = vld [vmem:[%s5633_s6 + $0xe4] sm:$0xf] }
 0x15d   : > { %v2194_v52 = vpop.permute.xlu1 %2193  ;;  %4007 = vrot.lane.b32.xlu0 %v4003_v58, %s5456_s24  ;;  %v6669_v58 = vor.u32 %v3551_v39, %v3548_v35  ;;  %v5009_v35 = vld [vmem:[%s5633_s6 + $0xd8] sm:$0xf]  ;;  %v2465_v57 = vshrl.u32 %v5013_v47, 16 }
 0x15e   : > { %2198 = vst.msk [vmem:[#allocation2 + $0xc] sm:$0xf] %vm2157_vm15, %v2194_v52  ;;  %v5118_v52 = vrot.slane %v5115_v42, 11  ;;  %v2421_v53 = vshrl.u32 %v5009_v35, 16  ;;  %v2424_v56 = vshll.u32 %v5009_v35, 16 }
 0x15f   : > { %2378 = vrot.lane.b32.xlu1 %v2375_v0, %s5452_s10  ;;  %v2192_v12 = vpop.permute.xlu0 %2191  ;;  %v3561_v0 = vrot.slane %v3559_v48, 7  ;;  %v3554_v10 = vrot.slane %v6669_v58, 4 }
 0x160   : > { %2197 = vst.msk [vmem:[#allocation2 + $0x8] sm:$0xf] %vm2157_vm15, %v2192_v12  ;;  %v3150_v18 = vsel %vm5828_vm4, %v5118_v52, %v3149_v34 }
 0x161   : > { %v2725_v6 = vpop.permute.xlu1 %2724  ;;  %2376 = vrot.lane.b32.xlu0 %v2365_v4, %s5452_s10  ;;  %v3543_v4 = vor.u32 %v3542_v61, %v3539_v45  ;;  %v3562_v12 = vor.u32 %v3561_v0, %v3558_v62  ;;  %v5012_v62 = vld [vmem:[%s5633_s6 + $0xe0] sm:$0xe] }
 0x162   : > { %2730 = vst.msk [vmem:[#allocation2 + $0x4] sm:$0xf] %vm2728_vm0, %v2725_v6  ;;  %v5222_v6 = vld [vmem:[%s5633_s6 + $0x158] sm:$0xf] }
 0x163   : > { %2411 = vrot.lane.b32.xlu1 %v2408_v13, %s5452_s10  ;;  %v2723_v11 = vpop.permute.xlu0 %2722  ;;  %v3583_v13 = vrot.slane %v3581_v49, 7  ;;  %v3544_v19 = vrot.slane %v3543_v4, 4  ;;  %v3563_v20 = vsel %vm5688_vm11, %v3554_v10, %v3562_v12  ;;  %v4023_v23 = vrot.slane %v5222_v6, 7  ;;  %v4957_v4 = vld [vmem:[%s5633_s6 + $0xe0] sm:$0xe] }
 0x164   : > { %2729 = vst.msk [vmem:[#allocation2] sm:$0xf] %vm2728_vm0, %v2723_v11  ;;  %v3595_v11 = vor.u32 %v3593_v5, %v3592_v15  ;;  %v2426_v5 = vrot.slane %v2424_v56, 5  ;;  %v2456_v10 = vshrl.u32 %v5012_v62, 16  ;;  %v2459_v12 = vshll.u32 %v5012_v62, 16 }
 0x165   : > { %v2747_v26 = vpop.permute.xlu1 %2746  ;;  %2409 = vrot.lane.b32.xlu0 %v2399_v2, %s5452_s10  ;;  %v3576_v2 = vshrl.u32 %v5169_v16, 16  ;;  %v3588_v59 = vrot.slane %v3583_v13, 4  ;;  %v3553_v30 = vsel %vm5688_vm11, %v3544_v19, %v6669_v58  ;;  %v3586_v32 = vor.u32 %v3584_v38, %v3583_v13  ;;  %v5226_v15 = vld [vmem:[%s5633_s6 + $0x164] sm:$0xf] }
 0x166   : > { %2751 = vst.msk [vmem:[#allocation2 + $0xc] sm:$0xf] %vm2728_vm0, %v2747_v26  ;;  %v4025_v41 = vrot.slane %v4023_v23, 4  ;;  %v2475_v6 = vshrl.u32 %v5014_v1, 16  ;;  %v4960_v38 = vrot.slane %v4957_v4, 9 }
 0x167   : > { %2842 = vrot.lane.b32.xlu1 %v2839_v22, %s5453_s11  ;;  %v2745_v44 = vpop.permute.xlu0 %2744  ;;  %v5223_v22 = vld [vmem:[%s5633_s6 + $0x15c] sm:$0x7]  ;;  %v5172_v31 = vrot.slane %v3576_v2, 11  ;;  %v3596_v36 = vsel %vm5643_vm6, %v3588_v59, %v3595_v11  ;;  %v2458_v11 = vrot.slane %v2456_v10, 5 }
 0x168   : > { %2750 = vst.msk [vmem:[#allocation2 + $0x8] sm:$0xf] %vm2728_vm0, %v2745_v44  ;;  %v4026_v34 = vrot.slane %v5223_v22, 7  ;;  %v2461_v22 = vrot.slane %v2459_v12, 6  ;;  %v1995_v35 = vsel %vm5803_vm14, %v4960_v38, %v1994_v40 }
 0x169   : > { %v3018_v50 = vpop.permute.xlu1 %3017  ;;  %2840 = vrot.lane.b32.xlu0 %v2836_v27, %s5453_s11  ;;  %v5010_v27 = vld [vmem:[%s5633_s6 + $0xdc] sm:$0xf] }
 0x16a   : > { %3023 = vst.msk [vmem:[#allocation2 + $0x4] sm:$0xf] %vm3021_vm2, %v3018_v50  ;;  %v2430_v44 = vshll.u32 %v5010_v27, 16  ;;  %v5224_v50 = vrot.slane %v5221_v28, 11  ;;  %v4027_v58 = vsel %vm5828_vm4, %v4025_v41, %v4026_v34  ;;  %v5064_v34 = vld [vmem:[%s5633_s6 + $0xdc] sm:$0xf] }
 0x16b   : > { %2854 = vrot.lane.b32.xlu1 %v5062_v46, %s5453_s11  ;;  %v3016_v51 = vpop.permute.xlu0 %3015  ;;  %v2434_v46 = vshrl.u32 %v5010_v27, 16 }
 0x16c   : > { %3022 = vst.msk [vmem:[#allocation2] sm:$0xf] %vm3021_vm2, %v3016_v51  ;;  %v6720_v45 = vrot.slane %v2430_v44, 5  ;;  %v2468_v51 = vshll.u32 %v5013_v47, 16  ;;  %v4024_v49 = vsel %vm5828_vm4, %v5224_v50, %v4023_v23  ;;  %v2868_v50 = vrot.slane %v5064_v34, 5 }
 0x16d   : > { %v3040_v63 = vpop.permute.xlu1 %3039  ;;  %2852 = vrot.lane.b32.xlu0 %v5061_v54, %s5453_s11  ;;  %v3587_v54 = vsel %vm5643_vm6, %v5172_v31, %v3586_v32  ;;  %v2436_v61 = vrot.slane %v2434_v46, 4 }
 0x16e   : > { %3044 = vst.msk [vmem:[#allocation2 + $0xc] sm:$0xf] %vm3021_vm2, %v3040_v63  ;;  %v1996_v63 = vrot.slane %v1994_v40, 4 }
 0x16f   : > { %3135 = vrot.lane.b32.xlu1 %v3132_v55, %s5454_s12  ;;  %v3038_v8 = vpop.permute.xlu0 %3037  ;;  %v4959_v55 = vld [vmem:[%s5633_s6 + $0xe8] sm:$0x1]  ;;  %v2437_v16 = vor.u32 %v2436_v61, %v6720_v45  ;;  %v2889_v61 = vrot.slane %v5068_v37, 6 }
 0x170   : > { %3043 = vst.msk [vmem:[#allocation2 + $0x8] sm:$0xf] %vm3021_vm2, %v3038_v8  ;;  %v1997_v52 = vrot.slane %v4959_v55, 5  ;;  %v2467_v8 = vrot.slane %v2465_v57, 5 }
 0x171   : > { %v3342_v17 = vpop.permute.xlu1 %3341  ;;  %3133 = vrot.lane.b32.xlu0 %v3129_v60, %s5454_s12  ;;  %v2440_v60 = vshll.u32 %v5011_v29, 16  ;;  %v2438_v27 = vrot.slane %v2437_v16, 4  ;;  %v5063_v29 = vld [vmem:[%s5633_s6 + $0xd8] sm:$0xe]  ;;  %v5123_v16 = vld [vmem:[%s5633_s6 + $0x178] sm:$0x1] }
 0x172   : > { %3347 = vst.msk [vmem:[#allocation2 + $0x4] sm:$0xf] %vm3345_vm3, %v3342_v17  ;;  %v2470_v17 = vrot.slane %v2468_v51, 6  ;;  %v1998_v2 = vsel %vm5803_vm14, %v1996_v63, %v1997_v52  ;;  %v5174_v51 = vld [vmem:[%s5633_s6 + $0x16c] sm:$0xf] }
 0x173   : > { %3156 = vrot.lane.b32.xlu1 %v3153_v3, %s5454_s12  ;;  %v3340_v21 = vpop.permute.xlu0 %3339  ;;  %v2423_v3 = vrot.slane %v2421_v53, 4  ;;  %v6777_v63 = vld [vmem:[%s5633_s6 + $0x174] sm:$0xf]  ;;  %v3618_v52 = vshll.u32 %v5174_v51, 16 }
 0x174   : > { %3346 = vst.msk [vmem:[#allocation2] sm:$0xf] %vm3345_vm3, %v3340_v21  ;;  %v5225_v21 = vld [vmem:[%s5633_s6 + $0x160] sm:$0xf]  ;;  %v2471_v28 = vor.u32 %v2470_v17, %v2467_v8  ;;  %v2891_v8 = vrot.slane %v2889_v61, 4  ;;  %v3182_v17 = vrot.slane %v6777_v63, 5 }
 0x175   : > { %v3382_v26 = vpop.permute.xlu1 %3381  ;;  %3154 = vrot.lane.b32.xlu0 %v3150_v18, %s5454_s12  ;;  %v2478_v18 = vshll.u32 %v5014_v1, 16  ;;  %v2427_v59 = vor.u32 %v2426_v5, %v2423_v3  ;;  %v5173_v3 = vld [vmem:[%s5633_s6 + $0x168] sm:$0xf] }
 0x176   : > { %3386 = vst.msk [vmem:[#allocation2 + $0xc] sm:$0xf] %vm3345_vm3, %v3382_v26  ;;  %v2473_v47 = vrot.slane %v2471_v28, 4 }
 0x177   : > { %3566 = vrot.lane.b32.xlu1 %v3563_v20, %s5455_s13  ;;  %v3380_v39 = vpop.permute.xlu0 %3379  ;;  %v2442_v20 = vrot.slane %v2440_v60, 5  ;;  %v2480_v31 = vrot.slane %v2478_v18, 6  ;;  %v3622_v60 = vshrl.u32 %v5174_v51, 16 }
 0x178   : > { %3385 = vst.msk [vmem:[#allocation2 + $0x8] sm:$0xf] %vm3345_vm3, %v3380_v39  ;;  %v2428_v39 = vrot.slane %v2427_v59, 4 }
 0x179   : > { %v3913_v48 = vpop.permute.xlu1 %3912  ;;  %3564 = vrot.lane.b32.xlu0 %v3553_v30, %s5455_s13  ;;  %v2477_v30 = vrot.slane %v2475_v6, 5  ;;  %v2443_v46 = vsel %vm5669_vm10, %v2438_v27, %v2442_v20  ;;  %v3609_v6 = vshrl.u32 %v5173_v3, 16  ;;  %v3624_v38 = vrot.slane %v3622_v60, 4 }
 0x17a   : > { %3918 = vst.msk [vmem:[#allocation2 + $0x4] sm:$0xf] %vm3916_vm5, %v3913_v48  ;;  %v2433_v40 = vsel %vm5669_vm10, %v2428_v39, %v6720_v45  ;;  %v5066_v45 = vrot.slane %v5063_v29, 9  ;;  %v5119_v29 = vld [vmem:[%s5633_s6 + $0x168] sm:$0xf] }
 0x17b   : > { %3599 = vrot.lane.b32.xlu1 %v3596_v36, %s5455_s13  ;;  %v3911_v42 = vpop.permute.xlu0 %3910  ;;  %v2462_v36 = vor.u32 %v2461_v22, %v2458_v11  ;;  %v2481_v48 = vor.u32 %v2480_v31, %v2477_v30  ;;  %v3184_v30 = vrot.slane %v3182_v17, 4  ;;  %v3185_v31 = vrot.slane %v5123_v16, 5 }
 0x17c   : > { %3917 = vst.msk [vmem:[#allocation2] sm:$0xf] %vm3916_vm5, %v3911_v42  ;;  %v2870_v42 = vrot.slane %v2868_v50, 4  ;;  %v2869_v18 = vsel %vm5803_vm14, %v5066_v45, %v2868_v50  ;;  %v3611_v34 = vrot.slane %v3609_v6, 4  ;;  %v5227_v6 = vld [vmem:[%s5633_s6 + $0x168] sm:$0xe] }
 0x17d   : > { %v3935_v0 = vpop.permute.xlu1 %3934  ;;  %3597 = vrot.lane.b32.xlu0 %v3587_v54, %s5455_s13  ;;  %v5065_v54 = vld [vmem:[%s5633_s6 + $0xe0] sm:$0x1]  ;;  %v2463_v55 = vrot.slane %v2462_v36, 4  ;;  %v2482_v57 = vsel %vm5656_vm9, %v2473_v47, %v2481_v48  ;;  %v5120_v47 = vld [vmem:[%s5633_s6 + $0x16c] sm:$0xf] }
 0x17e   : > { %3939 = vst.msk [vmem:[#allocation2 + $0xc] sm:$0xf] %vm3916_vm5, %v3935_v0  ;;  %v5069_v0 = vld [vmem:[%s5633_s6 + $0xe8] sm:$0x3] }
 0x17f   : > { %4030 = vrot.lane.b32.xlu1 %v4027_v58, %s5456_s24  ;;  %v3933_v13 = vpop.permute.xlu0 %3932  ;;  %v2871_v58 = vrot.slane %v5065_v54, 5  ;;  %v2472_v1 = vsel %vm5656_vm9, %v2463_v55, %v2471_v28  ;;  %v2892_v10 = vrot.slane %v5069_v0, 6  ;;  %v5178_v28 = vld [vmem:[%s5633_s6 + $0x178] sm:$0x3] }
 0x180   : > { %3938 = vst.msk [vmem:[#allocation2 + $0x8] sm:$0xf] %vm3916_vm5, %v3933_v13  ;;  %v3666_v54 = vshll.u32 %v5178_v28, 16 }
 0x181   : > { %v2233_v19 = vpop.permute.xlu1 %2232  ;;  %4028 = vrot.lane.b32.xlu0 %v4024_v49, %s5456_s24  ;;  %v5067_v49 = vld [vmem:[%s5633_s6 + $0xe0] sm:$0xc]  ;;  %v2872_v5 = vsel %vm5803_vm14, %v2870_v42, %v2871_v58  ;;  %v2893_v59 = vsel %vm5816_vm1, %v2891_v8, %v2892_v10 }
 0x182   : > { %2237 = vst.msk [vmem:[#allocation2 + $0x14] sm:$0xf] %vm2157_vm15, %v2233_v19  ;;  %v5070_v13 = vrot.slane %v5067_v49, 10  ;;  %v5175_v19 = vld [vmem:[%s5633_s6 + $0x170] sm:$0x1]  ;;  %v3668_v45 = vrot.slane %v3666_v54, 6 }
 0x183   : > { %4042 = vrot.lane.b32.xlu1 %v5226_v15, %s5456_s24  ;;  %v2231_v23 = vpop.permute.xlu0 %2230  ;;  %v5409_v26 = vld [vmem:[#allocation2] sm:$0xff]   ;;  %v4961_v54 = vld [vmem:[%s5633_s6 + $0xe8] sm:$0xc] }
 0x184   : > { %2236 = vst.msk [vmem:[#allocation2 + $0x10] sm:$0xf] %vm2157_vm15, %v2231_v23  ;;  %5326 = vmatprep.mubr.msk.bf16.mxu0 %vm4346_vm7, %v5409_v26  ;;  %v5177_v15 = vld [vmem:[%s5633_s6 + $0x174] sm:$0xf]  ;;  %v5176_v23 = vld [vmem:[%s5633_s6 + $0x170] sm:$0xe]  ;;  %v2890_v27 = vsel %vm5816_vm1, %v5070_v13, %v2889_v61 }
 0x185   : > { %v2266_v32 = vpop.permute.xlu1 %2265  ;;  %4040 = vrot.lane.b32.xlu0 %v5225_v21, %s5456_s24  ;;  %v3612_v21 = vshll.u32 %v5173_v3, 16  ;;  %v3653_v11 = vshrl.u32 %v5177_v15, 16  ;;  %v3656_v22 = vshll.u32 %v5177_v15, 16  ;;  %v5229_v15 = vld [vmem:[%s5633_s6 + $0x170] sm:$0x1] }
 0x186   : > { %2270 = vst.msk [vmem:[#allocation2 + $0x1c] sm:$0xf] %vm2157_vm15, %v2266_v32  ;;  %v3628_v32 = vshll.u32 %v5175_v19, 16  ;;  %v6837_v19 = vld [vmem:[%s5633_s6 + $0xec] sm:$0xf] }
 0x187   : > { %2001 = vrot.lane.b32.xlu1 %v1998_v2, %s5451_s9  ;;  %v2264_v41 = vpop.permute.xlu0 %2263  ;;  %v5410_v44 = vld [vmem:[#allocation2 + $0x8] sm:$0xff]   ;;  %v6792_v2 = vrot.slane %v3618_v52, 5  ;;  %v3614_v36 = vrot.slane %v3612_v21, 5  ;;  %v3655_v48 = vrot.slane %v3653_v11, 5  ;;  %v3658_v50 = vrot.slane %v3656_v22, 6 }
 0x188   : > { %2269 = vst.msk [vmem:[#allocation2 + $0x18] sm:$0xf] %vm2157_vm15, %v2264_v41  ;;  %5327 = vmatmul.mubr.msk.bf16.vlgmr.msra.gmra.mxu0 %vm4346_vm7, %v5410_v44  ;;  %v3644_v41 = vshrl.u32 %v5176_v23, 16  ;;  %v3647_v44 = vshll.u32 %v5176_v23, 16  ;;  %v5233_v11 = vld [vmem:[%s5633_s6 + $0x178] sm:$0x3] }
 0x189   : > { %v2768_v53 = vpop.permute.xlu1 %2767  ;;  %1999 = vrot.lane.b32.xlu0 %v1995_v35, %s5451_s9  ;;  %v5121_v35 = vld [vmem:[%s5633_s6 + $0x170] sm:$0xe]  ;;  %v3625_v39 = vor.u32 %v3624_v38, %v6792_v2  ;;  %v5230_v23 = vrot.slane %v5227_v6, 9 }
 0x18a   : > { %2772 = vst.msk [vmem:[#allocation2 + $0x14] sm:$0xf] %vm2728_vm0, %v2768_v53  ;;  %v3663_v53 = vshrl.u32 %v5178_v28, 16  ;;  %v5124_v55 = vrot.slane %v5121_v35, 9  ;;  %v3646_v42 = vrot.slane %v3644_v41, 5  ;;  %v3649_v58 = vrot.slane %v3647_v44, 6 }
 0x18b   : > { %2446 = vrot.lane.b32.xlu1 %v2443_v46, %s5452_s10  ;;  %v2766_v56 = vpop.permute.xlu0 %2765  ;;  %v3626_v51 = vrot.slane %v3625_v39, 4  ;;  %v5017_v39 = vld [vmem:[%s5633_s6 + $0xf0] sm:$0x7]  ;;  %v5015_v44 = vld [vmem:[%s5633_s6 + $0xe8] sm:$0xc] }
 0x18c   : > { %2771 = vst.msk [vmem:[#allocation2 + $0x10] sm:$0xf] %vm2728_vm0, %v2766_v56  ;;  %v3630_v56 = vrot.slane %v3628_v32, 5  ;;  %v3665_v0 = vrot.slane %v3663_v53, 5  ;;  %v3183_v63 = vsel %vm5803_vm14, %v5124_v55, %v3182_v17  ;;  %v3650_v60 = vor.u32 %v3649_v58, %v3646_v42  ;;  %v6852_v32 = vld [vmem:[%s5633_s6 + $0xf4] sm:$0xf] }
 0x18d   : > { %v2780_v62 = vpop.permute.xlu1 %2779  ;;  %2444 = vrot.lane.b32.xlu0 %v2433_v40, %s5452_s10  ;;  %v3186_v40 = vsel %vm5803_vm14, %v3184_v30, %v3185_v31  ;;  %v4080_v30 = vrot.slane %v5233_v11, 6  ;;  %v5231_v31 = vld [vmem:[%s5633_s6 + $0x170] sm:$0xc]  ;;  %v2514_v55 = vshrl.u32 %v5017_v39, 16 }
 0x18e   : > { %2784 = vst.msk [vmem:[#allocation2 + $0x1c] sm:$0xf] %vm2728_vm0, %v2780_v62  ;;  %v3659_v62 = vor.u32 %v3658_v50, %v3655_v48  ;;  %v3669_v8 = vor.u32 %v3668_v45, %v3665_v0  ;;  %v3651_v17 = vrot.slane %v3650_v60, 4  ;;  %v5234_v50 = vrot.slane %v5231_v31, 10  ;;  %v5018_v31 = vld [vmem:[%s5633_s6 + $0xf0] sm:$0x8] }
 0x18f   : > { %2485 = vrot.lane.b32.xlu1 %v2482_v57, %s5452_s10  ;;  %v2778_v4 = vpop.permute.xlu0 %2777  ;;  %v3615_v57 = vor.u32 %v3614_v36, %v3611_v34 }
 0x190   : > { %2783 = vst.msk [vmem:[#allocation2 + $0x18] sm:$0xf] %vm2728_vm0, %v2778_v4  ;;  %v3631_v4 = vsel %vm5669_vm10, %v3626_v51, %v3630_v56  ;;  %v2495_v56 = vshrl.u32 %v5015_v44, 16 }
 0x191   : > { %v3061_v12 = vpop.permute.xlu1 %3060  ;;  %2483 = vrot.lane.b32.xlu0 %v2472_v1, %s5452_s10  ;;  %v5228_v1 = vld [vmem:[%s5633_s6 + $0x16c] sm:$0xf]  ;;  %v3616_v52 = vrot.slane %v3615_v57, 4  ;;  %v2498_v57 = vshll.u32 %v5015_v44, 16 }
 0x192   : > { %3065 = vst.msk [vmem:[#allocation2 + $0x14] sm:$0xf] %vm3021_vm2, %v3061_v12  ;;  %v4056_v10 = vrot.slane %v5228_v1, 5  ;;  %v6824_v12 = vld [vmem:[%s5633_s6 + $0x174] sm:$0xf] }
 0x193   : > { %2875 = vrot.lane.b32.xlu1 %v2872_v5, %s5453_s11  ;;  %v3059_v20 = vpop.permute.xlu0 %3058  ;;  %v3661_v5 = vrot.slane %v3659_v62, 4  ;;  %v3621_v16 = vsel %vm5669_vm10, %v3616_v52, %v6792_v2  ;;  %v5016_v2 = vld [vmem:[%s5633_s6 + $0xec] sm:$0xf]  ;;  %v5020_v1 = vld [vmem:[%s5633_s6 + $0xf8] sm:$0xf]  ;;  %v4964_v52 = vrot.slane %v4961_v54, 10 }
 0x194   : > { %3064 = vst.msk [vmem:[#allocation2 + $0x10] sm:$0xf] %vm3021_vm2, %v3059_v20  ;;  %v4058_v20 = vrot.slane %v4056_v10, 4  ;;  %v2504_v36 = vshrl.u32 %v5016_v2, 16  ;;  %v2507_v41 = vshll.u32 %v5016_v2, 16  ;;  %v4057_v48 = vsel %vm5803_vm14, %v5230_v23, %v4056_v10 }
 0x195   : > { %v3082_v26 = vpop.permute.xlu1 %3081  ;;  %2873 = vrot.lane.b32.xlu0 %v2869_v18, %s5453_s11  ;;  %v4077_v18 = vrot.slane %v6824_v12, 6  ;;  %v3670_v21 = vsel %vm5656_vm9, %v3661_v5, %v3669_v8  ;;  %v2516_v5 = vrot.slane %v2514_v55, 6  ;;  %v2497_v10 = vrot.slane %v2495_v56, 6 }
 0x196   : > { %3086 = vst.msk [vmem:[#allocation2 + $0x1c] sm:$0xf] %vm3021_vm2, %v3082_v26  ;;  %v2015_v26 = vrot.slane %v6837_v19, 6  ;;  %v2509_v0 = vrot.slane %v2507_v41, 7  ;;  %v2500_v12 = vrot.slane %v2498_v57, 7 }
 0x197   : > { %2896 = vrot.lane.b32.xlu1 %v2893_v59, %s5453_s11  ;;  %v3080_v46 = vpop.permute.xlu0 %3079  ;;  %v4059_v59 = vrot.slane %v5229_v15, 5  ;;  %v4079_v28 = vrot.slane %v4077_v18, 4 }
 0x198   : > { %3085 = vst.msk [vmem:[#allocation2 + $0x18] sm:$0xf] %vm3021_vm2, %v3080_v46  ;;  %v2017_v53 = vrot.slane %v2015_v26, 4 }
 0x199   : > { %v3421_v37 = vpop.permute.xlu1 %3420  ;;  %2894 = vrot.lane.b32.xlu0 %v2890_v27, %s5453_s11  ;;  %v3660_v27 = vsel %vm5656_vm9, %v3651_v17, %v3659_v62  ;;  %v4060_v35 = vsel %vm5803_vm14, %v4058_v20, %v4059_v59  ;;  %v2506_v62 = vrot.slane %v2504_v36, 6 }
 0x19a   : > { %3425 = vst.msk [vmem:[#allocation2 + $0x14] sm:$0xf] %vm3345_vm3, %v3421_v37  ;;  %v2036_v37 = vrot.slane %v6852_v32, 7  ;;  %v5072_v32 = vld [vmem:[%s5633_s6 + $0xec] sm:$0xf] }
 0x19b   : > { %3168 = vrot.lane.b32.xlu1 %v5120_v47, %s5454_s12  ;;  %v3419_v61 = vpop.permute.xlu0 %3418  ;;  %v4963_v47 = vld [vmem:[%s5633_s6 + $0xf0] sm:$0x3]  ;;  %v2510_v17 = vor.u32 %v2509_v0, %v2506_v62 }
 0x19c   : > { %3424 = vst.msk [vmem:[#allocation2 + $0x10] sm:$0xf] %vm3345_vm3, %v3419_v61  ;;  %v4081_v61 = vsel %vm5816_vm1, %v4079_v28, %v4080_v30  ;;  %v2018_v51 = vrot.slane %v4963_v47, 6  ;;  %v2038_v60 = vrot.slane %v2036_v37, 4  ;;  %v2551_v30 = vshll.u32 %v5020_v1, 16 }
 0x19d   : > { %v3454_v49 = vpop.permute.xlu1 %3453  ;;  %3166 = vrot.lane.b32.xlu0 %v5119_v29, %s5454_s12  ;;  %v2517_v29 = vshll.u32 %v5017_v39, 16  ;;  %v2512_v23 = vrot.slane %v2510_v17, 4  ;;  %v2910_v47 = vrot.slane %v5072_v32, 7 }
 0x19e   : > { %3458 = vst.msk [vmem:[#allocation2 + $0x1c] sm:$0xf] %vm3345_vm3, %v3454_v49  ;;  %v5019_v49 = vld [vmem:[%s5633_s6 + $0xf4] sm:$0xf] }
 0x19f   : > { %3189 = vrot.lane.b32.xlu1 %v3186_v40, %s5454_s12  ;;  %v3452_v3 = vpop.permute.xlu0 %3451  ;;  %v4967_v40 = vld [vmem:[%s5633_s6 + $0xf8] sm:$0x7]  ;;  %v2519_v8 = vrot.slane %v2517_v29, 7  ;;  %v2539_v6 = vshrl.u32 %v5019_v49, 16  ;;  %v2542_v39 = vshll.u32 %v5019_v49, 16  ;;  %v2912_v56 = vrot.slane %v2910_v47, 4 }
 0x1a0   : > { %3457 = vst.msk [vmem:[#allocation2 + $0x18] sm:$0xf] %vm3345_vm3, %v3452_v3  ;;  %v2039_v3 = vrot.slane %v4967_v40, 7  ;;  %v5071_v40 = vld [vmem:[%s5633_s6 + $0xe8] sm:$0x8] }
 0x1a1   : > { %v3956_v13 = vpop.permute.xlu1 %3955  ;;  %3187 = vrot.lane.b32.xlu0 %v3183_v63, %s5454_s12  ;;  %v4078_v63 = vsel %vm5816_vm1, %v5234_v50, %v4077_v18  ;;  %v2520_v11 = vor.u32 %v2519_v8, %v2516_v5  ;;  %v5073_v50 = vld [vmem:[%s5633_s6 + $0xf0] sm:$0x7]  ;;  %v5127_v5 = vld [vmem:[%s5633_s6 + $0x180] sm:$0x3] }
 0x1a2   : > { %3960 = vst.msk [vmem:[#allocation2 + $0x14] sm:$0xf] %vm3916_vm5, %v3956_v13  ;;  %v2040_v20 = vsel %vm5828_vm4, %v2038_v60, %v2039_v3  ;;  %v2913_v57 = vrot.slane %v5073_v50, 7  ;;  %v5179_v3 = vld [vmem:[%s5633_s6 + $0x178] sm:$0xc] }
 0x1a3   : > { %3634 = vrot.lane.b32.xlu1 %v3631_v4, %s5455_s13  ;;  %v3954_v38 = vpop.permute.xlu0 %3953  ;;  %v4965_v4 = vld [vmem:[%s5633_s6 + $0xf0] sm:$0x8]  ;;  %v2521_v41 = vsel %vm5688_vm11, %v2512_v23, %v2520_v11  ;;  %v5184_v23 = vld [vmem:[%s5633_s6 + $0x188] sm:$0xf] }
 0x1a4   : > { %3959 = vst.msk [vmem:[#allocation2 + $0x10] sm:$0xf] %vm3916_vm5, %v3954_v38  ;;  %v2548_v38 = vshrl.u32 %v5020_v1, 16  ;;  %v4968_v59 = vrot.slane %v4965_v4, 11  ;;  %v2914_v1 = vsel %vm5828_vm4, %v2912_v56, %v2913_v57 }
 0x1a5   : > { %v3968_v22 = vpop.permute.xlu1 %3967  ;;  %3632 = vrot.lane.b32.xlu0 %v3621_v16, %s5455_s13  ;;  %v2019_v16 = vsel %vm5816_vm1, %v2017_v53, %v2018_v51  ;;  %v5074_v51 = vrot.slane %v5071_v40, 11  ;;  %v5182_v40 = vld [vmem:[%s5633_s6 + $0x180] sm:$0x8] }
 0x1a6   : > { %3972 = vst.msk [vmem:[#allocation2 + $0x1c] sm:$0xf] %vm3916_vm5, %v3968_v22  ;;  %v2501_v22 = vor.u32 %v2500_v12, %v2497_v10  ;;  %v2550_v28 = vrot.slane %v2548_v38, 7  ;;  %v5125_v10 = vld [vmem:[%s5633_s6 + $0x178] sm:$0xc] }
 0x1a7   : > { %3673 = vrot.lane.b32.xlu1 %v3670_v21, %s5455_s13  ;;  %v3966_v34 = vpop.permute.xlu0 %3965  ;;  %v2016_v21 = vsel %vm5816_vm1, %v4964_v52, %v2015_v26  ;;  %v2037_v26 = vsel %vm5828_vm4, %v4968_v59, %v2036_v37  ;;  %v2911_v8 = vsel %vm5828_vm4, %v5074_v51, %v2910_v47 }
 0x1a8   : > { %3971 = vst.msk [vmem:[#allocation2 + $0x18] sm:$0xf] %vm3916_vm5, %v3966_v34  ;;  %v2502_v34 = vrot.slane %v2501_v22, 4 }
 0x1a9   : > { %v2301_v46 = vpop.permute.xlu1 %2300  ;;  %3671 = vrot.lane.b32.xlu0 %v3660_v27, %s5455_s13  ;;  %v2541_v27 = vrot.slane %v2539_v6, 7  ;;  %v3686_v6 = vshll.u32 %v5179_v3, 16 }
 0x1aa   : > { %2305 = vst.msk [vmem:[#allocation2 + $0x24] sm:$0xf] %vm2157_vm15, %v2301_v46  ;;  %v2553_v46 = vor.u32 %v2551_v30, %v2550_v28  ;;  %v2511_v53 = vsel %vm5688_vm11, %v2502_v34, %v2510_v17  ;;  %v3683_v17 = vshrl.u32 %v5179_v3, 16  ;;  %v5128_v28 = vrot.slane %v5125_v10, 10 }
 0x1ab   : > { %4063 = vrot.lane.b32.xlu1 %v4060_v35, %s5456_s24  ;;  %v2299_v42 = vpop.permute.xlu0 %2298  ;;  %v5411_v58 = vld [vmem:[#allocation2 + $0x10] sm:$0xff]   ;;  %v2534_v35 = vshrl.u32 %v5018_v31, 16  ;;  %v2546_v44 = vrot.slane %v2541_v27, 4  ;;  %v2544_v37 = vor.u32 %v2542_v39, %v2541_v27 }
 0x1ac   : > { %2304 = vst.msk [vmem:[#allocation2 + $0x20] sm:$0xf] %vm2157_vm15, %v2299_v42  ;;  %5330 = vmatprep.mubr.msk.bf16.mxu0 %vm4346_vm7, %v5411_v58  ;;  %v6916_v42 = vld [vmem:[%s5633_s6 + $0x17c] sm:$0xf]  ;;  %v5075_v27 = vld [vmem:[%s5633_s6 + $0xf4] sm:$0xf] }
 0x1ad   : > { %v2340_v45 = vpop.permute.xlu1 %2339  ;;  %4061 = vrot.lane.b32.xlu0 %v4057_v48, %s5456_s24  ;;  %v5021_v54 = vrot.slane %v2534_v35, 11  ;;  %v2554_v29 = vsel %vm5643_vm6, %v2546_v44, %v2553_v46  ;;  %v3203_v0 = vrot.slane %v6916_v42, 6  ;;  %v3685_v34 = vrot.slane %v3683_v17, 6 }
 0x1ae   : > { %2344 = vst.msk [vmem:[#allocation2 + $0x2c] sm:$0xf] %vm2157_vm15, %v2340_v45  ;;  %v6927_v45 = vld [vmem:[%s5633_s6 + $0x184] sm:$0xf]  ;;  %v3688_v35 = vrot.slane %v3686_v6, 7  ;;  %v3736_v46 = vshrl.u32 %v5184_v23, 16 }
 0x1af   : > { %4084 = vrot.lane.b32.xlu1 %v4081_v61, %s5456_s24  ;;  %v2338_v13 = vpop.permute.xlu0 %2337  ;;  %v5412_v15 = vld [vmem:[#allocation2 + $0x18] sm:$0xff]   ;;  %v2545_v62 = vsel %vm5643_vm6, %v5021_v54, %v2544_v37  ;;  %v3224_v12 = vrot.slane %v6927_v45, 7  ;;  %v3204_v50 = vsel %vm5816_vm1, %v5128_v28, %v3203_v0  ;;  %v3739_v42 = vshll.u32 %v5184_v23, 16 }
 0x1b0   : > { %2343 = vst.msk [vmem:[#allocation2 + $0x28] sm:$0xf] %vm2157_vm15, %v2338_v13  ;;  %5331 = vmatmul.mubr.msk.bf16.gmra.mxu0 %vm4346_vm7, %v5412_v15  ;;  %v5180_v61 = vld [vmem:[%s5633_s6 + $0x17c] sm:$0xf]  ;;  %v5131_v13 = vld [vmem:[%s5633_s6 + $0x188] sm:$0x7]  ;;  %v3689_v37 = vor.u32 %v3688_v35, %v3685_v34 }
 0x1b1   : > { %v2801_v18 = vpop.permute.xlu1 %2800  ;;  %4082 = vrot.lane.b32.xlu0 %v4078_v63, %s5456_s24  ;;  %v5181_v63 = vld [vmem:[%s5633_s6 + $0x180] sm:$0x7]  ;;  %v3692_v52 = vshrl.u32 %v5180_v61, 16  ;;  %v3695_v60 = vshll.u32 %v5180_v61, 16  ;;  %v3226_v30 = vrot.slane %v3224_v12, 4  ;;  %v3227_v31 = vrot.slane %v5131_v13, 7 }
 0x1b2   : > { %2805 = vst.msk [vmem:[#allocation2 + $0x24] sm:$0xf] %vm2728_vm0, %v2801_v18  ;;  %v3702_v15 = vshrl.u32 %v5181_v63, 16  ;;  %v5076_v18 = vld [vmem:[%s5633_s6 + $0xf8] sm:$0xf]  ;;  %v3738_v57 = vrot.slane %v3736_v46, 7 }
 0x1b3   : > { %2022 = vrot.lane.b32.xlu1 %v2019_v16, %s5451_s9  ;;  %v2799_v2 = vpop.permute.xlu0 %2798  ;;  %v3705_v16 = vshll.u32 %v5181_v63, 16  ;;  %v3694_v59 = vrot.slane %v3692_v52, 6  ;;  %v3697_v11 = vrot.slane %v3695_v60, 7  ;;  %v5235_v13 = vld [vmem:[%s5633_s6 + $0x178] sm:$0x8] }
 0x1b4   : > { %2804 = vst.msk [vmem:[#allocation2 + $0x20] sm:$0xf] %vm2728_vm0, %v2799_v2  ;;  %v5183_v2 = vld [vmem:[%s5633_s6 + $0x184] sm:$0xf]  ;;  %v3704_v32 = vrot.slane %v3702_v15, 6  ;;  %v3741_v60 = vor.u32 %v3739_v42, %v3738_v57 }
 0x1b5   : > { %v2822_v19 = vpop.permute.xlu1 %2821  ;;  %2020 = vrot.lane.b32.xlu0 %v2016_v21, %s5451_s9  ;;  %v3205_v21 = vrot.slane %v3203_v0, 4  ;;  %v3727_v44 = vshrl.u32 %v5183_v2, 16  ;;  %v3722_v0 = vshrl.u32 %v5182_v40, 16  ;;  %v3730_v45 = vshll.u32 %v5183_v2, 16  ;;  %v5022_v2 = vld [vmem:[%s5633_s6 + $0xfc] sm:$0xf] }
 0x1b6   : > { %2826 = vst.msk [vmem:[#allocation2 + $0x2c] sm:$0xf] %vm2728_vm0, %v2822_v19  ;;  %v5129_v19 = vld [vmem:[%s5633_s6 + $0x180] sm:$0x8]  ;;  %v5024_v35 = vld [vmem:[%s5633_s6 + $0x104] sm:$0x1] }
 0x1b7   : > { %2043 = vrot.lane.b32.xlu1 %v2040_v20, %s5451_s9  ;;  %v2820_v36 = vpop.permute.xlu0 %2819  ;;  %v3206_v20 = vrot.slane %v5127_v5, 6  ;;  %v3729_v56 = vrot.slane %v3727_v44, 7  ;;  %v5240_v46 = vld [vmem:[%s5633_s6 + $0x188] sm:$0xf]  ;;  %v4971_v57 = vld [vmem:[%s5633_s6 + $0x104] sm:$0xe] }
 0x1b8   : > { %2825 = vst.msk [vmem:[#allocation2 + $0x28] sm:$0xf] %vm2728_vm0, %v2820_v36 }
 0x1b9   : > { %v3094_v48 = vpop.permute.xlu1 %3093  ;;  %2041 = vrot.lane.b32.xlu0 %v2037_v26, %s5451_s9  ;;  %v3707_v26 = vrot.slane %v3705_v16, 7  ;;  %v3207_v36 = vsel %vm5816_vm1, %v3205_v21, %v3206_v20  ;;  %v3734_v52 = vrot.slane %v3729_v56, 4  ;;  %v3732_v10 = vor.u32 %v3730_v45, %v3729_v56 }
 0x1ba   : > { %3098 = vst.msk [vmem:[#allocation2 + $0x24] sm:$0xf] %vm3021_vm2, %v3094_v48  ;;  %v5132_v48 = vrot.slane %v5129_v19, 11  ;;  %v5238_v21 = vrot.slane %v5235_v13, 11  ;;  %v4973_v19 = vld [vmem:[%s5633_s6 + $0x10c] sm:$0x1] }
 0x1bb   : > { %2524 = vrot.lane.b32.xlu1 %v2521_v41, %s5452_s10  ;;  %v3092_v55 = vpop.permute.xlu0 %3091  ;;  %v3698_v41 = vor.u32 %v3697_v11, %v3694_v59  ;;  %v3708_v54 = vor.u32 %v3707_v26, %v3704_v32  ;;  %v3742_v17 = vsel %vm5643_vm6, %v3734_v52, %v3741_v60  ;;  %v6991_v59 = vld [vmem:[%s5633_s6 + $0x108] sm:$0xf]  ;;  %v2567_v26 = vshrl.u32 %v5022_v2, 16 }
 0x1bc   : > { %3097 = vst.msk [vmem:[#allocation2 + $0x20] sm:$0xf] %vm3021_vm2, %v3092_v55  ;;  %v3225_v51 = vsel %vm5828_vm4, %v5132_v48, %v3224_v12  ;;  %v2069_v32 = vrot.slane %v6991_v59, 5 }
 0x1bd   : > { %v3115_v58 = vpop.permute.xlu1 %3114  ;;  %2522 = vrot.lane.b32.xlu0 %v2511_v53, %s5452_s10  ;;  %v3228_v53 = vsel %vm5828_vm4, %v3226_v30, %v3227_v31  ;;  %v5026_v31 = vld [vmem:[%s5633_s6 + $0x108] sm:$0xf]  ;;  %v2569_v56 = vrot.slane %v2567_v26, 4  ;;  %v5077_v26 = vld [vmem:[%s5633_s6 + $0xfc] sm:$0xe] }
 0x1be   : > { %3119 = vst.msk [vmem:[#allocation2 + $0x2c] sm:$0xf] %vm3021_vm2, %v3115_v58  ;;  %v5236_v58 = vld [vmem:[%s5633_s6 + $0x17c] sm:$0xf]  ;;  %v2614_v48 = vshll.u32 %v5026_v31, 16  ;;  %v2071_v40 = vrot.slane %v2069_v32, 4 }
 0x1bf   : > { %2557 = vrot.lane.b32.xlu1 %v2554_v29, %s5452_s10  ;;  %v3113_v49 = vpop.permute.xlu0 %3112  ;;  %v3700_v29 = vrot.slane %v3698_v41, 4 }
 0x1c0   : > { %3118 = vst.msk [vmem:[#allocation2 + $0x28] sm:$0xf] %vm3021_vm2, %v3113_v49  ;;  %v4098_v49 = vrot.slane %v5236_v58, 7 }
 0x1c1   : > { %v3489_v4 = vpop.permute.xlu1 %3488  ;;  %2555 = vrot.lane.b32.xlu0 %v2545_v62, %s5452_s10  ;;  %v3690_v62 = vrot.slane %v3689_v37, 4  ;;  %v3709_v63 = vsel %vm5688_vm11, %v3700_v29, %v3708_v54  ;;  %v5027_v54 = vld [vmem:[%s5633_s6 + $0x10c] sm:$0x3]  ;;  %v5239_v37 = vld [vmem:[%s5633_s6 + $0x184] sm:$0xf]  ;;  %v2586_v29 = vshll.u32 %v5024_v35, 16 }
 0x1c2   : > { %3493 = vst.msk [vmem:[#allocation2 + $0x24] sm:$0xf] %vm3345_vm3, %v3489_v4  ;;  %v5237_v4 = vld [vmem:[%s5633_s6 + $0x180] sm:$0x7]  ;;  %v4100_v12 = vrot.slane %v4098_v49, 4  ;;  %v4099_v34 = vsel %vm5828_vm4, %v5238_v21, %v4098_v49  ;;  %v2616_v49 = vrot.slane %v2614_v48, 6 }
 0x1c3   : > { %2917 = vrot.lane.b32.xlu1 %v2914_v1, %s5453_s11  ;;  %v3487_v38 = vpop.permute.xlu0 %3486  ;;  %v3699_v5 = vsel %vm5688_vm11, %v3690_v62, %v3698_v41  ;;  %v4101_v6 = vrot.slane %v5237_v4, 7  ;;  %v2570_v41 = vshll.u32 %v5022_v2, 16  ;;  %v4969_v4 = vld [vmem:[%s5633_s6 + $0xfc] sm:$0xf]  ;;  %v5083_v48 = vld [vmem:[%s5633_s6 + $0x10c] sm:$0x3] }
 0x1c4   : > { %3492 = vst.msk [vmem:[#allocation2 + $0x20] sm:$0xf] %vm3345_vm3, %v3487_v38  ;;  %v5023_v38 = vld [vmem:[%s5633_s6 + $0x100] sm:$0xf] }
 0x1c5   : > { %v3528_v22 = vpop.permute.xlu1 %3527  ;;  %2915 = vrot.lane.b32.xlu0 %v2911_v8, %s5453_s11  ;;  %v5185_v8 = vrot.slane %v3722_v0, 11  ;;  %v2576_v11 = vshll.u32 %v5023_v38, 16  ;;  %v4102_v28 = vsel %vm5828_vm4, %v4100_v12, %v4101_v6  ;;  %v2572_v58 = vrot.slane %v2570_v41, 5  ;;  %v4970_v0 = vld [vmem:[%s5633_s6 + $0x100] sm:$0xf] }
 0x1c6   : > { %3532 = vst.msk [vmem:[#allocation2 + $0x2c] sm:$0xf] %vm3345_vm3, %v3528_v22  ;;  %v2580_v22 = vshrl.u32 %v5023_v38, 16 }
 0x1c7   : > { %2929 = vrot.lane.b32.xlu1 %v5076_v18, %s5453_s11  ;;  %v3526_v39 = vpop.permute.xlu0 %3525  ;;  %v3733_v20 = vsel %vm5643_vm6, %v5185_v8, %v3732_v10  ;;  %v2573_v8 = vor.u32 %v2572_v58, %v2569_v56 }
 0x1c8   : > { %3531 = vst.msk [vmem:[#allocation2 + $0x28] sm:$0xf] %vm3345_vm3, %v3526_v39  ;;  %v7007_v39 = vrot.slane %v2576_v11, 5 }
 0x1c9   : > { %v3989_v47 = vpop.permute.xlu1 %3988  ;;  %2927 = vrot.lane.b32.xlu0 %v5075_v27, %s5453_s11 }
 0x1ca   : > { %3993 = vst.msk [vmem:[#allocation2 + $0x24] sm:$0xf] %vm3916_vm5, %v3989_v47  ;;  %v2611_v47 = vshrl.u32 %v5026_v31, 16  ;;  %v5082_v31 = vld [vmem:[%s5633_s6 + $0x108] sm:$0xf] }
 0x1cb   : > { %3210 = vrot.lane.b32.xlu1 %v3207_v36, %s5454_s12  ;;  %v3987_v55 = vpop.permute.xlu0 %3986  ;;  %v2582_v36 = vrot.slane %v2580_v22, 4 }
 0x1cc   : > { %3992 = vst.msk [vmem:[#allocation2 + $0x20] sm:$0xf] %vm3916_vm5, %v3987_v55  ;;  %v2072_v55 = vrot.slane %v4973_v19, 5  ;;  %v2613_v45 = vrot.slane %v2611_v47, 5 }
 0x1cd   : > { %v4010_v61 = vpop.permute.xlu1 %4009  ;;  %3208 = vrot.lane.b32.xlu0 %v3204_v50, %s5454_s12  ;;  %v5025_v50 = vld [vmem:[%s5633_s6 + $0x104] sm:$0xe]  ;;  %v2583_v42 = vor.u32 %v2582_v36, %v7007_v39 }
 0x1ce   : > { %4014 = vst.msk [vmem:[#allocation2 + $0x2c] sm:$0xf] %vm3916_vm5, %v4010_v61  ;;  %v2602_v61 = vshrl.u32 %v5025_v50, 16  ;;  %v2073_v60 = vsel %vm5803_vm14, %v2071_v40, %v2072_v55  ;;  %v5186_v55 = vld [vmem:[%s5633_s6 + $0x18c] sm:$0xf] }
 0x1cf   : > { %3231 = vrot.lane.b32.xlu1 %v3228_v53, %s5454_s12  ;;  %v4008_v1 = vpop.permute.xlu0 %4007 }
 0x1d0   : > { %4013 = vst.msk [vmem:[#allocation2 + $0x28] sm:$0xf] %vm3916_vm5, %v4008_v1  ;;  %v2621_v1 = vshrl.u32 %v5027_v54, 16  ;;  %v2604_v10 = vrot.slane %v2602_v61, 5 }
 0x1d1   : > { %v2379_v3 = vpop.permute.xlu1 %2378  ;;  %3229 = vrot.lane.b32.xlu0 %v3225_v51, %s5454_s12  ;;  %v2605_v51 = vshll.u32 %v5025_v50, 16  ;;  %v5081_v50 = vld [vmem:[%s5633_s6 + $0x104] sm:$0xc] }
 0x1d2   : > { %2383 = vst.msk [vmem:[#allocation2 + $0x34] sm:$0xf] %vm2157_vm15, %v2379_v3  ;;  %v4974_v3 = vrot.slane %v4971_v57, 9  ;;  %v5084_v61 = vrot.slane %v5081_v50, 10 }
 0x1d3   : > { %3712 = vrot.lane.b32.xlu1 %v3709_v63, %s5455_s13  ;;  %v2377_v15 = vpop.permute.xlu0 %2376  ;;  %v5413_v16 = vld [vmem:[#allocation2 + $0x20] sm:$0xff]   ;;  %v2624_v63 = vshll.u32 %v5027_v54, 16  ;;  %v2607_v12 = vrot.slane %v2605_v51, 6  ;;  %v7058_v54 = vld [vmem:[%s5633_s6 + $0x198] sm:$0xf] }
 0x1d4   : > { %2382 = vst.msk [vmem:[#allocation2 + $0x30] sm:$0xf] %vm2157_vm15, %v2377_v15  ;;  %5334 = vmatprep.mubr.msk.bf16.mxu0 %vm4346_vm7, %v5413_v16  ;;  %v2584_v15 = vrot.slane %v2583_v42, 4  ;;  %v2617_v16 = vor.u32 %v2616_v49, %v2613_v45  ;;  %v2070_v21 = vsel %vm5803_vm14, %v4974_v3, %v2069_v32  ;;  %v2967_v42 = vrot.slane %v5083_v48, 6  ;;  %v5190_v51 = vld [vmem:[%s5633_s6 + $0x198] sm:$0xf] }
 0x1d5   : > { %v2412_v18 = vpop.permute.xlu1 %2411  ;;  %3710 = vrot.lane.b32.xlu0 %v3699_v5, %s5455_s13  ;;  %v2588_v5 = vrot.slane %v2586_v29, 5  ;;  %v2626_v6 = vrot.slane %v2624_v63, 6  ;;  %v2608_v59 = vor.u32 %v2607_v12, %v2604_v10  ;;  %v3755_v45 = vshrl.u32 %v5186_v55, 16  ;;  %v5189_v10 = vld [vmem:[%s5633_s6 + $0x194] sm:$0xe] }
 0x1d6   : > { %2416 = vst.msk [vmem:[#allocation2 + $0x3c] sm:$0xf] %vm2157_vm15, %v2412_v18  ;;  %v5078_v18 = vld [vmem:[%s5633_s6 + $0x100] sm:$0xf]  ;;  %v2619_v2 = vrot.slane %v2617_v16, 4 }
 0x1d7   : > { %3745 = vrot.lane.b32.xlu1 %v3742_v17, %s5455_s13  ;;  %v2410_v23 = vpop.permute.xlu0 %2409  ;;  %v5414_v27 = vld [vmem:[#allocation2 + $0x28] sm:$0xff]   ;;  %v2623_v17 = vrot.slane %v2621_v1, 5  ;;  %v2589_v22 = vsel %vm5669_vm10, %v2584_v15, %v2588_v5  ;;  %v2609_v32 = vrot.slane %v2608_v59, 4  ;;  %v5188_v1 = vld [vmem:[%s5633_s6 + $0x194] sm:$0x1]  ;;  %v3799_v5 = vshrl.u32 %v5190_v51, 16 }
 0x1d8   : > { %2415 = vst.msk [vmem:[#allocation2 + $0x38] sm:$0xf] %vm2157_vm15, %v2410_v23  ;;  %5335 = vmatmul.mubr.msk.bf16.gmra.mxu0 %vm4346_vm7, %v5414_v27  ;;  %v2943_v27 = vrot.slane %v5078_v18, 5  ;;  %v5191_v15 = vld [vmem:[%s5633_s6 + $0x19c] sm:$0x3]  ;;  %v3790_v59 = vshrl.u32 %v5189_v10, 16 }
 0x1d9   : > { %v2843_v30 = vpop.permute.xlu1 %2842  ;;  %3743 = vrot.lane.b32.xlu0 %v3733_v20, %s5455_s13  ;;  %v2574_v20 = vrot.slane %v2573_v8, 4  ;;  %v2627_v23 = vor.u32 %v2626_v6, %v2623_v17  ;;  %v3802_v8 = vshll.u32 %v5190_v51, 16  ;;  %v3774_v6 = vshll.u32 %v5188_v1, 16  ;;  %v5135_v18 = vld [vmem:[%s5633_s6 + $0x194] sm:$0xe] }
 0x1da   : > { %2847 = vst.msk [vmem:[#allocation2 + $0x34] sm:$0xf] %vm2728_vm0, %v2843_v30  ;;  %v5079_v30 = vld [vmem:[%s5633_s6 + $0x104] sm:$0x1]  ;;  %v2945_v36 = vrot.slane %v2943_v27, 4 }
 0x1db   : > { %4105 = vrot.lane.b32.xlu1 %v4102_v28, %s5456_s24  ;;  %v2841_v44 = vpop.permute.xlu0 %2840  ;;  %v2579_v19 = vsel %vm5669_vm10, %v2574_v20, %v7007_v39  ;;  %v2628_v35 = vsel %vm5656_vm9, %v2619_v2, %v2627_v23  ;;  %v2946_v41 = vrot.slane %v5079_v30, 5  ;;  %v5080_v39 = vrot.slane %v5077_v26, 9  ;;  %v5134_v2 = vld [vmem:[%s5633_s6 + $0x190] sm:$0xf]  ;;  %v5133_v26 = vld [vmem:[%s5633_s6 + $0x18c] sm:$0xf] }
 0x1dc   : > { %2846 = vst.msk [vmem:[#allocation2 + $0x30] sm:$0xf] %vm2728_vm0, %v2841_v44  ;;  %v2964_v44 = vrot.slane %v5082_v31, 6  ;;  %v3801_v23 = vrot.slane %v3799_v5, 5  ;;  %v3812_v30 = vshll.u32 %v5191_v15, 16 }
 0x1dd   : > { %v2855_v53 = vpop.permute.xlu1 %2854  ;;  %4103 = vrot.lane.b32.xlu0 %v4099_v34, %s5456_s24  ;;  %v2947_v56 = vsel %vm5803_vm14, %v2945_v36, %v2946_v41  ;;  %v2944_v49 = vsel %vm5803_vm14, %v5080_v39, %v2943_v27  ;;  %v3804_v27 = vrot.slane %v3802_v8, 6  ;;  %v3792_v36 = vrot.slane %v3790_v59, 5 }
 0x1de   : > { %2859 = vst.msk [vmem:[#allocation2 + $0x3c] sm:$0xf] %vm2728_vm0, %v2855_v53  ;;  %v2618_v53 = vsel %vm5656_vm9, %v2609_v32, %v2617_v16  ;;  %v2966_v57 = vrot.slane %v2964_v44, 4  ;;  %v5138_v32 = vrot.slane %v5135_v18, 9  ;;  %v3814_v50 = vrot.slane %v3812_v30, 6 }
 0x1df   : > { %4117 = vrot.lane.b32.xlu1 %v5240_v46, %s5456_s24  ;;  %v2853_v62 = vpop.permute.xlu0 %2852  ;;  %v5187_v46 = vld [vmem:[%s5633_s6 + $0x190] sm:$0xf]  ;;  %v3805_v48 = vor.u32 %v3804_v27, %v3801_v23  ;;  %v4975_v30 = vld [vmem:[%s5633_s6 + $0x10c] sm:$0xc] }
 0x1e0   : > { %2858 = vst.msk [vmem:[#allocation2 + $0x38] sm:$0xf] %vm2728_vm0, %v2853_v62  ;;  %v3768_v40 = vshrl.u32 %v5187_v46, 16  ;;  %v5137_v62 = vld [vmem:[%s5633_s6 + $0x19c] sm:$0x1] }
 0x1e1   : > { %v3136_v52 = vpop.permute.xlu1 %3135  ;;  %4115 = vrot.lane.b32.xlu0 %v5239_v37, %s5456_s24  ;;  %v3764_v37 = vshll.u32 %v5187_v46, 16  ;;  %v3260_v17 = vrot.slane %v5137_v62, 5 }
 0x1e2   : > { %3140 = vst.msk [vmem:[#allocation2 + $0x34] sm:$0xf] %vm3021_vm2, %v3136_v52  ;;  %v3770_v52 = vrot.slane %v3768_v40, 4 }
 0x1e3   : > { %2055 = vrot.lane.b32.xlu1 %v4970_v0, %s5451_s9  ;;  %v3134_v13 = vpop.permute.xlu0 %3133  ;;  %v3257_v0 = vrot.slane %v7058_v54, 5  ;;  %v7073_v63 = vrot.slane %v3764_v37, 5  ;;  %v5242_v54 = vld [vmem:[%s5633_s6 + $0x190] sm:$0xf] }
 0x1e4   : > { %3139 = vst.msk [vmem:[#allocation2 + $0x30] sm:$0xf] %vm3021_vm2, %v3134_v13  ;;  %v2965_v13 = vsel %vm5816_vm1, %v5084_v61, %v2964_v44  ;;  %v4131_v51 = vrot.slane %v5242_v54, 5 }
 0x1e5   : > { %v3157_v38 = vpop.permute.xlu1 %3156  ;;  %2053 = vrot.lane.b32.xlu0 %v4969_v4, %s5451_s9  ;;  %v2968_v4 = vsel %vm5816_vm1, %v2966_v57, %v2967_v42  ;;  %v3259_v16 = vrot.slane %v3257_v0, 4  ;;  %v3258_v37 = vsel %vm5803_vm14, %v5138_v32, %v3257_v0 }
 0x1e6   : > { %3161 = vst.msk [vmem:[#allocation2 + $0x3c] sm:$0xf] %vm3021_vm2, %v3157_v38  ;;  %v3757_v38 = vrot.slane %v3755_v45, 4  ;;  %v5243_v45 = vld [vmem:[%s5633_s6 + $0x194] sm:$0x1]  ;;  %v4133_v5 = vrot.slane %v4131_v51, 4 }
 0x1e7   : > { %2076 = vrot.lane.b32.xlu1 %v2073_v60, %s5451_s9  ;;  %v3155_v11 = vpop.permute.xlu0 %3154  ;;  %v3758_v60 = vshll.u32 %v5186_v55, 16  ;;  %v4134_v8 = vrot.slane %v5243_v45, 5 }
 0x1e8   : > { %3160 = vst.msk [vmem:[#allocation2 + $0x38] sm:$0xf] %vm3021_vm2, %v3155_v11  ;;  %v3793_v11 = vshll.u32 %v5189_v10, 16  ;;  %v7123_v10 = vld [vmem:[%s5633_s6 + $0x110] sm:$0xf] }
 0x1e9   : > { %v3567_v28 = vpop.permute.xlu1 %3566  ;;  %2074 = vrot.lane.b32.xlu0 %v2070_v21, %s5451_s9  ;;  %v3771_v21 = vor.u32 %v3770_v52, %v7073_v63  ;;  %v3760_v20 = vrot.slane %v3758_v60, 5  ;;  %v5241_v52 = vld [vmem:[%s5633_s6 + $0x18c] sm:$0xe]  ;;  %v5247_v60 = vld [vmem:[%s5633_s6 + $0x19c] sm:$0x3] }
 0x1ea   : > { %3571 = vst.msk [vmem:[#allocation2 + $0x34] sm:$0xf] %vm3345_vm3, %v3567_v28  ;;  %v3809_v28 = vshrl.u32 %v5191_v15, 16  ;;  %v3795_v41 = vrot.slane %v3793_v11, 6  ;;  %v5244_v43 = vrot.slane %v5241_v52, 9  ;;  %v4155_v15 = vrot.slane %v5247_v60, 6 }
 0x1eb   : > { %2592 = vrot.lane.b32.xlu1 %v2589_v22, %s5452_s10  ;;  %v3565_v34 = vpop.permute.xlu0 %3564 }
 0x1ec   : > { %3570 = vst.msk [vmem:[#allocation2 + $0x30] sm:$0xf] %vm3345_vm3, %v3565_v34  ;;  %v3776_v34 = vrot.slane %v3774_v6, 5  ;;  %v3811_v39 = vrot.slane %v3809_v28, 5  ;;  %v3796_v55 = vor.u32 %v3795_v41, %v3792_v36  ;;  %v2090_v6 = vrot.slane %v7123_v10, 6 }
 0x1ed   : > { %v3600_v47 = vpop.permute.xlu1 %3599  ;;  %2590 = vrot.lane.b32.xlu0 %v2579_v19, %s5452_s10  ;;  %v3261_v19 = vsel %vm5803_vm14, %v3259_v16, %v3260_v17  ;;  %v5245_v17 = vld [vmem:[%s5633_s6 + $0x194] sm:$0xc]  ;;  %v4132_v23 = vsel %vm5803_vm14, %v5244_v43, %v4131_v51  ;;  %v5086_v43 = vld [vmem:[%s5633_s6 + $0x110] sm:$0xf] }
 0x1ee   : > { %3604 = vst.msk [vmem:[#allocation2 + $0x3c] sm:$0xf] %vm3345_vm3, %v3600_v47  ;;  %v3772_v47 = vrot.slane %v3771_v21, 4  ;;  %v3815_v61 = vor.u32 %v3814_v50, %v3811_v39  ;;  %v3797_v1 = vrot.slane %v3796_v55, 4  ;;  %v4135_v21 = vsel %vm5803_vm14, %v4133_v5, %v4134_v8  ;;  %v5033_v39 = vld [vmem:[%s5633_s6 + $0x11c] sm:$0xf] }
 0x1ef   : > { %2631 = vrot.lane.b32.xlu1 %v2628_v35, %s5452_s10  ;;  %v3598_v29 = vpop.permute.xlu0 %3597  ;;  %v3761_v35 = vor.u32 %v3760_v20, %v3757_v38  ;;  %v7135_v38 = vld [vmem:[%s5633_s6 + $0x118] sm:$0xf]  ;;  %v5030_v20 = vld [vmem:[%s5633_s6 + $0x114] sm:$0x7]  ;;  %v5248_v28 = vrot.slane %v5245_v17, 10  ;;  %v2092_v41 = vrot.slane %v2090_v6, 4 }
 0x1f0   : > { %3603 = vst.msk [vmem:[#allocation2 + $0x38] sm:$0xf] %vm3345_vm3, %v3598_v29  ;;  %v7104_v29 = vld [vmem:[%s5633_s6 + $0x198] sm:$0xf]  ;;  %v3777_v42 = vsel %vm5669_vm10, %v3772_v47, %v3776_v34  ;;  %v3806_v16 = vsel %vm5656_vm9, %v3797_v1, %v3805_v48  ;;  %v2660_v32 = vshrl.u32 %v5030_v20, 16  ;;  %v2697_v10 = vshll.u32 %v5033_v39, 16 }
 0x1f1   : > { %v4031_v58 = vpop.permute.xlu1 %4030  ;;  %2629 = vrot.lane.b32.xlu0 %v2618_v53, %s5452_s10  ;;  %v3762_v40 = vrot.slane %v3761_v35, 4  ;;  %v4152_v0 = vrot.slane %v7104_v29, 6 }
 0x1f2   : > { %4035 = vst.msk [vmem:[#allocation2 + $0x34] sm:$0xf] %vm3916_vm5, %v4031_v58  ;;  %v3807_v58 = vrot.slane %v3805_v48, 4  ;;  %v5032_v48 = vld [vmem:[%s5633_s6 + $0x118] sm:$0xf] }
 0x1f3   : > { %2950 = vrot.lane.b32.xlu1 %v2947_v56, %s5453_s11  ;;  %v4029_v3 = vpop.permute.xlu0 %4028  ;;  %v4153_v50 = vsel %vm5816_vm1, %v5248_v28, %v4152_v0  ;;  %v2685_v51 = vshrl.u32 %v5032_v48, 16  ;;  %v2688_v17 = vshll.u32 %v5032_v48, 16 }
 0x1f4   : > { %4034 = vst.msk [vmem:[#allocation2 + $0x30] sm:$0xf] %vm3916_vm5, %v4029_v3 }
 0x1f5   : > { %v4043_v12 = vpop.permute.xlu1 %4042  ;;  %2948 = vrot.lane.b32.xlu0 %v2944_v49, %s5453_s11  ;;  %v3767_v49 = vsel %vm5669_vm10, %v3762_v40, %v7073_v63  ;;  %v4154_v63 = vrot.slane %v4152_v0, 4  ;;  %v2662_v40 = vrot.slane %v2660_v32, 6  ;;  %v2687_v5 = vrot.slane %v2685_v51, 7 }
 0x1f6   : > { %4047 = vst.msk [vmem:[#allocation2 + $0x3c] sm:$0xf] %vm3916_vm5, %v4043_v12 }
 0x1f7   : > { %2971 = vrot.lane.b32.xlu1 %v2968_v4, %s5453_s11  ;;  %v4041_v22 = vpop.permute.xlu0 %4040  ;;  %v3816_v4 = vsel %vm5656_vm9, %v3807_v58, %v3815_v61  ;;  %v4156_v27 = vsel %vm5816_vm1, %v4154_v63, %v4155_v15  ;;  %v4979_v58 = vld [vmem:[%s5633_s6 + $0x114] sm:$0x8]  ;;  %v2690_v25 = vor.u32 %v2688_v17, %v2687_v5 }
 0x1f8   : > { %4046 = vst.msk [vmem:[#allocation2 + $0x38] sm:$0xf] %vm3916_vm5, %v4041_v22  ;;  %v5028_v22 = vld [vmem:[%s5633_s6 + $0x10c] sm:$0xc]  ;;  %v4982_v1 = vrot.slane %v4979_v58, 11 }
 0x1f9   : > { %v2002_v31 = vpop.permute.xlu1 %2001  ;;  %2969 = vrot.lane.b32.xlu0 %v2965_v13, %s5453_s11  ;;  %v5029_v13 = vld [vmem:[%s5633_s6 + $0x110] sm:$0xf]  ;;  %v2641_v34 = vshrl.u32 %v5028_v22, 16  ;;  %v2644_v35 = vshll.u32 %v5028_v22, 16 }
 0x1fa   : > { %2006 = vst.msk [vmem:[#allocation2 + $0x4c] sm:$0xf] %vm1833_vm13, %v2002_v31  ;;  %v2650_v59 = vshrl.u32 %v5029_v13, 16  ;;  %v2653_v11 = vshll.u32 %v5029_v13, 16  ;;  %v2111_v31 = vrot.slane %v7135_v38, 7 }
 0x1fb   : > { %3243 = vrot.lane.b32.xlu1 %v5134_v2, %s5454_s12  ;;  %v2000_v44 = vpop.permute.xlu0 %1999  ;;  %v5415_v46 = vld [vmem:[#allocation2 + $0x30] sm:$0xff]   ;;  %v2643_v29 = vrot.slane %v2641_v34, 6 }
 0x1fc   : > { %2005 = vst.msk [vmem:[#allocation2 + $0x48] sm:$0xf] %vm1833_vm13, %v2000_v44  ;;  %5338 = vmatprep.mubr.msk.bf16.mxu0 %vm4346_vm7, %v5415_v46  ;;  %v2652_v44 = vrot.slane %v2650_v59, 6  ;;  %v2655_v46 = vrot.slane %v2653_v11, 7  ;;  %v2113_v54 = vrot.slane %v2111_v31, 4  ;;  %v2112_v63 = vsel %vm5828_vm4, %v4982_v1, %v2111_v31 }
 0x1fd   : > { %v2447_v53 = vpop.permute.xlu1 %2446  ;;  %3241 = vrot.lane.b32.xlu0 %v5133_v26, %s5454_s12  ;;  %v2663_v26 = vshll.u32 %v5030_v20, 16  ;;  %v2985_v20 = vrot.slane %v5086_v43, 7  ;;  %v5087_v11 = vld [vmem:[%s5633_s6 + $0x114] sm:$0x7] }
 0x1fe   : > { %2451 = vst.msk [vmem:[#allocation2 + $0x44] sm:$0xf] %vm2157_vm15, %v2447_v53  ;;  %v4978_v53 = vrot.slane %v4975_v30, 10  ;;  %v2656_v61 = vor.u32 %v2655_v46, %v2652_v44  ;;  %v2988_v31 = vrot.slane %v5087_v11, 7 }
 0x1ff   : > { %3264 = vrot.lane.b32.xlu1 %v3261_v19, %s5454_s12  ;;  %v2445_v56 = vpop.permute.xlu0 %2444  ;;  %v5416_v57 = vld [vmem:[#allocation2 + $0x38] sm:$0xff]   ;;  %v2665_v55 = vrot.slane %v2663_v26, 7  ;;  %v2987_v30 = vrot.slane %v2985_v20, 4  ;;  %v5193_v26 = vld [vmem:[%s5633_s6 + $0x1a0] sm:$0xf] }
 0x200   : > { %2450 = vst.msk [vmem:[#allocation2 + $0x40] sm:$0xf] %vm2157_vm15, %v2445_v56  ;;  %5339 = vmatmul.mubr.msk.bf16.gmra.mxu0 %vm4346_vm7, %v5416_v57  ;;  %v4981_v19 = vld [vmem:[%s5633_s6 + $0x11c] sm:$0x7]  ;;  %v2646_v56 = vrot.slane %v2644_v35, 7  ;;  %v2091_v0 = vsel %vm5816_vm1, %v4978_v53, %v2090_v6  ;;  %v3841_v48 = vshll.u32 %v5193_v26, 16 }
 0x201   : > { %v2486_v62 = vpop.permute.xlu1 %2485  ;;  %3262 = vrot.lane.b32.xlu0 %v3258_v37, %s5454_s12  ;;  %v2114_v37 = vrot.slane %v4981_v19, 7  ;;  %v2666_v52 = vor.u32 %v2665_v55, %v2662_v40  ;;  %v5085_v19 = vld [vmem:[%s5633_s6 + $0x10c] sm:$0x8]  ;;  %v2989_v46 = vsel %vm5828_vm4, %v2987_v30, %v2988_v31  ;;  %v5194_v53 = vld [vmem:[%s5633_s6 + $0x1a4] sm:$0x7] }
 0x202   : > { %2490 = vst.msk [vmem:[#allocation2 + $0x4c] sm:$0xf] %vm2157_vm15, %v2486_v62  ;;  %v2694_v62 = vshrl.u32 %v5033_v39, 16  ;;  %v2647_v60 = vor.u32 %v2646_v56, %v2643_v29  ;;  %v5192_v39 = vld [vmem:[%s5633_s6 + $0x19c] sm:$0xc] }
 0x203   : > { %3780 = vrot.lane.b32.xlu1 %v3777_v42, %s5455_s13  ;;  %v2484_v3 = vpop.permute.xlu0 %2483  ;;  %v2094_v42 = vsel %vm5816_vm1, %v2092_v41, %v2093_v14  ;;  %v5141_v41 = vld [vmem:[%s5633_s6 + $0x1a4] sm:$0x3]  ;;  %v7205_v14 = vld [vmem:[%s5633_s6 + $0x1a8] sm:$0xf]  ;;  %v5139_v56 = vld [vmem:[%s5633_s6 + $0x19c] sm:$0xc] }
 0x204   : > { %2489 = vst.msk [vmem:[#allocation2 + $0x48] sm:$0xf] %vm2157_vm15, %v2484_v3  ;;  %v2696_v8 = vrot.slane %v2694_v62, 7  ;;  %v2648_v15 = vrot.slane %v2647_v60, 4  ;;  %v3281_v40 = vrot.slane %v5141_v41, 6  ;;  %v3299_v55 = vrot.slane %v7205_v14, 7 }
 0x205   : > { %v2876_v12 = vpop.permute.xlu1 %2875  ;;  %3778 = vrot.lane.b32.xlu0 %v3767_v49, %s5455_s13  ;;  %v2115_v49 = vsel %vm5828_vm4, %v2113_v54, %v2114_v37  ;;  %v5090_v54 = vld [vmem:[%s5633_s6 + $0x11c] sm:$0xf]  ;;  %v3832_v58 = vshll.u32 %v5192_v39, 16  ;;  %v3843_v62 = vrot.slane %v3841_v48, 7  ;;  %v5089_v60 = vld [vmem:[%s5633_s6 + $0x118] sm:$0xf] }
 0x206   : > { %2880 = vst.msk [vmem:[#allocation2 + $0x44] sm:$0xf] %vm2728_vm0, %v2876_v12  ;;  %v5031_v12 = vld [vmem:[%s5633_s6 + $0x114] sm:$0x8]  ;;  %v2657_v22 = vsel %vm5688_vm11, %v2648_v15, %v2656_v61  ;;  %v5251_v48 = vld [vmem:[%s5633_s6 + $0x1a4] sm:$0x7] }
 0x207   : > { %3819 = vrot.lane.b32.xlu1 %v3816_v4, %s5455_s13  ;;  %v2874_v18 = vpop.permute.xlu0 %2873  ;;  %v2658_v4 = vrot.slane %v2656_v61, 4 }
 0x208   : > { %2879 = vst.msk [vmem:[#allocation2 + $0x40] sm:$0xf] %vm2728_vm0, %v2874_v18  ;;  %v2692_v18 = vrot.slane %v2687_v5, 4  ;;  %v3301_v5 = vrot.slane %v3299_v55, 4 }
 0x209   : > { %v2897_v2 = vpop.permute.xlu1 %2896  ;;  %3817 = vrot.lane.b32.xlu0 %v3806_v16, %s5455_s13  ;;  %v2680_v16 = vshrl.u32 %v5031_v12, 16  ;;  %v2667_v38 = vsel %vm5688_vm11, %v2658_v4, %v2666_v52  ;;  %v5197_v52 = vld [vmem:[%s5633_s6 + $0x1ac] sm:$0xf]  ;;  %v5142_v4 = vrot.slane %v5139_v56, 10 }
 0x20a   : > { %2901 = vst.msk [vmem:[#allocation2 + $0x4c] sm:$0xf] %vm2728_vm0, %v2897_v2  ;;  %v3885_v31 = vshll.u32 %v5197_v52, 16 }
 0x20b   : > { %4138 = vrot.lane.b32.xlu1 %v4135_v21, %s5456_s24  ;;  %v2895_v36 = vpop.permute.xlu0 %2894  ;;  %v2699_v21 = vor.u32 %v2697_v10, %v2696_v8  ;;  %v5034_v2 = vrot.slane %v2680_v16, 11  ;;  %v5143_v10 = vld [vmem:[%s5633_s6 + $0x1a4] sm:$0x8] }
 0x20c   : > { %2900 = vst.msk [vmem:[#allocation2 + $0x48] sm:$0xf] %vm2728_vm0, %v2895_v36  ;;  %v5088_v36 = vrot.slane %v5085_v19, 11  ;;  %v5250_v19 = vld [vmem:[%s5633_s6 + $0x1a0] sm:$0xf] }
 0x20d   : > { %v3169_v47 = vpop.permute.xlu1 %3168  ;;  %4136 = vrot.lane.b32.xlu0 %v4132_v23, %s5456_s24  ;;  %v7190_v23 = vld [vmem:[%s5633_s6 + $0x1a0] sm:$0xf]  ;;  %v2700_v28 = vsel %vm5643_vm6, %v2692_v18, %v2699_v21  ;;  %v2691_v35 = vsel %vm5643_vm6, %v5034_v2, %v2690_v25  ;;  %v5195_v2 = vld [vmem:[%s5633_s6 + $0x1a4] sm:$0x8] }
 0x20e   : > { %3173 = vst.msk [vmem:[#allocation2 + $0x44] sm:$0xf] %vm3021_vm2, %v3169_v47  ;;  %v3278_v34 = vrot.slane %v7190_v23, 6  ;;  %v3838_v47 = vshrl.u32 %v5193_v26, 16  ;;  %v2986_v29 = vsel %vm5828_vm4, %v5088_v36, %v2985_v20 }
 0x20f   : > { %4159 = vrot.lane.b32.xlu1 %v4156_v27, %s5456_s24  ;;  %v3167_v57 = vpop.permute.xlu0 %3166 }
 0x210   : > { %3172 = vst.msk [vmem:[#allocation2 + $0x40] sm:$0xf] %vm3021_vm2, %v3167_v57  ;;  %v3280_v37 = vrot.slane %v3278_v34, 4  ;;  %v5145_v57 = vld [vmem:[%s5633_s6 + $0x1ac] sm:$0x7]  ;;  %v3840_v51 = vrot.slane %v3838_v47, 6  ;;  %v3279_v21 = vsel %vm5816_vm1, %v5142_v4, %v3278_v34 }
 0x211   : > { %v3190_v45 = vpop.permute.xlu1 %3189  ;;  %4157 = vrot.lane.b32.xlu0 %v4153_v50, %s5456_s24  ;;  %v3302_v8 = vrot.slane %v5145_v57, 7  ;;  %v3868_v34 = vshrl.u32 %v5195_v2, 16 }
 0x212   : > { %3194 = vst.msk [vmem:[#allocation2 + $0x4c] sm:$0xf] %vm3021_vm2, %v3190_v45  ;;  %v3848_v45 = vshrl.u32 %v5194_v53, 16  ;;  %v3844_v16 = vor.u32 %v3843_v62, %v3840_v51  ;;  %v5254_v62 = vld [vmem:[%s5633_s6 + $0x1ac] sm:$0xf] }
 0x213   : > { %2097 = vrot.lane.b32.xlu1 %v2094_v42, %s5451_s9  ;;  %v3188_v3 = vpop.permute.xlu0 %3187  ;;  %v3829_v42 = vshrl.u32 %v5192_v39, 16  ;;  %v3303_v20 = vsel %vm5828_vm4, %v3301_v5, %v3302_v8 }
 0x214   : > { %3193 = vst.msk [vmem:[#allocation2 + $0x48] sm:$0xf] %vm3021_vm2, %v3188_v3  ;;  %v3282_v3 = vsel %vm5816_vm1, %v3280_v37, %v3281_v40  ;;  %v3850_v17 = vrot.slane %v3848_v45, 6 }
 0x215   : > { %v3635_v13 = vpop.permute.xlu1 %3634  ;;  %2095 = vrot.lane.b32.xlu0 %v2091_v0, %s5451_s9  ;;  %v3851_v0 = vshll.u32 %v5194_v53, 16  ;;  %v3831_v12 = vrot.slane %v3829_v42, 6 }
 0x216   : > { %3639 = vst.msk [vmem:[#allocation2 + $0x44] sm:$0xf] %vm3345_vm3, %v3635_v13  ;;  %v3834_v13 = vrot.slane %v3832_v58, 7 }
 0x217   : > { %2118 = vrot.lane.b32.xlu1 %v2115_v49, %s5451_s9  ;;  %v3633_v6 = vpop.permute.xlu0 %3632  ;;  %v7222_v49 = vld [vmem:[%s5633_s6 + $0x1a8] sm:$0xf] }
 0x218   : > { %3638 = vst.msk [vmem:[#allocation2 + $0x40] sm:$0xf] %vm3345_vm3, %v3633_v6  ;;  %v3873_v43 = vshrl.u32 %v7222_v49, 16  ;;  %v3853_v6 = vrot.slane %v3851_v0, 7  ;;  %v3835_v11 = vor.u32 %v3834_v13, %v3831_v12  ;;  %v5253_v0 = vld [vmem:[%s5633_s6 + $0x1a8] sm:$0xf] }
 0x219   : > { %v3674_v59 = vpop.permute.xlu1 %3673  ;;  %2116 = vrot.lane.b32.xlu0 %v2112_v63, %s5451_s9 }
 0x21a   : > { %3678 = vst.msk [vmem:[#allocation2 + $0x4c] sm:$0xf] %vm3345_vm3, %v3674_v59  ;;  %v5146_v59 = vrot.slane %v5143_v10, 11  ;;  %v3836_v26 = vrot.slane %v3835_v11, 4 }
 0x21b   : > { %2670 = vrot.lane.b32.xlu1 %v2667_v38, %s5452_s10  ;;  %v3672_v27 = vpop.permute.xlu0 %3671  ;;  %v3882_v38 = vshrl.u32 %v5197_v52, 16 }
 0x21c   : > { %3677 = vst.msk [vmem:[#allocation2 + $0x48] sm:$0xf] %vm3345_vm3, %v3672_v27  ;;  %v3846_v27 = vrot.slane %v3844_v16, 4  ;;  %v3845_v39 = vsel %vm5688_vm11, %v3836_v26, %v3844_v16 }
 0x21d   : > { %v4064_v32 = vpop.permute.xlu1 %4063  ;;  %2668 = vrot.lane.b32.xlu0 %v2657_v22, %s5452_s10  ;;  %v3875_v22 = vrot.slane %v3873_v43, 7  ;;  %v3884_v30 = vrot.slane %v3882_v38, 7 }
 0x21e   : > { %4068 = vst.msk [vmem:[#allocation2 + $0x44] sm:$0xf] %vm3916_vm5, %v4064_v32  ;;  %v3300_v32 = vsel %vm5828_vm4, %v5146_v59, %v3299_v55  ;;  %v4176_v55 = vrot.slane %v5251_v48, 7 }
 0x21f   : > { %2703 = vrot.lane.b32.xlu1 %v2700_v28, %s5452_s10  ;;  %v4062_v44 = vpop.permute.xlu0 %4061  ;;  %v3854_v28 = vor.u32 %v3853_v6, %v3850_v17  ;;  %v3880_v14 = vrot.slane %v3875_v22, 4 }
 0x220   : > { %4067 = vst.msk [vmem:[#allocation2 + $0x40] sm:$0xf] %vm3916_vm5, %v4062_v44  ;;  %v3887_v44 = vor.u32 %v3885_v31, %v3884_v30 }
 0x221   : > { %v4085_v50 = vpop.permute.xlu1 %4084  ;;  %2701 = vrot.lane.b32.xlu0 %v2691_v35, %s5452_s10  ;;  %v3876_v35 = vshll.u32 %v7222_v49, 16  ;;  %v3855_v41 = vsel %vm5688_vm11, %v3846_v27, %v3854_v28 }
 0x222   : > { %4089 = vst.msk [vmem:[#allocation2 + $0x4c] sm:$0xf] %vm3916_vm5, %v4085_v50  ;;  %v5198_v50 = vrot.slane %v3868_v34, 11  ;;  %v3888_v37 = vsel %vm5643_vm6, %v3880_v14, %v3887_v44 }
 0x223   : > { %2992 = vrot.lane.b32.xlu1 %v2989_v46, %s5453_s11  ;;  %v4083_v61 = vpop.permute.xlu0 %4082  ;;  %v4173_v46 = vrot.slane %v5250_v19, 7  ;;  %v3878_v53 = vor.u32 %v3876_v35, %v3875_v22 }
 0x224   : > { %4088 = vst.msk [vmem:[#allocation2 + $0x48] sm:$0xf] %vm3916_vm5, %v4083_v61 }
 0x225   : > { %v2023_v1 = vpop.permute.xlu1 %2022  ;;  %2990 = vrot.lane.b32.xlu0 %v2986_v29, %s5453_s11  ;;  %v4175_v40 = vrot.slane %v4173_v46, 4  ;;  %v5249_v29 = vld [vmem:[%s5633_s6 + $0x19c] sm:$0x8]  ;;  %v3879_v9 = vsel %vm5643_vm6, %v5198_v50, %v3878_v53  ;;  %s7294_s6 = scalar_lea.vmem %s7507_s2, %s4896_s30  ;;  %vm4560_vm6 = vcmask 64512  }
 0x226   : > { %2027 = vst.msk [vmem:[#allocation2 + $0x54] sm:$0xf] %vm1833_vm13, %v2023_v1  ;;  %v5252_v57 = vrot.slane %v5249_v29, 11 }
 0x227   : > { %3004 = vrot.lane.b32.xlu1 %v5090_v54, %s5453_s11  ;;  %v2021_v63 = vpop.permute.xlu0 %2020  ;;  %v5417_v15 = vld [vmem:[#allocation2 + $0x40] sm:$0xff]   ;;  %v4177_v58 = vsel %vm5828_vm4, %v4175_v40, %v4176_v55 }
 0x228   : > { %2026 = vst.msk [vmem:[#allocation2 + $0x50] sm:$0xf] %vm1833_vm13, %v2021_v63  ;;  %5342 = vmatprep.mubr.msk.bf16.mxu1 %vm4346_vm7, %v5417_v15  ;;  %v4174_v7 = vsel %vm5828_vm4, %v5252_v57, %v4173_v46 }
 0x229   : > { %v2044_v18 = vpop.permute.xlu1 %2043  ;;  %3002 = vrot.lane.b32.xlu0 %v5089_v60, %s5453_s11  ;;  %s688_s11 = scalar_lea.vmem %s7508_s3, %s4897_s8 }
 0x22a   : > { %2048 = vst.msk [vmem:[#allocation2 + $0x5c] sm:$0xf] %vm1833_vm13, %v2044_v18 }
 0x22b   : > { %3285 = vrot.lane.b32.xlu1 %v3282_v3, %s5454_s12  ;;  %v2042_v25 = vpop.permute.xlu0 %2041  ;;  %v5418_v23 = vld [vmem:[#allocation2 + $0x48] sm:$0xff]  }
 0x22c   : > { %2047 = vst.msk [vmem:[#allocation2 + $0x58] sm:$0xf] %vm1833_vm13, %v2042_v25  ;;  %5343 = vmatmul.mubr.msk.bf16.vlgmr.msra.gmra.mxu1 %vm4346_vm7, %v5418_v23 }
 0x22d   : > { %v2525_v24 = vpop.permute.xlu1 %2524  ;;  %3283 = vrot.lane.b32.xlu0 %v3279_v21, %s5454_s12 }
 0x22e   : > { %2529 = vst.msk [vmem:[#allocation2 + $0x54] sm:$0xf] %vm2157_vm15, %v2525_v24 }
 0x22f   : > { %3306 = vrot.lane.b32.xlu1 %v3303_v20, %s5454_s12  ;;  %v2523_v36 = vpop.permute.xlu0 %2522 }
 0x230   : > { %2528 = vst.msk [vmem:[#allocation2 + $0x50] sm:$0xf] %vm2157_vm15, %v2523_v36 }
 0x231   : > { %v2558_v47 = vpop.permute.xlu1 %2557  ;;  %3304 = vrot.lane.b32.xlu0 %v3300_v32, %s5454_s12 }
 0x232   : > { %2562 = vst.msk [vmem:[#allocation2 + $0x5c] sm:$0xf] %vm2157_vm15, %v2558_v47 }
 0x233   : > { %3858 = vrot.lane.b32.xlu1 %v3855_v41, %s5455_s13  ;;  %v2556_v54 = vpop.permute.xlu0 %2555 }
 0x234   : > { %2561 = vst.msk [vmem:[#allocation2 + $0x58] sm:$0xf] %vm2157_vm15, %v2556_v54 }
 0x235   : > { %v2918_v56 = vpop.permute.xlu1 %2917  ;;  %3856 = vrot.lane.b32.xlu0 %v3845_v39, %s5455_s13 }
 0x236   : > { %2922 = vst.msk [vmem:[#allocation2 + $0x54] sm:$0xf] %vm2728_vm0, %v2918_v56 }
 0x237   : > { %3891 = vrot.lane.b32.xlu1 %v3888_v37, %s5455_s13  ;;  %v2916_v42 = vpop.permute.xlu0 %2915 }
 0x238   : > { %2921 = vst.msk [vmem:[#allocation2 + $0x50] sm:$0xf] %vm2728_vm0, %v2916_v42 }
 0x239   : > { %v2930_v61 = vpop.permute.xlu1 %2929  ;;  %3889 = vrot.lane.b32.xlu0 %v3879_v9, %s5455_s13 }
 0x23a   : > { %2934 = vst.msk [vmem:[#allocation2 + $0x5c] sm:$0xf] %vm2728_vm0, %v2930_v61 }
 0x23b   : > { %4180 = vrot.lane.b32.xlu1 %v4177_v58, %s5456_s24  ;;  %v2928_v51 = vpop.permute.xlu0 %2927 }
 0x23c   : > { %2933 = vst.msk [vmem:[#allocation2 + $0x58] sm:$0xf] %vm2728_vm0, %v2928_v51 }
 0x23d   : > { %v3211_v45 = vpop.permute.xlu1 %3210  ;;  %4178 = vrot.lane.b32.xlu0 %v4174_v7, %s5456_s24 }
 0x23e   : > { %3215 = vst.msk [vmem:[#allocation2 + $0x54] sm:$0xf] %vm3021_vm2, %v3211_v45 }
 0x23f   : > { %4192 = vrot.lane.b32.xlu1 %v5254_v62, %s5456_s24  ;;  %v3209_v49 = vpop.permute.xlu0 %3208 }
 0x240   : > { %3214 = vst.msk [vmem:[#allocation2 + $0x50] sm:$0xf] %vm3021_vm2, %v3209_v49 }
 0x241   : > { %v3232_v1 = vpop.permute.xlu1 %3231  ;;  %4190 = vrot.lane.b32.xlu0 %v5253_v0, %s5456_s24 }
 0x242   : > { %3236 = vst.msk [vmem:[#allocation2 + $0x5c] sm:$0xf] %vm3021_vm2, %v3232_v1 }
 0x243   : > { %v3230_v33 = vpop.permute.xlu0 %3229 }
 0x244   : > { %3235 = vst.msk [vmem:[#allocation2 + $0x58] sm:$0xf] %vm3021_vm2, %v3230_v33 }
 0x245   : > { %v3713_v52 = vpop.permute.xlu1 %3712 }
 0x246   : > { %3717 = vst.msk [vmem:[#allocation2 + $0x54] sm:$0xf] %vm3345_vm3, %v3713_v52 }
 0x247   : > { %v3711_v60 = vpop.permute.xlu0 %3710 }
 0x248   : > { %3716 = vst.msk [vmem:[#allocation2 + $0x50] sm:$0xf] %vm3345_vm3, %v3711_v60  ;;  %v5328_v4 = vpop.f32.mrf.mxu0 }
 0x249   : > { %v3746_v3 = vpop.permute.xlu1 %3745  ;;  %4563 = vst.msk [vmem:[%s7294_s6 + $0x10] sm:$0xff] %vm4560_vm6, %v5328_v4  ;;  %v4664_v15 = vmul.f32 %v5328_v4, %v5328_v4  ;;  %v4596_v21 = vsel %vm4560_vm6, %v5328_v4, 0.0 }
 0x24a   : > { %3750 = vst.msk [vmem:[#allocation2 + $0x5c] sm:$0xf] %vm3345_vm3, %v3746_v3  ;;  %v4433_v8 = vpop.f32.mrf.mxu0 }
 0x24b   : > { %v3744_v5 = vpop.permute.xlu0 %3743  ;;  %4561 = vst.msk [vmem:[%s7294_s6] sm:$0xff] %vm4560_vm6, %v4433_v8  ;;  %v4662_v13 = vmul.f32 %v4433_v8, %v4433_v8  ;;  %v4593_v16 = vsel %vm4560_vm6, %v4433_v8, 0.0  ;;  %v4697_v23 = vsel %vm4560_vm6, %v4664_v15, 0.0 }
 0x24c   : > { %3749 = vst.msk [vmem:[#allocation2 + $0x58] sm:$0xf] %vm3345_vm3, %v3744_v5  ;;  %v5329_v12 = vpop.f32.mrf.mxu0 }
 0x24d   : > { %v4106_v10 = vpop.permute.xlu1 %4105  ;;  %4564 = vst.msk [vmem:[%s7294_s6 + $0x18] sm:$0xff] %vm4560_vm6, %v5329_v12  ;;  %v4694_v20 = vsel %vm4560_vm6, %v4662_v13, 0.0  ;;  %v4665_v59 = vmul.f32 %v5329_v12, %v5329_v12  ;;  %v4598_v27 = vsel %vm4560_vm6, %v5329_v12, 0.0 }
 0x24e   : > { %4110 = vst.msk [vmem:[#allocation2 + $0x54] sm:$0xf] %vm3916_vm5, %v4106_v10  ;;  %v4436_v63 = vpop.f32.mrf.mxu0 }
 0x24f   : > { %v4104_v43 = vpop.permute.xlu0 %4103  ;;  %4562 = vst.msk [vmem:[%s7294_s6 + $0x8] sm:$0xff] %vm4560_vm6, %v4436_v63  ;;  %v4594_v17 = vsel %vm4560_vm6, %v4436_v63, 0.0  ;;  %v4663_v6 = vmul.f32 %v4436_v63, %v4436_v63  ;;  %v4699_v24 = vsel %vm4560_vm6, %v4665_v59, 0.0 }
 0x250   : > { %4109 = vst.msk [vmem:[#allocation2 + $0x50] sm:$0xf] %vm3916_vm5, %v4104_v43  ;;  %v4595_v18 = vadd.f32 %v4594_v17, %v4593_v16 }
 0x251   : > { %v4118_v38 = vpop.permute.xlu1 %4117  ;;  %v4695_v11 = vsel %vm4560_vm6, %v4663_v6, 0.0 }
 0x252   : > { %4122 = vst.msk [vmem:[#allocation2 + $0x5c] sm:$0xf] %vm3916_vm5, %v4118_v38  ;;  %v4597_v22 = vadd.f32 %v4596_v21, %v4595_v18  ;;  %v4696_v2 = vadd.f32 %v4695_v11, %v4694_v20 }
 0x253   : > { %v4116_v25 = vpop.permute.xlu0 %4115 }
 0x254   : > { %4121 = vst.msk [vmem:[#allocation2 + $0x58] sm:$0xf] %vm3916_vm5, %v4116_v25  ;;  %v4698_v30 = vadd.f32 %v4697_v23, %v4696_v2  ;;  %v4599_v31 = vadd.f32 %v4598_v27, %v4597_v22 }
 0x255   : > { %v2056_v28 = vpop.permute.xlu1 %2055 }
 0x256   : > { %2060 = vst.msk [vmem:[#allocation2 + $0x64] sm:$0xf] %vm1833_vm13, %v2056_v28  ;;  %v4700_v26 = vadd.f32 %v4699_v24, %v4698_v30 }
 0x257   : > { %v2054_v19 = vpop.permute.xlu0 %2053  ;;  %v5419_v32 = vld [vmem:[#allocation2 + $0x50] sm:$0xff]  }
 0x258   : > { %2059 = vst.msk [vmem:[#allocation2 + $0x60] sm:$0xf] %vm1833_vm13, %v2054_v19  ;;  %5346 = vmatprep.mubr.msk.bf16.mxu1 %vm4346_vm7, %v5419_v32 }
 0x259   : > { %v2077_v34 = vpop.permute.xlu1 %2076 }
 0x25a   : > { %2081 = vst.msk [vmem:[#allocation2 + $0x6c] sm:$0xf] %vm1833_vm13, %v2077_v34 }
 0x25b   : > { %v2075_v35 = vpop.permute.xlu0 %2074  ;;  %v5420_v36 = vld [vmem:[#allocation2 + $0x58] sm:$0xff]  }
 0x25c   : > { %2080 = vst.msk [vmem:[#allocation2 + $0x68] sm:$0xf] %vm1833_vm13, %v2075_v35  ;;  %5347 = vmatmul.mubr.msk.bf16.gmra.mxu1 %vm4346_vm7, %v5420_v36 }
 0x25d   : > { %v2593_v41 = vpop.permute.xlu1 %2592 }
 0x25e   : > { %2597 = vst.msk [vmem:[#allocation2 + $0x64] sm:$0xf] %vm2157_vm15, %v2593_v41 }
 0x25f   : > { %v2591_v14 = vpop.permute.xlu0 %2590 }
 0x260   : > { %2596 = vst.msk [vmem:[#allocation2 + $0x60] sm:$0xf] %vm2157_vm15, %v2591_v14 }
 0x261   : > { %v2632_v44 = vpop.permute.xlu1 %2631 }
 0x262   : > { %2636 = vst.msk [vmem:[#allocation2 + $0x6c] sm:$0xf] %vm2157_vm15, %v2632_v44 }
 0x263   : > { %v2630_v46 = vpop.permute.xlu0 %2629 }
 0x264   : > { %2635 = vst.msk [vmem:[#allocation2 + $0x68] sm:$0xf] %vm2157_vm15, %v2630_v46 }
 0x265   : > { %v2951_v47 = vpop.permute.xlu1 %2950 }
 0x266   : > { %2955 = vst.msk [vmem:[#allocation2 + $0x64] sm:$0xf] %vm2728_vm0, %v2951_v47 }
 0x267   : > { %v2949_v48 = vpop.permute.xlu0 %2948 }
 0x268   : > { %2954 = vst.msk [vmem:[#allocation2 + $0x60] sm:$0xf] %vm2728_vm0, %v2949_v48 }
 0x269   : > { %v2972_v39 = vpop.permute.xlu1 %2971 }
 0x26a   : > { %2976 = vst.msk [vmem:[#allocation2 + $0x6c] sm:$0xf] %vm2728_vm0, %v2972_v39 }
 0x26b   : > { %v2970_v50 = vpop.permute.xlu0 %2969 }
 0x26c   : > { %2975 = vst.msk [vmem:[#allocation2 + $0x68] sm:$0xf] %vm2728_vm0, %v2970_v50 }
 0x26d   : > { %v3244_v53 = vpop.permute.xlu1 %3243 }
 0x26e   : > { %3248 = vst.msk [vmem:[#allocation2 + $0x64] sm:$0xf] %vm3021_vm2, %v3244_v53 }
 0x26f   : > { %v3242_v54 = vpop.permute.xlu0 %3241 }
 0x270   : > { %3247 = vst.msk [vmem:[#allocation2 + $0x60] sm:$0xf] %vm3021_vm2, %v3242_v54  ;;  %v5332_v40 = vpop.f32.mrf.mxu0 }
 0x271   : > { %v3265_v37 = vpop.permute.xlu1 %3264  ;;  %4567 = vst.msk [vmem:[%s7294_s6 + $0x30] sm:$0xff] %vm4560_vm6, %v5332_v40  ;;  %v4668_v45 = vmul.f32 %v5332_v40, %v5332_v40  ;;  %v4604_v52 = vsel %vm4560_vm6, %v5332_v40, 0.0 }
 0x272   : > { %3269 = vst.msk [vmem:[#allocation2 + $0x6c] sm:$0xf] %vm3021_vm2, %v3265_v37  ;;  %v4449_v29 = vpop.f32.mrf.mxu0 }
 0x273   : > { %v3263_v55 = vpop.permute.xlu0 %3262  ;;  %4565 = vst.msk [vmem:[%s7294_s6 + $0x20] sm:$0xff] %vm4560_vm6, %v4449_v29  ;;  %v4600_v56 = vsel %vm4560_vm6, %v4449_v29, 0.0  ;;  %v4666_v9 = vmul.f32 %v4449_v29, %v4449_v29  ;;  %v4705_v10 = vsel %vm4560_vm6, %v4668_v45, 0.0 }
 0x274   : > { %3268 = vst.msk [vmem:[#allocation2 + $0x68] sm:$0xf] %vm3021_vm2, %v3263_v55  ;;  %v4601_v42 = vadd.f32 %v4600_v56, %v4599_v31  ;;  %v5333_v58 = vpop.f32.mrf.mxu0 }
 0x275   : > { %v3781_v57 = vpop.permute.xlu1 %3780  ;;  %v4701_v61 = vsel %vm4560_vm6, %v4666_v9, 0.0  ;;  %4568 = vst.msk [vmem:[%s7294_s6 + $0x38] sm:$0xff] %vm4560_vm6, %v5333_v58  ;;  %v4669_v60 = vmul.f32 %v5333_v58, %v5333_v58  ;;  %v4606_v12 = vsel %vm4560_vm6, %v5333_v58, 0.0 }
 0x276   : > { %3785 = vst.msk [vmem:[#allocation2 + $0x64] sm:$0xf] %vm3345_vm3, %v3781_v57  ;;  %v4702_v7 = vadd.f32 %v4701_v61, %v4700_v26  ;;  %v4452_v62 = vpop.f32.mrf.mxu0 }
 0x277   : > { %v3779_v51 = vpop.permute.xlu0 %3778  ;;  %4566 = vst.msk [vmem:[%s7294_s6 + $0x28] sm:$0xff] %vm4560_vm6, %v4452_v62  ;;  %v4602_v0 = vsel %vm4560_vm6, %v4452_v62, 0.0  ;;  %v4667_v49 = vmul.f32 %v4452_v62, %v4452_v62  ;;  %v4707_v15 = vsel %vm4560_vm6, %v4669_v60, 0.0 }
 0x278   : > { %3784 = vst.msk [vmem:[#allocation2 + $0x60] sm:$0xf] %vm3345_vm3, %v3779_v51  ;;  %v4603_v33 = vadd.f32 %v4602_v0, %v4601_v42 }
 0x279   : > { %v3820_v1 = vpop.permute.xlu1 %3819  ;;  %v4703_v3 = vsel %vm4560_vm6, %v4667_v49, 0.0 }
 0x27a   : > { %3824 = vst.msk [vmem:[#allocation2 + $0x6c] sm:$0xf] %vm3345_vm3, %v3820_v1  ;;  %v4605_v4 = vadd.f32 %v4604_v52, %v4603_v33  ;;  %v4704_v5 = vadd.f32 %v4703_v3, %v4702_v7 }
 0x27b   : > { %v3818_v8 = vpop.permute.xlu0 %3817 }
 0x27c   : > { %3823 = vst.msk [vmem:[#allocation2 + $0x68] sm:$0xf] %vm3345_vm3, %v3818_v8  ;;  %v4706_v43 = vadd.f32 %v4705_v10, %v4704_v5  ;;  %v4607_v63 = vadd.f32 %v4606_v12, %v4605_v4 }
 0x27d   : > { %v4139_v13 = vpop.permute.xlu1 %4138 }
 0x27e   : > { %4143 = vst.msk [vmem:[#allocation2 + $0x64] sm:$0xf] %vm3916_vm5, %v4139_v13  ;;  %v4708_v17 = vadd.f32 %v4707_v15, %v4706_v43 }
 0x27f   : > { %v4137_v16 = vpop.permute.xlu0 %4136 }
 0x280   : > { %4142 = vst.msk [vmem:[#allocation2 + $0x60] sm:$0xf] %vm3916_vm5, %v4137_v16 }
 0x281   : > { %v4160_v6 = vpop.permute.xlu1 %4159 }
 0x282   : > { %4164 = vst.msk [vmem:[#allocation2 + $0x6c] sm:$0xf] %vm3916_vm5, %v4160_v6 }
 0x283   : > { %v4158_v38 = vpop.permute.xlu0 %4157 }
 0x284   : > { %4163 = vst.msk [vmem:[#allocation2 + $0x68] sm:$0xf] %vm3916_vm5, %v4158_v38 }
 0x285   : > { %v2098_v18 = vpop.permute.xlu1 %2097 }
 0x286   : > { %2102 = vst.msk [vmem:[#allocation2 + $0x74] sm:$0xf] %vm1833_vm13, %v2098_v18 }
 0x287   : > { %v2096_v21 = vpop.permute.xlu0 %2095  ;;  %v5421_v20 = vld [vmem:[#allocation2 + $0x60] sm:$0xff]  }
 0x288   : > { %2101 = vst.msk [vmem:[#allocation2 + $0x70] sm:$0xf] %vm1833_vm13, %v2096_v21  ;;  %5350 = vmatprep.mubr.msk.bf16.mxu1 %vm4346_vm7, %v5421_v20 }
 0x289   : > { %v2119_v59 = vpop.permute.xlu1 %2118 }
 0x28a   : > { %2123 = vst.msk [vmem:[#allocation2 + $0x7c] sm:$0xf] %vm1833_vm13, %v2119_v59 }
 0x28b   : > { %v2117_v11 = vpop.permute.xlu0 %2116  ;;  %v5422_v22 = vld [vmem:[#allocation2 + $0x68] sm:$0xff]  }
 0x28c   : > { %2122 = vst.msk [vmem:[#allocation2 + $0x78] sm:$0xf] %vm1833_vm13, %v2117_v11  ;;  %5351 = vmatmul.mubr.msk.bf16.gmra.mxu1 %vm4346_vm7, %v5422_v22 }
 0x28d   : > { %v2671_v2 = vpop.permute.xlu1 %2670 }
 0x28e   : > { %2675 = vst.msk [vmem:[#allocation2 + $0x74] sm:$0xf] %vm2157_vm15, %v2671_v2 }
 0x28f   : > { %v2669_v25 = vpop.permute.xlu0 %2668 }
 0x290   : > { %2674 = vst.msk [vmem:[#allocation2 + $0x70] sm:$0xf] %vm2157_vm15, %v2669_v25 }
 0x291   : > { %v2704_v23 = vpop.permute.xlu1 %2703 }
 0x292   : > { %2708 = vst.msk [vmem:[#allocation2 + $0x7c] sm:$0xf] %vm2157_vm15, %v2704_v23 }
 0x293   : > { %v2702_v27 = vpop.permute.xlu0 %2701 }
 0x294   : > { %2707 = vst.msk [vmem:[#allocation2 + $0x78] sm:$0xf] %vm2157_vm15, %v2702_v27 }
 0x295   : > { %v2993_v28 = vpop.permute.xlu1 %2992 }
 0x296   : > { %2997 = vst.msk [vmem:[#allocation2 + $0x74] sm:$0xf] %vm2728_vm0, %v2993_v28 }
 0x297   : > { %v2991_v30 = vpop.permute.xlu0 %2990 }
 0x298   : > { %2996 = vst.msk [vmem:[#allocation2 + $0x70] sm:$0xf] %vm2728_vm0, %v2991_v30  ;;  %v5336_v24 = vpop.f32.mrf.mxu0 }
 0x299   : > { %v3005_v31 = vpop.permute.xlu1 %3004  ;;  %4571 = vst.msk [vmem:[%s7294_s6 + $0x50] sm:$0xff] %vm4560_vm6, %v5336_v24  ;;  %v4672_v48 = vmul.f32 %v5336_v24, %v5336_v24  ;;  %v4612_v37 = vsel %vm4560_vm6, %v5336_v24, 0.0 }
 0x29a   : > { %3009 = vst.msk [vmem:[#allocation2 + $0x7c] sm:$0xf] %vm2728_vm0, %v3005_v31  ;;  %v4465_v32 = vpop.f32.mrf.mxu0 }
 0x29b   : > { %v3003_v19 = vpop.permute.xlu0 %3002  ;;  %4569 = vst.msk [vmem:[%s7294_s6 + $0x40] sm:$0xff] %vm4560_vm6, %v4465_v32  ;;  %v4608_v26 = vsel %vm4560_vm6, %v4465_v32, 0.0  ;;  %v4670_v34 = vmul.f32 %v4465_v32, %v4465_v32  ;;  %v4713_v57 = vsel %vm4560_vm6, %v4672_v48, 0.0 }
 0x29c   : > { %3008 = vst.msk [vmem:[#allocation2 + $0x78] sm:$0xf] %vm2728_vm0, %v3003_v19  ;;  %v4609_v36 = vadd.f32 %v4608_v26, %v4607_v63  ;;  %v5337_v41 = vpop.f32.mrf.mxu0 }
 0x29d   : > { %v3286_v35 = vpop.permute.xlu1 %3285  ;;  %v4709_v14 = vsel %vm4560_vm6, %v4670_v34, 0.0  ;;  %4572 = vst.msk [vmem:[%s7294_s6 + $0x58] sm:$0xff] %vm4560_vm6, %v5337_v41  ;;  %v4673_v40 = vmul.f32 %v5337_v41, %v5337_v41  ;;  %v4614_v42 = vsel %vm4560_vm6, %v5337_v41, 0.0 }
 0x29e   : > { %3290 = vst.msk [vmem:[#allocation2 + $0x74] sm:$0xf] %vm3021_vm2, %v3286_v35  ;;  %v4710_v44 = vadd.f32 %v4709_v14, %v4708_v17  ;;  %v4468_v47 = vpop.f32.mrf.mxu0 }
 0x29f   : > { %v3284_v46 = vpop.permute.xlu0 %3283  ;;  %4570 = vst.msk [vmem:[%s7294_s6 + $0x48] sm:$0xff] %vm4560_vm6, %v4468_v47  ;;  %v4610_v39 = vsel %vm4560_vm6, %v4468_v47, 0.0  ;;  %v4671_v50 = vmul.f32 %v4468_v47, %v4468_v47  ;;  %v4715_v51 = vsel %vm4560_vm6, %v4673_v40, 0.0 }
 0x2a0   : > { %3289 = vst.msk [vmem:[#allocation2 + $0x70] sm:$0xf] %vm3021_vm2, %v3284_v46  ;;  %v4611_v54 = vadd.f32 %v4610_v39, %v4609_v36 }
 0x2a1   : > { %v3307_v53 = vpop.permute.xlu1 %3306  ;;  %v4711_v55 = vsel %vm4560_vm6, %v4671_v50, 0.0 }
 0x2a2   : > { %3311 = vst.msk [vmem:[#allocation2 + $0x7c] sm:$0xf] %vm3021_vm2, %v3307_v53  ;;  %v4613_v29 = vadd.f32 %v4612_v37, %v4611_v54  ;;  %v4712_v56 = vadd.f32 %v4711_v55, %v4710_v44 }
 0x2a3   : > { %v3305_v9 = vpop.permute.xlu0 %3304 }
 0x2a4   : > { %3310 = vst.msk [vmem:[#allocation2 + $0x78] sm:$0xf] %vm3021_vm2, %v3305_v9  ;;  %v4714_v61 = vadd.f32 %v4713_v57, %v4712_v56  ;;  %v4615_v7 = vadd.f32 %v4614_v42, %v4613_v29 }
 0x2a5   : > { %v3859_v58 = vpop.permute.xlu1 %3858 }
 0x2a6   : > { %3863 = vst.msk [vmem:[#allocation2 + $0x74] sm:$0xf] %vm3345_vm3, %v3859_v58  ;;  %v4716_v45 = vadd.f32 %v4715_v51, %v4714_v61 }
 0x2a7   : > { %v3857_v62 = vpop.permute.xlu0 %3856 }
 0x2a8   : > { %3862 = vst.msk [vmem:[#allocation2 + $0x70] sm:$0xf] %vm3345_vm3, %v3857_v62 }
 0x2a9   : > { %v3892_v0 = vpop.permute.xlu1 %3891 }
 0x2aa   : > { %3896 = vst.msk [vmem:[#allocation2 + $0x7c] sm:$0xf] %vm3345_vm3, %v3892_v0 }
 0x2ab   : > { %v3890_v49 = vpop.permute.xlu0 %3889 }
 0x2ac   : > { %3895 = vst.msk [vmem:[#allocation2 + $0x78] sm:$0xf] %vm3345_vm3, %v3890_v49 }
 0x2ad   : > { %v4181_v1 = vpop.permute.xlu1 %4180 }
 0x2ae   : > { %4185 = vst.msk [vmem:[#allocation2 + $0x74] sm:$0xf] %vm3916_vm5, %v4181_v1 }
 0x2af   : > { %v4179_v33 = vpop.permute.xlu0 %4178 }
 0x2b0   : > { %4184 = vst.msk [vmem:[#allocation2 + $0x70] sm:$0xf] %vm3916_vm5, %v4179_v33 }
 0x2b1   : > { %v4193_v52 = vpop.permute.xlu1 %4192 }
 0x2b2   : > { %4197 = vst.msk [vmem:[#allocation2 + $0x7c] sm:$0xf] %vm3916_vm5, %v4193_v52 }
 0x2b3   : > { %v4191_v60 = vpop.permute.xlu0 %4190 }
 0x2b4   : > { %4196 = vst.msk [vmem:[#allocation2 + $0x78] sm:$0xf] %vm3916_vm5, %v4191_v60 }
 0x2b7   : > { %v5423_v3 = vld [vmem:[#allocation2 + $0x70] sm:$0xff]  }
 0x2b8   : > { %5354 = vmatprep.mubr.msk.bf16.mxu1 %vm4346_vm7, %v5423_v3 }
 0x2bb   : > { %v5424_v4 = vld [vmem:[#allocation2 + $0x78] sm:$0xff]  }
 0x2bc   : > { %5355 = vmatmul.mubr.msk.bf16.gmra.mxu1 %vm4346_vm7, %v5424_v4 }
 0x2c0   : > { %v5340_v5 = vpop.f32.mrf.mxu0 }
 0x2c1   : > { %4575 = vst.msk [vmem:[%s7294_s6 + $0x70] sm:$0xff] %vm4560_vm6, %v5340_v5  ;;  %v4676_v17 = vmul.f32 %v5340_v5, %v5340_v5  ;;  %v4620_v21 = vsel %vm4560_vm6, %v5340_v5, 0.0 }
 0x2c2   : > { %v4481_v8 = vpop.f32.mrf.mxu0 }
 0x2c3   : > { %4573 = vst.msk [vmem:[%s7294_s6 + $0x60] sm:$0xff] %vm4560_vm6, %v4481_v8  ;;  %v4616_v10 = vsel %vm4560_vm6, %v4481_v8, 0.0  ;;  %v4674_v12 = vmul.f32 %v4481_v8, %v4481_v8  ;;  %v4721_v2 = vsel %vm4560_vm6, %v4676_v17, 0.0 }
 0x2c4   : > { %v4617_v13 = vadd.f32 %v4616_v10, %v4615_v7  ;;  %v5341_v43 = vpop.f32.mrf.mxu0 }
 0x2c5   : > { %v4717_v63 = vsel %vm4560_vm6, %v4674_v12, 0.0  ;;  %4576 = vst.msk [vmem:[%s7294_s6 + $0x78] sm:$0xff] %vm4560_vm6, %v5341_v43  ;;  %v4677_v20 = vmul.f32 %v5341_v43, %v5341_v43  ;;  %v4622_v25 = vsel %vm4560_vm6, %v5341_v43, 0.0 }
 0x2c6   : > { %v4718_v15 = vadd.f32 %v4717_v63, %v4716_v45  ;;  %v4484_v16 = vpop.f32.mrf.mxu0 }
 0x2c7   : > { %4574 = vst.msk [vmem:[%s7294_s6 + $0x68] sm:$0xff] %vm4560_vm6, %v4484_v16  ;;  %v4618_v6 = vsel %vm4560_vm6, %v4484_v16, 0.0  ;;  %v4675_v38 = vmul.f32 %v4484_v16, %v4484_v16  ;;  %v4723_v28 = vsel %vm4560_vm6, %v4677_v20, 0.0 }
 0x2c8   : > { %v4619_v18 = vadd.f32 %v4618_v6, %v4617_v13 }
 0x2c9   : > { %v4719_v59 = vsel %vm4560_vm6, %v4675_v38, 0.0 }
 0x2ca   : > { %v4621_v11 = vadd.f32 %v4620_v21, %v4619_v18  ;;  %v4720_v22 = vadd.f32 %v4719_v59, %v4718_v15 }
 0x2cc   : > { %v4722_v23 = vadd.f32 %v4721_v2, %v4720_v22  ;;  %v4623_v27 = vadd.f32 %v4622_v25, %v4621_v11 }
 0x2ce   : > { %v4724_v30 = vadd.f32 %v4723_v28, %v4722_v23 }
 0x2ec   : > { %v5344_v31 = vpop.f32.mrf.mxu1 }
 0x2ed   : > { %4579 = vst.msk [vmem:[%s7294_s6 + $0x90] sm:$0xff] %vm4560_vm6, %v5344_v31  ;;  %v4680_v14 = vmul.f32 %v5344_v31, %v5344_v31  ;;  %v4628_v48 = vsel %vm4560_vm6, %v5344_v31, 0.0 }
 0x2ee   : > { %v4497_v24 = vpop.f32.mrf.mxu1 }
 0x2ef   : > { %4577 = vst.msk [vmem:[%s7294_s6 + $0x80] sm:$0xff] %vm4560_vm6, %v4497_v24  ;;  %v4624_v19 = vsel %vm4560_vm6, %v4497_v24, 0.0  ;;  %v4678_v32 = vmul.f32 %v4497_v24, %v4497_v24  ;;  %v4729_v37 = vsel %vm4560_vm6, %v4680_v14, 0.0 }
 0x2f0   : > { %v4625_v26 = vadd.f32 %v4624_v19, %v4623_v27  ;;  %v5345_v34 = vpop.f32.mrf.mxu1 }
 0x2f1   : > { %v4725_v35 = vsel %vm4560_vm6, %v4678_v32, 0.0  ;;  %4580 = vst.msk [vmem:[%s7294_s6 + $0x98] sm:$0xff] %vm4560_vm6, %v5345_v34  ;;  %v4681_v39 = vmul.f32 %v5345_v34, %v5345_v34  ;;  %v4630_v40 = vsel %vm4560_vm6, %v5345_v34, 0.0 }
 0x2f2   : > { %v4726_v36 = vadd.f32 %v4725_v35, %v4724_v30  ;;  %v4500_v41 = vpop.f32.mrf.mxu1 }
 0x2f3   : > { %4578 = vst.msk [vmem:[%s7294_s6 + $0x88] sm:$0xff] %vm4560_vm6, %v4500_v41  ;;  %v4626_v44 = vsel %vm4560_vm6, %v4500_v41, 0.0  ;;  %v4679_v46 = vmul.f32 %v4500_v41, %v4500_v41  ;;  %v4731_v56 = vsel %vm4560_vm6, %v4681_v39, 0.0 }
 0x2f4   : > { %v4627_v47 = vadd.f32 %v4626_v44, %v4625_v26 }
 0x2f5   : > { %v4727_v50 = vsel %vm4560_vm6, %v4679_v46, 0.0 }
 0x2f6   : > { %v4629_v53 = vadd.f32 %v4628_v48, %v4627_v47  ;;  %v4728_v54 = vadd.f32 %v4727_v50, %v4726_v36 }
 0x2f8   : > { %v4730_v55 = vadd.f32 %v4729_v37, %v4728_v54  ;;  %v4631_v29 = vadd.f32 %v4630_v40, %v4629_v53 }
 0x2fa   : > { %v4732_v9 = vadd.f32 %v4731_v56, %v4730_v55 }
 0x31c   : > { %v5348_v57 = vpop.f32.mrf.mxu1 }
 0x31d   : > { %4583 = vst.msk [vmem:[%s7294_s6 + $0xb0] sm:$0xff] %vm4560_vm6, %v5348_v57  ;;  %v4684_v49 = vmul.f32 %v5348_v57, %v5348_v57  ;;  %v4636_v60 = vsel %vm4560_vm6, %v5348_v57, 0.0 }
 0x31e   : > { %v4513_v42 = vpop.f32.mrf.mxu1 }
 0x31f   : > { %4581 = vst.msk [vmem:[%s7294_s6 + $0xa0] sm:$0xff] %vm4560_vm6, %v4513_v42  ;;  %v4632_v58 = vsel %vm4560_vm6, %v4513_v42, 0.0  ;;  %v4682_v61 = vmul.f32 %v4513_v42, %v4513_v42  ;;  %v4737_v10 = vsel %vm4560_vm6, %v4684_v49, 0.0 }
 0x320   : > { %v4633_v7 = vadd.f32 %v4632_v58, %v4631_v29  ;;  %v5349_v51 = vpop.f32.mrf.mxu1 }
 0x321   : > { %v4733_v62 = vsel %vm4560_vm6, %v4682_v61, 0.0  ;;  %4584 = vst.msk [vmem:[%s7294_s6 + $0xb8] sm:$0xff] %vm4560_vm6, %v5349_v51  ;;  %v4685_v3 = vmul.f32 %v5349_v51, %v5349_v51  ;;  %v4638_v12 = vsel %vm4560_vm6, %v5349_v51, 0.0 }
 0x322   : > { %v4734_v45 = vadd.f32 %v4733_v62, %v4732_v9  ;;  %v4516_v0 = vpop.f32.mrf.mxu1 }
 0x323   : > { %4582 = vst.msk [vmem:[%s7294_s6 + $0xa8] sm:$0xff] %vm4560_vm6, %v4516_v0  ;;  %v4634_v1 = vsel %vm4560_vm6, %v4516_v0, 0.0  ;;  %v4683_v33 = vmul.f32 %v4516_v0, %v4516_v0  ;;  %v4739_v63 = vsel %vm4560_vm6, %v4685_v3, 0.0 }
 0x324   : > { %v4635_v52 = vadd.f32 %v4634_v1, %v4633_v7 }
 0x325   : > { %v4735_v4 = vsel %vm4560_vm6, %v4683_v33, 0.0 }
 0x326   : > { %v4637_v5 = vadd.f32 %v4636_v60, %v4635_v52  ;;  %v4736_v8 = vadd.f32 %v4735_v4, %v4734_v45 }
 0x328   : > { %v4738_v13 = vadd.f32 %v4737_v10, %v4736_v8  ;;  %v4639_v43 = vadd.f32 %v4638_v12, %v4637_v5 }
 0x32a   : > { %v4740_v15 = vadd.f32 %v4739_v63, %v4738_v13 }
 0x34c   : > { %v5352_v16 = vpop.f32.mrf.mxu1 }
 0x34d   : > { %4587 = vst.msk [vmem:[%s7294_s6 + $0xd0] sm:$0xff] %vm4560_vm6, %v5352_v16  ;;  %v4688_v27 = vmul.f32 %v5352_v16, %v5352_v16  ;;  %v4644_v30 = vsel %vm4560_vm6, %v5352_v16, 0.0 }
 0x34e   : > { %v4529_v17 = vpop.f32.mrf.mxu1 }
 0x34f   : > { %4585 = vst.msk [vmem:[%s7294_s6 + $0xc0] sm:$0xff] %vm4560_vm6, %v4529_v17  ;;  %v4686_v18 = vmul.f32 %v4529_v17, %v4529_v17  ;;  %v4640_v21 = vsel %vm4560_vm6, %v4529_v17, 0.0  ;;  %v4745_v19 = vsel %vm4560_vm6, %v4688_v27, 0.0 }
 0x350   : > { %v5353_v6 = vpop.f32.mrf.mxu1  ;;  %v4641_v22 = vadd.f32 %v4640_v21, %v4639_v43 }
 0x351   : > { %4588 = vst.msk [vmem:[%s7294_s6 + $0xd8] sm:$0xff] %vm4560_vm6, %v5353_v6  ;;  %v4741_v59 = vsel %vm4560_vm6, %v4686_v18, 0.0  ;;  %v4689_v32 = vmul.f32 %v5353_v6, %v5353_v6  ;;  %v4646_v35 = vsel %vm4560_vm6, %v5353_v6, 0.0 }
 0x352   : > { %v4532_v38 = vpop.f32.mrf.mxu1  ;;  %v4742_v25 = vadd.f32 %v4741_v59, %v4740_v15 }
 0x353   : > { %4586 = vst.msk [vmem:[%s7294_s6 + $0xc8] sm:$0xff] %vm4560_vm6, %v4532_v38  ;;  %v4687_v20 = vmul.f32 %v4532_v38, %v4532_v38  ;;  %v4642_v11 = vsel %vm4560_vm6, %v4532_v38, 0.0  ;;  %v4747_v46 = vsel %vm4560_vm6, %v4689_v32, 0.0 }
 0x354   : > { %v4643_v23 = vadd.f32 %v4642_v11, %v4641_v22 }
 0x355   : > { %v4743_v2 = vsel %vm4560_vm6, %v4687_v20, 0.0 }
 0x356   : > { %v4744_v28 = vadd.f32 %v4743_v2, %v4742_v25  ;;  %v4645_v31 = vadd.f32 %v4644_v30, %v4643_v23 }
 0x358   : > { %v4746_v26 = vadd.f32 %v4745_v19, %v4744_v28  ;;  %v4647_v14 = vadd.f32 %v4646_v35, %v4645_v31 }
 0x35a   : > { %v4748_v39 = vadd.f32 %v4747_v46, %v4746_v26 }
 0x37c   : > { %v5356_v24 = vpop.f32.mrf.mxu1 }
 0x37d   : > { %4591 = vst.msk [vmem:[%s7294_s6 + $0xf0] sm:$0xff] %vm4560_vm6, %v5356_v24  ;;  %v4692_v53 = vmul.f32 %v5356_v24, %v5356_v24  ;;  %v4652_v29 = vsel %vm4560_vm6, %v5356_v24, 0.0 }
 0x37e   : > { %v4545_v34 = vpop.f32.mrf.mxu1 }
 0x37f   : > { %4589 = vst.msk [vmem:[%s7294_s6 + $0xe0] sm:$0xff] %vm4560_vm6, %v4545_v34  ;;  %v4648_v36 = vsel %vm4560_vm6, %v4545_v34, 0.0  ;;  %v4690_v41 = vmul.f32 %v4545_v34, %v4545_v34  ;;  %v4753_v58 = vsel %vm4560_vm6, %v4692_v53, 0.0 }
 0x380   : > { %v5357_v44 = vpop.f32.mrf.mxu1  ;;  %v4649_v48 = vadd.f32 %v4648_v36, %v4647_v14 }
 0x381   : > { %v4749_v47 = vsel %vm4560_vm6, %v4690_v41, 0.0  ;;  %4592 = vst.msk [vmem:[%s7294_s6 + $0xf8] sm:$0xff] %vm4560_vm6, %v5357_v44  ;;  %v4693_v56 = vmul.f32 %v5357_v44, %v5357_v44  ;;  %v4654_v61 = vsel %vm4560_vm6, %v5357_v44, 0.0 }
 0x382   : > { %v4548_v50 = vpop.f32.mrf.mxu1  ;;  %v4750_v40 = vadd.f32 %v4749_v47, %v4748_v39 }
 0x383   : > { %4590 = vst.msk [vmem:[%s7294_s6 + $0xe8] sm:$0xff] %vm4560_vm6, %v4548_v50  ;;  %v4650_v54 = vsel %vm4560_vm6, %v4548_v50, 0.0  ;;  %v4691_v37 = vmul.f32 %v4548_v50, %v4548_v50  ;;  %v4755_v62 = vsel %vm4560_vm6, %v4693_v56, 0.0 }
 0x384   : > { %v4651_v55 = vadd.f32 %v4650_v54, %v4649_v48 }
 0x385   : > { %v4751_v9 = vsel %vm4560_vm6, %v4691_v37, 0.0 }
 0x386   : > { %v4653_v57 = vadd.f32 %v4652_v29, %v4651_v55  ;;  %v4752_v42 = vadd.f32 %v4751_v9, %v4750_v40 }
 0x388   : > { %v4655_v7 = vadd.f32 %v4654_v61, %v4653_v57  ;;  %v4754_v51 = vadd.f32 %v4753_v58, %v4752_v42 }
 0x38a   : > { %v4656_v45 = vrot.slane %v4655_v7, 4  ;;  %v4756_v0 = vadd.f32 %v4755_v62, %v4754_v51 }
 0x38c   : > { %v4657_v49 = vadd.f32 %v4656_v45, %v4655_v7  ;;  %v4757_v1 = vrot.slane %v4756_v0, 4 }
 0x38e   : > { %v4658_v33 = vrot.slane %v4657_v49, 2  ;;  %v4758_v52 = vadd.f32 %v4757_v1, %v4756_v0 }
 0x390   : > { %v4659_v60 = vadd.f32 %v4658_v33, %v4657_v49  ;;  %v4759_v3 = vrot.slane %v4758_v52, 2 }
 0x392   : > { %v4660_v4 = vrot.slane %v4659_v60, 1  ;;  %v4760_v5 = vadd.f32 %v4759_v3, %v4758_v52 }
 0x394   : > { %v4661_v8 = vadd.f32 %v4660_v4, %v4659_v60  ;;  %v4761_v10 = vrot.slane %v4760_v5, 1 }
 0x396   : > { %v4762_v12 = vadd.f32 %v4761_v10, %v4760_v5  ;;  %4763 = vst.msk [vmem:[%s688_s11] sm:$0xff] %vm4560_vm6, %v4661_v8 }
 0x398   : > { %4764 = vst.msk [vmem:[%s692_s14] sm:$0xff] %vm4560_vm6, %v4762_v12 }
 0x399 PF: > { %p12_p10 = scmp.ge.s32.totalorder %s5501_s19, 4   ;;  %s7524_s15 = smov %s5443_s16 }
 0x39a   : > { %s7525_s16 = smov %s5510_s22  ;;  %s7526_s17 = smov %s5501_s19 }
 0x39b   :  { %14 = sbr.rel (!%p12_p10) target bundleno = 2 (0x2), region = 130 }

</bundles_post_ra>
